<compile_context>
chip_gen: v5e
topology: v5e:2x2
jax: 0.10.0
libtpu: 0.0.40
codegen_flags: <defaults>
</compile_context>

<pallas_src>
import math

import jax
import jax.numpy as jnp
from jax import lax
from jax.experimental import pallas as pl
from jax.experimental.pallas import tpu as pltpu

NUM_EXPERTS = 4
TOP_K = 2
GAT_HEADS = 4
WT_COLS = 8           # combine-weight slab lane width (>= NUM_EXPERTS)


def _round_up(x, m):
    return (x + m - 1) // m * m


# --------------------------------------------------------------------------
# In-kernel GELU (tanh form).  tanh goes to the EUP slot; the remaining f32
# polynomial is ~8 VALU ops/element vs ~14 for the erf-series form, which was
# the saturating slot at D=128.  Matches jax.nn.gelu(x, approximate=True).
# --------------------------------------------------------------------------
def _gelu_tanh(x):
    c = 0.7978845608028654            # sqrt(2 / pi)
    inner = c * (x + 0.044715 * (x * x * x))
    return 0.5 * x * (1.0 + jnp.tanh(inner))


# --------------------------------------------------------------------------
# Pallas kernel: for each token tile, statically-unrolled loop over experts.
# Experts with no routed token in the tile are skipped entirely (SMEM mask).
# The first active expert stores directly into o_ref; later active experts
# accumulate.  A tile with no active expert (pure padding) writes zeros.
# --------------------------------------------------------------------------
def moe_expert_combine_kernel(mask_ref, first_ref, x_ref, w1_ref, b1_ref,
                              w2_ref, b2_ref, wt_ref, o_ref):
    i = pl.program_id(0)
    fe = first_ref[i]                       # first active expert id, E if none
    num_experts = w1_ref.shape[0]

    @pl.when(fe >= num_experts)             # all-padding tile
    def _():
        o_ref[...] = jnp.zeros_like(o_ref)

    x = x_ref[...]                          # (tile_t, D) bf16
    wt = wt_ref[...]                        # (tile_t, WT_COLS) f32

    for e in range(num_experts):            # static unroll (E is small)
        @pl.when(mask_ref[i, e] != 0)
        def _(e=e):
            h = jnp.dot(x, w1_ref[e], preferred_element_type=jnp.float32)
            h = _gelu_tanh(h + b1_ref[e])                       # f32, EUP tanh
            y = jnp.dot(h.astype(jnp.bfloat16), w2_ref[e],
                        preferred_element_type=jnp.float32) + b2_ref[e]
            yw = (wt[:, e:e + 1] * y).astype(o_ref.dtype)

            @pl.when(fe == e)               # first active expert: plain store
            def _():
                o_ref[...] = yw

            @pl.when(fe != e)               # later experts: accumulate
            def _():
                o_ref[...] += yw


def moe_combine(x_flat, w1, b1, w2, b2, weights, *, tile_t=256):
    """out[t] = sum_e weights[t, e] * ExpertMLP_e(x_flat[t])."""
    T, D = x_flat.shape
    E, _, H = w1.shape
    out_dtype = x_flat.dtype

    # Token tiling: 256 rows -> >= 2 grid steps/TensorCore at small T (keeps the
    # BlockSpec pipeline busy on v7x megacore) while staying MXU-friendly.
    tile_t = max(128, min(tile_t, _round_up(T, 128)))
    T_pad = _round_up(T, tile_t)
    num_tiles = T_pad // tile_t

    # bf16 MXU inputs, f32 accumulation (also halves weight/activation DMA).
    x_p = jnp.pad(x_flat, ((0, T_pad - T), (0, 0))).astype(jnp.bfloat16)
    w1b = w1.astype(jnp.bfloat16)
    w2b = w2.astype(jnp.bfloat16)
    b1r = b1.reshape(E, 1, H).astype(jnp.float32)
    b2r = b2.reshape(E, 1, D).astype(jnp.float32)

    # Narrow combine-weight slab: (T_pad, WT_COLS) f32, column e = expert e's
    # weight.  Block last dim == full array dim, so the (8,128) rule is met.
    wt_p = jnp.zeros((T_pad, WT_COLS), jnp.float32)
    wt_p = wt_p.at[:T, :E].set(weights.astype(jnp.float32))

    # Scalar-prefetched routing metadata:
    #  * mask[i, e]  != 0  -> some token in tile i routes to expert e
    #  * first_e[i]  = first active expert of tile i (E if the tile is all pad)
    mask = (jnp.abs(wt_p[:, :E]).reshape(num_tiles, tile_t, E).max(axis=1) > 0.0)
    mask_i = mask.astype(jnp.int32)
    first_e = jnp.where(mask.any(axis=1), jnp.argmax(mask, axis=1),
                        E).astype(jnp.int32)

    out_p = pl.pallas_call(
        moe_expert_combine_kernel,
        out_shape=jax.ShapeDtypeStruct((T_pad, D), out_dtype),
        grid_spec=pltpu.PrefetchScalarGridSpec(
            num_scalar_prefetch=2,
            grid=(num_tiles,),
            in_specs=[
                pl.BlockSpec((tile_t, D), lambda i, m, f: (i, 0)),        # x tile
                pl.BlockSpec((E, D, H), lambda i, m, f: (0, 0, 0)),       # W1 (resident)
                pl.BlockSpec((E, 1, H), lambda i, m, f: (0, 0, 0)),       # b1
                pl.BlockSpec((E, H, D), lambda i, m, f: (0, 0, 0)),       # W2 (resident)
                pl.BlockSpec((E, 1, D), lambda i, m, f: (0, 0, 0)),       # b2
                pl.BlockSpec((tile_t, WT_COLS), lambda i, m, f: (i, 0)),  # combine wts
            ],
            out_specs=pl.BlockSpec((tile_t, D), lambda i, m, f: (i, 0)),
        ),
        compiler_params=pltpu.CompilerParams(
            dimension_semantics=("parallel",)),
    )(mask_i, first_e, x_p, w1b, b1r, w2b, b2r, wt_p)
    return out_p[:T]


# --------------------------------------------------------------------------
# GNN gate glue (plain JAX): GATConv(D -> num_experts, heads=4, concat=True,
# add_self_loops=True, negative_slope=0.2) + LayerNorm + mean(dim=-1).
# --------------------------------------------------------------------------
def gat_conv(x, edge_index, lin_w, att_src, att_dst, bias, heads, out_ch):
    n = x.shape[0]
    xw = (x @ lin_w.T).reshape(n, heads, out_ch)
    a_src = (xw * att_src[None]).sum(-1)                      # (n, heads)
    a_dst = (xw * att_dst[None]).sum(-1)
    loops = jnp.arange(n, dtype=edge_index.dtype)
    src = jnp.concatenate([edge_index[0], loops])             # add self-loops
    dst = jnp.concatenate([edge_index[1], loops])
    logits = jax.nn.leaky_relu(a_src[src] + a_dst[dst], negative_slope=0.2)
    lmax = jax.ops.segment_max(logits, dst, num_segments=n)
    ex = jnp.exp(logits - lmax[dst])
    denom = jax.ops.segment_sum(ex, dst, num_segments=n)
    alpha = ex / (denom[dst] + 1e-16)
    msg = alpha[:, :, None] * xw[src]
    out = jax.ops.segment_sum(msg, dst, num_segments=n)       # (n, heads, out)
    return out.reshape(n, heads * out_ch) + bias


def layer_norm(x, gamma, beta, eps=1e-5):
    mu = x.mean(-1, keepdims=True)
    var = ((x - mu) ** 2).mean(-1, keepdims=True)
    return (x - mu) * lax.rsqrt(var + eps) * gamma + beta


def gnn_moe_forward(x, edge_index, params):
    B, N, D = x.shape
    T = B * N
    x_flat = x.reshape(T, D)

    # --- gate: GATConv + LayerNorm + mean over channels -> (B, N, 1) ---
    g = gat_conv(x_flat, edge_index, params["gat_w"], params["att_src"],
                 params["att_dst"], params["gat_b"], GAT_HEADS, NUM_EXPERTS)
    g = layer_norm(g, params["ln_g"], params["ln_b"])
    scores = g.mean(-1).reshape(B, N, -1)                     # (B, N, 1)

    # --- top-k routing (k = min(top_k, 1) = 1, exactly as written) ---
    k = min(TOP_K, scores.shape[-1])
    topk_scores, topk_indices = lax.top_k(scores, k)
    topk_scores = jax.nn.softmax(topk_scores, axis=-1)        # -> all ones

    # dense per-token per-expert combine weights (0 if expert not selected)
    onehot = jax.nn.one_hot(topk_indices, NUM_EXPERTS, dtype=x.dtype)  # (B,N,k,E)
    weights = jnp.einsum("bnk,bnke->bne", topk_scores, onehot).reshape(T, NUM_EXPERTS)

    # --- expert MLPs + weighted combine: Pallas kernel ---
    out_flat = moe_combine(x_flat, params["w1"], params["b1"],
                           params["w2"], params["b2"], weights)
    out = out_flat.reshape(B, N, D)

    # --- aux load-balancing loss (plain JAX, matches torch code) ---
    indicator = (topk_indices[..., None] ==
                 jnp.arange(NUM_EXPERTS)[None, None, None, :]).any(axis=-2)
    counts = indicator.reshape(T, NUM_EXPERTS).astype(jnp.float32).sum(0)
    prob = counts / (B * N)
    aux_loss = (NUM_EXPERTS * (prob * prob.mean() / (prob + 1e-6))).sum()
    return out, aux_loss


# --------------------------------------------------------------------------
# Reference expert MLP (plain JAX) with the kernel's bf16-in / f32-accumulate
# MXU numerics and tanh-form GELU, for a correctness check.
# --------------------------------------------------------------------------
def _expert_ref(xf, w1e, b1e, w2e, b2e):
    h = jnp.dot(xf.astype(jnp.bfloat16), w1e.astype(jnp.bfloat16),
                preferred_element_type=jnp.float32) + b1e
    h = jax.nn.gelu(h, approximate=True)
    return jnp.dot(h.astype(jnp.bfloat16), w2e.astype(jnp.bfloat16),
                   preferred_element_type=jnp.float32) + b2e


if __name__ == "__main__":
    key = jax.random.PRNGKey(0)
    B, N, D = 4, 200, 128          # T = 800 -> padded to 1024, 4 token tiles
    H = 2 * D
    T = B * N
    ks = jax.random.split(key, 10)

    x = jax.random.normal(ks[0], (B, N, D), jnp.float32)
    idx = jnp.arange(T, dtype=jnp.int32)
    edge_index = jnp.stack([idx, (idx + 1) % T])              # ring graph (2, T)

    params = dict(
        # experts: Linear(D, 2D) -> GELU -> Linear(2D, D)
        w1=jax.random.normal(ks[1], (NUM_EXPERTS, D, H), jnp.float32) / math.sqrt(D),
        b1=jax.random.normal(ks[2], (NUM_EXPERTS, H), jnp.float32) * 0.02,
        w2=jax.random.normal(ks[3], (NUM_EXPERTS, H, D), jnp.float32) / math.sqrt(H),
        b2=jax.random.normal(ks[4], (NUM_EXPERTS, D), jnp.float32) * 0.02,
        # gate: GATConv(D, num_experts, heads=4) + LayerNorm(num_experts*heads)
        gat_w=jax.random.normal(ks[5], (GAT_HEADS * NUM_EXPERTS, D), jnp.float32) / math.sqrt(D),
        att_src=jax.random.normal(ks[6], (GAT_HEADS, NUM_EXPERTS), jnp.float32) * 0.1,
        att_dst=jax.random.normal(ks[7], (GAT_HEADS, NUM_EXPERTS), jnp.float32) * 0.1,
        gat_b=jnp.zeros((GAT_HEADS * NUM_EXPERTS,), jnp.float32),
        ln_g=jnp.ones((GAT_HEADS * NUM_EXPERTS,), jnp.float32),
        ln_b=jnp.zeros((GAT_HEADS * NUM_EXPERTS,), jnp.float32),
    )

    out, aux_loss = gnn_moe_forward(x, edge_index, params)
    out = jax.block_until_ready(out)
    aux_loss = jax.block_until_ready(aux_loss)

    # Correctness check against a plain-JAX reference of the same routing math.
    # As written in the module, the gate mean gives a single score channel, so
    # all tokens route to expert 0 with weight 1.0.
    x_flat = x.reshape(T, D)
    ref = _expert_ref(x_flat, params["w1"][0], params["b1"][0],
                      params["w2"][0], params["b2"][0]).reshape(B, N, D)
    max_err = float(jnp.max(jnp.abs(out - ref)))
    assert jnp.allclose(out, ref, atol=2e-3, rtol=2e-3), max_err
    assert out.shape == (B, N, D)
    assert jnp.isfinite(aux_loss)

    print("KERNEL_OK")
</pallas_src>

<mosaic_0001>
module attributes {stable_mosaic.version = 11 : i64} {
  func.func @moe_expert_combine_kernel(%arg0: i32, %arg1: memref<4x4xi32, #tpu.memory_space<smem>>, %arg2: memref<4xi32, #tpu.memory_space<smem>>, %arg3: memref<256x128xbf16, #tpu.memory_space<vmem>>, %arg4: memref<4x128x256xbf16, #tpu.memory_space<vmem>>, %arg5: memref<4x1x256xf32, #tpu.memory_space<vmem>>, %arg6: memref<4x256x128xbf16, #tpu.memory_space<vmem>>, %arg7: memref<4x1x128xf32, #tpu.memory_space<vmem>>, %arg8: memref<256x8xf32, #tpu.memory_space<vmem>>, %arg9: memref<256x128xf32, #tpu.memory_space<vmem>>) attributes {dimension_semantics = [#tpu.dimension_semantics<parallel>], iteration_bounds = array<i64: 4>, scalar_prefetch = 2 : i64, scratch_operands = 0 : i64, tpu.core_type = #tpu.core_type<tc>, window_params = [{transform_indices = @transform_0, window_bounds = array<i64: 256, 128>}, {pipeline_mode = #tpu.pipeline_mode<synchronous>, transform_indices = @transform_1, window_bounds = array<i64: 4, 128, 256>}, {pipeline_mode = #tpu.pipeline_mode<synchronous>, transform_indices = @transform_2, window_bounds = array<i64: 4, 1, 256>}, {pipeline_mode = #tpu.pipeline_mode<synchronous>, transform_indices = @transform_3, window_bounds = array<i64: 4, 256, 128>}, {pipeline_mode = #tpu.pipeline_mode<synchronous>, transform_indices = @transform_4, window_bounds = array<i64: 4, 1, 128>}, {transform_indices = @transform_5, window_bounds = array<i64: 256, 8>}, {transform_indices = @transform_6, window_bounds = array<i64: 256, 128>}]} {
    %0 = arith.index_cast %arg0 : i32 to index
    %1 = memref.load %arg2[%0] : memref<4xi32, #tpu.memory_space<smem>>
    %c4_i32 = arith.constant 4 : i32
    %2 = arith.cmpi sge, %1, %c4_i32 : i32
    %3 = arith.extui %2 : i1 to i32
    %c0_i32 = arith.constant 0 : i32
    %4 = arith.cmpi ne, %3, %c0_i32 : i32
    scf.if %4 {
      %cst = arith.constant 0.000000e+00 : f32
      %27 = vector.broadcast %cst : f32 to vector<256x128xf32>
      %c0_12 = arith.constant 0 : index
      %c0_13 = arith.constant 0 : index
      %28 = vector.load %arg9[%c0_12, %c0_13] : memref<256x128xf32, #tpu.memory_space<vmem>>, vector<256x128xf32>
      tpu.vector_store %arg9[%c0_12, %c0_13], %27 {strides = array<i32>} : memref<256x128xf32, #tpu.memory_space<vmem>>, vector<256x128xf32>,
    } else {
    }
    %c0 = arith.constant 0 : index
    %c0_0 = arith.constant 0 : index
    %5 = vector.load %arg3[%c0, %c0_0] : memref<256x128xbf16, #tpu.memory_space<vmem>>, vector<256x128xbf16>
    %c0_1 = arith.constant 0 : index
    %c0_2 = arith.constant 0 : index
    %6 = vector.load %arg8[%c0_1, %c0_2] : memref<256x8xf32, #tpu.memory_space<vmem>>, vector<256x8xf32>
    %7 = arith.index_cast %arg0 : i32 to index
    %c0_3 = arith.constant 0 : index
    %8 = memref.load %arg1[%7, %c0_3] : memref<4x4xi32, #tpu.memory_space<smem>>
    %c0_i32_4 = arith.constant 0 : i32
    %9 = arith.cmpi ne, %8, %c0_i32_4 : i32
    %10 = arith.extui %9 : i1 to i32
    %c0_i32_5 = arith.constant 0 : i32
    %11 = arith.cmpi ne, %10, %c0_i32_5 : i32
    scf.if %11 {
      %c0_12 = arith.constant 0 : index
      %c0_13 = arith.constant 0 : index
      %c0_14 = arith.constant 0 : index
      %27 = vector.load %arg4[%c0_12, %c0_13, %c0_14] : memref<4x128x256xbf16, #tpu.memory_space<vmem>>, vector<1x128x256xbf16>
      %28 = vector.shape_cast %27 : vector<1x128x256xbf16> to vector<128x256xbf16>
      %cst = arith.constant dense<0.000000e+00> : vector<256x256xf32>
      %29 = tpu.matmul %5, %28, %cst {dimension_numbers = #tpu.dot_dimension_numbers<[1], [0], [0], [1], [0, 0, 1, 1], [], []>} : vector<256x128xbf16>, vector<128x256xbf16>, vector<256x256xf32> -> vector<256x256xf32>
      %c0_15 = arith.constant 0 : index
      %c0_16 = arith.constant 0 : index
      %c0_17 = arith.constant 0 : index
      %30 = vector.load %arg5[%c0_15, %c0_16, %c0_17] : memref<4x1x256xf32, #tpu.memory_space<vmem>>, vector<1x1x256xf32>
      %31 = vector.shape_cast %30 : vector<1x1x256xf32> to vector<1x256xf32>
      %32 = vector.broadcast %31 : vector<1x256xf32> to vector<256x256xf32>
      %33 = arith.addf %29, %32 : vector<256x256xf32>
      %34 = arith.mulf %33, %33 : vector<256x256xf32>
      %35 = arith.mulf %34, %33 : vector<256x256xf32>
      %cst_18 = arith.constant 4.471500e-02 : f32
      %36 = vector.broadcast %cst_18 : f32 to vector<256x256xf32>
      %37 = arith.mulf %36, %35 : vector<256x256xf32>
      %38 = arith.addf %33, %37 : vector<256x256xf32>
      %cst_19 = arith.constant 0.797884583 : f32
      %39 = vector.broadcast %cst_19 : f32 to vector<256x256xf32>
      %40 = arith.mulf %39, %38 : vector<256x256xf32>
      %cst_20 = arith.constant 5.000000e-01 : f32
      %41 = vector.broadcast %cst_20 : f32 to vector<256x256xf32>
      %42 = arith.mulf %41, %33 : vector<256x256xf32>
      %43 = math.tanh %40 : vector<256x256xf32>
      %cst_21 = arith.constant 1.000000e+00 : f32
      %44 = vector.broadcast %cst_21 : f32 to vector<256x256xf32>
      %45 = arith.addf %44, %43 : vector<256x256xf32>
      %46 = arith.mulf %42, %45 : vector<256x256xf32>
      %47 = arith.truncf %46 : vector<256x256xf32> to vector<256x256xbf16>
      %c0_22 = arith.constant 0 : index
      %c0_23 = arith.constant 0 : index
      %c0_24 = arith.constant 0 : index
      %48 = vector.load %arg6[%c0_22, %c0_23, %c0_24] : memref<4x256x128xbf16, #tpu.memory_space<vmem>>, vector<1x256x128xbf16>
      %49 = vector.shape_cast %48 : vector<1x256x128xbf16> to vector<256x128xbf16>
      %cst_25 = arith.constant dense<0.000000e+00> : vector<256x128xf32>
      %50 = tpu.matmul %47, %49, %cst_25 {dimension_numbers = #tpu.dot_dimension_numbers<[1], [0], [0], [1], [0, 0, 1, 1], [], []>} : vector<256x256xbf16>, vector<256x128xbf16>, vector<256x128xf32> -> vector<256x128xf32>
      %c0_26 = arith.constant 0 : index
      %c0_27 = arith.constant 0 : index
      %c0_28 = arith.constant 0 : index
      %51 = vector.load %arg7[%c0_26, %c0_27, %c0_28] : memref<4x1x128xf32, #tpu.memory_space<vmem>>, vector<1x1x128xf32>
      %52 = vector.shape_cast %51 : vector<1x1x128xf32> to vector<1x128xf32>
      %53 = vector.broadcast %52 : vector<1x128xf32> to vector<256x128xf32>
      %54 = arith.addf %50, %53 : vector<256x128xf32>
      %55 = vector.extract_strided_slice %6 {offsets = [0, 0], sizes = [256, 1], strides = [1, 1]} : vector<256x8xf32> to vector<256x1xf32>
      %56 = vector.broadcast %55 : vector<256x1xf32> to vector<256x128xf32>
      %57 = arith.mulf %56, %54 : vector<256x128xf32>
      %c0_i32_29 = arith.constant 0 : i32
      %58 = arith.cmpi eq, %1, %c0_i32_29 : i32
      %59 = arith.extui %58 : i1 to i32
      %c0_i32_30 = arith.constant 0 : i32
      %60 = arith.cmpi ne, %59, %c0_i32_30 : i32
      scf.if %60 {
        %c0_33 = arith.constant 0 : index
        %c0_34 = arith.constant 0 : index
        %64 = vector.load %arg9[%c0_33, %c0_34] : memref<256x128xf32, #tpu.memory_space<vmem>>, vector<256x128xf32>
        tpu.vector_store %arg9[%c0_33, %c0_34], %57 {strides = array<i32>} : memref<256x128xf32, #tpu.memory_space<vmem>>, vector<256x128xf32>,
      } else {
      }
      %c0_i32_31 = arith.constant 0 : i32
      %61 = arith.cmpi ne, %1, %c0_i32_31 : i32
      %62 = arith.extui %61 : i1 to i32
      %c0_i32_32 = arith.constant 0 : i32
      %63 = arith.cmpi ne, %62, %c0_i32_32 : i32
      scf.if %63 {
        %c0_33 = arith.constant 0 : index
        %c0_34 = arith.constant 0 : index
        %64 = vector.load %arg9[%c0_33, %c0_34] : memref<256x128xf32, #tpu.memory_space<vmem>>, vector<256x128xf32>
        %65 = arith.addf %64, %57 : vector<256x128xf32>
        %c0_35 = arith.constant 0 : index
        %c0_36 = arith.constant 0 : index
        %66 = vector.load %arg9[%c0_35, %c0_36] : memref<256x128xf32, #tpu.memory_space<vmem>>, vector<256x128xf32>
        tpu.vector_store %arg9[%c0_35, %c0_36], %65 {strides = array<i32>} : memref<256x128xf32, #tpu.memory_space<vmem>>, vector<256x128xf32>,
      } else {
      }
    } else {
    }
    %12 = arith.index_cast %arg0 : i32 to index
    %c1 = arith.constant 1 : index
    %13 = memref.load %arg1[%12, %c1] : memref<4x4xi32, #tpu.memory_space<smem>>
    %c0_i32_6 = arith.constant 0 : i32
    %14 = arith.cmpi ne, %13, %c0_i32_6 : i32
    %15 = arith.extui %14 : i1 to i32
    %c0_i32_7 = arith.constant 0 : i32
    %16 = arith.cmpi ne, %15, %c0_i32_7 : i32
    scf.if %16 {
      %c1_12 = arith.constant 1 : index
      %c0_13 = arith.constant 0 : index
      %c0_14 = arith.constant 0 : index
      %27 = vector.load %arg4[%c1_12, %c0_13, %c0_14] : memref<4x128x256xbf16, #tpu.memory_space<vmem>>, vector<1x128x256xbf16>
      %28 = vector.shape_cast %27 : vector<1x128x256xbf16> to vector<128x256xbf16>
      %cst = arith.constant dense<0.000000e+00> : vector<256x256xf32>
      %29 = tpu.matmul %5, %28, %cst {dimension_numbers = #tpu.dot_dimension_numbers<[1], [0], [0], [1], [0, 0, 1, 1], [], []>} : vector<256x128xbf16>, vector<128x256xbf16>, vector<256x256xf32> -> vector<256x256xf32>
      %c1_15 = arith.constant 1 : index
      %c0_16 = arith.constant 0 : index
      %c0_17 = arith.constant 0 : index
      %30 = vector.load %arg5[%c1_15, %c0_16, %c0_17] : memref<4x1x256xf32, #tpu.memory_space<vmem>>, vector<1x1x256xf32>
      %31 = vector.shape_cast %30 : vector<1x1x256xf32> to vector<1x256xf32>
      %32 = vector.broadcast %31 : vector<1x256xf32> to vector<256x256xf32>
      %33 = arith.addf %29, %32 : vector<256x256xf32>
      %34 = arith.mulf %33, %33 : vector<256x256xf32>
      %35 = arith.mulf %34, %33 : vector<256x256xf32>
      %cst_18 = arith.constant 4.471500e-02 : f32
      %36 = vector.broadcast %cst_18 : f32 to vector<256x256xf32>
      %37 = arith.mulf %36, %35 : vector<256x256xf32>
      %38 = arith.addf %33, %37 : vector<256x256xf32>
      %cst_19 = arith.constant 0.797884583 : f32
      %39 = vector.broadcast %cst_19 : f32 to vector<256x256xf32>
      %40 = arith.mulf %39, %38 : vector<256x256xf32>
      %cst_20 = arith.constant 5.000000e-01 : f32
      %41 = vector.broadcast %cst_20 : f32 to vector<256x256xf32>
      %42 = arith.mulf %41, %33 : vector<256x256xf32>
      %43 = math.tanh %40 : vector<256x256xf32>
      %cst_21 = arith.constant 1.000000e+00 : f32
      %44 = vector.broadcast %cst_21 : f32 to vector<256x256xf32>
      %45 = arith.addf %44, %43 : vector<256x256xf32>
      %46 = arith.mulf %42, %45 : vector<256x256xf32>
      %47 = arith.truncf %46 : vector<256x256xf32> to vector<256x256xbf16>
      %c1_22 = arith.constant 1 : index
      %c0_23 = arith.constant 0 : index
      %c0_24 = arith.constant 0 : index
      %48 = vector.load %arg6[%c1_22, %c0_23, %c0_24] : memref<4x256x128xbf16, #tpu.memory_space<vmem>>, vector<1x256x128xbf16>
      %49 = vector.shape_cast %48 : vector<1x256x128xbf16> to vector<256x128xbf16>
      %cst_25 = arith.constant dense<0.000000e+00> : vector<256x128xf32>
      %50 = tpu.matmul %47, %49, %cst_25 {dimension_numbers = #tpu.dot_dimension_numbers<[1], [0], [0], [1], [0, 0, 1, 1], [], []>} : vector<256x256xbf16>, vector<256x128xbf16>, vector<256x128xf32> -> vector<256x128xf32>
      %c1_26 = arith.constant 1 : index
      %c0_27 = arith.constant 0 : index
      %c0_28 = arith.constant 0 : index
      %51 = vector.load %arg7[%c1_26, %c0_27, %c0_28] : memref<4x1x128xf32, #tpu.memory_space<vmem>>, vector<1x1x128xf32>
      %52 = vector.shape_cast %51 : vector<1x1x128xf32> to vector<1x128xf32>
      %53 = vector.broadcast %52 : vector<1x128xf32> to vector<256x128xf32>
      %54 = arith.addf %50, %53 : vector<256x128xf32>
      %55 = vector.extract_strided_slice %6 {offsets = [0, 1], sizes = [256, 1], strides = [1, 1]} : vector<256x8xf32> to vector<256x1xf32>
      %56 = vector.broadcast %55 : vector<256x1xf32> to vector<256x128xf32>
      %57 = arith.mulf %56, %54 : vector<256x128xf32>
      %c1_i32 = arith.constant 1 : i32
      %58 = arith.cmpi eq, %1, %c1_i32 : i32
      %59 = arith.extui %58 : i1 to i32
      %c0_i32_29 = arith.constant 0 : i32
      %60 = arith.cmpi ne, %59, %c0_i32_29 : i32
      scf.if %60 {
        %c0_32 = arith.constant 0 : index
        %c0_33 = arith.constant 0 : index
        %64 = vector.load %arg9[%c0_32, %c0_33] : memref<256x128xf32, #tpu.memory_space<vmem>>, vector<256x128xf32>
        tpu.vector_store %arg9[%c0_32, %c0_33], %57 {strides = array<i32>} : memref<256x128xf32, #tpu.memory_space<vmem>>, vector<256x128xf32>,
      } else {
      }
      %c1_i32_30 = arith.constant 1 : i32
      %61 = arith.cmpi ne, %1, %c1_i32_30 : i32
      %62 = arith.extui %61 : i1 to i32
      %c0_i32_31 = arith.constant 0 : i32
      %63 = arith.cmpi ne, %62, %c0_i32_31 : i32
      scf.if %63 {
        %c0_32 = arith.constant 0 : index
        %c0_33 = arith.constant 0 : index
        %64 = vector.load %arg9[%c0_32, %c0_33] : memref<256x128xf32, #tpu.memory_space<vmem>>, vector<256x128xf32>
        %65 = arith.addf %64, %57 : vector<256x128xf32>
        %c0_34 = arith.constant 0 : index
        %c0_35 = arith.constant 0 : index
        %66 = vector.load %arg9[%c0_34, %c0_35] : memref<256x128xf32, #tpu.memory_space<vmem>>, vector<256x128xf32>
        tpu.vector_store %arg9[%c0_34, %c0_35], %65 {strides = array<i32>} : memref<256x128xf32, #tpu.memory_space<vmem>>, vector<256x128xf32>,
      } else {
      }
    } else {
    }
    %17 = arith.index_cast %arg0 : i32 to index
    %c2 = arith.constant 2 : index
    %18 = memref.load %arg1[%17, %c2] : memref<4x4xi32, #tpu.memory_space<smem>>
    %c0_i32_8 = arith.constant 0 : i32
    %19 = arith.cmpi ne, %18, %c0_i32_8 : i32
    %20 = arith.extui %19 : i1 to i32
    %c0_i32_9 = arith.constant 0 : i32
    %21 = arith.cmpi ne, %20, %c0_i32_9 : i32
    scf.if %21 {
      %c2_12 = arith.constant 2 : index
      %c0_13 = arith.constant 0 : index
      %c0_14 = arith.constant 0 : index
      %27 = vector.load %arg4[%c2_12, %c0_13, %c0_14] : memref<4x128x256xbf16, #tpu.memory_space<vmem>>, vector<1x128x256xbf16>
      %28 = vector.shape_cast %27 : vector<1x128x256xbf16> to vector<128x256xbf16>
      %cst = arith.constant dense<0.000000e+00> : vector<256x256xf32>
      %29 = tpu.matmul %5, %28, %cst {dimension_numbers = #tpu.dot_dimension_numbers<[1], [0], [0], [1], [0, 0, 1, 1], [], []>} : vector<256x128xbf16>, vector<128x256xbf16>, vector<256x256xf32> -> vector<256x256xf32>
      %c2_15 = arith.constant 2 : index
      %c0_16 = arith.constant 0 : index
      %c0_17 = arith.constant 0 : index
      %30 = vector.load %arg5[%c2_15, %c0_16, %c0_17] : memref<4x1x256xf32, #tpu.memory_space<vmem>>, vector<1x1x256xf32>
      %31 = vector.shape_cast %30 : vector<1x1x256xf32> to vector<1x256xf32>
      %32 = vector.broadcast %31 : vector<1x256xf32> to vector<256x256xf32>
      %33 = arith.addf %29, %32 : vector<256x256xf32>
      %34 = arith.mulf %33, %33 : vector<256x256xf32>
      %35 = arith.mulf %34, %33 : vector<256x256xf32>
      %cst_18 = arith.constant 4.471500e-02 : f32
      %36 = vector.broadcast %cst_18 : f32 to vector<256x256xf32>
      %37 = arith.mulf %36, %35 : vector<256x256xf32>
      %38 = arith.addf %33, %37 : vector<256x256xf32>
      %cst_19 = arith.constant 0.797884583 : f32
      %39 = vector.broadcast %cst_19 : f32 to vector<256x256xf32>
      %40 = arith.mulf %39, %38 : vector<256x256xf32>
      %cst_20 = arith.constant 5.000000e-01 : f32
      %41 = vector.broadcast %cst_20 : f32 to vector<256x256xf32>
      %42 = arith.mulf %41, %33 : vector<256x256xf32>
      %43 = math.tanh %40 : vector<256x256xf32>
      %cst_21 = arith.constant 1.000000e+00 : f32
      %44 = vector.broadcast %cst_21 : f32 to vector<256x256xf32>
      %45 = arith.addf %44, %43 : vector<256x256xf32>
      %46 = arith.mulf %42, %45 : vector<256x256xf32>
      %47 = arith.truncf %46 : vector<256x256xf32> to vector<256x256xbf16>
      %c2_22 = arith.constant 2 : index
      %c0_23 = arith.constant 0 : index
      %c0_24 = arith.constant 0 : index
      %48 = vector.load %arg6[%c2_22, %c0_23, %c0_24] : memref<4x256x128xbf16, #tpu.memory_space<vmem>>, vector<1x256x128xbf16>
      %49 = vector.shape_cast %48 : vector<1x256x128xbf16> to vector<256x128xbf16>
      %cst_25 = arith.constant dense<0.000000e+00> : vector<256x128xf32>
      %50 = tpu.matmul %47, %49, %cst_25 {dimension_numbers = #tpu.dot_dimension_numbers<[1], [0], [0], [1], [0, 0, 1, 1], [], []>} : vector<256x256xbf16>, vector<256x128xbf16>, vector<256x128xf32> -> vector<256x128xf32>
      %c2_26 = arith.constant 2 : index
      %c0_27 = arith.constant 0 : index
      %c0_28 = arith.constant 0 : index
      %51 = vector.load %arg7[%c2_26, %c0_27, %c0_28] : memref<4x1x128xf32, #tpu.memory_space<vmem>>, vector<1x1x128xf32>
      %52 = vector.shape_cast %51 : vector<1x1x128xf32> to vector<1x128xf32>
      %53 = vector.broadcast %52 : vector<1x128xf32> to vector<256x128xf32>
      %54 = arith.addf %50, %53 : vector<256x128xf32>
      %55 = vector.extract_strided_slice %6 {offsets = [0, 2], sizes = [256, 1], strides = [1, 1]} : vector<256x8xf32> to vector<256x1xf32>
      %56 = vector.broadcast %55 : vector<256x1xf32> to vector<256x128xf32>
      %57 = arith.mulf %56, %54 : vector<256x128xf32>
      %c2_i32 = arith.constant 2 : i32
      %58 = arith.cmpi eq, %1, %c2_i32 : i32
      %59 = arith.extui %58 : i1 to i32
      %c0_i32_29 = arith.constant 0 : i32
      %60 = arith.cmpi ne, %59, %c0_i32_29 : i32
      scf.if %60 {
        %c0_32 = arith.constant 0 : index
        %c0_33 = arith.constant 0 : index
        %64 = vector.load %arg9[%c0_32, %c0_33] : memref<256x128xf32, #tpu.memory_space<vmem>>, vector<256x128xf32>
        tpu.vector_store %arg9[%c0_32, %c0_33], %57 {strides = array<i32>} : memref<256x128xf32, #tpu.memory_space<vmem>>, vector<256x128xf32>,
      } else {
      }
      %c2_i32_30 = arith.constant 2 : i32
      %61 = arith.cmpi ne, %1, %c2_i32_30 : i32
      %62 = arith.extui %61 : i1 to i32
      %c0_i32_31 = arith.constant 0 : i32
      %63 = arith.cmpi ne, %62, %c0_i32_31 : i32
      scf.if %63 {
        %c0_32 = arith.constant 0 : index
        %c0_33 = arith.constant 0 : index
        %64 = vector.load %arg9[%c0_32, %c0_33] : memref<256x128xf32, #tpu.memory_space<vmem>>, vector<256x128xf32>
        %65 = arith.addf %64, %57 : vector<256x128xf32>
        %c0_34 = arith.constant 0 : index
        %c0_35 = arith.constant 0 : index
        %66 = vector.load %arg9[%c0_34, %c0_35] : memref<256x128xf32, #tpu.memory_space<vmem>>, vector<256x128xf32>
        tpu.vector_store %arg9[%c0_34, %c0_35], %65 {strides = array<i32>} : memref<256x128xf32, #tpu.memory_space<vmem>>, vector<256x128xf32>,
      } else {
      }
    } else {
    }
    %22 = arith.index_cast %arg0 : i32 to index
    %c3 = arith.constant 3 : index
    %23 = memref.load %arg1[%22, %c3] : memref<4x4xi32, #tpu.memory_space<smem>>
    %c0_i32_10 = arith.constant 0 : i32
    %24 = arith.cmpi ne, %23, %c0_i32_10 : i32
    %25 = arith.extui %24 : i1 to i32
    %c0_i32_11 = arith.constant 0 : i32
    %26 = arith.cmpi ne, %25, %c0_i32_11 : i32
    scf.if %26 {
      %c3_12 = arith.constant 3 : index
      %c0_13 = arith.constant 0 : index
      %c0_14 = arith.constant 0 : index
      %27 = vector.load %arg4[%c3_12, %c0_13, %c0_14] : memref<4x128x256xbf16, #tpu.memory_space<vmem>>, vector<1x128x256xbf16>
      %28 = vector.shape_cast %27 : vector<1x128x256xbf16> to vector<128x256xbf16>
      %cst = arith.constant dense<0.000000e+00> : vector<256x256xf32>
      %29 = tpu.matmul %5, %28, %cst {dimension_numbers = #tpu.dot_dimension_numbers<[1], [0], [0], [1], [0, 0, 1, 1], [], []>} : vector<256x128xbf16>, vector<128x256xbf16>, vector<256x256xf32> -> vector<256x256xf32>
      %c3_15 = arith.constant 3 : index
      %c0_16 = arith.constant 0 : index
      %c0_17 = arith.constant 0 : index
      %30 = vector.load %arg5[%c3_15, %c0_16, %c0_17] : memref<4x1x256xf32, #tpu.memory_space<vmem>>, vector<1x1x256xf32>
      %31 = vector.shape_cast %30 : vector<1x1x256xf32> to vector<1x256xf32>
      %32 = vector.broadcast %31 : vector<1x256xf32> to vector<256x256xf32>
      %33 = arith.addf %29, %32 : vector<256x256xf32>
      %34 = arith.mulf %33, %33 : vector<256x256xf32>
      %35 = arith.mulf %34, %33 : vector<256x256xf32>
      %cst_18 = arith.constant 4.471500e-02 : f32
      %36 = vector.broadcast %cst_18 : f32 to vector<256x256xf32>
      %37 = arith.mulf %36, %35 : vector<256x256xf32>
      %38 = arith.addf %33, %37 : vector<256x256xf32>
      %cst_19 = arith.constant 0.797884583 : f32
      %39 = vector.broadcast %cst_19 : f32 to vector<256x256xf32>
      %40 = arith.mulf %39, %38 : vector<256x256xf32>
      %cst_20 = arith.constant 5.000000e-01 : f32
      %41 = vector.broadcast %cst_20 : f32 to vector<256x256xf32>
      %42 = arith.mulf %41, %33 : vector<256x256xf32>
      %43 = math.tanh %40 : vector<256x256xf32>
      %cst_21 = arith.constant 1.000000e+00 : f32
      %44 = vector.broadcast %cst_21 : f32 to vector<256x256xf32>
      %45 = arith.addf %44, %43 : vector<256x256xf32>
      %46 = arith.mulf %42, %45 : vector<256x256xf32>
      %47 = arith.truncf %46 : vector<256x256xf32> to vector<256x256xbf16>
      %c3_22 = arith.constant 3 : index
      %c0_23 = arith.constant 0 : index
      %c0_24 = arith.constant 0 : index
      %48 = vector.load %arg6[%c3_22, %c0_23, %c0_24] : memref<4x256x128xbf16, #tpu.memory_space<vmem>>, vector<1x256x128xbf16>
      %49 = vector.shape_cast %48 : vector<1x256x128xbf16> to vector<256x128xbf16>
      %cst_25 = arith.constant dense<0.000000e+00> : vector<256x128xf32>
      %50 = tpu.matmul %47, %49, %cst_25 {dimension_numbers = #tpu.dot_dimension_numbers<[1], [0], [0], [1], [0, 0, 1, 1], [], []>} : vector<256x256xbf16>, vector<256x128xbf16>, vector<256x128xf32> -> vector<256x128xf32>
      %c3_26 = arith.constant 3 : index
      %c0_27 = arith.constant 0 : index
      %c0_28 = arith.constant 0 : index
      %51 = vector.load %arg7[%c3_26, %c0_27, %c0_28] : memref<4x1x128xf32, #tpu.memory_space<vmem>>, vector<1x1x128xf32>
      %52 = vector.shape_cast %51 : vector<1x1x128xf32> to vector<1x128xf32>
      %53 = vector.broadcast %52 : vector<1x128xf32> to vector<256x128xf32>
      %54 = arith.addf %50, %53 : vector<256x128xf32>
      %55 = vector.extract_strided_slice %6 {offsets = [0, 3], sizes = [256, 1], strides = [1, 1]} : vector<256x8xf32> to vector<256x1xf32>
      %56 = vector.broadcast %55 : vector<256x1xf32> to vector<256x128xf32>
      %57 = arith.mulf %56, %54 : vector<256x128xf32>
      %c3_i32 = arith.constant 3 : i32
      %58 = arith.cmpi eq, %1, %c3_i32 : i32
      %59 = arith.extui %58 : i1 to i32
      %c0_i32_29 = arith.constant 0 : i32
      %60 = arith.cmpi ne, %59, %c0_i32_29 : i32
      scf.if %60 {
        %c0_32 = arith.constant 0 : index
        %c0_33 = arith.constant 0 : index
        %64 = vector.load %arg9[%c0_32, %c0_33] : memref<256x128xf32, #tpu.memory_space<vmem>>, vector<256x128xf32>
        tpu.vector_store %arg9[%c0_32, %c0_33], %57 {strides = array<i32>} : memref<256x128xf32, #tpu.memory_space<vmem>>, vector<256x128xf32>,
      } else {
      }
      %c3_i32_30 = arith.constant 3 : i32
      %61 = arith.cmpi ne, %1, %c3_i32_30 : i32
      %62 = arith.extui %61 : i1 to i32
      %c0_i32_31 = arith.constant 0 : i32
      %63 = arith.cmpi ne, %62, %c0_i32_31 : i32
      scf.if %63 {
        %c0_32 = arith.constant 0 : index
        %c0_33 = arith.constant 0 : index
        %64 = vector.load %arg9[%c0_32, %c0_33] : memref<256x128xf32, #tpu.memory_space<vmem>>, vector<256x128xf32>
        %65 = arith.addf %64, %57 : vector<256x128xf32>
        %c0_34 = arith.constant 0 : index
        %c0_35 = arith.constant 0 : index
        %66 = vector.load %arg9[%c0_34, %c0_35] : memref<256x128xf32, #tpu.memory_space<vmem>>, vector<256x128xf32>
        tpu.vector_store %arg9[%c0_34, %c0_35], %65 {strides = array<i32>} : memref<256x128xf32, #tpu.memory_space<vmem>>, vector<256x128xf32>,
      } else {
      }
    } else {
    }
    return
  }
  func.func @transform_0(%arg0: i32, %arg1: memref<4x4xi32, #tpu.memory_space<smem>>, %arg2: memref<4xi32, #tpu.memory_space<smem>>) -> (i32, i32) {
    %c0_i32 = arith.constant 0 : i32
    %c0_i32_0 = arith.constant 0 : i32
    return %arg0, %c0_i32 : i32, i32
  }
  func.func @transform_1(%arg0: i32, %arg1: memref<4x4xi32, #tpu.memory_space<smem>>, %arg2: memref<4xi32, #tpu.memory_space<smem>>) -> (i32, i32, i32) {
    %c0_i32 = arith.constant 0 : i32
    %c0_i32_0 = arith.constant 0 : i32
    %c0_i32_1 = arith.constant 0 : i32
    %c0_i32_2 = arith.constant 0 : i32
    return %c0_i32, %c0_i32_0, %c0_i32_1 : i32, i32, i32
  }
  func.func @transform_2(%arg0: i32, %arg1: memref<4x4xi32, #tpu.memory_space<smem>>, %arg2: memref<4xi32, #tpu.memory_space<smem>>) -> (i32, i32, i32) {
    %c0_i32 = arith.constant 0 : i32
    %c0_i32_0 = arith.constant 0 : i32
    %c0_i32_1 = arith.constant 0 : i32
    %c0_i32_2 = arith.constant 0 : i32
    return %c0_i32, %c0_i32_0, %c0_i32_1 : i32, i32, i32
  }
  func.func @transform_3(%arg0: i32, %arg1: memref<4x4xi32, #tpu.memory_space<smem>>, %arg2: memref<4xi32, #tpu.memory_space<smem>>) -> (i32, i32, i32) {
    %c0_i32 = arith.constant 0 : i32
    %c0_i32_0 = arith.constant 0 : i32
    %c0_i32_1 = arith.constant 0 : i32
    %c0_i32_2 = arith.constant 0 : i32
    return %c0_i32, %c0_i32_0, %c0_i32_1 : i32, i32, i32
  }
  func.func @transform_4(%arg0: i32, %arg1: memref<4x4xi32, #tpu.memory_space<smem>>, %arg2: memref<4xi32, #tpu.memory_space<smem>>) -> (i32, i32, i32) {
    %c0_i32 = arith.constant 0 : i32
    %c0_i32_0 = arith.constant 0 : i32
    %c0_i32_1 = arith.constant 0 : i32
    %c0_i32_2 = arith.constant 0 : i32
    return %c0_i32, %c0_i32_0, %c0_i32_1 : i32, i32, i32
  }
  func.func @transform_5(%arg0: i32, %arg1: memref<4x4xi32, #tpu.memory_space<smem>>, %arg2: memref<4xi32, #tpu.memory_space<smem>>) -> (i32, i32) {
    %c0_i32 = arith.constant 0 : i32
    %c0_i32_0 = arith.constant 0 : i32
    return %arg0, %c0_i32 : i32, i32
  }
  func.func @transform_6(%arg0: i32, %arg1: memref<4x4xi32, #tpu.memory_space<smem>>, %arg2: memref<4xi32, #tpu.memory_space<smem>>) -> (i32, i32) {
    %c0_i32 = arith.constant 0 : i32
    %c0_i32_0 = arith.constant 0 : i32
    return %arg0, %c0_i32 : i32, i32
  }
}

</mosaic_0001>

<bundles_post_ra>
// kernel: tpu_custom_call.1
= control target key start
LH: loop header
LB: loop body
LE: loop exit
PB: predicated region body
PF: predicated region fallthrough
CT: control target
= control target key end

     0   :  { %s8796_s11 = smov [#allocation3]   ;;  %s8797_s12 = smov [#allocation4]   ;;  %s13153_s0 = inlined_call_operand.vmem [shape: s32[4,4], index: 0, kind: input, shape index: {}]   ;;  %s13154_s2 = inlined_call_operand.vmem [shape: bf16[1024,128], index: 2, kind: input, shape index: {}]   ;;  %s13155_s3 = inlined_call_operand.vmem [shape: bf16[4,128,256], index: 3, kind: input, shape index: {}]   ;;  %s13156_s4 = inlined_call_operand.vmem [shape: f32[4,1,256], index: 4, kind: input, shape index: {}]   ;;  %s13157_s5 = inlined_call_operand.hbm [shape: bf16[4,256,128], index: 5, kind: input, shape index: {}]   ;;  %s13158_s6 = inlined_call_operand.vmem [shape: f32[4,1,128], index: 6, kind: input, shape index: {}]   ;;  %s13159_s7 = inlined_call_operand.vmem [shape: f32[1024,8], index: 7, kind: input, shape index: {}]   ;;  %s13160_s8 = inlined_call_operand.hbm [shape: f32[1024,128], index: 8, kind: output, shape index: {}]   ;;  %s13161_s1 = inlined_call_operand.vmem [shape: s32[4], index: 1, kind: input, shape index: {}]  }
   0x1   :  { %s14_s29 = sshll.u32 %s13153_s0, 4  ;;  %s19_s10 = sshll.u32 %s13161_s1, 4  ;;  %s15_s29 = int_to_ptr.vmem [resolvable:$true] %s14_s29  ;;  %s20_s10 = int_to_ptr.vmem [resolvable:$true] %s19_s10 }
   0x2   :  { %17 = dma.vmem_to_smem %s15_s29, 64, %s8796_s11, [#allocation2] }
   0x3   :  { %22 = dma.vmem_to_smem %s20_s10, 16, %s8797_s12, [#allocation2] }
   0x4   :  { %8770 = dma.done.wait [#allocation2], 80 }
   0x5   :  { %8771 = vsyncadd [#allocation2], 4294967216 }
   0x6   :  { %25 = sfence }
   0x7   :  { %26 = vsyncpa [#allocation6], 0 }
   0x8   :  { %27 = vsyncpa [#allocation7], 0 }
   0x9   :  { %29 = vsyncpa [#allocation7 + $0x1], 0  ;;  %s8859_s13 = smov 0   ;;  %s8861_s14 = smov 0  }
   0xa   :  { %s8863_s0 = smov 0   ;;  %s8865_s15 = smov 0  }
   0xb LB: > { %s8880_s1 = sadd.s32 4294967295, %s8794_s15   ;;  %s7034_s16 = sadd.s32 4294967294, %s8794_s15   ;;  %s8794_s15 = sphi %s8865_s15, %s13437_s15   ;;  %s8790_s0 = sphi %s8863_s0, %s13436_s0   ;;  %s8786_s14 = sphi %s8861_s14, %s13435_s14   ;;  %s8782_s13 = sphi %s8859_s13, %s13434_s13  }
   0xc   : > { %s8884_s17 = sadd.s32 1, %s8794_s15   ;;  %s178_s18 = sadd.s32 1, %s8790_s0 }
   0xd   : > { %s175_s19 = ssub.s32 %s8794_s15, %s8884_s17  ;;  %p188_p0 = scmp.ne.s32.totalorder %s8790_s0, %s8786_s14 }
   0xe   : > { %p176_p1 = scmp.eq.s32.totalorder %s175_s19, 0  ;;  %p189_p2 = scmp.eq.s32.totalorder %s8880_s1, 3 }
   0xf   : > { %p194_p3 = scmp.ne.s32.totalorder %s8786_s14, %s8782_s13  ;;  %p195_p4 = scmp.eq.s32.totalorder %s7034_s16, 3 }
  0x10   : > { %s8895_s20 = scalar_select %p176_p1, %s8790_s0, %s178_s18  }
  0x11   : > { %p8897_p5 = por %p189_p2, %p188_p0  ;;  %p8901_p6 = por %p195_p4, %p194_p3 }
  0x12   : > { %p7035_p7 = scmp.ge.s32.totalorder %s8794_s15, 1  ;;  %p202_p8 = scmp.lt.s32.totalorder %s8794_s15, 5 }
  0x13   : > { %p8093_p9 = scmp.eq.s32.totalorder %s8880_s1, 0  ;;  %s219_s25 = sshll.u32 %s13157_s5, 4  ;;  %s220_s25 = int_to_ptr.hbm [resolvable:$true] %s219_s25 }
  0x14   : > { %p203_p10 = pnand %p7035_p7, %p202_p8  ;;  %s8798_s26 = smov [#allocation5]  }
  0x15   : > { %s221_s27 = sshll.u32 %s8798_s26, 4  ;;  %s8799_s28 = smov 64   ;;  %s222_s27 = int_to_ptr.vmem [resolvable:$true] %s221_s27 }
  0x16   : > { %p8085_p11 = pneg %p203_p10  ;;  %s8800_s29 = smov 4  }
  0x17   : > { %258 = sbr.rel (%p203_p10) target bundleno = 2857 (0xb29), region = 44 }
  0x18   : > { %p8086_p12 = pnand %p8093_p9, %p8085_p11 }
  0x1a   : > { %8088 = dma.hbm_to_vmem [thread:$0]  (!%p8086_p12), %s220_s25, 8192, %s222_s27, [#allocation6], %s8799_s28, %s8799_s28, %s8800_s29  }
  0x1c   : > { %8773 = dma.done.wait (%p8093_p9), [#allocation6], 8192  }
  0x1d   : > { %8775 = vsyncadd (%p8093_p9), [#allocation6], 4294959104  ;;  %s291_s30 = sand.u32 1, %s8786_s14   ;;  %s7041_s9 = sshll.u32 %s8880_s1, 5 }
  0x1e   : > { %s8920_s10 = sld [smem:[#allocation4 + %s8880_s1]]  ;;  %s7040_s11 = sshll.u32 %s291_s30, 8 }
  0x1f   : > { %p295_p13 = scmp.lt.s32.totalorder %s7041_s9, 127  ;;  %s8934_s27 = scalar_lea.vmem [#allocation8], %s7040_s11 }
  0x21   : > { %s13439_s9 = smov (!%p295_p13, %s7041_s9), 127 }
  0x22   : > { %s7042_s12 = sshll.u32 %s13439_s9, 2  ;;  %s7044_s16 = sshll.u32 %s13439_s9, 3 }
  0x23   : > { %s8927_s23 = scalar_lea.vmem %s13154_s2, %s7042_s12  ;;  %s8932_s26 = scalar_lea.vmem %s13159_s7, %s7044_s16 }
  0x24   : > { %p7045_p0 = scmp.lt.s32.totalorder %s8920_s10, 4 }
  0x26   : > { %311 = sbr.rel (%p7045_p0) target bundleno = 76 (0x4c), region = 52 }
  0x2b   : > { %v8801_v0 = vmov 0.0  }
  0x2c   : > { %312 = vst [vmem:[%s8934_s27] sm:$0xff] %v8801_v0 }
  0x2d   : > { %313 = vst [vmem:[%s8934_s27 + $0x8] sm:$0xff] %v8801_v0 }
  0x2e   : > { %314 = vst [vmem:[%s8934_s27 + $0x10] sm:$0xff] %v8801_v0 }
  0x2f   : > { %315 = vst [vmem:[%s8934_s27 + $0x18] sm:$0xff] %v8801_v0 }
  0x30   : > { %316 = vst [vmem:[%s8934_s27 + $0x20] sm:$0xff] %v8801_v0 }
  0x31   : > { %317 = vst [vmem:[%s8934_s27 + $0x28] sm:$0xff] %v8801_v0 }
  0x32   : > { %318 = vst [vmem:[%s8934_s27 + $0x30] sm:$0xff] %v8801_v0 }
  0x33   : > { %319 = vst [vmem:[%s8934_s27 + $0x38] sm:$0xff] %v8801_v0 }
  0x34   : > { %320 = vst [vmem:[%s8934_s27 + $0x40] sm:$0xff] %v8801_v0 }
  0x35   : > { %321 = vst [vmem:[%s8934_s27 + $0x48] sm:$0xff] %v8801_v0 }
  0x36   : > { %322 = vst [vmem:[%s8934_s27 + $0x50] sm:$0xff] %v8801_v0 }
  0x37   : > { %323 = vst [vmem:[%s8934_s27 + $0x58] sm:$0xff] %v8801_v0 }
  0x38   : > { %324 = vst [vmem:[%s8934_s27 + $0x60] sm:$0xff] %v8801_v0 }
  0x39   : > { %325 = vst [vmem:[%s8934_s27 + $0x68] sm:$0xff] %v8801_v0 }
  0x3a   : > { %326 = vst [vmem:[%s8934_s27 + $0x70] sm:$0xff] %v8801_v0 }
  0x3b   : > { %327 = vst [vmem:[%s8934_s27 + $0x78] sm:$0xff] %v8801_v0 }
  0x3c   : > { %328 = vst [vmem:[%s8934_s27 + $0x80] sm:$0xff] %v8801_v0 }
  0x3d   : > { %329 = vst [vmem:[%s8934_s27 + $0x88] sm:$0xff] %v8801_v0 }
  0x3e   : > { %330 = vst [vmem:[%s8934_s27 + $0x90] sm:$0xff] %v8801_v0 }
  0x3f   : > { %331 = vst [vmem:[%s8934_s27 + $0x98] sm:$0xff] %v8801_v0 }
  0x40   : > { %332 = vst [vmem:[%s8934_s27 + $0xa0] sm:$0xff] %v8801_v0 }
  0x41   : > { %333 = vst [vmem:[%s8934_s27 + $0xa8] sm:$0xff] %v8801_v0 }
  0x42   : > { %334 = vst [vmem:[%s8934_s27 + $0xb0] sm:$0xff] %v8801_v0 }
  0x43   : > { %335 = vst [vmem:[%s8934_s27 + $0xb8] sm:$0xff] %v8801_v0 }
  0x44   : > { %336 = vst [vmem:[%s8934_s27 + $0xc0] sm:$0xff] %v8801_v0 }
  0x45   : > { %337 = vst [vmem:[%s8934_s27 + $0xc8] sm:$0xff] %v8801_v0 }
  0x46   : > { %338 = vst [vmem:[%s8934_s27 + $0xd0] sm:$0xff] %v8801_v0 }
  0x47   : > { %339 = vst [vmem:[%s8934_s27 + $0xd8] sm:$0xff] %v8801_v0 }
  0x48   : > { %340 = vst [vmem:[%s8934_s27 + $0xe0] sm:$0xff] %v8801_v0 }
  0x49   : > { %341 = vst [vmem:[%s8934_s27 + $0xe8] sm:$0xff] %v8801_v0 }
  0x4a   : > { %342 = vst [vmem:[%s8934_s27 + $0xf0] sm:$0xff] %v8801_v0 }
  0x4b   : > { %343 = vst [vmem:[%s8934_s27 + $0xf8] sm:$0xff] %v8801_v0 }
  0x4c PF: > { %v8970_v1 = vld [vmem:[%s8927_s23] sm:$0xf]  ;;  %v8982_v5 = vld [vmem:[%s8927_s23] sm:$0xf0]  ;;  %v8994_v9 = vld [vmem:[%s8927_s23 + $0x8] sm:$0xf] }
  0x4d   : > { %13170 = vst [vmem:[#allocation12_spill] sm:$0xff] %v8970_v1  ;;  %v8973_v2 = vld [vmem:[%s8927_s23] sm:$0xf]  ;;  %v8985_v6 = vld [vmem:[%s8927_s23] sm:$0xf0]  ;;  %s9357_s28 = sshll.u32 %s8880_s1, 7 }
  0x4e   : > { %13171 = vst [vmem:[#allocation13_spill] sm:$0xff] %v8973_v2  ;;  %v8976_v3 = vld [vmem:[%s8927_s23] sm:$0xf]  ;;  %v8988_v7 = vld [vmem:[%s8927_s23] sm:$0xf0]  ;;  %s9369_s29 = sld [smem:[#allocation3 + %s9357_s28]] }
  0x4f   : > { %13172 = vst [vmem:[#allocation14_spill] sm:$0xff] %v8976_v3  ;;  %v8979_v4 = vld [vmem:[%s8927_s23] sm:$0xf]  ;;  %v8991_v8 = vld [vmem:[%s8927_s23] sm:$0xf0]  ;;  %v9453_v3 = vld [vmem:[%s8932_s26 + $0xf8] sm:$0xff] }
  0x50   : > { %13173 = vst [vmem:[#allocation15_spill] sm:$0xff] %v8982_v5  ;;  %v8997_v10 = vld [vmem:[%s8927_s23 + $0x8] sm:$0xf]  ;;  %v9006_v13 = vld [vmem:[%s8927_s23 + $0x8] sm:$0xf0] }
  0x51   : > { %13174 = vst [vmem:[#allocation16_spill] sm:$0xff] %v8985_v6  ;;  %v9000_v11 = vld [vmem:[%s8927_s23 + $0x8] sm:$0xf]  ;;  %v9009_v14 = vld [vmem:[%s8927_s23 + $0x8] sm:$0xf0] }
  0x52   : > { %13175 = vst [vmem:[#allocation17_spill] sm:$0xff] %v8988_v7  ;;  %v9003_v12 = vld [vmem:[%s8927_s23 + $0x8] sm:$0xf]  ;;  %v9012_v15 = vld [vmem:[%s8927_s23 + $0x8] sm:$0xf0]  ;;  %v9450_v7 = vld [vmem:[%s8932_s26 + $0xf0] sm:$0xff] }
  0x53   : > { %13176 = vst [vmem:[#allocation18_spill] sm:$0xff] %v8994_v9  ;;  %v9015_v16 = vld [vmem:[%s8927_s23 + $0x8] sm:$0xf0]  ;;  %v9018_v17 = vld [vmem:[%s8927_s23 + $0x10] sm:$0xf] }
  0x54   : > { %13177 = vst [vmem:[#allocation19_spill] sm:$0xff] %v8997_v10  ;;  %v9021_v18 = vld [vmem:[%s8927_s23 + $0x10] sm:$0xf]  ;;  %v9030_v21 = vld [vmem:[%s8927_s23 + $0x10] sm:$0xf0]  ;;  %p7047_p1 = scmp.eq.s32.totalorder %s9369_s29, 0 }
  0x55   : > { %13178 = vst [vmem:[#allocation20_spill] sm:$0xff] %v9000_v11  ;;  %v9024_v19 = vld [vmem:[%s8927_s23 + $0x10] sm:$0xf]  ;;  %v9033_v22 = vld [vmem:[%s8927_s23 + $0x10] sm:$0xf0]  ;;  %v9447_v11 = vld [vmem:[%s8932_s26 + $0xe8] sm:$0xff] }
  0x56   : > { %13179 = vst [vmem:[#allocation21_spill] sm:$0xff] %v9006_v13  ;;  %v9027_v20 = vld [vmem:[%s8927_s23 + $0x10] sm:$0xf]  ;;  %v9036_v23 = vld [vmem:[%s8927_s23 + $0x10] sm:$0xf0]  ;;  %p7240_p2 = scmp.ne.s32.totalorder (!%p7047_p1), %s8920_s10, 0 }
  0x57   : > { %13180 = vst [vmem:[#allocation22_spill] sm:$0xff] %v9009_v14  ;;  %v9039_v24 = vld [vmem:[%s8927_s23 + $0x10] sm:$0xf0]  ;;  %v9042_v25 = vld [vmem:[%s8927_s23 + $0x18] sm:$0xf] }
  0x58   : > { %13181 = vst [vmem:[#allocation23_spill] sm:$0xff] %v9012_v15  ;;  %v9045_v26 = vld [vmem:[%s8927_s23 + $0x18] sm:$0xf]  ;;  %v9054_v29 = vld [vmem:[%s8927_s23 + $0x18] sm:$0xf0]  ;;  %v9444_v15 = vld [vmem:[%s8932_s26 + $0xe0] sm:$0xff] }
  0x59   : > { %13182 = vst [vmem:[#allocation24_spill] sm:$0xff] %v9018_v17  ;;  %v9048_v27 = vld [vmem:[%s8927_s23 + $0x18] sm:$0xf]  ;;  %v9057_v30 = vld [vmem:[%s8927_s23 + $0x18] sm:$0xf0] }
  0x5a   : > { %13183 = vst [vmem:[#allocation25_spill] sm:$0xff] %v9021_v18  ;;  %v9051_v28 = vld [vmem:[%s8927_s23 + $0x18] sm:$0xf]  ;;  %v9060_v31 = vld [vmem:[%s8927_s23 + $0x18] sm:$0xf0] }
  0x5b   : > { %13184 = vst [vmem:[#allocation26_spill] sm:$0xff] %v9024_v19  ;;  %v9063_v32 = vld [vmem:[%s8927_s23 + $0x18] sm:$0xf0]  ;;  %v9066_v33 = vld [vmem:[%s8927_s23 + $0x20] sm:$0xf] }
  0x5c   : > { %13185 = vst [vmem:[#allocation27_spill] sm:$0xff] %v9030_v21  ;;  %v9069_v34 = vld [vmem:[%s8927_s23 + $0x20] sm:$0xf]  ;;  %v9078_v37 = vld [vmem:[%s8927_s23 + $0x20] sm:$0xf0]  ;;  %v9441_v19 = vld [vmem:[%s8932_s26 + $0xd8] sm:$0xff] }
  0x5d   : > { %13186 = vst [vmem:[#allocation28_spill] sm:$0xff] %v9033_v22  ;;  %v9072_v35 = vld [vmem:[%s8927_s23 + $0x20] sm:$0xf]  ;;  %v9081_v38 = vld [vmem:[%s8927_s23 + $0x20] sm:$0xf0] }
  0x5e   : > { %13187 = vst [vmem:[#allocation29_spill] sm:$0xff] %v9036_v23  ;;  %v9075_v36 = vld [vmem:[%s8927_s23 + $0x20] sm:$0xf]  ;;  %v9084_v39 = vld [vmem:[%s8927_s23 + $0x20] sm:$0xf0]  ;;  %v9438_v23 = vld [vmem:[%s8932_s26 + $0xd0] sm:$0xff] }
  0x5f   : > { %13188 = vst [vmem:[#allocation30_spill] sm:$0xff] %v9042_v25  ;;  %v9087_v40 = vld [vmem:[%s8927_s23 + $0x20] sm:$0xf0]  ;;  %v9090_v41 = vld [vmem:[%s8927_s23 + $0x28] sm:$0xf] }
  0x60   : > { %13189 = vst [vmem:[#allocation31_spill] sm:$0xff] %v9045_v26  ;;  %v9093_v42 = vld [vmem:[%s8927_s23 + $0x28] sm:$0xf]  ;;  %v9102_v45 = vld [vmem:[%s8927_s23 + $0x28] sm:$0xf0] }
  0x61   : > { %13190 = vst [vmem:[#allocation32_spill] sm:$0xff] %v9048_v27  ;;  %v9096_v43 = vld [vmem:[%s8927_s23 + $0x28] sm:$0xf]  ;;  %v9105_v46 = vld [vmem:[%s8927_s23 + $0x28] sm:$0xf0] }
  0x62   : > { %13191 = vst [vmem:[#allocation33_spill] sm:$0xff] %v9054_v29  ;;  %v9099_v44 = vld [vmem:[%s8927_s23 + $0x28] sm:$0xf]  ;;  %v9108_v47 = vld [vmem:[%s8927_s23 + $0x28] sm:$0xf0] }
  0x63   : > { %13192 = vst [vmem:[#allocation34_spill] sm:$0xff] %v9057_v30  ;;  %v9111_v48 = vld [vmem:[%s8927_s23 + $0x28] sm:$0xf0]  ;;  %v9114_v49 = vld [vmem:[%s8927_s23 + $0x30] sm:$0xf] }
  0x64   : > { %13193 = vst [vmem:[#allocation35_spill] sm:$0xff] %v9060_v31  ;;  %v9117_v50 = vld [vmem:[%s8927_s23 + $0x30] sm:$0xf]  ;;  %v9126_v53 = vld [vmem:[%s8927_s23 + $0x30] sm:$0xf0]  ;;  %v9432_v31 = vld [vmem:[%s8932_s26 + $0xc0] sm:$0xff] }
  0x65   : > { %13194 = vst [vmem:[#allocation36_spill] sm:$0xff] %v9066_v33  ;;  %v9120_v51 = vld [vmem:[%s8927_s23 + $0x30] sm:$0xf]  ;;  %v9129_v54 = vld [vmem:[%s8927_s23 + $0x30] sm:$0xf0]  ;;  %v9435_v27 = vld [vmem:[%s8932_s26 + $0xc8] sm:$0xff] }
  0x66   : > { %13195 = vst [vmem:[#allocation37_spill] sm:$0xff] %v9069_v34  ;;  %v9123_v52 = vld [vmem:[%s8927_s23 + $0x30] sm:$0xf]  ;;  %v9132_v55 = vld [vmem:[%s8927_s23 + $0x30] sm:$0xf0] }
  0x67   : > { %13196 = vst [vmem:[#allocation38_spill] sm:$0xff] %v9072_v35  ;;  %v9135_v56 = vld [vmem:[%s8927_s23 + $0x30] sm:$0xf0]  ;;  %v9138_v57 = vld [vmem:[%s8927_s23 + $0x38] sm:$0xf] }
  0x68   : > { %13197 = vst [vmem:[#allocation39_spill] sm:$0xff] %v9078_v37  ;;  %v9141_v58 = vld [vmem:[%s8927_s23 + $0x38] sm:$0xf]  ;;  %v9150_v61 = vld [vmem:[%s8927_s23 + $0x38] sm:$0xf0] }
  0x69   : > { %13198 = vst [vmem:[#allocation40_spill] sm:$0xff] %v9081_v38  ;;  %v9144_v59 = vld [vmem:[%s8927_s23 + $0x38] sm:$0xf]  ;;  %v9153_v62 = vld [vmem:[%s8927_s23 + $0x38] sm:$0xf0] }
  0x6a   : > { %13199 = vst [vmem:[#allocation41_spill] sm:$0xff] %v9084_v39  ;;  %v9147_v60 = vld [vmem:[%s8927_s23 + $0x38] sm:$0xf]  ;;  %v9156_v63 = vld [vmem:[%s8927_s23 + $0x38] sm:$0xf0]  ;;  %v9426_v39 = vld [vmem:[%s8932_s26 + $0xb0] sm:$0xff] }
  0x6b   : > { %13200 = vst [vmem:[#allocation42_spill] sm:$0xff] %v9090_v41  ;;  %v9159_v0 = vld [vmem:[%s8927_s23 + $0x38] sm:$0xf0]  ;;  %v9177_v41 = vld [vmem:[%s8927_s23 + $0x40] sm:$0xf0] }
  0x6c   : > { %13201 = vst [vmem:[#allocation43_spill] sm:$0xff] %v9093_v42  ;;  %v9180_v37 = vld [vmem:[%s8927_s23 + $0x40] sm:$0xf0]  ;;  %v9186_v33 = vld [vmem:[%s8927_s23 + $0x48] sm:$0xf]  ;;  %v9429_v35 = vld [vmem:[%s8932_s26 + $0xb8] sm:$0xff] }
  0x6d   : > { %13202 = vst [vmem:[#allocation44_spill] sm:$0xff] %v9096_v43  ;;  %v9189_v29 = vld [vmem:[%s8927_s23 + $0x48] sm:$0xf]  ;;  %v9198_v21 = vld [vmem:[%s8927_s23 + $0x48] sm:$0xf0] }
  0x6e   : > { %13203 = vst [vmem:[#allocation45_spill] sm:$0xff] %v9102_v45  ;;  %v9174_v45 = vld [vmem:[%s8927_s23 + $0x40] sm:$0xf0]  ;;  %v9192_v25 = vld [vmem:[%s8927_s23 + $0x48] sm:$0xf] }
  0x6f   : > { %13204 = vst [vmem:[#allocation46_spill] sm:$0xff] %v9105_v46  ;;  %v9201_v17 = vld [vmem:[%s8927_s23 + $0x48] sm:$0xf0]  ;;  %v9210_v9 = vld [vmem:[%s8927_s23 + $0x50] sm:$0xf] }
  0x70   : > { %13205 = vst [vmem:[#allocation47_spill] sm:$0xff] %v9108_v47  ;;  %v9204_v13 = vld [vmem:[%s8927_s23 + $0x48] sm:$0xf0]  ;;  %v9213_v5 = vld [vmem:[%s8927_s23 + $0x50] sm:$0xf]  ;;  %v9420_v47 = vld [vmem:[%s8932_s26 + $0xa0] sm:$0xff] }
  0x71   : > { %13206 = vst [vmem:[#allocation48_spill] sm:$0xff] %v9114_v49  ;;  %v9168_v49 = vld [vmem:[%s8927_s23 + $0x40] sm:$0xf]  ;;  %v9216_v1 = vld [vmem:[%s8927_s23 + $0x50] sm:$0xf]  ;;  %v9423_v43 = vld [vmem:[%s8932_s26 + $0xa8] sm:$0xff] }
  0x72   : > { %13207 = vst [vmem:[#allocation49_spill] sm:$0xff] %v9117_v50  ;;  %v9261_v50 = vld [vmem:[%s8927_s23 + $0x60] sm:$0xf]  ;;  %v9273_v42 = vld [vmem:[%s8927_s23 + $0x60] sm:$0xf0] }
  0x73   : > { %13208 = vst [vmem:[#allocation50_spill] sm:$0xff] %v9120_v51  ;;  %v9264_v46 = vld [vmem:[%s8927_s23 + $0x60] sm:$0xf]  ;;  %v9276_v38 = vld [vmem:[%s8927_s23 + $0x60] sm:$0xf0]  ;;  %v9417_v51 = vld [vmem:[%s8932_s26 + $0x98] sm:$0xff] }
  0x74   : > { %13209 = vst [vmem:[#allocation51_spill] sm:$0xff] %v9126_v53  ;;  %v9165_v53 = vld [vmem:[%s8927_s23 + $0x40] sm:$0xf]  ;;  %v9285_v34 = vld [vmem:[%s8927_s23 + $0x68] sm:$0xf] }
  0x75   : > { %13210 = vst [vmem:[#allocation52_spill] sm:$0xff] %v9129_v54  ;;  %v9252_v54 = vld [vmem:[%s8927_s23 + $0x58] sm:$0xf0]  ;;  %v9288_v30 = vld [vmem:[%s8927_s23 + $0x68] sm:$0xf] }
  0x76   : > { %13211 = vst [vmem:[#allocation53_spill] sm:$0xff] %v9132_v55  ;;  %v9297_v26 = vld [vmem:[%s8927_s23 + $0x68] sm:$0xf0]  ;;  %v9309_v18 = vld [vmem:[%s8927_s23 + $0x70] sm:$0xf] }
  0x77   : > { %13212 = vst [vmem:[#allocation54_spill] sm:$0xff] %v9138_v57  ;;  %v9162_v57 = vld [vmem:[%s8927_s23 + $0x40] sm:$0xf]  ;;  %v9300_v22 = vld [vmem:[%s8927_s23 + $0x68] sm:$0xf0]  ;;  %v9414_v55 = vld [vmem:[%s8932_s26 + $0x90] sm:$0xff] }
  0x78   : > { %13213 = vst [vmem:[#allocation55_spill] sm:$0xff] %v9141_v58  ;;  %v9249_v58 = vld [vmem:[%s8927_s23 + $0x58] sm:$0xf0]  ;;  %v9312_v14 = vld [vmem:[%s8927_s23 + $0x70] sm:$0xf] }
  0x79   : > { %13214 = vst [vmem:[#allocation56_spill] sm:$0xff] %v9144_v59  ;;  %v9321_v10 = vld [vmem:[%s8927_s23 + $0x70] sm:$0xf0]  ;;  %v9411_v59 = vld [vmem:[%s8932_s26 + $0x88] sm:$0xff] }
  0x7a   : > { %13215 = vst [vmem:[#allocation57_spill] sm:$0xff] %v9150_v61  ;;  %v9171_v61 = vld [vmem:[%s8927_s23 + $0x40] sm:$0xf]  ;;  %v9324_v6 = vld [vmem:[%s8927_s23 + $0x70] sm:$0xf0] }
  0x7b   : > { %13216 = vst [vmem:[#allocation58_spill] sm:$0xff] %v9153_v62  ;;  %v9240_v62 = vld [vmem:[%s8927_s23 + $0x58] sm:$0xf]  ;;  %v9327_v2 = vld [vmem:[%s8927_s23 + $0x70] sm:$0xf0] }
  0x7c   : > { %13217 = vst [vmem:[#allocation59_spill] sm:$0xff] %v9156_v63  ;;  %v9408_v63 = vld [vmem:[%s8932_s26 + $0x80] sm:$0xff] }
  0x7d   : > { %13218 = vst [vmem:[#allocation60_spill] sm:$0xff] %v9162_v57  ;;  %v9183_v57 = vld [vmem:[%s8927_s23 + $0x40] sm:$0xf0] }
  0x7e   : > { %13219 = vst [vmem:[#allocation61_spill] sm:$0xff] %v9165_v53  ;;  %v9237_v53 = vld [vmem:[%s8927_s23 + $0x58] sm:$0xf] }
  0x7f   : > { %13220 = vst [vmem:[#allocation62_spill] sm:$0xff] %v9168_v49  ;;  %v9405_v49 = vld [vmem:[%s8932_s26 + $0x78] sm:$0xff] }
  0x80   : > { %13221 = vst [vmem:[#allocation63_spill] sm:$0xff] %v9174_v45  ;;  %v9195_v45 = vld [vmem:[%s8927_s23 + $0x48] sm:$0xf] }
  0x81   : > { %13222 = vst [vmem:[#allocation64_spill] sm:$0xff] %v9177_v41  ;;  %v9228_v41 = vld [vmem:[%s8927_s23 + $0x50] sm:$0xf0] }
  0x82   : > { %13223 = vst [vmem:[#allocation65_spill] sm:$0xff] %v9180_v37  ;;  %v9402_v37 = vld [vmem:[%s8932_s26 + $0x70] sm:$0xff] }
  0x83   : > { %13224 = vst [vmem:[#allocation66_spill] sm:$0xff] %v9186_v33  ;;  %v9207_v33 = vld [vmem:[%s8927_s23 + $0x48] sm:$0xf0] }
  0x84   : > { %13225 = vst [vmem:[#allocation67_spill] sm:$0xff] %v9189_v29  ;;  %v9225_v29 = vld [vmem:[%s8927_s23 + $0x50] sm:$0xf0] }
  0x85   : > { %13226 = vst [vmem:[#allocation68_spill] sm:$0xff] %v9192_v25  ;;  %v9399_v25 = vld [vmem:[%s8932_s26 + $0x68] sm:$0xff] }
  0x86   : > { %13227 = vst [vmem:[#allocation69_spill] sm:$0xff] %v9198_v21  ;;  %v9219_v21 = vld [vmem:[%s8927_s23 + $0x50] sm:$0xf] }
  0x87   : > { %13228 = vst [vmem:[#allocation70_spill] sm:$0xff] %v9201_v17  ;;  %v9222_v17 = vld [vmem:[%s8927_s23 + $0x50] sm:$0xf0] }
  0x88   : > { %13229 = vst [vmem:[#allocation71_spill] sm:$0xff] %v9204_v13  ;;  %v9396_v13 = vld [vmem:[%s8932_s26 + $0x60] sm:$0xff] }
  0x89   : > { %13230 = vst [vmem:[#allocation72_spill] sm:$0xff] %v9210_v9  ;;  %v9231_v9 = vld [vmem:[%s8927_s23 + $0x50] sm:$0xf0] }
  0x8a   : > { %13231 = vst [vmem:[#allocation73_spill] sm:$0xff] %v9213_v5  ;;  %v9234_v5 = vld [vmem:[%s8927_s23 + $0x58] sm:$0xf] }
  0x8b   : > { %13232 = vst [vmem:[#allocation74_spill] sm:$0xff] %v9216_v1  ;;  %v9393_v1 = vld [vmem:[%s8932_s26 + $0x58] sm:$0xff] }
  0x8c   : > { %13233 = vst [vmem:[#allocation75_spill] sm:$0xff] %v9222_v17  ;;  %v9243_v17 = vld [vmem:[%s8927_s23 + $0x58] sm:$0xf] }
  0x8d   : > { %13234 = vst [vmem:[#allocation76_spill] sm:$0xff] %v9225_v29  ;;  %v9246_v29 = vld [vmem:[%s8927_s23 + $0x58] sm:$0xf0] }
  0x8e   : > { %13235 = vst [vmem:[#allocation77_spill] sm:$0xff] %v9228_v41  ;;  %v9390_v41 = vld [vmem:[%s8932_s26 + $0x50] sm:$0xff] }
  0x8f   : > { %13236 = vst [vmem:[#allocation78_spill] sm:$0xff] %v9234_v5  ;;  %v9255_v5 = vld [vmem:[%s8927_s23 + $0x58] sm:$0xf0] }
  0x90   : > { %13237 = vst [vmem:[#allocation79_spill] sm:$0xff] %v9237_v53  ;;  %v9258_v53 = vld [vmem:[%s8927_s23 + $0x60] sm:$0xf] }
  0x91   : > { %13238 = vst [vmem:[#allocation80_spill] sm:$0xff] %v9240_v62  ;;  %v9387_v62 = vld [vmem:[%s8932_s26 + $0x48] sm:$0xff] }
  0x92   : > { %13239 = vst [vmem:[#allocation81_spill] sm:$0xff] %v9246_v29  ;;  %v9267_v29 = vld [vmem:[%s8927_s23 + $0x60] sm:$0xf] }
  0x93   : > { %13240 = vst [vmem:[#allocation82_spill] sm:$0xff] %v9249_v58  ;;  %v9270_v58 = vld [vmem:[%s8927_s23 + $0x60] sm:$0xf0] }
  0x94   : > { %13241 = vst [vmem:[#allocation83_spill] sm:$0xff] %v9252_v54  ;;  %v9384_v54 = vld [vmem:[%s8932_s26 + $0x40] sm:$0xff] }
  0x95   : > { %13242 = vst [vmem:[#allocation84_spill] sm:$0xff] %v9258_v53  ;;  %v9279_v53 = vld [vmem:[%s8927_s23 + $0x60] sm:$0xf0] }
  0x96   : > { %13243 = vst [vmem:[#allocation85_spill] sm:$0xff] %v9261_v50  ;;  %v9282_v50 = vld [vmem:[%s8927_s23 + $0x68] sm:$0xf] }
  0x97   : > { %13244 = vst [vmem:[#allocation86_spill] sm:$0xff] %v9264_v46  ;;  %v9381_v46 = vld [vmem:[%s8932_s26 + $0x38] sm:$0xff] }
  0x98   : > { %13245 = vst [vmem:[#allocation87_spill] sm:$0xff] %v9270_v58  ;;  %v9291_v58 = vld [vmem:[%s8927_s23 + $0x68] sm:$0xf] }
  0x99   : > { %13246 = vst [vmem:[#allocation88_spill] sm:$0xff] %v9273_v42  ;;  %v9294_v42 = vld [vmem:[%s8927_s23 + $0x68] sm:$0xf0] }
  0x9a   : > { %13247 = vst [vmem:[#allocation89_spill] sm:$0xff] %v9276_v38  ;;  %v9378_v38 = vld [vmem:[%s8932_s26 + $0x30] sm:$0xff] }
  0x9b   : > { %13248 = vst [vmem:[#allocation90_spill] sm:$0xff] %v9282_v50  ;;  %v9303_v50 = vld [vmem:[%s8927_s23 + $0x68] sm:$0xf0] }
  0x9c   : > { %13249 = vst [vmem:[#allocation91_spill] sm:$0xff] %v9285_v34  ;;  %v9306_v34 = vld [vmem:[%s8927_s23 + $0x70] sm:$0xf] }
  0x9d   : > { %13250 = vst [vmem:[#allocation92_spill] sm:$0xff] %v9288_v30  ;;  %v9375_v30 = vld [vmem:[%s8932_s26 + $0x28] sm:$0xff] }
  0x9e   : > { %13251 = vst [vmem:[#allocation93_spill] sm:$0xff] %v9294_v42  ;;  %v9315_v42 = vld [vmem:[%s8927_s23 + $0x70] sm:$0xf] }
  0x9f   : > { %13252 = vst [vmem:[#allocation94_spill] sm:$0xff] %v9297_v26  ;;  %v9318_v26 = vld [vmem:[%s8927_s23 + $0x70] sm:$0xf0] }
  0xa0   : > { %13253 = vst [vmem:[#allocation95_spill] sm:$0xff] %v9300_v22  ;;  %v9339_v22 = vld [vmem:[%s8927_s23 + $0x78] sm:$0xf] }
  0xa1   : > { %13254 = vst [vmem:[#allocation96_spill] sm:$0xff] %v9306_v34  ;;  %v9330_v34 = vld [vmem:[%s8927_s23 + $0x78] sm:$0xf] }
  0xa2   : > { %13255 = vst [vmem:[#allocation97_spill] sm:$0xff] %v9309_v18  ;;  %v9333_v18 = vld [vmem:[%s8927_s23 + $0x78] sm:$0xf] }
  0xa3   : > { %13256 = vst [vmem:[#allocation98_spill] sm:$0xff] %v9312_v14  ;;  %v9336_v14 = vld [vmem:[%s8927_s23 + $0x78] sm:$0xf] }
  0xa4   : > { %13257 = vst [vmem:[#allocation99_spill] sm:$0xff] %v9315_v42 }
  0xa5   : > { %13258 = vst [vmem:[#allocation100_spill] sm:$0xff] %v9318_v26  ;;  %v9342_v26 = vld [vmem:[%s8927_s23 + $0x78] sm:$0xf0] }
  0xa6   : > { %13259 = vst [vmem:[#allocation101_spill] sm:$0xff] %v9321_v10  ;;  %v9345_v10 = vld [vmem:[%s8927_s23 + $0x78] sm:$0xf0] }
  0xa7   : > { %13260 = vst [vmem:[#allocation102_spill] sm:$0xff] %v9324_v6  ;;  %v9348_v6 = vld [vmem:[%s8927_s23 + $0x78] sm:$0xf0] }
  0xa8   : > { %13261 = vst [vmem:[#allocation103_spill] sm:$0xff] %v9327_v2 }
  0xa9   : > { %13262 = vst [vmem:[#allocation104_spill] sm:$0xff] %v9330_v34  ;;  %v9351_v34 = vld [vmem:[%s8927_s23 + $0x78] sm:$0xf0] }
  0xaa   : > { %13263 = vst [vmem:[#allocation105_spill] sm:$0xff] %v9333_v18  ;;  %v9354_v18 = vld [vmem:[%s8932_s26] sm:$0xff] }
  0xab   : > { %13264 = vst [vmem:[#allocation106_spill] sm:$0xff] %v9336_v14  ;;  %v9360_v14 = vld [vmem:[%s8932_s26 + $0x8] sm:$0xff] }
  0xac   : > { %13265 = vst [vmem:[#allocation107_spill] sm:$0xff] %v9339_v22 }
  0xad   : > { %13266 = vst [vmem:[#allocation108_spill] sm:$0xff] %v9342_v26  ;;  %v9363_v26 = vld [vmem:[%s8932_s26 + $0x10] sm:$0xff] }
  0xae   : > { %13267 = vst [vmem:[#allocation109_spill] sm:$0xff] %v9345_v10  ;;  %v9366_v10 = vld [vmem:[%s8932_s26 + $0x18] sm:$0xff] }
  0xaf   : > { %13268 = vst [vmem:[#allocation110_spill] sm:$0xff] %v9348_v6  ;;  %v9372_v6 = vld [vmem:[%s8932_s26 + $0x20] sm:$0xff] }
  0xb0   : > { %13269 = vst [vmem:[#allocation111_spill] sm:$0xff] %v9351_v34 }
  0xb1   : > { %13270 = vst [vmem:[#allocation112_spill] sm:$0xff] %v9363_v26 }
  0xb2   : > { %13271 = vst [vmem:[#allocation113_spill] sm:$0xff] %v9372_v6 }
  0xb3   : > { %13272 = vst [vmem:[#allocation114_spill] sm:$0xff] %v9420_v47 }
  0xb4   : > { %13273 = vst [vmem:[#allocation115_spill] sm:$0xff] %v9423_v43 }
  0xb5   : > { %13274 = vst [vmem:[#allocation116_spill] sm:$0xff] %v9426_v39 }
  0xb6   : > { %13275 = vst [vmem:[#allocation117_spill] sm:$0xff] %v9429_v35 }
  0xb7   : > { %13276 = vst [vmem:[#allocation118_spill] sm:$0xff] %v9432_v31 }
  0xb8   : > { %13277 = vst [vmem:[#allocation119_spill] sm:$0xff] %v9435_v27 }
  0xb9   : > { %13278 = vst [vmem:[#allocation120_spill] sm:$0xff] %v9438_v23 }
  0xba   : > { %13279 = vst [vmem:[#allocation121_spill] sm:$0xff] %v9441_v19  ;;  %413 = sbr.rel (%p7047_p1) target bundleno = 843 (0x34b), region = 56 }
  0xbb   : > { %13280 = vst [vmem:[#allocation122_spill] sm:$0xff] %v9444_v15 }
  0xbc   : > { %13281 = vst [vmem:[#allocation123_spill] sm:$0xff] %v9447_v11 }
  0xbd   : > { %13282 = vst [vmem:[#allocation124_spill] sm:$0xff] %v9450_v7 }
  0xbe   : > { %13283 = vst [vmem:[#allocation125_spill] sm:$0xff] %v9453_v3 }
  0xbf   : > { %v7170_v34 = vld [vmem:[%s13155_s3 + $0x70] sm:$0xf]  ;;  %v7965_v22 = vld [vmem:[%s13155_s3 + $0x74] sm:$0xf0]  ;;  %v7964_v19 = vld [vmem:[%s13155_s3 + $0x74] sm:$0xf] }
  0xc0   : > { %v7171_v11 = vor.u32 %v7965_v22, %v7170_v34  ;;  %v7172_v7 = vld [vmem:[%s13155_s3 + $0x78] sm:$0xf0]  ;;  %v7162_v3 = vld [vmem:[%s13155_s3 + $0x60] sm:$0xf]  ;;  %v7963_v15 = vld [vmem:[%s13155_s3 + $0x64] sm:$0xf0] }
  0xc1   : > { %v7175_v2 = vor.u32 %v7964_v19, %v7172_v7  ;;  %v7962_v42 = vld [vmem:[%s13155_s3 + $0x64] sm:$0xf]  ;;  %v7164_v22 = vld [vmem:[%s13155_s3 + $0x68] sm:$0xf0]  ;;  %v7163_v34 = vor.u32 %v7963_v15, %v7162_v3  ;;  %v7154_v31 = vld [vmem:[%s13155_s3 + $0x50] sm:$0xf] }
  0xc2   : > { %612 = vmatpush.bf16.msra.mxu0 %v7171_v11  ;;  %v7167_v23 = vor.u32 %v7962_v42, %v7164_v22  ;;  %v7961_v7 = vld [vmem:[%s13155_s3 + $0x54] sm:$0xf0]  ;;  %v7960_v19 = vld [vmem:[%s13155_s3 + $0x54] sm:$0xf]  ;;  %v7156_v27 = vld [vmem:[%s13155_s3 + $0x58] sm:$0xf0] }
  0xc3   : > { %701 = vmatpush.bf16.msra.mxu1 %v7175_v2  ;;  %v7155_v3 = vor.u32 %v7961_v7, %v7154_v31  ;;  %v7159_v2 = vor.u32 %v7960_v19, %v7156_v27  ;;  %v7146_v11 = vld [vmem:[%s13155_s3 + $0x40] sm:$0xf]  ;;  %v7959_v15 = vld [vmem:[%s13155_s3 + $0x44] sm:$0xf0]  ;;  %v7958_v42 = vld [vmem:[%s13155_s3 + $0x44] sm:$0xf] }
  0xc4   : > { %v7148_v22 = vld [vmem:[%s13155_s3 + $0x48] sm:$0xf0]  ;;  %v7147_v31 = vor.u32 %v7959_v15, %v7146_v11  ;;  %v7138_v27 = vld [vmem:[%s13155_s3 + $0x30] sm:$0xf]  ;;  %v7956_v7 = vld [vmem:[%s13155_s3 + $0x34] sm:$0xf] }
  0xc5   : > { %v7140_v19 = vld [vmem:[%s13155_s3 + $0x38] sm:$0xf0]  ;;  %v7130_v11 = vld [vmem:[%s13155_s3 + $0x20] sm:$0xf]  ;;  %v7955_v15 = vld [vmem:[%s13155_s3 + $0x24] sm:$0xf0] }
  0xc6   : > { %613 = vmatpush.bf16.msra.mxu0 %v7163_v34  ;;  %v7957_v34 = vld [vmem:[%s13155_s3 + $0x34] sm:$0xf0] }
  0xc7   : > { %702 = vmatpush.bf16.msra.mxu1 %v7167_v23  ;;  %v7151_v23 = vor.u32 %v7958_v42, %v7148_v22  ;;  %v7954_v42 = vld [vmem:[%s13155_s3 + $0x24] sm:$0xf]  ;;  %v7132_v22 = vld [vmem:[%s13155_s3 + $0x28] sm:$0xf0] }
  0xca   : > { %614 = vmatpush.bf16.msra.mxu0 %v7155_v3  ;;  %v7139_v3 = vor.u32 %v7957_v34, %v7138_v27  ;;  %v7122_v27 = vld [vmem:[%s13155_s3 + $0x10] sm:$0xf]  ;;  %v7953_v34 = vld [vmem:[%s13155_s3 + $0x14] sm:$0xf0] }
  0xcb   : > { %703 = vmatpush.bf16.msra.mxu1 %v7159_v2  ;;  %v7143_v2 = vor.u32 %v7956_v7, %v7140_v19  ;;  %v7952_v7 = vld [vmem:[%s13155_s3 + $0x14] sm:$0xf]  ;;  %v7124_v19 = vld [vmem:[%s13155_s3 + $0x18] sm:$0xf0] }
  0xce   : > { %615 = vmatpush.bf16.msra.mxu0 %v7147_v31  ;;  %v7131_v31 = vor.u32 %v7955_v15, %v7130_v11  ;;  %v7114_v11 = vld [vmem:[%s13155_s3] sm:$0xf]  ;;  %v7951_v15 = vld [vmem:[%s13155_s3 + $0x4] sm:$0xf0] }
  0xcf   : > { %704 = vmatpush.bf16.msra.mxu1 %v7151_v23  ;;  %v7135_v23 = vor.u32 %v7954_v42, %v7132_v22  ;;  %v7950_v42 = vld [vmem:[%s13155_s3 + $0x4] sm:$0xf]  ;;  %v7116_v22 = vld [vmem:[%s13155_s3 + $0x8] sm:$0xf0] }
  0xd2   : > { %616 = vmatpush.bf16.msra.mxu0 %v7139_v3  ;;  %v7123_v3 = vor.u32 %v7953_v34, %v7122_v27  ;;  %v7051_v27 = vor.u32 %v8991_v8, %v8979_v4  ;;  %v7055_v34 = vor.u32 %v9015_v16, %v9003_v12  ;;  %v7067_v4 = vor.u32 %v9087_v40, %v9075_v36  ;;  %v7973_v16 = vld [vmem:[#allocation5 + $0x38] sm:$0xff]  ;;  %v7979_v36 = vld [vmem:[#allocation5 + $0x68] sm:$0xff]  ;;  %v7970_v40 = vld [vmem:[#allocation5 + $0x20] sm:$0xff] }
  0xd3   : > { %705 = vmatpush.bf16.msra.mxu1 %v7143_v2  ;;  %v7127_v2 = vor.u32 %v7952_v7, %v7124_v19  ;;  %v7059_v7 = vor.u32 %v9039_v24, %v9027_v20  ;;  %v7063_v19 = vor.u32 %v9063_v32, %v9051_v28  ;;  %v7071_v8 = vor.u32 %v9111_v48, %v9099_v44  ;;  %v7981_v20 = vld [vmem:[#allocation5 + $0x78] sm:$0xff]  ;;  %v7972_v24 = vld [vmem:[#allocation5 + $0x30] sm:$0xff]  ;;  %v7971_v32 = vld [vmem:[#allocation5 + $0x28] sm:$0xff] }
  0xd4   : > { %v7075_v12 = vor.u32 %v9135_v56, %v9123_v52  ;;  %1530 = vmatpush.bf16.msra.mxu2 %v7973_v16  ;;  %1619 = vmatpush.bf16.msra.mxu3 %v7981_v20  ;;  %v7980_v28 = vld [vmem:[#allocation5 + $0x70] sm:$0xff]  ;;  %v7978_v44 = vld [vmem:[#allocation5 + $0x60] sm:$0xff]  ;;  %v7079_v48 = vor.u32 %v9159_v0, %v9147_v60  ;;  %v7969_v52 = vld [vmem:[#allocation5 + $0x18] sm:$0xff] }
  0xd5   : > { %v7977_v56 = vld [vmem:[#allocation5 + $0x58] sm:$0xff] }
  0xd6   : > { %617 = vmatpush.bf16.msra.mxu0 %v7131_v31  ;;  %v7115_v31 = vor.u32 %v7951_v15, %v7114_v11  ;;  %v430_v11 = vld [vmem:[%s13156_s4] sm:$0x3]  ;;  %v7967_v15 = vld [vmem:[#allocation5 + $0x8] sm:$0xff] }
  0xd7   : > { %706 = vmatpush.bf16.msra.mxu1 %v7135_v23  ;;  %v7119_v23 = vor.u32 %v7950_v42, %v7116_v22  ;;  %v7975_v42 = vld [vmem:[#allocation5 + $0x48] sm:$0xff]  ;;  %v9571_v60 = vperm.slane %v430_v11, 0  ;;  %v9573_v0 = vperm.slane %v430_v11, 1  ;;  %v7966_v22 = vld [vmem:[#allocation5] sm:$0xff]  ;;  %v7087_v11 = vor.u32 %v9207_v33, %v9195_v45 }
  0xd8   : > { %1531 = vmatpush.bf16.msra.mxu2 %v7972_v24  ;;  %1620 = vmatpush.bf16.msra.mxu3 %v7980_v28 }
  0xda   : > { %618 = vmatpush.bf16.msra.mxu0 %v7123_v3  ;;  %v7968_v3 = vld [vmem:[#allocation5 + $0x10] sm:$0xff] }
  0xdb   : > { %707 = vmatpush.bf16.msra.mxu1 %v7127_v2  ;;  %v7976_v2 = vld [vmem:[#allocation5 + $0x50] sm:$0xff] }
  0xdc   : > { %1532 = vmatpush.bf16.msra.mxu2 %v7971_v32  ;;  %1621 = vmatpush.bf16.msra.mxu3 %v7979_v36 }
  0xde   : > { %619 = vmatpush.bf16.msra.mxu0 %v7115_v31  ;;  %v7974_v31 = vld [vmem:[#allocation5 + $0x40] sm:$0xff] }
  0xdf   : > { %708 = vmatpush.bf16.msra.mxu1 %v7119_v23  ;;  %v7083_v23 = vor.u32 %v9183_v57, %v9171_v61 }
  0xe0   : > { %1533 = vmatpush.bf16.msra.mxu2 %v7970_v40  ;;  %1622 = vmatpush.bf16.msra.mxu3 %v7978_v44 }
  0xe1   : > { %620 = vmatmul.bf16.vlgmr.msra.gmra.mxu0 %v7051_v27 }
  0xe2   : > { %709 = vmatmul.bf16.vlgmr.msra.gmra.mxu1 %v7051_v27 }
  0xe4   : > { %1534 = vmatpush.bf16.msra.mxu2 %v7969_v52  ;;  %1623 = vmatpush.bf16.msra.mxu3 %v7977_v56 }
  0xe8   : > { %1535 = vmatpush.bf16.msra.mxu2 %v7968_v3  ;;  %1624 = vmatpush.bf16.msra.mxu3 %v7976_v2 }
  0xec   : > { %1536 = vmatpush.bf16.msra.mxu2 %v7967_v15  ;;  %1625 = vmatpush.bf16.msra.mxu3 %v7975_v42 }
  0xf0   : > { %1537 = vmatpush.bf16.msra.mxu2 %v7966_v22  ;;  %1626 = vmatpush.bf16.msra.mxu3 %v7974_v31 }
  0xf1   : > { %625 = vmatmul.bf16.gmra.mxu0 %v7055_v34 }
  0xf2   : > { %714 = vmatmul.bf16.gmra.mxu1 %v7055_v34 }
 0x101   : > { %630 = vmatmul.bf16.gmra.mxu0 %v7059_v7 }
 0x102   : > { %719 = vmatmul.bf16.gmra.mxu1 %v7059_v7 }
 0x111   : > { %635 = vmatmul.bf16.gmra.mxu0 %v7063_v19 }
 0x112   : > { %724 = vmatmul.bf16.gmra.mxu1 %v7063_v19 }
 0x121   : > { %640 = vmatmul.bf16.gmra.mxu0 %v7067_v4 }
 0x122   : > { %729 = vmatmul.bf16.gmra.mxu1 %v7067_v4 }
 0x131   : > { %645 = vmatmul.bf16.gmra.mxu0 %v7071_v8 }
 0x132   : > { %734 = vmatmul.bf16.gmra.mxu1 %v7071_v8 }
 0x141   : > { %650 = vmatmul.bf16.gmra.mxu0 %v7075_v12 }
 0x142   : > { %739 = vmatmul.bf16.gmra.mxu1 %v7075_v12 }
 0x151   : > { %655 = vmatmul.bf16.gmra.mxu0 %v7079_v48 }
 0x152   : > { %744 = vmatmul.bf16.gmra.mxu1 %v7079_v48 }
 0x15e   : > { %v621_v27 = vpop.f32.mrf.mxu0 }
 0x15f   : > { %v9578_v34 = vadd.f32 %v621_v27, %v9571_v60  ;;  %v710_v7 = vpop.f32.mrf.mxu1 }
 0x160   : > { %v9581_v19 = vadd.f32 %v710_v7, %v9573_v0 }
 0x161   : > { %v790_v4 = vmul.f32 %v9578_v34, %v9578_v34  ;;  %660 = vmatmul.bf16.gmra.mxu0 %v7083_v23 }
 0x162   : > { %v791_v8 = vmul.f32 %v9581_v19, %v9581_v19  ;;  %749 = vmatmul.bf16.gmra.mxu1 %v7083_v23 }
 0x163   : > { %v854_v57 = vmul.f32 %v790_v4, %v9578_v34 }
 0x164   : > { %v855_v61 = vmul.f32 %v791_v8, %v9581_v19 }
 0x165   : > { %v918_v12 = vmul.f32 0.044715, %v854_v57 }
 0x166   : > { %v919_v16 = vmul.f32 0.044715, %v855_v61  ;;  %v623_v20 = vpop.f32.mrf.mxu0 }
 0x167   : > { %v624_v24 = vadd.f32 %v623_v20, %v9571_v60  ;;  %v712_v28 = vpop.f32.mrf.mxu1  ;;  %v982_v32 = vadd.f32 %v918_v12, %v9578_v34 }
 0x168   : > { %v713_v36 = vadd.f32 %v712_v28, %v9573_v0  ;;  %v983_v40 = vadd.f32 %v919_v16, %v9581_v19  ;;  %v8802_v28 = vmov 0  }
 0x169   : > { %v792_v44 = vmul.f32 %v624_v24, %v624_v24  ;;  %v1046_v56 = vmul.f32 0.7978846, %v982_v32  ;;  %8140 = vset.pattern.permute.xlu0 %v8802_v28  ;;  %8141 = vset.pattern.permute.xlu1 %v8802_v28 }
 0x16a   : > { %v793_v48 = vmul.f32 %v713_v36, %v713_v36  ;;  %v1047_v2 = vmul.f32 0.7978846, %v983_v40  ;;  %1710 = vperm.xlu0 %8140, %v9354_v18   ;;  %1720 = vperm.xlu1 %8141, %v9363_v26  }
 0x16b   : > { %v856_v52 = vmul.f32 %v792_v44, %v624_v24  ;;  %8144 = vtanh.f32 %v1046_v56  ;;  %8142 = vset.pattern.permute.xlu2 %v8802_v28 }
 0x16c   : > { %v857_v3 = vmul.f32 %v793_v48, %v713_v36  ;;  %8146 = vtanh.f32 %v1047_v2  ;;  %1730 = vperm.xlu2 %8142, %v9372_v6  }
 0x16d   : > { %v920_v15 = vmul.f32 0.044715, %v856_v52 }
 0x16e   : > { %v626_v42 = vpop.f32.mrf.mxu0  ;;  %v921_v22 = vmul.f32 0.044715, %v857_v3 }
 0x16f   : > { %v9596_v31 = vadd.f32 %v626_v42, %v9571_v60  ;;  %v715_v23 = vpop.f32.mrf.mxu1  ;;  %v984_v27 = vadd.f32 %v920_v15, %v624_v24 }
 0x170   : > { %v9599_v7 = vadd.f32 %v715_v23, %v9573_v0  ;;  %v985_v4 = vadd.f32 %v921_v22, %v713_v36  ;;  %v1110_v22 = vmul.f32 0.5, %v9578_v34 }
 0x171   : > { %v794_v8 = vmul.f32 %v9596_v31, %v9596_v31  ;;  %665 = vmatmul.bf16.gmra.mxu0 %v7087_v11  ;;  %v1048_v57 = vmul.f32 0.7978846, %v984_v27  ;;  %v8145_v16 = vpop.eup %8144 }
 0x172   : > { %v795_v33 = vmul.f32 %v9599_v7, %v9599_v7  ;;  %754 = vmatmul.bf16.gmra.mxu1 %v7087_v11  ;;  %v1049_v45 = vmul.f32 0.7978846, %v985_v4  ;;  %v8147_v32 = vpop.eup %8146  ;;  %v1238_v2 = vadd.f32 1.0, %v8145_v16  ;;  %1715 = vperm.xlu0 %8140, %v9360_v14  }
 0x173   : > { %v858_v61 = vmul.f32 %v794_v8, %v9596_v31  ;;  %8148 = vtanh.f32 %v1048_v57  ;;  %v1239_v23 = vadd.f32 1.0, %v8147_v32  ;;  %v1112_v8 = vmul.f32 0.5, %v624_v24  ;;  %1725 = vperm.xlu1 %8141, %v9366_v10  }
 0x174   : > { %v859_v12 = vmul.f32 %v795_v33, %v9599_v7  ;;  %8150 = vtanh.f32 %v1049_v45  ;;  %v1111_v33 = vmul.f32 0.5, %v9581_v19  ;;  %v1302_v28 = vmul.f32 %v1238_v2, %v1110_v22  ;;  %1735 = vperm.xlu2 %8142, %v9375_v30  }
 0x175   : > { %v922_v20 = vmul.f32 0.044715, %v858_v61  ;;  %v1113_v61 = vmul.f32 0.5, %v713_v36 }
 0x176   : > { %v923_v40 = vmul.f32 0.044715, %v859_v12  ;;  %v628_v44 = vpop.f32.mrf.mxu0  ;;  %v1303_v34 = vmul.f32 %v1239_v23, %v1111_v33 }
 0x177   : > { %v9610_v48 = vadd.f32 %v628_v44, %v9571_v60  ;;  %v717_v52 = vpop.f32.mrf.mxu1  ;;  %v986_v56 = vadd.f32 %v922_v20, %v9596_v31 }
 0x178   : > { %v9614_v3 = vadd.f32 %v717_v52, %v9573_v0  ;;  %v987_v11 = vadd.f32 %v923_v40, %v9599_v7  ;;  %v7091_v52 = vor.u32 %v9231_v9, %v9219_v21 }
 0x179   : > { %v8149_v15 = vpop.eup %8148  ;;  %v796_v42 = vmul.f32 %v9610_v48, %v9610_v48  ;;  %v1050_v16 = vmul.f32 0.7978846, %v986_v56 }
 0x17a   : > { %v8151_v27 = vpop.eup %8150  ;;  %v797_v4 = vmul.f32 %v9614_v3, %v9614_v3  ;;  %v1240_v57 = vadd.f32 1.0, %v8149_v15  ;;  %v1051_v44 = vmul.f32 0.7978846, %v987_v11  ;;  %1740 = vperm.xlu0 %8140, %v9378_v38  }
 0x17b   : > { %v860_v45 = vmul.f32 %v796_v42, %v9610_v48  ;;  %v1241_v12 = vadd.f32 1.0, %v8151_v27  ;;  %8152 = vtanh.f32 %v1050_v16  ;;  %1745 = vperm.xlu1 %8141, %v9381_v46  }
 0x17c   : > { %v861_v20 = vmul.f32 %v797_v4, %v9614_v3  ;;  %v1304_v40 = vmul.f32 %v1240_v57, %v1112_v8  ;;  %8154 = vtanh.f32 %v1051_v44  ;;  %1750 = vperm.xlu2 %8142, %v9384_v54  }
 0x17d   : > { %v1305_v32 = vmul.f32 %v1241_v12, %v1113_v61  ;;  %v924_v6 = vmul.f32 0.044715, %v860_v45 }
 0x17e   : > { %v631_v24 = vpop.f32.mrf.mxu0  ;;  %v1366_v15 = vpack.c.bf16 %v1304_v40, %v1302_v28  ;;  %v925_v26 = vmul.f32 0.044715, %v861_v20 }
 0x17f   : > { %v9631_v19 = vadd.f32 %v631_v24, %v9571_v60  ;;  %v720_v36 = vpop.f32.mrf.mxu1  ;;  %v1367_v56 = vpack.c.bf16 %v1305_v32, %v1303_v34  ;;  %v988_v2 = vadd.f32 %v924_v6, %v9610_v48  ;;  %v1114_v34 = vmul.f32 0.5, %v9596_v31 }
 0x180   : > { %v9635_v11 = vadd.f32 %v720_v36, %v9573_v0  ;;  %1538 = vmatmul.bf16.vlgmr.msra.gmra.mxu2 %v1366_v15  ;;  %v989_v9 = vadd.f32 %v925_v26, %v9614_v3  ;;  %v1116_v15 = vmul.f32 0.5, %v9610_v48 }
 0x181   : > { %v798_v21 = vmul.f32 %v9631_v19, %v9631_v19  ;;  %1627 = vmatmul.bf16.vlgmr.msra.gmra.mxu3 %v1367_v56  ;;  %670 = vmatmul.bf16.gmra.mxu0 %v7091_v52  ;;  %v1052_v42 = vmul.f32 0.7978846, %v988_v2  ;;  %v8153_v26 = vpop.eup %8152  ;;  %v1115_v56 = vmul.f32 0.5, %v9599_v7 }
 0x182   : > { %v799_v22 = vmul.f32 %v9635_v11, %v9635_v11  ;;  %759 = vmatmul.bf16.gmra.mxu1 %v7091_v52  ;;  %v1053_v6 = vmul.f32 0.7978846, %v989_v9  ;;  %v8155_v8 = vpop.eup %8154  ;;  %v1242_v20 = vadd.f32 1.0, %v8153_v26  ;;  %v1117_v9 = vmul.f32 0.5, %v9614_v3  ;;  %1755 = vperm.xlu0 %8140, %v9387_v62  }
 0x183   : > { %v862_v23 = vmul.f32 %v798_v21, %v9631_v19  ;;  %8156 = vtanh.f32 %v1052_v42  ;;  %v1243_v32 = vadd.f32 1.0, %v8155_v8  ;;  %1760 = vperm.xlu1 %8141, %v9390_v41  }
 0x184   : > { %v863_v27 = vmul.f32 %v799_v22, %v9635_v11  ;;  %8158 = vtanh.f32 %v1053_v6  ;;  %v1306_v6 = vmul.f32 %v1242_v20, %v1114_v34  ;;  %1765 = vperm.xlu2 %8142, %v9393_v1  }
 0x185   : > { %v926_v4 = vmul.f32 0.044715, %v862_v23 }
 0x186   : > { %v927_v57 = vmul.f32 0.044715, %v863_v27  ;;  %v633_v33 = vpop.f32.mrf.mxu0  ;;  %v1307_v27 = vmul.f32 %v1243_v32, %v1115_v56 }
 0x187   : > { %v9648_v45 = vadd.f32 %v633_v33, %v9571_v60  ;;  %v722_v61 = vpop.f32.mrf.mxu1  ;;  %v990_v12 = vadd.f32 %v926_v4, %v9631_v19  ;;  %v7095_v4 = vor.u32 %v9255_v5, %v9243_v17 }
 0x188   : > { %v9652_v16 = vadd.f32 %v722_v61, %v9573_v0  ;;  %v991_v28 = vadd.f32 %v927_v57, %v9635_v11 }
 0x189   : > { %v8157_v40 = vpop.eup %8156  ;;  %v800_v44 = vmul.f32 %v9648_v45, %v9648_v45  ;;  %v1054_v42 = vmul.f32 0.7978846, %v990_v12 }
 0x18a   : > { %v8159_v52 = vpop.eup %8158  ;;  %v801_v24 = vmul.f32 %v9652_v16, %v9652_v16  ;;  %v1244_v36 = vadd.f32 1.0, %v8157_v40  ;;  %v1055_v23 = vmul.f32 0.7978846, %v991_v28  ;;  %1770 = vperm.xlu0 %8140, %v9396_v13  }
 0x18b   : > { %v864_v2 = vmul.f32 %v800_v44, %v9648_v45  ;;  %v1245_v21 = vadd.f32 1.0, %v8159_v52  ;;  %8160 = vtanh.f32 %v1054_v42  ;;  %1775 = vperm.xlu1 %8141, %v9399_v25  }
 0x18c   : > { %v865_v22 = vmul.f32 %v801_v24, %v9652_v16  ;;  %v1308_v31 = vmul.f32 %v1244_v36, %v1116_v15  ;;  %8162 = vtanh.f32 %v1055_v23  ;;  %1780 = vperm.xlu2 %8142, %v9402_v37  }
 0x18d   : > { %v1309_v26 = vmul.f32 %v1245_v21, %v1117_v9  ;;  %v928_v48 = vmul.f32 0.044715, %v864_v2 }
 0x18e   : > { %v636_v8 = vpop.f32.mrf.mxu0  ;;  %v1368_v57 = vpack.c.bf16 %v1308_v31, %v1306_v6  ;;  %v929_v7 = vmul.f32 0.044715, %v865_v22 }
 0x18f   : > { %v9671_v3 = vadd.f32 %v636_v8, %v9571_v60  ;;  %v725_v33 = vpop.f32.mrf.mxu1  ;;  %v1369_v61 = vpack.c.bf16 %v1309_v26, %v1307_v27  ;;  %v992_v12 = vadd.f32 %v928_v48, %v9648_v45  ;;  %v1118_v27 = vmul.f32 0.5, %v9631_v19 }
 0x190   : > { %v9675_v20 = vadd.f32 %v725_v33, %v9573_v0  ;;  %1543 = vmatmul.bf16.gmra.mxu2 %v1368_v57  ;;  %v993_v5 = vadd.f32 %v929_v7, %v9652_v16  ;;  %v1120_v8 = vmul.f32 0.5, %v9648_v45  ;;  %v1119_v7 = vmul.f32 0.5, %v9635_v11 }
 0x191   : > { %v802_v17 = vmul.f32 %v9671_v3, %v9671_v3  ;;  %1632 = vmatmul.bf16.gmra.mxu3 %v1369_v61  ;;  %675 = vmatmul.bf16.gmra.mxu0 %v7095_v4  ;;  %v1056_v28 = vmul.f32 0.7978846, %v992_v12  ;;  %v8161_v52 = vpop.eup %8160  ;;  %v1121_v61 = vmul.f32 0.5, %v9652_v16 }
 0x192   : > { %v803_v40 = vmul.f32 %v9675_v20, %v9675_v20  ;;  %764 = vmatmul.bf16.gmra.mxu1 %v7095_v4  ;;  %v1057_v44 = vmul.f32 0.7978846, %v993_v5  ;;  %v8163_v15 = vpop.eup %8162  ;;  %v1246_v22 = vadd.f32 1.0, %v8161_v52  ;;  %1785 = vperm.xlu0 %8140, %v9405_v49  }
 0x193   : > { %v866_v34 = vmul.f32 %v802_v17, %v9671_v3  ;;  %8164 = vtanh.f32 %v1056_v28  ;;  %v1247_v26 = vadd.f32 1.0, %v8163_v15  ;;  %1790 = vperm.xlu1 %8141, %v9408_v63  }
 0x194   : > { %v867_v32 = vmul.f32 %v803_v40, %v9675_v20  ;;  %8166 = vtanh.f32 %v1057_v44  ;;  %v1310_v28 = vmul.f32 %v1246_v22, %v1118_v27  ;;  %1795 = vperm.xlu2 %8142, %v9411_v59  }
 0x195   : > { %v930_v24 = vmul.f32 0.044715, %v866_v34  ;;  %v1311_v44 = vmul.f32 %v1247_v26, %v1119_v7 }
 0x196   : > { %v931_v36 = vmul.f32 0.044715, %v867_v32  ;;  %v638_v56 = vpop.f32.mrf.mxu0  ;;  %v7099_v32 = vor.u32 %v9279_v53, %v9267_v29 }
 0x197   : > { %v9688_v2 = vadd.f32 %v638_v56, %v9571_v60  ;;  %v727_v9 = vpop.f32.mrf.mxu1  ;;  %v994_v21 = vadd.f32 %v930_v24, %v9671_v3 }
 0x198   : > { %v9692_v42 = vadd.f32 %v727_v9, %v9573_v0  ;;  %v995_v6 = vadd.f32 %v931_v36, %v9675_v20 }
 0x199   : > { %v8165_v31 = vpop.eup %8164  ;;  %v804_v23 = vmul.f32 %v9688_v2, %v9688_v2  ;;  %v1058_v5 = vmul.f32 0.7978846, %v994_v21 }
 0x19a   : > { %v8167_v4 = vpop.eup %8166  ;;  %v805_v48 = vmul.f32 %v9692_v42, %v9692_v42  ;;  %v1248_v57 = vadd.f32 1.0, %v8165_v31  ;;  %v1059_v40 = vmul.f32 0.7978846, %v995_v6  ;;  %1800 = vperm.xlu0 %8140, %v9414_v55  }
 0x19b   : > { %v868_v33 = vmul.f32 %v804_v23, %v9688_v2  ;;  %v1249_v12 = vadd.f32 1.0, %v8167_v4  ;;  %8168 = vtanh.f32 %v1058_v5  ;;  %1805 = vperm.xlu1 %8141, %v9417_v51  }
 0x19c   : > { %v869_v17 = vmul.f32 %v805_v48, %v9692_v42  ;;  %v1312_v19 = vmul.f32 %v1248_v57, %v1120_v8  ;;  %8170 = vtanh.f32 %v1059_v40  ;;  %1810 = vperm.xlu2 %8142, %v9420_v47  }
 0x19d   : > { %v1313_v34 = vmul.f32 %v1249_v12, %v1121_v61  ;;  %v932_v45 = vmul.f32 0.044715, %v868_v33 }
 0x19e   : > { %v641_v52 = vpop.f32.mrf.mxu0  ;;  %v1370_v24 = vpack.c.bf16 %v1312_v19, %v1310_v28  ;;  %v933_v11 = vmul.f32 0.044715, %v869_v17  ;;  %v1122_v19 = vmul.f32 0.5, %v9671_v3 }
 0x19f   : > { %v9711_v16 = vadd.f32 %v641_v52, %v9571_v60  ;;  %v730_v15 = vpop.f32.mrf.mxu1  ;;  %v1371_v36 = vpack.c.bf16 %v1313_v34, %v1311_v44  ;;  %v996_v56 = vadd.f32 %v932_v45, %v9688_v2  ;;  %v1123_v52 = vmul.f32 0.5, %v9675_v20 }
 0x1a0   : > { %v9715_v9 = vadd.f32 %v730_v15, %v9573_v0  ;;  %1548 = vmatmul.bf16.gmra.mxu2 %v1370_v24  ;;  %v997_v29 = vadd.f32 %v933_v11, %v9692_v42  ;;  %v1125_v11 = vmul.f32 0.5, %v9692_v42 }
 0x1a1   : > { %v806_v53 = vmul.f32 %v9711_v16, %v9711_v16  ;;  %1637 = vmatmul.bf16.gmra.mxu3 %v1371_v36  ;;  %680 = vmatmul.bf16.gmra.mxu0 %v7099_v32  ;;  %v1060_v21 = vmul.f32 0.7978846, %v996_v56  ;;  %v8169_v27 = vpop.eup %8168 }
 0x1a2   : > { %v807_v22 = vmul.f32 %v9715_v9, %v9715_v9  ;;  %769 = vmatmul.bf16.gmra.mxu1 %v7099_v32  ;;  %v1061_v6 = vmul.f32 0.7978846, %v997_v29  ;;  %v8171_v4 = vpop.eup %8170  ;;  %v1250_v12 = vadd.f32 1.0, %v8169_v27  ;;  %v1124_v32 = vmul.f32 0.5, %v9688_v2  ;;  %1815 = vperm.xlu0 %8140, %v9423_v43  }
 0x1a3   : > { %v870_v31 = vmul.f32 %v806_v53, %v9711_v16  ;;  %8172 = vtanh.f32 %v1060_v21  ;;  %v1251_v40 = vadd.f32 1.0, %v8171_v4  ;;  %v7103_v2 = vor.u32 %v9303_v50, %v9291_v58  ;;  %1820 = vperm.xlu1 %8141, %v9426_v39  }
 0x1a4   : > { %v871_v23 = vmul.f32 %v807_v22, %v9715_v9  ;;  %8174 = vtanh.f32 %v1061_v6  ;;  %v1314_v29 = vmul.f32 %v1250_v12, %v1122_v19  ;;  %1825 = vperm.xlu2 %8142, %v9429_v35  }
 0x1a5   : > { %v934_v26 = vmul.f32 0.044715, %v870_v31  ;;  %v1315_v22 = vmul.f32 %v1251_v40, %v1123_v52 }
 0x1a6   : > { %v935_v48 = vmul.f32 0.044715, %v871_v23  ;;  %v643_v8 = vpop.f32.mrf.mxu0 }
 0x1a7   : > { %v9728_v57 = vadd.f32 %v643_v8, %v9571_v60  ;;  %v732_v7 = vpop.f32.mrf.mxu1  ;;  %v998_v33 = vadd.f32 %v934_v26, %v9711_v16 }
 0x1a8   : > { %v9732_v61 = vadd.f32 %v732_v7, %v9573_v0  ;;  %v999_v5 = vadd.f32 %v935_v48, %v9715_v9 }
 0x1a9   : > { %v8173_v17 = vpop.eup %8172  ;;  %v808_v28 = vmul.f32 %v9728_v57, %v9728_v57  ;;  %v1062_v36 = vmul.f32 0.7978846, %v998_v33 }
 0x1aa   : > { %v8175_v44 = vpop.eup %8174  ;;  %v809_v34 = vmul.f32 %v9732_v61, %v9732_v61  ;;  %v1252_v45 = vadd.f32 1.0, %v8173_v17  ;;  %v1063_v53 = vmul.f32 0.7978846, %v999_v5 }
 0x1ab   : > { %v872_v24 = vmul.f32 %v808_v28, %v9728_v57  ;;  %v1253_v15 = vadd.f32 1.0, %v8175_v44  ;;  %8176 = vtanh.f32 %v1062_v36 }
 0x1ac   : > { %v873_v56 = vmul.f32 %v809_v34, %v9732_v61  ;;  %v1316_v3 = vmul.f32 %v1252_v45, %v1124_v32  ;;  %8178 = vtanh.f32 %v1063_v53  ;;  %v13284_v34 = vld [vmem:[#allocation119_spill] sm:$0xff]  ;;  %v13285_v32 = vld [vmem:[#allocation118_spill] sm:$0xff]  ;;  %v1126_v53 = vmul.f32 0.5, %v9711_v16 }
 0x1ad   : > { %v936_v21 = vmul.f32 0.044715, %v872_v24  ;;  %v1317_v6 = vmul.f32 %v1253_v15, %v1125_v11  ;;  %1835 = vperm.xlu1 %8141, %v13284_v34   ;;  %1830 = vperm.xlu0 %8140, %v13285_v32  }
 0x1ae   : > { %v937_v31 = vmul.f32 0.044715, %v873_v56  ;;  %v646_v23 = vpop.f32.mrf.mxu0  ;;  %v1372_v20 = vpack.c.bf16 %v1316_v3, %v1314_v29  ;;  %v13286_v56 = vld [vmem:[#allocation120_spill] sm:$0xff] }
 0x1af   : > { %v9751_v42 = vadd.f32 %v646_v23, %v9571_v60  ;;  %v735_v27 = vpop.f32.mrf.mxu1  ;;  %v1373_v26 = vpack.c.bf16 %v1317_v6, %v1315_v22  ;;  %v1000_v4 = vadd.f32 %v936_v21, %v9728_v57  ;;  %1840 = vperm.xlu2 %8142, %v13286_v56   ;;  %v1127_v23 = vmul.f32 0.5, %v9715_v9 }
 0x1b0   : > { %v9755_v48 = vadd.f32 %v735_v27, %v9573_v0  ;;  %1553 = vmatmul.bf16.gmra.mxu2 %v1372_v20  ;;  %v1001_v50 = vadd.f32 %v937_v31, %v9732_v61  ;;  %v1129_v27 = vmul.f32 0.5, %v9732_v61 }
 0x1b1   : > { %v810_v58 = vmul.f32 %v9751_v42, %v9751_v42  ;;  %1642 = vmatmul.bf16.gmra.mxu3 %v1373_v26  ;;  %685 = vmatmul.bf16.gmra.mxu0 %v7103_v2  ;;  %v1064_v8 = vmul.f32 0.7978846, %v1000_v4  ;;  %v8177_v17 = vpop.eup %8176 }
 0x1b2   : > { %v811_v7 = vmul.f32 %v9755_v48, %v9755_v48  ;;  %774 = vmatmul.bf16.gmra.mxu1 %v7103_v2  ;;  %v1065_v33 = vmul.f32 0.7978846, %v1001_v50  ;;  %v8179_v19 = vpop.eup %8178  ;;  %v1254_v15 = vadd.f32 1.0, %v8177_v17  ;;  %v1128_v2 = vmul.f32 0.5, %v9728_v57  ;;  %v13288_v17 = vld [vmem:[#allocation103_spill] sm:$0xff] }
 0x1b3   : > { %v874_v12 = vmul.f32 %v810_v58, %v9751_v42  ;;  %8180 = vtanh.f32 %v1064_v8  ;;  %v1255_v21 = vadd.f32 1.0, %v8179_v19 }
 0x1b4   : > { %v875_v5 = vmul.f32 %v811_v7, %v9755_v48  ;;  %8182 = vtanh.f32 %v1065_v33  ;;  %v1318_v58 = vmul.f32 %v1254_v15, %v1126_v53 }
 0x1b5   : > { %v938_v28 = vmul.f32 0.044715, %v874_v12  ;;  %v1319_v33 = vmul.f32 %v1255_v21, %v1127_v23 }
 0x1b6   : > { %v939_v40 = vmul.f32 0.044715, %v875_v5  ;;  %v648_v44 = vpop.f32.mrf.mxu0  ;;  %v13287_v5 = vld [vmem:[#allocation99_spill] sm:$0xff] }
 0x1b7   : > { %v9768_v45 = vadd.f32 %v648_v44, %v9571_v60  ;;  %v737_v52 = vpop.f32.mrf.mxu1  ;;  %v1002_v24 = vadd.f32 %v938_v28, %v9751_v42  ;;  %v7107_v57 = vor.u32 %v13288_v17, %v13287_v5  ;;  %v13290_v44 = vld [vmem:[#allocation121_spill] sm:$0xff]  ;;  %v1130_v5 = vmul.f32 0.5, %v9751_v42 }
 0x1b8   : > { %v9772_v11 = vadd.f32 %v737_v52, %v9573_v0  ;;  %v1003_v36 = vadd.f32 %v939_v40, %v9755_v48  ;;  %v13289_v40 = vld [vmem:[#allocation122_spill] sm:$0xff]  ;;  %1845 = vperm.xlu0 %8140, %v13290_v44  }
 0x1b9   : > { %v8181_v29 = vpop.eup %8180  ;;  %v812_v3 = vmul.f32 %v9768_v45, %v9768_v45  ;;  %v1066_v4 = vmul.f32 0.7978846, %v1002_v24  ;;  %1850 = vperm.xlu1 %8141, %v13289_v40   ;;  %v1131_v40 = vmul.f32 0.5, %v9755_v48 }
 0x1ba   : > { %v8183_v22 = vpop.eup %8182  ;;  %v813_v6 = vmul.f32 %v9772_v11, %v9772_v11  ;;  %v1256_v31 = vadd.f32 1.0, %v8181_v29  ;;  %v1067_v8 = vmul.f32 0.7978846, %v1003_v36  ;;  %v13291_v36 = vld [vmem:[#allocation123_spill] sm:$0xff] }
 0x1bb   : > { %v876_v20 = vmul.f32 %v812_v3, %v9768_v45  ;;  %v1257_v26 = vadd.f32 1.0, %v8183_v22  ;;  %8184 = vtanh.f32 %v1066_v4  ;;  %1855 = vperm.xlu2 %8142, %v13291_v36  }
 0x1bc   : > { %v877_v50 = vmul.f32 %v813_v6, %v9772_v11  ;;  %v1320_v16 = vmul.f32 %v1256_v31, %v1128_v2  ;;  %8186 = vtanh.f32 %v1067_v8 }
 0x1bd   : > { %v940_v7 = vmul.f32 0.044715, %v876_v20  ;;  %v1321_v12 = vmul.f32 %v1257_v26, %v1129_v27  ;;  %v13292_v27 = vld [vmem:[#allocation125_spill] sm:$0xff]  ;;  %v13293_v26 = vld [vmem:[#allocation124_spill] sm:$0xff] }
 0x1be   : > { %v941_v28 = vmul.f32 0.044715, %v877_v50  ;;  %v651_v19 = vpop.f32.mrf.mxu0  ;;  %v1374_v9 = vpack.c.bf16 %v1320_v16, %v1318_v58 }
 0x1bf   : > { %v9791_v61 = vadd.f32 %v651_v19, %v9571_v60  ;;  %v740_v34 = vpop.f32.mrf.mxu1  ;;  %v1375_v32 = vpack.c.bf16 %v1321_v12, %v1319_v33  ;;  %v1004_v52 = vadd.f32 %v940_v7, %v9768_v45  ;;  %v1132_v19 = vmul.f32 0.5, %v9768_v45 }
 0x1c0   : > { %v9795_v24 = vadd.f32 %v740_v34, %v9573_v0  ;;  %1558 = vmatmul.bf16.gmra.mxu2 %v1374_v9  ;;  %v1005_v15 = vadd.f32 %v941_v28, %v9772_v11  ;;  %1860 = vperm.xlu0 %8140, %v13293_v26   ;;  %v1133_v34 = vmul.f32 0.5, %v9772_v11 }
 0x1c1   : > { %v814_v56 = vmul.f32 %v9791_v61, %v9791_v61  ;;  %1647 = vmatmul.bf16.gmra.mxu3 %v1375_v32  ;;  %690 = vmatmul.bf16.gmra.mxu0 %v7107_v57  ;;  %v1068_v29 = vmul.f32 0.7978846, %v1004_v52  ;;  %v8185_v6 = vpop.eup %8184 }
 0x1c2   : > { %v815_v3 = vmul.f32 %v9795_v24, %v9795_v24  ;;  %779 = vmatmul.bf16.gmra.mxu1 %v7107_v57  ;;  %v1069_v53 = vmul.f32 0.7978846, %v1005_v15  ;;  %v8187_v31 = vpop.eup %8186  ;;  %1865 = vperm.xlu1 %8141, %v13292_v27   ;;  %v1258_v8 = vadd.f32 1.0, %v8185_v6 }
 0x1c3   : > { %v878_v21 = vmul.f32 %v814_v56, %v9791_v61  ;;  %8188 = vtanh.f32 %v1068_v29  ;;  %v1259_v17 = vadd.f32 1.0, %v8187_v31 }
 0x1c4   : > { %v879_v22 = vmul.f32 %v815_v3, %v9795_v24  ;;  %8190 = vtanh.f32 %v1069_v53  ;;  %v1322_v36 = vmul.f32 %v1258_v8, %v1130_v5 }
 0x1c5   : > { %v942_v2 = vmul.f32 0.044715, %v878_v21  ;;  %v1323_v3 = vmul.f32 %v1259_v17, %v1131_v40  ;;  %v13294_v21 = vld [vmem:[#allocation107_spill] sm:$0xff] }
 0x1c6   : > { %v943_v23 = vmul.f32 0.044715, %v879_v22  ;;  %v653_v20 = vpop.f32.mrf.mxu0  ;;  %v13295_v22 = vld [vmem:[#allocation111_spill] sm:$0xff] }
 0x1c7   : > { %v9808_v4 = vadd.f32 %v653_v20, %v9571_v60  ;;  %v742_v50 = vpop.f32.mrf.mxu1  ;;  %v1006_v58 = vadd.f32 %v942_v2, %v9791_v61  ;;  %v7111_v45 = vor.u32 %v13295_v22, %v13294_v21  ;;  %v1135_v22 = vmul.f32 0.5, %v9795_v24 }
 0x1c8   : > { %v9812_v16 = vadd.f32 %v742_v50, %v9573_v0  ;;  %v1007_v7 = vadd.f32 %v943_v23, %v9795_v24 }
 0x1c9   : > { %v8189_v33 = vpop.eup %8188  ;;  %v816_v12 = vmul.f32 %v9808_v4, %v9808_v4  ;;  %v1070_v52 = vmul.f32 0.7978846, %v1006_v58 }
 0x1ca   : > { %v8191_v57 = vpop.eup %8190  ;;  %v817_v28 = vmul.f32 %v9812_v16, %v9812_v16  ;;  %v1260_v9 = vadd.f32 1.0, %v8189_v33  ;;  %v1071_v56 = vmul.f32 0.7978846, %v1007_v7 }
 0x1cb   : > { %v880_v44 = vmul.f32 %v816_v12, %v9808_v4  ;;  %v1261_v32 = vadd.f32 1.0, %v8191_v57  ;;  %8192 = vtanh.f32 %v1070_v52 }
 0x1cc   : > { %v881_v15 = vmul.f32 %v817_v28, %v9812_v16  ;;  %v1324_v42 = vmul.f32 %v1260_v9, %v1132_v19  ;;  %8194 = vtanh.f32 %v1071_v56 }
 0x1cd   : > { %v944_v29 = vmul.f32 0.044715, %v880_v44  ;;  %v1325_v53 = vmul.f32 %v1261_v32, %v1133_v34 }
 0x1ce   : > { %v945_v6 = vmul.f32 0.044715, %v881_v15  ;;  %v656_v2 = vpop.f32.mrf.mxu0  ;;  %v1376_v48 = vpack.c.bf16 %v1324_v42, %v1322_v36  ;;  %v1134_v42 = vmul.f32 0.5, %v9791_v61 }
 0x1cf   : > { %v9828_v31 = vadd.f32 %v656_v2, %v9571_v60  ;;  %v745_v11 = vpop.f32.mrf.mxu1  ;;  %v1377_v23 = vpack.c.bf16 %v1325_v53, %v1323_v3  ;;  %v1008_v20 = vadd.f32 %v944_v29, %v9808_v4  ;;  %v1136_v53 = vmul.f32 0.5, %v9808_v4 }
 0x1d0   : > { %v9832_v27 = vadd.f32 %v745_v11, %v9573_v0  ;;  %1563 = vmatmul.bf16.gmra.mxu2 %v1376_v48  ;;  %v1009_v26 = vadd.f32 %v945_v6, %v9812_v16  ;;  %v1137_v6 = vmul.f32 0.5, %v9812_v16 }
 0x1d1   : > { %v818_v50 = vmul.f32 %v9828_v31, %v9828_v31  ;;  %1652 = vmatmul.bf16.gmra.mxu3 %v1377_v23  ;;  %695 = vmatmul.bf16.gmra.mxu0 %v7111_v45  ;;  %v1072_v58 = vmul.f32 0.7978846, %v1008_v20  ;;  %v8193_v5 = vpop.eup %8192 }
 0x1d2   : > { %v819_v8 = vmul.f32 %v9832_v27, %v9832_v27  ;;  %784 = vmatmul.bf16.gmra.mxu1 %v7111_v45  ;;  %v1073_v7 = vmul.f32 0.7978846, %v1009_v26  ;;  %v8195_v57 = vpop.eup %8194  ;;  %v1262_v32 = vadd.f32 1.0, %v8193_v5 }
 0x1d3   : > { %v882_v33 = vmul.f32 %v818_v50, %v9828_v31  ;;  %8196 = vtanh.f32 %v1072_v58  ;;  %v1263_v56 = vadd.f32 1.0, %v8195_v57 }
 0x1d4   : > { %v883_v12 = vmul.f32 %v819_v8, %v9832_v27  ;;  %8198 = vtanh.f32 %v1073_v7  ;;  %v1326_v23 = vmul.f32 %v1262_v32, %v1134_v42 }
 0x1d5   : > { %v946_v17 = vmul.f32 0.044715, %v882_v33  ;;  %v1327_v50 = vmul.f32 %v1263_v56, %v1135_v22 }
 0x1d6   : > { %v947_v28 = vmul.f32 0.044715, %v883_v12  ;;  %v658_v19 = vpop.f32.mrf.mxu0 }
 0x1d7   : > { %v9842_v9 = vadd.f32 %v658_v19, %v9571_v60  ;;  %v747_v40 = vpop.f32.mrf.mxu1  ;;  %v1010_v44 = vadd.f32 %v946_v17, %v9828_v31 }
 0x1d8   : > { %v9846_v34 = vadd.f32 %v747_v40, %v9573_v0  ;;  %v1011_v52 = vadd.f32 %v947_v28, %v9832_v27 }
 0x1d9   : > { %v8197_v15 = vpop.eup %8196  ;;  %v820_v36 = vmul.f32 %v9842_v9, %v9842_v9  ;;  %v1074_v48 = vmul.f32 0.7978846, %v1010_v44 }
 0x1da   : > { %v8199_v29 = vpop.eup %8198  ;;  %v821_v3 = vmul.f32 %v9846_v34, %v9846_v34  ;;  %v1264_v21 = vadd.f32 1.0, %v8197_v15  ;;  %v1075_v20 = vmul.f32 0.7978846, %v1011_v52 }
 0x1db   : > { %v884_v45 = vmul.f32 %v820_v36, %v9842_v9  ;;  %v1265_v2 = vadd.f32 1.0, %v8199_v29  ;;  %8200 = vtanh.f32 %v1074_v48  ;;  %v1138_v48 = vmul.f32 0.5, %v9828_v31 }
 0x1dc   : > { %v885_v11 = vmul.f32 %v821_v3, %v9846_v34  ;;  %v1328_v61 = vmul.f32 %v1264_v21, %v1136_v53  ;;  %8202 = vtanh.f32 %v1075_v20  ;;  %v1140_v20 = vmul.f32 0.5, %v9842_v9 }
 0x1dd   : > { %v948_v26 = vmul.f32 0.044715, %v884_v45  ;;  %v1329_v58 = vmul.f32 %v1265_v2, %v1137_v6 }
 0x1de   : > { %v949_v8 = vmul.f32 0.044715, %v885_v11  ;;  %v661_v7 = vpop.f32.mrf.mxu0  ;;  %v1378_v4 = vpack.c.bf16 %v1328_v61, %v1326_v23 }
 0x1df   : > { %v9860_v33 = vadd.f32 %v661_v7, %v9571_v60  ;;  %v750_v24 = vpop.f32.mrf.mxu1  ;;  %v1379_v12 = vpack.c.bf16 %v1329_v58, %v1327_v50  ;;  %v1012_v16 = vadd.f32 %v948_v26, %v9842_v9  ;;  %v1139_v50 = vmul.f32 0.5, %v9832_v27 }
 0x1e0   : > { %v9864_v5 = vadd.f32 %v750_v24, %v9573_v0  ;;  %1568 = vmatmul.bf16.gmra.mxu2 %v1378_v4  ;;  %v1013_v17 = vadd.f32 %v949_v8, %v9846_v34  ;;  %v1141_v8 = vmul.f32 0.5, %v9846_v34 }
 0x1e1   : > { %v822_v57 = vmul.f32 %v9860_v33, %v9860_v33  ;;  %1657 = vmatmul.bf16.gmra.mxu3 %v1379_v12  ;;  %v1076_v28 = vmul.f32 0.7978846, %v1012_v16  ;;  %v8201_v52 = vpop.eup %8200 }
 0x1e2   : > { %v823_v19 = vmul.f32 %v9864_v5, %v9864_v5  ;;  %v1077_v40 = vmul.f32 0.7978846, %v1013_v17  ;;  %v8203_v36 = vpop.eup %8202  ;;  %v1266_v22 = vadd.f32 1.0, %v8201_v52 }
 0x1e3   : > { %v886_v44 = vmul.f32 %v822_v57, %v9860_v33  ;;  %8204 = vtanh.f32 %v1076_v28  ;;  %v1267_v11 = vadd.f32 1.0, %v8203_v36 }
 0x1e4   : > { %v887_v32 = vmul.f32 %v823_v19, %v9864_v5  ;;  %8206 = vtanh.f32 %v1077_v40  ;;  %v1330_v12 = vmul.f32 %v1266_v22, %v1138_v48 }
 0x1e5   : > { %v950_v15 = vmul.f32 0.044715, %v886_v44  ;;  %v1331_v57 = vmul.f32 %v1267_v11, %v1139_v50 }
 0x1e6   : > { %v951_v42 = vmul.f32 0.044715, %v887_v32  ;;  %v663_v56 = vpop.f32.mrf.mxu0 }
 0x1e7   : > { %v9874_v29 = vadd.f32 %v663_v56, %v9571_v60  ;;  %v752_v3 = vpop.f32.mrf.mxu1  ;;  %v1014_v53 = vadd.f32 %v950_v15, %v9860_v33 }
 0x1e8   : > { %v9878_v21 = vadd.f32 %v752_v3, %v9573_v0  ;;  %v1015_v45 = vadd.f32 %v951_v42, %v9864_v5 }
 0x1e9   : > { %v8205_v6 = vpop.eup %8204  ;;  %v824_v2 = vmul.f32 %v9874_v29, %v9874_v29  ;;  %v1078_v4 = vmul.f32 0.7978846, %v1014_v53 }
 0x1ea   : > { %v8207_v23 = vpop.eup %8206  ;;  %v825_v61 = vmul.f32 %v9878_v21, %v9878_v21  ;;  %v1268_v26 = vadd.f32 1.0, %v8205_v6  ;;  %v1079_v16 = vmul.f32 0.7978846, %v1015_v45 }
 0x1eb   : > { %v888_v58 = vmul.f32 %v824_v2, %v9874_v29  ;;  %v1269_v7 = vadd.f32 1.0, %v8207_v23  ;;  %8208 = vtanh.f32 %v1078_v4  ;;  %v1142_v4 = vmul.f32 0.5, %v9860_v33 }
 0x1ec   : > { %v889_v24 = vmul.f32 %v825_v61, %v9878_v21  ;;  %v1332_v31 = vmul.f32 %v1268_v26, %v1140_v20  ;;  %8210 = vtanh.f32 %v1079_v16  ;;  %v1144_v16 = vmul.f32 0.5, %v9874_v29 }
 0x1ed   : > { %v952_v17 = vmul.f32 0.044715, %v888_v58  ;;  %v1333_v28 = vmul.f32 %v1269_v7, %v1141_v8 }
 0x1ee   : > { %v953_v19 = vmul.f32 0.044715, %v889_v24  ;;  %v666_v40 = vpop.f32.mrf.mxu0  ;;  %v1380_v9 = vpack.c.bf16 %v1332_v31, %v1330_v12 }
 0x1ef   : > { %v9892_v44 = vadd.f32 %v666_v40, %v9571_v60  ;;  %v755_v27 = vpop.f32.mrf.mxu1  ;;  %v1381_v32 = vpack.c.bf16 %v1333_v28, %v1331_v57  ;;  %v1016_v34 = vadd.f32 %v952_v17, %v9874_v29  ;;  %v1145_v40 = vmul.f32 0.5, %v9878_v21 }
 0x1f0   : > { %v9896_v52 = vadd.f32 %v755_v27, %v9573_v0  ;;  %1573 = vmatmul.bf16.gmra.mxu2 %v1380_v9  ;;  %v1017_v15 = vadd.f32 %v953_v19, %v9878_v21  ;;  %v1143_v19 = vmul.f32 0.5, %v9864_v5 }
 0x1f1   : > { %v826_v36 = vmul.f32 %v9892_v44, %v9892_v44  ;;  %1662 = vmatmul.bf16.gmra.mxu3 %v1381_v32  ;;  %v1080_v42 = vmul.f32 0.7978846, %v1016_v34  ;;  %v8209_v45 = vpop.eup %8208 }
 0x1f2   : > { %v827_v56 = vmul.f32 %v9896_v52, %v9896_v52  ;;  %v1081_v3 = vmul.f32 0.7978846, %v1017_v15  ;;  %v8211_v2 = vpop.eup %8210  ;;  %v1270_v50 = vadd.f32 1.0, %v8209_v45 }
 0x1f3   : > { %v890_v53 = vmul.f32 %v826_v36, %v9892_v44  ;;  %8212 = vtanh.f32 %v1080_v42  ;;  %v1271_v24 = vadd.f32 1.0, %v8211_v2 }
 0x1f4   : > { %v891_v22 = vmul.f32 %v827_v56, %v9896_v52  ;;  %8214 = vtanh.f32 %v1081_v3  ;;  %v1334_v32 = vmul.f32 %v1270_v50, %v1142_v4 }
 0x1f5   : > { %v954_v6 = vmul.f32 0.044715, %v890_v53  ;;  %v1335_v36 = vmul.f32 %v1271_v24, %v1143_v19 }
 0x1f6   : > { %v955_v48 = vmul.f32 0.044715, %v891_v22  ;;  %v668_v11 = vpop.f32.mrf.mxu0 }
 0x1f7   : > { %v9906_v23 = vadd.f32 %v668_v11, %v9571_v60  ;;  %v757_v61 = vpop.f32.mrf.mxu1  ;;  %v1018_v20 = vadd.f32 %v954_v6, %v9892_v44  ;;  %v9933_v6 = vld [vmem:[%s13158_s6] ss:$0 sm:$0xff] }
 0x1f8   : > { %v9910_v26 = vadd.f32 %v757_v61, %v9573_v0  ;;  %v1019_v58 = vadd.f32 %v955_v48, %v9896_v52 }
 0x1f9   : > { %v8213_v8 = vpop.eup %8212  ;;  %v828_v7 = vmul.f32 %v9906_v23, %v9906_v23  ;;  %v1082_v57 = vmul.f32 0.7978846, %v1018_v20 }
 0x1fa   : > { %v8215_v12 = vpop.eup %8214  ;;  %v829_v31 = vmul.f32 %v9910_v26, %v9910_v26  ;;  %v1272_v17 = vadd.f32 1.0, %v8213_v8  ;;  %v1083_v34 = vmul.f32 0.7978846, %v1019_v58  ;;  %v1711_v8 = vpop.permute.xlu0 %1710 }
 0x1fb   : > { %v892_v28 = vmul.f32 %v828_v7, %v9906_v23  ;;  %v1273_v9 = vadd.f32 1.0, %v8215_v12  ;;  %8216 = vtanh.f32 %v1082_v57 }
 0x1fc   : > { %v893_v27 = vmul.f32 %v829_v31, %v9910_v26  ;;  %v1336_v33 = vmul.f32 %v1272_v17, %v1144_v16  ;;  %8218 = vtanh.f32 %v1083_v34 }
 0x1fd   : > { %v956_v15 = vmul.f32 0.044715, %v892_v28  ;;  %v1337_v42 = vmul.f32 %v1273_v9, %v1145_v40 }
 0x1fe   : > { %v957_v56 = vmul.f32 0.044715, %v893_v27  ;;  %v671_v3 = vpop.f32.mrf.mxu0  ;;  %v1382_v29 = vpack.c.bf16 %v1336_v33, %v1334_v32 }
 0x1ff   : > { %v9924_v53 = vadd.f32 %v671_v3, %v9571_v60  ;;  %v760_v22 = vpop.f32.mrf.mxu1  ;;  %v1383_v5 = vpack.c.bf16 %v1337_v42, %v1335_v36  ;;  %v1020_v21 = vadd.f32 %v956_v15, %v9906_v23  ;;  %v1146_v42 = vmul.f32 0.5, %v9892_v44 }
 0x200   : > { %v9928_v45 = vadd.f32 %v760_v22, %v9573_v0  ;;  %1578 = vmatmul.bf16.gmra.mxu2 %v1382_v29  ;;  %v1021_v2 = vadd.f32 %v957_v56, %v9910_v26  ;;  %v1147_v56 = vmul.f32 0.5, %v9896_v52 }
 0x201   : > { %v830_v48 = vmul.f32 %v9924_v53, %v9924_v53  ;;  %1667 = vmatmul.bf16.gmra.mxu3 %v1383_v5  ;;  %v1084_v11 = vmul.f32 0.7978846, %v1020_v21  ;;  %v8217_v7 = vpop.eup %8216  ;;  %v1148_v5 = vmul.f32 0.5, %v9906_v23 }
 0x202   : > { %v831_v61 = vmul.f32 %v9928_v45, %v9928_v45  ;;  %v1085_v20 = vmul.f32 0.7978846, %v1021_v2  ;;  %v8219_v16 = vpop.eup %8218  ;;  %v1274_v9 = vadd.f32 1.0, %v8217_v7 }
 0x203   : > { %v894_v50 = vmul.f32 %v830_v48, %v9924_v53  ;;  %v1539_v58 = vpop.f32.mrf.mxu2  ;;  %8220 = vtanh.f32 %v1084_v11  ;;  %v1275_v3 = vadd.f32 1.0, %v8219_v16 }
 0x204   : > { %v895_v4 = vmul.f32 %v831_v61, %v9928_v45  ;;  %v1540_v24 = vadd.f32 %v9933_v6, %v1539_v58  ;;  %v1628_v12 = vpop.f32.mrf.mxu3  ;;  %8222 = vtanh.f32 %v1085_v20  ;;  %v1338_v61 = vmul.f32 %v1274_v9, %v1146_v42 }
 0x205   : > { %v958_v31 = vmul.f32 0.044715, %v894_v50  ;;  %v1149_v20 = vmul.f32 0.5, %v9910_v26 }
 0x206   : > { %v959_v17 = vmul.f32 0.044715, %v895_v4  ;;  %v1629_v57 = vadd.f32 %v1628_v12, %v1540_v24  ;;  %v673_v28 = vpop.f32.mrf.mxu0  ;;  %v1716_v24 = vpop.permute.xlu0 %1715  ;;  %v1339_v12 = vmul.f32 %v1275_v3, %v1147_v56 }
 0x207   : > { %v9944_v19 = vadd.f32 %v673_v28, %v9571_v60  ;;  %v762_v40 = vpop.f32.mrf.mxu1  ;;  %v1022_v27 = vadd.f32 %v958_v31, %v9924_v53 }
 0x208   : > { %v9948_v32 = vadd.f32 %v762_v40, %v9573_v0  ;;  %v9950_v33 = vmul.f32 %v1711_v8, %v1629_v57  ;;  %v1023_v34 = vadd.f32 %v959_v17, %v9928_v45 }
 0x209   : > { %v8221_v15 = vpop.eup %8220  ;;  %v832_v36 = vmul.f32 %v9944_v19, %v9944_v19  ;;  %v1086_v2 = vmul.f32 0.7978846, %v1022_v27 }
 0x20a   : > { %v8223_v29 = vpop.eup %8222  ;;  %v833_v22 = vmul.f32 %v9948_v32, %v9948_v32  ;;  %v1276_v21 = vadd.f32 1.0, %v8221_v15  ;;  %v1087_v7 = vmul.f32 0.7978846, %v1023_v34 }
 0x20b   : > { %v896_v48 = vmul.f32 %v832_v36, %v9944_v19  ;;  %v1541_v11 = vpop.f32.mrf.mxu2  ;;  %v1277_v50 = vadd.f32 1.0, %v8223_v29  ;;  %8224 = vtanh.f32 %v1086_v2 }
 0x20c   : > { %v897_v44 = vmul.f32 %v833_v22, %v9948_v32  ;;  %v1542_v52 = vadd.f32 %v9933_v6, %v1541_v11  ;;  %v1630_v58 = vpop.f32.mrf.mxu3  ;;  %v1340_v8 = vmul.f32 %v1276_v21, %v1148_v5  ;;  %8226 = vtanh.f32 %v1087_v7  ;;  %v1721_v5 = vpop.permute.xlu1 %1720 }
 0x20d   : > { %v960_v4 = vmul.f32 0.044715, %v896_v48  ;;  %v1341_v23 = vmul.f32 %v1277_v50, %v1149_v20 }
 0x20e   : > { %v961_v31 = vmul.f32 0.044715, %v897_v44  ;;  %v1631_v16 = vadd.f32 %v1630_v58, %v1542_v52  ;;  %v676_v17 = vpop.f32.mrf.mxu0  ;;  %v1384_v57 = vpack.c.bf16 %v1340_v8, %v1338_v61 }
 0x20f   : > { %v9965_v28 = vadd.f32 %v676_v17, %v9571_v60  ;;  %v765_v26 = vpop.f32.mrf.mxu1  ;;  %v1385_v40 = vpack.c.bf16 %v1341_v23, %v1339_v12  ;;  %v1024_v9 = vadd.f32 %v960_v4, %v9944_v19  ;;  %v1150_v17 = vmul.f32 0.5, %v9924_v53 }
 0x210   : > { %v9969_v27 = vadd.f32 %v765_v26, %v9573_v0  ;;  %v9971_v34 = vmul.f32 %v1716_v24, %v1631_v16  ;;  %1583 = vmatmul.bf16.gmra.mxu2 %v1384_v57  ;;  %v1025_v15 = vadd.f32 %v961_v31, %v9948_v32  ;;  %v1151_v57 = vmul.f32 0.5, %v9928_v45 }
 0x211   : > { %v834_v36 = vmul.f32 %v9965_v28, %v9965_v28  ;;  %1672 = vmatmul.bf16.gmra.mxu3 %v1385_v40  ;;  %v1088_v42 = vmul.f32 0.7978846, %v1024_v9  ;;  %v8225_v21 = vpop.eup %8224 }
 0x212   : > { %v835_v56 = vmul.f32 %v9969_v27, %v9969_v27  ;;  %v1089_v3 = vmul.f32 0.7978846, %v1025_v15  ;;  %v8227_v20 = vpop.eup %8226  ;;  %v1278_v7 = vadd.f32 1.0, %v8225_v21  ;;  %v1152_v15 = vmul.f32 0.5, %v9944_v19 }
 0x213   : > { %v898_v29 = vmul.f32 %v834_v36, %v9965_v28  ;;  %v1544_v22 = vpop.f32.mrf.mxu2  ;;  %8228 = vtanh.f32 %v1088_v42  ;;  %v1279_v26 = vadd.f32 1.0, %v8227_v20 }
 0x214   : > { %v899_v2 = vmul.f32 %v835_v56, %v9969_v27  ;;  %v1545_v48 = vadd.f32 %v9933_v6, %v1544_v22  ;;  %v1633_v11 = vpop.f32.mrf.mxu3  ;;  %8230 = vtanh.f32 %v1089_v3  ;;  %v1153_v22 = vmul.f32 0.5, %v9948_v32 }
 0x215   : > { %v962_v61 = vmul.f32 0.044715, %v898_v29  ;;  %v1342_v29 = vmul.f32 %v1278_v7, %v1150_v17  ;;  %v1343_v20 = vmul.f32 %v1279_v26, %v1151_v57 }
 0x216   : > { %v963_v50 = vmul.f32 0.044715, %v899_v2  ;;  %v1634_v44 = vadd.f32 %v1633_v11, %v1545_v48  ;;  %v678_v52 = vpop.f32.mrf.mxu0 }
 0x217   : > { %v9982_v58 = vadd.f32 %v678_v52, %v9571_v60  ;;  %v767_v8 = vpop.f32.mrf.mxu1  ;;  %v1026_v4 = vadd.f32 %v962_v61, %v9965_v28  ;;  %v1726_v61 = vpop.permute.xlu1 %1725 }
 0x218   : > { %v9986_v24 = vadd.f32 %v767_v8, %v9573_v0  ;;  %v9988_v12 = vmul.f32 %v1721_v5, %v1634_v44  ;;  %v1027_v23 = vadd.f32 %v963_v50, %v9969_v27 }
 0x219   : > { %v8229_v31 = vpop.eup %8228  ;;  %v836_v16 = vmul.f32 %v9982_v58, %v9982_v58  ;;  %v1090_v42 = vmul.f32 0.7978846, %v1026_v4 }
 0x21a   : > { %v8231_v40 = vpop.eup %8230  ;;  %v837_v9 = vmul.f32 %v9986_v24, %v9986_v24  ;;  %v1280_v36 = vadd.f32 1.0, %v8229_v31  ;;  %v1091_v48 = vmul.f32 0.7978846, %v1027_v23 }
 0x21b   : > { %v900_v56 = vmul.f32 %v836_v16, %v9982_v58  ;;  %v1546_v3 = vpop.f32.mrf.mxu2  ;;  %v1281_v5 = vadd.f32 1.0, %v8231_v40  ;;  %8232 = vtanh.f32 %v1090_v42  ;;  %v1731_v42 = vpop.permute.xlu2 %1730 }
 0x21c   : > { %v901_v53 = vmul.f32 %v837_v9, %v9986_v24  ;;  %v1547_v45 = vadd.f32 %v9933_v6, %v1546_v3  ;;  %v1635_v21 = vpop.f32.mrf.mxu3  ;;  %v1344_v2 = vmul.f32 %v1280_v36, %v1152_v15  ;;  %8234 = vtanh.f32 %v1091_v48 }
 0x21d   : > { %v964_v11 = vmul.f32 0.044715, %v900_v56  ;;  %v1345_v19 = vmul.f32 %v1281_v5, %v1153_v22 }
 0x21e   : > { %v965_v50 = vmul.f32 0.044715, %v901_v53  ;;  %v1636_v44 = vadd.f32 %v1635_v21, %v1547_v45  ;;  %v681_v52 = vpop.f32.mrf.mxu0  ;;  %v1386_v8 = vpack.c.bf16 %v1344_v2, %v1342_v29 }
 0x21f   : > { %v10003_v7 = vadd.f32 %v681_v52, %v9571_v60  ;;  %v770_v32 = vpop.f32.mrf.mxu1  ;;  %v1387_v4 = vpack.c.bf16 %v1345_v19, %v1343_v20  ;;  %v1028_v31 = vadd.f32 %v964_v11, %v9982_v58 }
 0x220   : > { %v10007_v16 = vadd.f32 %v770_v32, %v9573_v0  ;;  %v10009_v23 = vmul.f32 %v1726_v61, %v1636_v44  ;;  %1588 = vmatmul.bf16.gmra.mxu2 %v1386_v8  ;;  %v1029_v17 = vadd.f32 %v965_v50, %v9986_v24  ;;  %v1154_v32 = vmul.f32 0.5, %v9965_v28 }
 0x221   : > { %v838_v57 = vmul.f32 %v10003_v7, %v10003_v7  ;;  %1677 = vmatmul.bf16.gmra.mxu3 %v1387_v4  ;;  %v1092_v26 = vmul.f32 0.7978846, %v1028_v31  ;;  %v8233_v56 = vpop.eup %8232  ;;  %v1155_v4 = vmul.f32 0.5, %v9969_v27 }
 0x222   : > { %v839_v40 = vmul.f32 %v10007_v16, %v10007_v16  ;;  %v1093_v9 = vmul.f32 0.7978846, %v1029_v17  ;;  %v8235_v53 = vpop.eup %8234  ;;  %v1282_v20 = vadd.f32 1.0, %v8233_v56  ;;  %v1157_v56 = vmul.f32 0.5, %v9986_v24 }
 0x223   : > { %v902_v15 = vmul.f32 %v838_v57, %v10003_v7  ;;  %v1549_v36 = vpop.f32.mrf.mxu2  ;;  %8236 = vtanh.f32 %v1092_v26  ;;  %v1283_v31 = vadd.f32 1.0, %v8235_v53 }
 0x224   : > { %v903_v3 = vmul.f32 %v839_v40, %v10007_v16  ;;  %v1550_v29 = vadd.f32 %v9933_v6, %v1549_v36  ;;  %v1638_v22 = vpop.f32.mrf.mxu3  ;;  %8238 = vtanh.f32 %v1093_v9  ;;  %v1156_v40 = vmul.f32 0.5, %v9982_v58 }
 0x225   : > { %v966_v5 = vmul.f32 0.044715, %v902_v15 }
 0x226   : > { %v967_v45 = vmul.f32 0.044715, %v903_v3  ;;  %v1639_v21 = vadd.f32 %v1638_v22, %v1550_v29  ;;  %v683_v2 = vpop.f32.mrf.mxu0 }
 0x227   : > { %v1030_v48 = vadd.f32 %v966_v5, %v10003_v7  ;;  %v10021_v11 = vadd.f32 %v683_v2, %v9571_v60  ;;  %v772_v61 = vpop.f32.mrf.mxu1 }
 0x228   : > { %v1031_v19 = vadd.f32 %v967_v45, %v10007_v16  ;;  %v10025_v50 = vadd.f32 %v772_v61, %v9573_v0  ;;  %v10027_v44 = vmul.f32 %v1731_v42, %v1639_v21  ;;  %v1346_v42 = vmul.f32 %v1282_v20, %v1154_v32  ;;  %v1736_v45 = vpop.permute.xlu2 %1735 }
 0x229   : > { %v8237_v52 = vpop.eup %8236  ;;  %v840_v8 = vmul.f32 %v10021_v11, %v10021_v11  ;;  %v1094_v57 = vmul.f32 0.7978846, %v1030_v48  ;;  %v1347_v21 = vmul.f32 %v1283_v31, %v1155_v4 }
 0x22a   : > { %v8239_v17 = vpop.eup %8238  ;;  %v841_v26 = vmul.f32 %v10025_v50, %v10025_v50  ;;  %v1284_v9 = vadd.f32 1.0, %v8237_v52  ;;  %v1095_v29 = vmul.f32 0.7978846, %v1031_v19 }
 0x22b   : > { %v904_v15 = vmul.f32 %v840_v8, %v10021_v11  ;;  %v1551_v36 = vpop.f32.mrf.mxu2  ;;  %v1285_v3 = vadd.f32 1.0, %v8239_v17  ;;  %8240 = vtanh.f32 %v1094_v57 }
 0x22c   : > { %v905_v28 = vmul.f32 %v841_v26, %v10025_v50  ;;  %v1552_v27 = vadd.f32 %v9933_v6, %v1551_v36  ;;  %v1640_v22 = vpop.f32.mrf.mxu3  ;;  %v1348_v5 = vmul.f32 %v1284_v9, %v1156_v40  ;;  %8242 = vtanh.f32 %v1095_v29 }
 0x22d   : > { %v968_v53 = vmul.f32 0.044715, %v904_v15  ;;  %v1349_v2 = vmul.f32 %v1285_v3, %v1157_v56 }
 0x22e   : > { %v969_v58 = vmul.f32 0.044715, %v905_v28  ;;  %v1641_v48 = vadd.f32 %v1640_v22, %v1552_v27  ;;  %v686_v61 = vpop.f32.mrf.mxu0  ;;  %v1388_v52 = vpack.c.bf16 %v1348_v5, %v1346_v42  ;;  %v1741_v28 = vpop.permute.xlu0 %1740 }
 0x22f   : > { %v1032_v20 = vadd.f32 %v968_v53, %v10021_v11  ;;  %v10042_v24 = vadd.f32 %v686_v61, %v9571_v60  ;;  %v775_v19 = vpop.f32.mrf.mxu1  ;;  %v1389_v8 = vpack.c.bf16 %v1349_v2, %v1347_v21 }
 0x230   : > { %v1033_v32 = vadd.f32 %v969_v58, %v10025_v50  ;;  %v10046_v17 = vadd.f32 %v775_v19, %v9573_v0  ;;  %v10048_v4 = vmul.f32 %v1736_v45, %v1641_v48  ;;  %1593 = vmatmul.bf16.gmra.mxu2 %v1388_v52 }
 0x231   : > { %v1096_v31 = vmul.f32 0.7978846, %v1032_v20  ;;  %v842_v57 = vmul.f32 %v10042_v24, %v10042_v24  ;;  %1682 = vmatmul.bf16.gmra.mxu3 %v1389_v8  ;;  %v8241_v36 = vpop.eup %8240  ;;  %v1158_v8 = vmul.f32 0.5, %v10003_v7 }
 0x232   : > { %v1097_v26 = vmul.f32 0.7978846, %v1033_v32  ;;  %v843_v40 = vmul.f32 %v10046_v17, %v10046_v17  ;;  %v8243_v27 = vpop.eup %8242  ;;  %v1286_v58 = vadd.f32 1.0, %v8241_v36  ;;  %v1159_v32 = vmul.f32 0.5, %v10007_v16 }
 0x233   : > { %8244 = vtanh.f32 %v1096_v31  ;;  %v906_v9 = vmul.f32 %v842_v57, %v10042_v24  ;;  %v1554_v15 = vpop.f32.mrf.mxu2  ;;  %v1287_v31 = vadd.f32 1.0, %v8243_v27 }
 0x234   : > { %8246 = vtanh.f32 %v1097_v26  ;;  %v907_v42 = vmul.f32 %v843_v40, %v10046_v17  ;;  %v1555_v56 = vadd.f32 %v9933_v6, %v1554_v15  ;;  %v1643_v3 = vpop.f32.mrf.mxu3 }
 0x235   : > { %v970_v29 = vmul.f32 0.044715, %v906_v9  ;;  %v1160_v9 = vmul.f32 0.5, %v10021_v11 }
 0x236   : > { %v971_v22 = vmul.f32 0.044715, %v907_v42  ;;  %v1644_v5 = vadd.f32 %v1643_v3, %v1555_v56  ;;  %v688_v53 = vpop.f32.mrf.mxu0  ;;  %v1350_v56 = vmul.f32 %v1286_v58, %v1158_v8  ;;  %v1161_v3 = vmul.f32 0.5, %v10025_v50 }
 0x237   : > { %v1034_v45 = vadd.f32 %v970_v29, %v10042_v24  ;;  %v10059_v21 = vadd.f32 %v688_v53, %v9571_v60  ;;  %v777_v2 = vpop.f32.mrf.mxu1  ;;  %v1746_v53 = vpop.permute.xlu1 %1745 }
 0x238   : > { %v1035_v48 = vadd.f32 %v971_v22, %v10046_v17  ;;  %v10063_v61 = vadd.f32 %v777_v2, %v9573_v0  ;;  %v10065_v52 = vmul.f32 %v1741_v28, %v1644_v5 }
 0x239   : > { %v8245_v20 = vpop.eup %8244  ;;  %v844_v19 = vmul.f32 %v10059_v21, %v10059_v21  ;;  %v1098_v26 = vmul.f32 0.7978846, %v1034_v45  ;;  %v1351_v45 = vmul.f32 %v1287_v31, %v1159_v32 }
 0x23a   : > { %v8247_v57 = vpop.eup %8246  ;;  %v845_v40 = vmul.f32 %v10063_v61, %v10063_v61  ;;  %v1288_v15 = vadd.f32 1.0, %v8245_v20  ;;  %v1099_v28 = vmul.f32 0.7978846, %v1035_v48 }
 0x23b   : > { %v908_v36 = vmul.f32 %v844_v19, %v10059_v21  ;;  %v1556_v42 = vpop.f32.mrf.mxu2  ;;  %v1289_v29 = vadd.f32 1.0, %v8247_v57  ;;  %8248 = vtanh.f32 %v1098_v26 }
 0x23c   : > { %v909_v7 = vmul.f32 %v845_v40, %v10063_v61  ;;  %v1557_v16 = vadd.f32 %v9933_v6, %v1556_v42  ;;  %v1645_v27 = vpop.f32.mrf.mxu3  ;;  %v1352_v22 = vmul.f32 %v1288_v15, %v1160_v9  ;;  %8250 = vtanh.f32 %v1099_v28 }
 0x23d   : > { %v972_v5 = vmul.f32 0.044715, %v908_v36  ;;  %v1353_v2 = vmul.f32 %v1289_v29, %v1161_v3 }
 0x23e   : > { %v973_v11 = vmul.f32 0.044715, %v909_v7  ;;  %v1646_v20 = vadd.f32 %v1645_v27, %v1557_v16  ;;  %v691_v19 = vpop.f32.mrf.mxu0  ;;  %v1390_v35 = vpack.c.bf16 %v1352_v22, %v1350_v56  ;;  %v1751_v7 = vpop.permute.xlu2 %1750 }
 0x23f   : > { %v1036_v58 = vadd.f32 %v972_v5, %v10059_v21  ;;  %v10080_v50 = vadd.f32 %v691_v19, %v9571_v60  ;;  %v780_v48 = vpop.f32.mrf.mxu1  ;;  %v1391_v8 = vpack.c.bf16 %v1353_v2, %v1351_v45 }
 0x240   : > { %v1037_v57 = vadd.f32 %v973_v11, %v10063_v61  ;;  %v10084_v40 = vadd.f32 %v780_v48, %v9573_v0  ;;  %v10086_v32 = vmul.f32 %v1746_v53, %v1646_v20  ;;  %1598 = vmatmul.bf16.gmra.mxu2 %v1390_v35 }
 0x241   : > { %v1100_v31 = vmul.f32 0.7978846, %v1036_v58  ;;  %v846_v26 = vmul.f32 %v10080_v50, %v10080_v50  ;;  %1687 = vmatmul.bf16.gmra.mxu3 %v1391_v8  ;;  %v8249_v56 = vpop.eup %8248 }
 0x242   : > { %v1101_v9 = vmul.f32 0.7978846, %v1037_v57  ;;  %v847_v15 = vmul.f32 %v10084_v40, %v10084_v40  ;;  %v8251_v16 = vpop.eup %8250  ;;  %v1290_v11 = vadd.f32 1.0, %v8249_v56  ;;  %v1162_v57 = vmul.f32 0.5, %v10042_v24 }
 0x243   : > { %8252 = vtanh.f32 %v1100_v31  ;;  %v910_v36 = vmul.f32 %v846_v26, %v10080_v50  ;;  %v1559_v42 = vpop.f32.mrf.mxu2  ;;  %v1163_v31 = vmul.f32 0.5, %v10046_v17  ;;  %v1291_v26 = vadd.f32 1.0, %v8251_v16 }
 0x244   : > { %8254 = vtanh.f32 %v1101_v9  ;;  %v911_v3 = vmul.f32 %v847_v15, %v10084_v40  ;;  %v1560_v29 = vadd.f32 %v9933_v6, %v1559_v42  ;;  %v1648_v35 = vpop.f32.mrf.mxu3  ;;  %v1164_v42 = vmul.f32 0.5, %v10059_v21 }
 0x245   : > { %v974_v28 = vmul.f32 0.044715, %v910_v36 }
 0x246   : > { %v975_v27 = vmul.f32 0.044715, %v911_v3  ;;  %v1649_v22 = vadd.f32 %v1648_v35, %v1560_v29  ;;  %v693_v5 = vpop.f32.mrf.mxu0  ;;  %v1354_v35 = vmul.f32 %v1290_v11, %v1162_v57 }
 0x247   : > { %v1038_v53 = vadd.f32 %v974_v28, %v10080_v50  ;;  %v10097_v45 = vadd.f32 %v693_v5, %v9571_v60  ;;  %v782_v2 = vpop.f32.mrf.mxu1  ;;  %v1165_v28 = vmul.f32 0.5, %v10063_v61 }
 0x248   : > { %v1039_v20 = vadd.f32 %v975_v27, %v10084_v40  ;;  %v10101_v19 = vadd.f32 %v782_v2, %v9573_v0  ;;  %v10103_v58 = vmul.f32 %v1751_v7, %v1649_v22  ;;  %v1355_v2 = vmul.f32 %v1291_v26, %v1163_v31 }
 0x249   : > { %v8253_v48 = vpop.eup %8252  ;;  %v848_v8 = vmul.f32 %v10097_v45, %v10097_v45  ;;  %v1102_v15 = vmul.f32 0.7978846, %v1038_v53  ;;  %v1756_v53 = vpop.permute.xlu0 %1755 }
 0x24a   : > { %v8255_v9 = vpop.eup %8254  ;;  %v849_v36 = vmul.f32 %v10101_v19, %v10101_v19  ;;  %v1292_v56 = vadd.f32 1.0, %v8253_v48  ;;  %v1103_v27 = vmul.f32 0.7978846, %v1039_v20 }
 0x24b   : > { %v912_v3 = vmul.f32 %v848_v8, %v10097_v45  ;;  %v1561_v29 = vpop.f32.mrf.mxu2  ;;  %v1293_v7 = vadd.f32 1.0, %v8255_v9  ;;  %8256 = vtanh.f32 %v1102_v15 }
 0x24c   : > { %v913_v24 = vmul.f32 %v849_v36, %v10101_v19  ;;  %v1562_v17 = vadd.f32 %v9933_v6, %v1561_v29  ;;  %v1650_v16 = vpop.f32.mrf.mxu3  ;;  %v1356_v22 = vmul.f32 %v1292_v56, %v1164_v42  ;;  %8258 = vtanh.f32 %v1103_v27  ;;  %v1761_v27 = vpop.permute.xlu1 %1760 }
 0x24d   : > { %v976_v5 = vmul.f32 0.044715, %v912_v3  ;;  %v1357_v43 = vmul.f32 %v1293_v7, %v1165_v28 }
 0x24e   : > { %v977_v21 = vmul.f32 0.044715, %v913_v24  ;;  %v1651_v48 = vadd.f32 %v1650_v16, %v1562_v17  ;;  %v696_v8 = vpop.f32.mrf.mxu0  ;;  %v1392_v39 = vpack.c.bf16 %v1356_v22, %v1354_v35 }
 0x24f   : > { %v1040_v11 = vadd.f32 %v976_v5, %v10097_v45  ;;  %v10118_v61 = vadd.f32 %v696_v8, %v9571_v60  ;;  %v785_v20 = vpop.f32.mrf.mxu1  ;;  %v1393_v57 = vpack.c.bf16 %v1357_v43, %v1355_v2 }
 0x250   : > { %v1041_v9 = vadd.f32 %v977_v21, %v10101_v19  ;;  %v10122_v36 = vadd.f32 %v785_v20, %v9573_v0  ;;  %v10124_v31 = vmul.f32 %v1756_v53, %v1651_v48  ;;  %1603 = vmatmul.bf16.gmra.mxu2 %v1392_v39 }
 0x251   : > { %v1104_v26 = vmul.f32 0.7978846, %v1040_v11  ;;  %v850_v15 = vmul.f32 %v10118_v61, %v10118_v61  ;;  %1692 = vmatmul.bf16.gmra.mxu3 %v1393_v57  ;;  %v8257_v29 = vpop.eup %8256 }
 0x252   : > { %v1105_v42 = vmul.f32 0.7978846, %v1041_v9  ;;  %v851_v56 = vmul.f32 %v10122_v36, %v10122_v36  ;;  %v8259_v24 = vpop.eup %8258  ;;  %v1294_v21 = vadd.f32 1.0, %v8257_v29  ;;  %v1166_v9 = vmul.f32 0.5, %v10080_v50 }
 0x253   : > { %8260 = vtanh.f32 %v1104_v26  ;;  %v914_v43 = vmul.f32 %v850_v15, %v10118_v61  ;;  %v1564_v3 = vpop.f32.mrf.mxu2  ;;  %v1167_v26 = vmul.f32 0.5, %v10084_v40  ;;  %v1295_v15 = vadd.f32 1.0, %v8259_v24  ;;  %v1766_v24 = vpop.permute.xlu2 %1765 }
 0x254   : > { %8262 = vtanh.f32 %v1105_v42  ;;  %v915_v35 = vmul.f32 %v851_v56, %v10122_v36  ;;  %v1565_v28 = vadd.f32 %v9933_v6, %v1564_v3  ;;  %v1653_v39 = vpop.f32.mrf.mxu3  ;;  %v1169_v3 = vmul.f32 0.5, %v10101_v19 }
 0x255   : > { %v978_v7 = vmul.f32 0.044715, %v914_v43  ;;  %v1168_v43 = vmul.f32 0.5, %v10097_v45 }
 0x256   : > { %v979_v17 = vmul.f32 0.044715, %v915_v35  ;;  %v1654_v16 = vadd.f32 %v1653_v39, %v1565_v28  ;;  %v698_v22 = vpop.f32.mrf.mxu0 }
 0x257   : > { %v1042_v5 = vadd.f32 %v978_v7, %v10118_v61  ;;  %v699_v53 = vadd.f32 %v698_v22, %v9571_v60  ;;  %v787_v2 = vpop.f32.mrf.mxu1  ;;  %v1359_v22 = vmul.f32 %v1295_v15, %v1167_v26 }
 0x258   : > { %v1043_v48 = vadd.f32 %v979_v17, %v10122_v36  ;;  %v788_v8 = vadd.f32 %v787_v2, %v9573_v0  ;;  %v10137_v11 = vmul.f32 %v1761_v27, %v1654_v16  ;;  %v1358_v0 = vmul.f32 %v1294_v21, %v1166_v9 }
 0x259   : > { %v8261_v20 = vpop.eup %8260  ;;  %v852_v57 = vmul.f32 %v699_v53, %v699_v53  ;;  %v1106_v29 = vmul.f32 0.7978846, %v1042_v5 }
 0x25a   : > { %v8263_v42 = vpop.eup %8262  ;;  %v853_v56 = vmul.f32 %v788_v8, %v788_v8  ;;  %v1296_v60 = vadd.f32 1.0, %v8261_v20  ;;  %v1107_v7 = vmul.f32 0.7978846, %v1043_v48 }
 0x25b   : > { %v916_v35 = vmul.f32 %v852_v57, %v699_v53  ;;  %v1566_v28 = vpop.f32.mrf.mxu2  ;;  %v1297_v39 = vadd.f32 1.0, %v8263_v42  ;;  %8264 = vtanh.f32 %v1106_v29 }
 0x25c   : > { %v917_v27 = vmul.f32 %v853_v56, %v788_v8  ;;  %v1567_v17 = vadd.f32 %v9933_v6, %v1566_v28  ;;  %v1655_v50 = vpop.f32.mrf.mxu3  ;;  %v1360_v16 = vmul.f32 %v1296_v60, %v1168_v43  ;;  %8266 = vtanh.f32 %v1107_v7  ;;  %v1771_v43 = vpop.permute.xlu0 %1770 }
 0x25d   : > { %v980_v40 = vmul.f32 0.044715, %v916_v35  ;;  %v1361_v2 = vmul.f32 %v1297_v39, %v1169_v3  ;;  %v1170_v39 = vmul.f32 0.5, %v10118_v61  ;;  %v1172_v7 = vmul.f32 0.5, %v699_v53 }
 0x25e   : > { %v981_v47 = vmul.f32 0.044715, %v917_v27  ;;  %v1656_v45 = vadd.f32 %v1655_v50, %v1567_v17  ;;  %v1394_v20 = vpack.c.bf16 %v1360_v16, %v1358_v0  ;;  %v1171_v50 = vmul.f32 0.5, %v10122_v36 }
 0x25f   : > { %v1044_v19 = vadd.f32 %v980_v40, %v699_v53  ;;  %v1395_v5 = vpack.c.bf16 %v1361_v2, %v1359_v22  ;;  %v1173_v16 = vmul.f32 0.5, %v788_v8 }
 0x260   : > { %v1045_v57 = vadd.f32 %v981_v47, %v788_v8  ;;  %v10144_v21 = vmul.f32 %v1766_v24, %v1656_v45  ;;  %1608 = vmatmul.bf16.gmra.mxu2 %v1394_v20  ;;  %v1776_v20 = vpop.permute.xlu1 %1775  ;;  %v1781_v8 = vpop.permute.xlu2 %1780 }
 0x261   : > { %v1108_v48 = vmul.f32 0.7978846, %v1044_v19  ;;  %1697 = vmatmul.bf16.gmra.mxu3 %v1395_v5  ;;  %v8265_v56 = vpop.eup %8264 }
 0x262   : > { %v1109_v9 = vmul.f32 0.7978846, %v1045_v57  ;;  %v8267_v60 = vpop.eup %8266  ;;  %v1298_v35 = vadd.f32 1.0, %v8265_v56 }
 0x263   : > { %8268 = vtanh.f32 %v1108_v48  ;;  %v1569_v42 = vpop.f32.mrf.mxu2  ;;  %v1299_v28 = vadd.f32 1.0, %v8267_v60 }
 0x264   : > { %8270 = vtanh.f32 %v1109_v9  ;;  %v1570_v26 = vadd.f32 %v9933_v6, %v1569_v42  ;;  %v1658_v15 = vpop.f32.mrf.mxu3  ;;  %v1362_v2 = vmul.f32 %v1298_v35, %v1170_v39 }
 0x265   : > { %v1363_v19 = vmul.f32 %v1299_v28, %v1171_v50 }
 0x266   : > { %v1659_v3 = vadd.f32 %v1658_v15, %v1570_v26 }
 0x268   : > { %v10147_v29 = vmul.f32 %v1771_v43, %v1659_v3  ;;  %v1786_v3 = vpop.permute.xlu0 %1785 }
 0x269   : > { %v8269_v47 = vpop.eup %8268 }
 0x26a   : > { %v8271_v0 = vpop.eup %8270  ;;  %v1300_v27 = vadd.f32 1.0, %v8269_v47 }
 0x26b   : > { %v1571_v17 = vpop.f32.mrf.mxu2  ;;  %v1301_v40 = vadd.f32 1.0, %v8271_v0 }
 0x26c   : > { %v1572_v24 = vadd.f32 %v9933_v6, %v1571_v17  ;;  %v1660_v22 = vpop.f32.mrf.mxu3  ;;  %v1364_v45 = vmul.f32 %v1300_v27, %v1172_v7  ;;  %v1791_v7 = vpop.permute.xlu1 %1790 }
 0x26d   : > { %v1365_v5 = vmul.f32 %v1301_v40, %v1173_v16 }
 0x26e   : > { %v1661_v57 = vadd.f32 %v1660_v22, %v1572_v24  ;;  %v1396_v48 = vpack.c.bf16 %v1364_v45, %v1362_v2  ;;  %v1796_v24 = vpop.permute.xlu2 %1795 }
 0x26f   : > { %v1397_v9 = vpack.c.bf16 %v1365_v5, %v1363_v19 }
 0x270   : > { %v10152_v42 = vmul.f32 %v1776_v20, %v1661_v57  ;;  %1613 = vmatmul.bf16.gmra.mxu2 %v1396_v48  ;;  %v1801_v57 = vpop.permute.xlu0 %1800 }
 0x271   : > { %1702 = vmatmul.bf16.gmra.mxu3 %v1397_v9 }
 0x273   : > { %v1574_v61 = vpop.f32.mrf.mxu2 }
 0x274   : > { %v1575_v36 = vadd.f32 %v9933_v6, %v1574_v61  ;;  %v1663_v53 = vpop.f32.mrf.mxu3 }
 0x276   : > { %v1664_v26 = vadd.f32 %v1663_v53, %v1575_v36 }
 0x278   : > { %v10155_v15 = vmul.f32 %v1781_v8, %v1664_v26  ;;  %v1806_v8 = vpop.permute.xlu1 %1805 }
 0x27b   : > { %v1576_v56 = vpop.f32.mrf.mxu2 }
 0x27c   : > { %v1577_v43 = vadd.f32 %v9933_v6, %v1576_v56  ;;  %v1665_v60 = vpop.f32.mrf.mxu3 }
 0x27e   : > { %v1666_v35 = vadd.f32 %v1665_v60, %v1577_v43 }
 0x280   : > { %v10158_v47 = vmul.f32 %v1786_v3, %v1666_v35  ;;  %v1811_v35 = vpop.permute.xlu2 %1810 }
 0x283   : > { %v1579_v28 = vpop.f32.mrf.mxu2 }
 0x284   : > { %v1580_v0 = vadd.f32 %v9933_v6, %v1579_v28  ;;  %v1668_v39 = vpop.f32.mrf.mxu3 }
 0x286   : > { %v1669_v27 = vadd.f32 %v1668_v39, %v1580_v0 }
 0x288   : > { %v10161_v17 = vmul.f32 %v1791_v7, %v1669_v27 }
 0x28b   : > { %v1581_v50 = vpop.f32.mrf.mxu2 }
 0x28c   : > { %v1582_v16 = vadd.f32 %v9933_v6, %v1581_v50  ;;  %v1670_v40 = vpop.f32.mrf.mxu3  ;;  %v1816_v50 = vpop.permute.xlu0 %1815 }
 0x28e   : > { %v1671_v22 = vadd.f32 %v1670_v40, %v1582_v16 }
 0x290   : > { %v10164_v2 = vmul.f32 %v1796_v24, %v1671_v22 }
 0x293   : > { %v1584_v45 = vpop.f32.mrf.mxu2 }
 0x294   : > { %v1585_v20 = vadd.f32 %v9933_v6, %v1584_v45  ;;  %v1673_v19 = vpop.f32.mrf.mxu3 }
 0x296   : > { %v1674_v5 = vadd.f32 %v1673_v19, %v1585_v20  ;;  %v1821_v20 = vpop.permute.xlu1 %1820 }
 0x298   : > { %v10167_v48 = vmul.f32 %v1801_v57, %v1674_v5 }
 0x29b   : > { %v1586_v9 = vpop.f32.mrf.mxu2 }
 0x29c   : > { %v1587_v61 = vadd.f32 %v9933_v6, %v1586_v9  ;;  %v1675_v36 = vpop.f32.mrf.mxu3 }
 0x29e   : > { %v1676_v53 = vadd.f32 %v1675_v36, %v1587_v61  ;;  %v1826_v36 = vpop.permute.xlu2 %1825 }
 0x2a0   : > { %v10170_v26 = vmul.f32 %v1806_v8, %v1676_v53 }
 0x2a3   : > { %v1589_v56 = vpop.f32.mrf.mxu2 }
 0x2a4   : > { %v1590_v43 = vadd.f32 %v9933_v6, %v1589_v56  ;;  %v1678_v60 = vpop.f32.mrf.mxu3 }
 0x2a6   : > { %v1679_v3 = vadd.f32 %v1678_v60, %v1590_v43 }
 0x2a8   : > { %v10173_v28 = vmul.f32 %v1811_v35, %v1679_v3  ;;  %v1831_v3 = vpop.permute.xlu0 %1830 }
 0x2ab   : > { %v1591_v0 = vpop.f32.mrf.mxu2 }
 0x2ac   : > { %v1592_v39 = vadd.f32 %v9933_v6, %v1591_v0  ;;  %v1680_v7 = vpop.f32.mrf.mxu3 }
 0x2ae   : > { %v1681_v27 = vadd.f32 %v1680_v7, %v1592_v39 }
 0x2b0   : > { %v10176_v16 = vmul.f32 %v1816_v50, %v1681_v27  ;;  %v1836_v50 = vpop.permute.xlu1 %1835 }
 0x2b3   : > { %v1594_v40 = vpop.f32.mrf.mxu2 }
 0x2b4   : > { %v1595_v24 = vadd.f32 %v9933_v6, %v1594_v40  ;;  %v1683_v22 = vpop.f32.mrf.mxu3 }
 0x2b6   : > { %v1684_v45 = vadd.f32 %v1683_v22, %v1595_v24 }
 0x2b8   : > { %v10179_v19 = vmul.f32 %v1821_v20, %v1684_v45 }
 0x2bb   : > { %v1596_v5 = vpop.f32.mrf.mxu2 }
 0x2bc   : > { %v1597_v57 = vadd.f32 %v9933_v6, %v1596_v5  ;;  %v1685_v9 = vpop.f32.mrf.mxu3  ;;  %v1841_v5 = vpop.permute.xlu2 %1840 }
 0x2be   : > { %v1686_v61 = vadd.f32 %v1685_v9, %v1597_v57 }
 0x2c0   : > { %v10182_v53 = vmul.f32 %v1826_v36, %v1686_v61 }
 0x2c3   : > { %v1599_v8 = vpop.f32.mrf.mxu2 }
 0x2c4   : > { %v1600_v56 = vadd.f32 %v9933_v6, %v1599_v8  ;;  %v1688_v43 = vpop.f32.mrf.mxu3 }
 0x2c6   : > { %v1689_v60 = vadd.f32 %v1688_v43, %v1600_v56  ;;  %v1846_v56 = vpop.permute.xlu0 %1845 }
 0x2c8   : > { %v10185_v35 = vmul.f32 %v1831_v3, %v1689_v60 }
 0x2cb   : > { %v1601_v0 = vpop.f32.mrf.mxu2 }
 0x2cc   : > { %v1602_v39 = vadd.f32 %v9933_v6, %v1601_v0  ;;  %v1690_v7 = vpop.f32.mrf.mxu3 }
 0x2ce   : > { %v1691_v27 = vadd.f32 %v1690_v7, %v1602_v39  ;;  %v1851_v7 = vpop.permute.xlu1 %1850 }
 0x2d0   : > { %v10188_v40 = vmul.f32 %v1836_v50, %v1691_v27 }
 0x2d3   : > { %v1604_v24 = vpop.f32.mrf.mxu2 }
 0x2d4   : > { %v1605_v22 = vadd.f32 %v9933_v6, %v1604_v24  ;;  %v1693_v45 = vpop.f32.mrf.mxu3 }
 0x2d6   : > { %v1694_v20 = vadd.f32 %v1693_v45, %v1605_v22 }
 0x2d8   : > { %v10191_v57 = vmul.f32 %v1841_v5, %v1694_v20  ;;  %v1856_v20 = vpop.permute.xlu2 %1855 }
 0x2db   : > { %v1606_v9 = vpop.f32.mrf.mxu2 }
 0x2dc   : > { %v1607_v61 = vadd.f32 %v9933_v6, %v1606_v9  ;;  %v1695_v36 = vpop.f32.mrf.mxu3 }
 0x2de   : > { %v1696_v8 = vadd.f32 %v1695_v36, %v1607_v61  ;;  %v8272_v61 = vld [vmem:[%s13158_s6] ss:$0 sm:$0xff] }
 0x2e0   : > { %v10194_v43 = vmul.f32 %v1846_v56, %v1696_v8 }
 0x2e3   : > { %v1609_v60 = vpop.f32.mrf.mxu2 }
 0x2e4   : > { %v1610_v3 = vadd.f32 %v9933_v6, %v1609_v60  ;;  %v1698_v0 = vpop.f32.mrf.mxu3  ;;  %v1861_v60 = vpop.permute.xlu0 %1860 }
 0x2e6   : > { %v1699_v39 = vadd.f32 %v1698_v0, %v1610_v3 }
 0x2e8   : > { %v10197_v27 = vmul.f32 %v1851_v7, %v1699_v39 }
 0x2eb   : > { %v1611_v50 = vpop.f32.mrf.mxu2 }
 0x2ec   : > { %v1612_v24 = vadd.f32 %v9933_v6, %v1611_v50  ;;  %v1700_v22 = vpop.f32.mrf.mxu3  ;;  %v1866_v50 = vpop.permute.xlu1 %1865 }
 0x2ee   : > { %v1701_v45 = vadd.f32 %v1700_v22, %v1612_v24 }
 0x2f0   : > { %v10200_v5 = vmul.f32 %v1856_v20, %v1701_v45 }
 0x2f3   : > { %v1614_v9 = vpop.f32.mrf.mxu2 }
 0x2f4   : > { %v1615_v36 = vadd.f32 %v8272_v61, %v1614_v9  ;;  %v1703_v8 = vpop.f32.mrf.mxu3 }
 0x2f6   : > { %v1704_v56 = vadd.f32 %v1703_v8, %v1615_v36 }
 0x2f8   : > { %v10205_v3 = vmul.f32 %v1861_v60, %v1704_v56 }
 0x2fb   : > { %v1616_v0 = vpop.f32.mrf.mxu2 }
 0x2fc   : > { %v1617_v39 = vadd.f32 %v8272_v61, %v1616_v0  ;;  %v1705_v7 = vpop.f32.mrf.mxu3  ;;  %1903 = sbr.rel (%p7240_p2) target bundleno = 801 (0x321), region = 60 }
 0x2fe   : > { %v1706_v6 = vadd.f32 %v1705_v7, %v1617_v39 }
 0x300   : > { %v10207_v24 = vmul.f32 %v1866_v50, %v1706_v6 }
 0x301   : > { %1904 = vst [vmem:[%s8934_s27] sm:$0xff] %v9950_v33 }
 0x302   : > { %1905 = vst [vmem:[%s8934_s27 + $0x8] sm:$0xff] %v9971_v34 }
 0x303   : > { %1906 = vst [vmem:[%s8934_s27 + $0x10] sm:$0xff] %v9988_v12 }
 0x304   : > { %1907 = vst [vmem:[%s8934_s27 + $0x18] sm:$0xff] %v10009_v23 }
 0x305   : > { %1908 = vst [vmem:[%s8934_s27 + $0x20] sm:$0xff] %v10027_v44 }
 0x306   : > { %1909 = vst [vmem:[%s8934_s27 + $0x28] sm:$0xff] %v10048_v4 }
 0x307   : > { %1910 = vst [vmem:[%s8934_s27 + $0x30] sm:$0xff] %v10065_v52 }
 0x308   : > { %1911 = vst [vmem:[%s8934_s27 + $0x38] sm:$0xff] %v10086_v32 }
 0x309   : > { %1912 = vst [vmem:[%s8934_s27 + $0x40] sm:$0xff] %v10103_v58 }
 0x30a   : > { %1913 = vst [vmem:[%s8934_s27 + $0x48] sm:$0xff] %v10124_v31 }
 0x30b   : > { %1914 = vst [vmem:[%s8934_s27 + $0x50] sm:$0xff] %v10137_v11 }
 0x30c   : > { %1915 = vst [vmem:[%s8934_s27 + $0x58] sm:$0xff] %v10144_v21 }
 0x30d   : > { %1916 = vst [vmem:[%s8934_s27 + $0x60] sm:$0xff] %v10147_v29 }
 0x30e   : > { %1917 = vst [vmem:[%s8934_s27 + $0x68] sm:$0xff] %v10152_v42 }
 0x30f   : > { %1918 = vst [vmem:[%s8934_s27 + $0x70] sm:$0xff] %v10155_v15 }
 0x310   : > { %1919 = vst [vmem:[%s8934_s27 + $0x78] sm:$0xff] %v10158_v47 }
 0x311   : > { %1920 = vst [vmem:[%s8934_s27 + $0x80] sm:$0xff] %v10161_v17 }
 0x312   : > { %1921 = vst [vmem:[%s8934_s27 + $0x88] sm:$0xff] %v10164_v2 }
 0x313   : > { %1922 = vst [vmem:[%s8934_s27 + $0x90] sm:$0xff] %v10167_v48 }
 0x314   : > { %1923 = vst [vmem:[%s8934_s27 + $0x98] sm:$0xff] %v10170_v26 }
 0x315   : > { %1924 = vst [vmem:[%s8934_s27 + $0xa0] sm:$0xff] %v10173_v28 }
 0x316   : > { %1925 = vst [vmem:[%s8934_s27 + $0xa8] sm:$0xff] %v10176_v16 }
 0x317   : > { %1926 = vst [vmem:[%s8934_s27 + $0xb0] sm:$0xff] %v10179_v19 }
 0x318   : > { %1927 = vst [vmem:[%s8934_s27 + $0xb8] sm:$0xff] %v10182_v53 }
 0x319   : > { %1928 = vst [vmem:[%s8934_s27 + $0xc0] sm:$0xff] %v10185_v35 }
 0x31a   : > { %1929 = vst [vmem:[%s8934_s27 + $0xc8] sm:$0xff] %v10188_v40 }
 0x31b   : > { %1930 = vst [vmem:[%s8934_s27 + $0xd0] sm:$0xff] %v10191_v57 }
 0x31c   : > { %1931 = vst [vmem:[%s8934_s27 + $0xd8] sm:$0xff] %v10194_v43 }
 0x31d   : > { %1932 = vst [vmem:[%s8934_s27 + $0xe0] sm:$0xff] %v10197_v27 }
 0x31e   : > { %1933 = vst [vmem:[%s8934_s27 + $0xe8] sm:$0xff] %v10200_v5 }
 0x31f   : > { %1934 = vst [vmem:[%s8934_s27 + $0xf0] sm:$0xff] %v10205_v3 }
 0x320   : > { %1935 = vst [vmem:[%s8934_s27 + $0xf8] sm:$0xff] %v10207_v24 }
 0x321 PF: > { %p7241_p3 = scmp.eq.s32.totalorder %s8920_s10, 0 }
 0x323   : > { %1939 = sbr.rel (%p7241_p3) target bundleno = 843 (0x34b), region = 64 }
 0x328   : > { %v1940_v22 = vld [vmem:[%s8934_s27] sm:$0xff]  ;;  %v1941_v45 = vld [vmem:[%s8934_s27 + $0x8] sm:$0xff]  ;;  %v1942_v20 = vld [vmem:[%s8934_s27 + $0x10] sm:$0xff] }
 0x329   : > { %v1972_v9 = vadd.f32 %v1940_v22, %v9950_v33  ;;  %v1973_v61 = vadd.f32 %v1941_v45, %v9971_v34  ;;  %v1974_v36 = vadd.f32 %v1942_v20, %v9988_v12  ;;  %v1943_v8 = vld [vmem:[%s8934_s27 + $0x18] sm:$0xff]  ;;  %v1944_v56 = vld [vmem:[%s8934_s27 + $0x20] sm:$0xff]  ;;  %v1945_v60 = vld [vmem:[%s8934_s27 + $0x28] sm:$0xff] }
 0x32a   : > { %v1975_v0 = vadd.f32 %v1943_v8, %v10009_v23  ;;  %v1946_v39 = vld [vmem:[%s8934_s27 + $0x30] sm:$0xff]  ;;  %v1976_v7 = vadd.f32 %v1944_v56, %v10027_v44  ;;  %v1947_v33 = vld [vmem:[%s8934_s27 + $0x38] sm:$0xff]  ;;  %v1977_v34 = vadd.f32 %v1945_v60, %v10048_v4  ;;  %v1948_v12 = vld [vmem:[%s8934_s27 + $0x40] sm:$0xff] }
 0x32b   : > { %2004 = vst [vmem:[%s8934_s27] sm:$0xff] %v1972_v9  ;;  %v1978_v6 = vadd.f32 %v1946_v39, %v10065_v52  ;;  %v1949_v23 = vld [vmem:[%s8934_s27 + $0x48] sm:$0xff]  ;;  %v1979_v50 = vadd.f32 %v1947_v33, %v10086_v32  ;;  %v1950_v44 = vld [vmem:[%s8934_s27 + $0x50] sm:$0xff]  ;;  %v1980_v22 = vadd.f32 %v1948_v12, %v10103_v58  ;;  %v1951_v4 = vld [vmem:[%s8934_s27 + $0x58] sm:$0xff] }
 0x32c   : > { %2005 = vst [vmem:[%s8934_s27 + $0x8] sm:$0xff] %v1973_v61  ;;  %v1981_v45 = vadd.f32 %v1949_v23, %v10124_v31  ;;  %v1952_v52 = vld [vmem:[%s8934_s27 + $0x60] sm:$0xff]  ;;  %v1982_v20 = vadd.f32 %v1950_v44, %v10137_v11  ;;  %v1953_v32 = vld [vmem:[%s8934_s27 + $0x68] sm:$0xff]  ;;  %v1983_v9 = vadd.f32 %v1951_v4, %v10144_v21  ;;  %v1954_v58 = vld [vmem:[%s8934_s27 + $0x70] sm:$0xff] }
 0x32d   : > { %2006 = vst [vmem:[%s8934_s27 + $0x10] sm:$0xff] %v1974_v36  ;;  %v1984_v61 = vadd.f32 %v1952_v52, %v10147_v29  ;;  %v1955_v31 = vld [vmem:[%s8934_s27 + $0x78] sm:$0xff]  ;;  %v1985_v36 = vadd.f32 %v1953_v32, %v10152_v42  ;;  %v1956_v11 = vld [vmem:[%s8934_s27 + $0x80] sm:$0xff]  ;;  %v1986_v8 = vadd.f32 %v1954_v58, %v10155_v15  ;;  %v1957_v21 = vld [vmem:[%s8934_s27 + $0x88] sm:$0xff] }
 0x32e   : > { %2007 = vst [vmem:[%s8934_s27 + $0x18] sm:$0xff] %v1975_v0  ;;  %v1987_v56 = vadd.f32 %v1955_v31, %v10158_v47  ;;  %v1958_v29 = vld [vmem:[%s8934_s27 + $0x90] sm:$0xff]  ;;  %v1988_v60 = vadd.f32 %v1956_v11, %v10161_v17  ;;  %v1959_v42 = vld [vmem:[%s8934_s27 + $0x98] sm:$0xff]  ;;  %v1989_v0 = vadd.f32 %v1957_v21, %v10164_v2  ;;  %v1960_v15 = vld [vmem:[%s8934_s27 + $0xa0] sm:$0xff] }
 0x32f   : > { %2008 = vst [vmem:[%s8934_s27 + $0x20] sm:$0xff] %v1976_v7  ;;  %v1990_v39 = vadd.f32 %v1958_v29, %v10167_v48  ;;  %v1961_v47 = vld [vmem:[%s8934_s27 + $0xa8] sm:$0xff]  ;;  %v1991_v7 = vadd.f32 %v1959_v42, %v10170_v26  ;;  %v1962_v17 = vld [vmem:[%s8934_s27 + $0xb0] sm:$0xff]  ;;  %v1992_v33 = vadd.f32 %v1960_v15, %v10173_v28  ;;  %v1963_v2 = vld [vmem:[%s8934_s27 + $0xb8] sm:$0xff] }
 0x330   : > { %2009 = vst [vmem:[%s8934_s27 + $0x28] sm:$0xff] %v1977_v34  ;;  %v1993_v34 = vadd.f32 %v1961_v47, %v10176_v16  ;;  %v1964_v48 = vld [vmem:[%s8934_s27 + $0xc0] sm:$0xff]  ;;  %v1994_v12 = vadd.f32 %v1962_v17, %v10179_v19  ;;  %v1965_v26 = vld [vmem:[%s8934_s27 + $0xc8] sm:$0xff]  ;;  %v1966_v28 = vld [vmem:[%s8934_s27 + $0xd0] sm:$0xff] }
 0x331   : > { %2010 = vst [vmem:[%s8934_s27 + $0x30] sm:$0xff] %v1978_v6  ;;  %v1995_v6 = vadd.f32 %v1963_v2, %v10182_v53  ;;  %v1996_v23 = vadd.f32 %v1964_v48, %v10185_v35  ;;  %v1967_v16 = vld [vmem:[%s8934_s27 + $0xd8] sm:$0xff]  ;;  %v1968_v44 = vld [vmem:[%s8934_s27 + $0xe0] sm:$0xff]  ;;  %v1998_v19 = vadd.f32 %v1966_v28, %v10191_v57  ;;  %v1969_v53 = vld [vmem:[%s8934_s27 + $0xe8] sm:$0xff] }
 0x332   : > { %2011 = vst [vmem:[%s8934_s27 + $0x38] sm:$0xff] %v1979_v50  ;;  %v1997_v50 = vadd.f32 %v1965_v26, %v10188_v40  ;;  %v1970_v4 = vld [vmem:[%s8934_s27 + $0xf0] sm:$0xff]  ;;  %v2000_v35 = vadd.f32 %v1968_v44, %v10197_v27  ;;  %v2001_v40 = vadd.f32 %v1969_v53, %v10200_v5 }
 0x333   : > { %2012 = vst [vmem:[%s8934_s27 + $0x40] sm:$0xff] %v1980_v22  ;;  %v1999_v22 = vadd.f32 %v1967_v16, %v10194_v43  ;;  %v2002_v52 = vadd.f32 %v1970_v4, %v10205_v3 }
 0x334   : > { %2013 = vst [vmem:[%s8934_s27 + $0x48] sm:$0xff] %v1981_v45  ;;  %v1971_v45 = vld [vmem:[%s8934_s27 + $0xf8] sm:$0xff] }
 0x335   : > { %2014 = vst [vmem:[%s8934_s27 + $0x50] sm:$0xff] %v1982_v20  ;;  %v2003_v57 = vadd.f32 %v1971_v45, %v10207_v24 }
 0x336   : > { %2015 = vst [vmem:[%s8934_s27 + $0x58] sm:$0xff] %v1983_v9 }
 0x337   : > { %2016 = vst [vmem:[%s8934_s27 + $0x60] sm:$0xff] %v1984_v61 }
 0x338   : > { %2017 = vst [vmem:[%s8934_s27 + $0x68] sm:$0xff] %v1985_v36 }
 0x339   : > { %2018 = vst [vmem:[%s8934_s27 + $0x70] sm:$0xff] %v1986_v8 }
 0x33a   : > { %2019 = vst [vmem:[%s8934_s27 + $0x78] sm:$0xff] %v1987_v56 }
 0x33b   : > { %2020 = vst [vmem:[%s8934_s27 + $0x80] sm:$0xff] %v1988_v60 }
 0x33c   : > { %2021 = vst [vmem:[%s8934_s27 + $0x88] sm:$0xff] %v1989_v0 }
 0x33d   : > { %2022 = vst [vmem:[%s8934_s27 + $0x90] sm:$0xff] %v1990_v39 }
 0x33e   : > { %2023 = vst [vmem:[%s8934_s27 + $0x98] sm:$0xff] %v1991_v7 }
 0x33f   : > { %2024 = vst [vmem:[%s8934_s27 + $0xa0] sm:$0xff] %v1992_v33 }
 0x340   : > { %2025 = vst [vmem:[%s8934_s27 + $0xa8] sm:$0xff] %v1993_v34 }
 0x341   : > { %2026 = vst [vmem:[%s8934_s27 + $0xb0] sm:$0xff] %v1994_v12 }
 0x342   : > { %2027 = vst [vmem:[%s8934_s27 + $0xb8] sm:$0xff] %v1995_v6 }
 0x343   : > { %2028 = vst [vmem:[%s8934_s27 + $0xc0] sm:$0xff] %v1996_v23 }
 0x344   : > { %2029 = vst [vmem:[%s8934_s27 + $0xc8] sm:$0xff] %v1997_v50 }
 0x345   : > { %2030 = vst [vmem:[%s8934_s27 + $0xd0] sm:$0xff] %v1998_v19 }
 0x346   : > { %2031 = vst [vmem:[%s8934_s27 + $0xd8] sm:$0xff] %v1999_v22 }
 0x347   : > { %2032 = vst [vmem:[%s8934_s27 + $0xe0] sm:$0xff] %v2000_v35 }
 0x348   : > { %2033 = vst [vmem:[%s8934_s27 + $0xe8] sm:$0xff] %v2001_v40 }
 0x349   : > { %2034 = vst [vmem:[%s8934_s27 + $0xf0] sm:$0xff] %v2002_v52 }
 0x34a   : > { %2035 = vst [vmem:[%s8934_s27 + $0xf8] sm:$0xff] %v2003_v57 }
 0x34b PF: > { %s2036_s18 = sadd.s32 1, %s9357_s28 }
 0x34c   : > { %s2037_s19 = sld [smem:[#allocation3 + %s2036_s18]] }
 0x352   : > { %p7242_p4 = scmp.eq.s32.totalorder %s2037_s19, 0 }
 0x353   : > { %p7453_p7 = scmp.ne.s32.totalorder (!%p7242_p4), %s8920_s10, 1 }
 0x354   : > { %2041 = sbr.rel (%p7242_p4) target bundleno = 1509 (0x5e5), region = 68 }
 0x359   : > { %v7382_v43 = vld [vmem:[%s13155_s3 + $0xf0] sm:$0xf]  ;;  %v7997_v27 = vld [vmem:[%s13155_s3 + $0xf4] sm:$0xf0]  ;;  %v7996_v5 = vld [vmem:[%s13155_s3 + $0xf4] sm:$0xf] }
 0x35a   : > { %v7383_v3 = vor.u32 %v7997_v27, %v7382_v43  ;;  %v7384_v24 = vld [vmem:[%s13155_s3 + $0xf8] sm:$0xf0]  ;;  %v7374_v20 = vld [vmem:[%s13155_s3 + $0xe0] sm:$0xf]  ;;  %v7995_v32 = vld [vmem:[%s13155_s3 + $0xe4] sm:$0xf0] }
 0x35b   : > { %v7387_v9 = vor.u32 %v7996_v5, %v7384_v24  ;;  %v7994_v58 = vld [vmem:[%s13155_s3 + $0xe4] sm:$0xf]  ;;  %v7376_v61 = vld [vmem:[%s13155_s3 + $0xe8] sm:$0xf0]  ;;  %v7375_v31 = vor.u32 %v7995_v32, %v7374_v20  ;;  %v7366_v11 = vld [vmem:[%s13155_s3 + $0xd0] sm:$0xf] }
 0x35c   : > { %2242 = vmatpush.bf16.msra.mxu0 %v7383_v3  ;;  %v7379_v36 = vor.u32 %v7994_v58, %v7376_v61  ;;  %v7993_v8 = vld [vmem:[%s13155_s3 + $0xd4] sm:$0xf0]  ;;  %v7992_v21 = vld [vmem:[%s13155_s3 + $0xd4] sm:$0xf]  ;;  %v7368_v56 = vld [vmem:[%s13155_s3 + $0xd8] sm:$0xf0] }
 0x35d   : > { %2331 = vmatpush.bf16.msra.mxu1 %v7387_v9  ;;  %v7367_v29 = vor.u32 %v7993_v8, %v7366_v11  ;;  %v7371_v60 = vor.u32 %v7992_v21, %v7368_v56  ;;  %v7358_v42 = vld [vmem:[%s13155_s3 + $0xc0] sm:$0xf]  ;;  %v7991_v0 = vld [vmem:[%s13155_s3 + $0xc4] sm:$0xf0]  ;;  %v7990_v15 = vld [vmem:[%s13155_s3 + $0xc4] sm:$0xf] }
 0x35e   : > { %v7360_v39 = vld [vmem:[%s13155_s3 + $0xc8] sm:$0xf0]  ;;  %v7359_v47 = vor.u32 %v7991_v0, %v7358_v42  ;;  %v7350_v17 = vld [vmem:[%s13155_s3 + $0xb0] sm:$0xf]  ;;  %v7989_v33 = vld [vmem:[%s13155_s3 + $0xb4] sm:$0xf0] }
 0x35f   : > { %v7363_v7 = vor.u32 %v7990_v15, %v7360_v39  ;;  %v7988_v2 = vld [vmem:[%s13155_s3 + $0xb4] sm:$0xf]  ;;  %v7352_v34 = vld [vmem:[%s13155_s3 + $0xb8] sm:$0xf0]  ;;  %v7351_v48 = vor.u32 %v7989_v33, %v7350_v17  ;;  %v7342_v26 = vld [vmem:[%s13155_s3 + $0xa0] sm:$0xf] }
 0x360   : > { %2243 = vmatpush.bf16.msra.mxu0 %v7375_v31  ;;  %v7355_v12 = vor.u32 %v7988_v2, %v7352_v34  ;;  %v7987_v6 = vld [vmem:[%s13155_s3 + $0xa4] sm:$0xf0]  ;;  %v7986_v28 = vld [vmem:[%s13155_s3 + $0xa4] sm:$0xf]  ;;  %v7344_v23 = vld [vmem:[%s13155_s3 + $0xa8] sm:$0xf0] }
 0x361   : > { %2332 = vmatpush.bf16.msra.mxu1 %v7379_v36  ;;  %v7343_v16 = vor.u32 %v7987_v6, %v7342_v26  ;;  %v7347_v50 = vor.u32 %v7986_v28, %v7344_v23  ;;  %v7334_v44 = vld [vmem:[%s13155_s3 + $0x90] sm:$0xf]  ;;  %v7985_v19 = vld [vmem:[%s13155_s3 + $0x94] sm:$0xf0]  ;;  %v7984_v53 = vld [vmem:[%s13155_s3 + $0x94] sm:$0xf] }
 0x362   : > { %v7336_v22 = vld [vmem:[%s13155_s3 + $0x98] sm:$0xf0]  ;;  %v7335_v4 = vor.u32 %v7985_v19, %v7334_v44  ;;  %v7326_v45 = vld [vmem:[%s13155_s3 + $0x80] sm:$0xf]  ;;  %v7983_v40 = vld [vmem:[%s13155_s3 + $0x84] sm:$0xf0] }
 0x363   : > { %v7339_v35 = vor.u32 %v7984_v53, %v7336_v22  ;;  %v7982_v52 = vld [vmem:[%s13155_s3 + $0x84] sm:$0xf]  ;;  %v7328_v57 = vld [vmem:[%s13155_s3 + $0x88] sm:$0xf0]  ;;  %v7327_v43 = vor.u32 %v7983_v40, %v7326_v45  ;;  %v13296_v5 = vld [vmem:[#allocation14_spill] sm:$0xff] }
 0x364   : > { %2244 = vmatpush.bf16.msra.mxu0 %v7367_v29  ;;  %v7331_v27 = vor.u32 %v7982_v52, %v7328_v57  ;;  %v13297_v3 = vld [vmem:[#allocation17_spill] sm:$0xff]  ;;  %v13298_v20 = vld [vmem:[#allocation20_spill] sm:$0xff]  ;;  %v13299_v32 = vld [vmem:[#allocation23_spill] sm:$0xff] }
 0x365   : > { %2333 = vmatpush.bf16.msra.mxu1 %v7371_v60  ;;  %v7263_v24 = vor.u32 %v13297_v3, %v13296_v5  ;;  %v7267_v9 = vor.u32 %v13299_v32, %v13298_v20  ;;  %v13300_v58 = vld [vmem:[#allocation26_spill] sm:$0xff]  ;;  %v13301_v61 = vld [vmem:[#allocation29_spill] sm:$0xff]  ;;  %v13302_v36 = vld [vmem:[#allocation32_spill] sm:$0xff] }
 0x366   : > { %v7271_v31 = vor.u32 %v13301_v61, %v13300_v58  ;;  %v13303_v11 = vld [vmem:[#allocation35_spill] sm:$0xff]  ;;  %v13304_v21 = vld [vmem:[#allocation38_spill] sm:$0xff]  ;;  %v13305_v56 = vld [vmem:[#allocation41_spill] sm:$0xff] }
 0x367   : > { %v7275_v8 = vor.u32 %v13303_v11, %v13302_v36  ;;  %v7279_v29 = vor.u32 %v13305_v56, %v13304_v21  ;;  %v13306_v60 = vld [vmem:[#allocation44_spill] sm:$0xff]  ;;  %v13307_v42 = vld [vmem:[#allocation47_spill] sm:$0xff]  ;;  %v13308_v15 = vld [vmem:[#allocation50_spill] sm:$0xff] }
 0x368   : > { %2245 = vmatpush.bf16.msra.mxu0 %v7359_v47  ;;  %v7283_v0 = vor.u32 %v13307_v42, %v13306_v60  ;;  %v13309_v39 = vld [vmem:[#allocation53_spill] sm:$0xff]  ;;  %v8013_v17 = vld [vmem:[#allocation5 + $0xf8] sm:$0xff]  ;;  %v8004_v33 = vld [vmem:[#allocation5 + $0xb0] sm:$0xff] }
 0x369   : > { %2334 = vmatpush.bf16.msra.mxu1 %v7363_v7  ;;  %v7287_v47 = vor.u32 %v13309_v39, %v13308_v15  ;;  %v8005_v7 = vld [vmem:[#allocation5 + $0xb8] sm:$0xff]  ;;  %3251 = vmatpush.bf16.msra.mxu3 %v8013_v17  ;;  %v8012_v2 = vld [vmem:[#allocation5 + $0xf0] sm:$0xff]  ;;  %v8003_v34 = vld [vmem:[#allocation5 + $0xa8] sm:$0xff] }
 0x36a   : > { %3162 = vmatpush.bf16.msra.mxu2 %v8005_v7  ;;  %v8010_v26 = vld [vmem:[#allocation5 + $0xe0] sm:$0xff]  ;;  %v13311_v28 = vld [vmem:[#allocation59_spill] sm:$0xff]  ;;  %v8000_v44 = vld [vmem:[#allocation5 + $0x90] sm:$0xff] }
 0x36b   : > { %v13310_v6 = vld [vmem:[#allocation56_spill] sm:$0xff]  ;;  %v8008_v19 = vld [vmem:[#allocation5 + $0xd0] sm:$0xff]  ;;  %v7999_v22 = vld [vmem:[#allocation5 + $0x88] sm:$0xff] }
 0x36c   : > { %2246 = vmatpush.bf16.msra.mxu0 %v7351_v48  ;;  %v8011_v48 = vld [vmem:[#allocation5 + $0xe8] sm:$0xff]  ;;  %v7291_v23 = vor.u32 %v13311_v28, %v13310_v6  ;;  %v7259_v53 = vld [vmem:[%s13156_s4 + $0x2] sm:$0x3]  ;;  %v13312_v57 = vld [vmem:[#allocation62_spill] sm:$0xff] }
 0x36d   : > { %2335 = vmatpush.bf16.msra.mxu1 %v7355_v12  ;;  %3252 = vmatpush.bf16.msra.mxu3 %v8012_v2  ;;  %v8002_v12 = vld [vmem:[#allocation5 + $0xa0] sm:$0xff]  ;;  %v10489_v45 = vperm.slane %v7259_v53, 1 }
 0x36e   : > { %3163 = vmatpush.bf16.msra.mxu2 %v8004_v33  ;;  %v7998_v40 = vld [vmem:[#allocation5 + $0x80] sm:$0xff]  ;;  %v13315_v33 = vld [vmem:[#allocation71_spill] sm:$0xff] }
 0x36f   : > { %v8006_v52 = vld [vmem:[#allocation5 + $0xc0] sm:$0xff] }
 0x370   : > { %2247 = vmatpush.bf16.msra.mxu0 %v7343_v16  ;;  %v8001_v16 = vld [vmem:[#allocation5 + $0x98] sm:$0xff]  ;;  %v13314_v17 = vld [vmem:[#allocation68_spill] sm:$0xff] }
 0x371   : > { %2336 = vmatpush.bf16.msra.mxu1 %v7347_v50  ;;  %3253 = vmatpush.bf16.msra.mxu3 %v8011_v48  ;;  %v8009_v50 = vld [vmem:[#allocation5 + $0xd8] sm:$0xff]  ;;  %v7299_v2 = vor.u32 %v13315_v33, %v13314_v17 }
 0x372   : > { %3164 = vmatpush.bf16.msra.mxu2 %v8003_v34 }
 0x374   : > { %2248 = vmatpush.bf16.msra.mxu0 %v7335_v4  ;;  %v8007_v4 = vld [vmem:[#allocation5 + $0xc8] sm:$0xff] }
 0x375   : > { %2337 = vmatpush.bf16.msra.mxu1 %v7339_v35  ;;  %3254 = vmatpush.bf16.msra.mxu3 %v8010_v26  ;;  %v10487_v35 = vperm.slane %v7259_v53, 0 }
 0x376   : > { %3165 = vmatpush.bf16.msra.mxu2 %v8002_v12 }
 0x378   : > { %2249 = vmatpush.bf16.msra.mxu0 %v7327_v43  ;;  %v13313_v43 = vld [vmem:[#allocation65_spill] sm:$0xff] }
 0x379   : > { %2338 = vmatpush.bf16.msra.mxu1 %v7331_v27  ;;  %3255 = vmatpush.bf16.msra.mxu3 %v8009_v50  ;;  %v7295_v27 = vor.u32 %v13313_v43, %v13312_v57  ;;  %v8803_v57 = vmov 1  }
 0x37a   : > { %3166 = vmatpush.bf16.msra.mxu2 %v8001_v16  ;;  %8273 = vset.pattern.permute.xlu0 %v8803_v57 }
 0x37b   : > { %2250 = vmatmul.bf16.vlgmr.msra.gmra.mxu0 %v7263_v24  ;;  %8274 = vset.pattern.permute.xlu1 %v8803_v57 }
 0x37c   : > { %2339 = vmatmul.bf16.vlgmr.msra.gmra.mxu1 %v7263_v24  ;;  %3342 = vperm.xlu0 %8273, %v9354_v18  }
 0x37d   : > { %3256 = vmatpush.bf16.msra.mxu3 %v8008_v19  ;;  %8275 = vset.pattern.permute.xlu2 %v8803_v57 }
 0x37e   : > { %3167 = vmatpush.bf16.msra.mxu2 %v8000_v44 }
 0x381   : > { %3257 = vmatpush.bf16.msra.mxu3 %v8007_v4 }
 0x382   : > { %3168 = vmatpush.bf16.msra.mxu2 %v7999_v22 }
 0x384   : > { %3347 = vperm.xlu0 %8273, %v9360_v14  }
 0x385   : > { %3258 = vmatpush.bf16.msra.mxu3 %v8006_v52 }
 0x386   : > { %3169 = vmatpush.bf16.msra.mxu2 %v7998_v40 }
 0x38b   : > { %2255 = vmatmul.bf16.gmra.mxu0 %v7267_v9 }
 0x38c   : > { %2344 = vmatmul.bf16.gmra.mxu1 %v7267_v9  ;;  %3372 = vperm.xlu0 %8273, %v9378_v38  }
 0x394   : > { %3387 = vperm.xlu0 %8273, %v9387_v62  }
 0x39b   : > { %2260 = vmatmul.bf16.gmra.mxu0 %v7271_v31 }
 0x39c   : > { %2349 = vmatmul.bf16.gmra.mxu1 %v7271_v31  ;;  %3402 = vperm.xlu0 %8273, %v9396_v13  }
 0x3a4   : > { %3417 = vperm.xlu0 %8273, %v9405_v49  }
 0x3ab   : > { %2265 = vmatmul.bf16.gmra.mxu0 %v7275_v8 }
 0x3ac   : > { %2354 = vmatmul.bf16.gmra.mxu1 %v7275_v8  ;;  %3432 = vperm.xlu0 %8273, %v9414_v55  }
 0x3bb   : > { %2270 = vmatmul.bf16.gmra.mxu0 %v7279_v29 }
 0x3bc   : > { %2359 = vmatmul.bf16.gmra.mxu1 %v7279_v29 }
 0x3cb   : > { %2275 = vmatmul.bf16.gmra.mxu0 %v7283_v0 }
 0x3cc   : > { %2364 = vmatmul.bf16.gmra.mxu1 %v7283_v0 }
 0x3db   : > { %2280 = vmatmul.bf16.gmra.mxu0 %v7287_v47 }
 0x3dc   : > { %2369 = vmatmul.bf16.gmra.mxu1 %v7287_v47 }
 0x3eb   : > { %2285 = vmatmul.bf16.gmra.mxu0 %v7291_v23 }
 0x3ec   : > { %2374 = vmatmul.bf16.gmra.mxu1 %v7291_v23 }
 0x3f8   : > { %v2251_v5 = vpop.f32.mrf.mxu0 }
 0x3f9   : > { %v10494_v3 = vadd.f32 %v2251_v5, %v10487_v35  ;;  %v2340_v24 = vpop.f32.mrf.mxu1 }
 0x3fa   : > { %v10497_v20 = vadd.f32 %v2340_v24, %v10489_v45  ;;  %v13316_v24 = vld [vmem:[#allocation112_spill] sm:$0xff] }
 0x3fb   : > { %v2420_v32 = vmul.f32 %v10494_v3, %v10494_v3  ;;  %2290 = vmatmul.bf16.gmra.mxu0 %v7295_v27  ;;  %3352 = vperm.xlu1 %8274, %v13316_v24  }
 0x3fc   : > { %v2421_v9 = vmul.f32 %v10497_v20, %v10497_v20  ;;  %2379 = vmatmul.bf16.gmra.mxu1 %v7295_v27 }
 0x3fd   : > { %v2484_v58 = vmul.f32 %v2420_v32, %v10494_v3 }
 0x3fe   : > { %v2485_v61 = vmul.f32 %v2421_v9, %v10497_v20 }
 0x3ff   : > { %v2548_v31 = vmul.f32 0.044715, %v2484_v58 }
 0x400   : > { %v2549_v36 = vmul.f32 0.044715, %v2485_v61  ;;  %v2253_v11 = vpop.f32.mrf.mxu0 }
 0x401   : > { %v2254_v8 = vadd.f32 %v2253_v11, %v10487_v35  ;;  %v2342_v21 = vpop.f32.mrf.mxu1  ;;  %v2612_v56 = vadd.f32 %v2548_v31, %v10494_v3  ;;  %v13317_v11 = vld [vmem:[#allocation113_spill] sm:$0xff] }
 0x402   : > { %v2343_v29 = vadd.f32 %v2342_v21, %v10489_v45  ;;  %v2613_v60 = vadd.f32 %v2549_v36, %v10497_v20  ;;  %3362 = vperm.xlu2 %8275, %v13317_v11  }
 0x403   : > { %v2422_v42 = vmul.f32 %v2254_v8, %v2254_v8  ;;  %v2676_v39 = vmul.f32 0.7978846, %v2612_v56  ;;  %3357 = vperm.xlu1 %8274, %v9366_v10  }
 0x404   : > { %v2423_v0 = vmul.f32 %v2343_v29, %v2343_v29  ;;  %v2677_v7 = vmul.f32 0.7978846, %v2613_v60  ;;  %v2740_v60 = vmul.f32 0.5, %v10494_v3  ;;  %v2743_v33 = vmul.f32 0.5, %v2343_v29 }
 0x405   : > { %v2486_v15 = vmul.f32 %v2422_v42, %v2254_v8  ;;  %8277 = vtanh.f32 %v2676_v39  ;;  %v2742_v39 = vmul.f32 0.5, %v2254_v8 }
 0x406   : > { %v2487_v47 = vmul.f32 %v2423_v0, %v2343_v29  ;;  %8279 = vtanh.f32 %v2677_v7  ;;  %v2741_v7 = vmul.f32 0.5, %v10497_v20 }
 0x407   : > { %v2550_v34 = vmul.f32 0.044715, %v2486_v15 }
 0x408   : > { %v2256_v48 = vpop.f32.mrf.mxu0  ;;  %v2551_v12 = vmul.f32 0.044715, %v2487_v47 }
 0x409   : > { %v10512_v26 = vadd.f32 %v2256_v48, %v10487_v35  ;;  %v2345_v6 = vpop.f32.mrf.mxu1  ;;  %v2614_v28 = vadd.f32 %v2550_v34, %v2254_v8 }
 0x40a   : > { %v10515_v23 = vadd.f32 %v2345_v6, %v10489_v45  ;;  %v2615_v16 = vadd.f32 %v2551_v12, %v2343_v29  ;;  %3367 = vperm.xlu2 %8275, %v9375_v30  }
 0x40b   : > { %v2424_v50 = vmul.f32 %v10512_v26, %v10512_v26  ;;  %2295 = vmatmul.bf16.gmra.mxu0 %v7299_v2  ;;  %v2678_v44 = vmul.f32 0.7978846, %v2614_v28  ;;  %v8278_v40 = vpop.eup %8277  ;;  %3377 = vperm.xlu1 %8274, %v9381_v46  }
 0x40c   : > { %v2425_v19 = vmul.f32 %v10515_v23, %v10515_v23  ;;  %2384 = vmatmul.bf16.gmra.mxu1 %v7299_v2  ;;  %v2679_v53 = vmul.f32 0.7978846, %v2615_v16  ;;  %v8280_v43 = vpop.eup %8279  ;;  %v2868_v31 = vadd.f32 1.0, %v8278_v40 }
 0x40d   : > { %v2488_v22 = vmul.f32 %v2424_v50, %v10512_v26  ;;  %8281 = vtanh.f32 %v2678_v44  ;;  %v2869_v42 = vadd.f32 1.0, %v8280_v43  ;;  %v13318_v50 = vld [vmem:[#allocation74_spill] sm:$0xff]  ;;  %v13319_v44 = vld [vmem:[#allocation77_spill] sm:$0xff] }
 0x40e   : > { %v2489_v4 = vmul.f32 %v2425_v19, %v10515_v23  ;;  %8283 = vtanh.f32 %v2679_v53  ;;  %v2932_v12 = vmul.f32 %v2868_v31, %v2740_v60  ;;  %v7303_v19 = vor.u32 %v13319_v44, %v13318_v50 }
 0x40f   : > { %v2552_v52 = vmul.f32 0.044715, %v2488_v22  ;;  %v2933_v3 = vmul.f32 %v2869_v42, %v2741_v7 }
 0x410   : > { %v2553_v27 = vmul.f32 0.044715, %v2489_v4  ;;  %v2258_v5 = vpop.f32.mrf.mxu0 }
 0x411   : > { %v10526_v32 = vadd.f32 %v2258_v5, %v10487_v35  ;;  %v2347_v9 = vpop.f32.mrf.mxu1  ;;  %v2616_v58 = vadd.f32 %v2552_v52, %v10512_v26 }
 0x412   : > { %v10530_v61 = vadd.f32 %v2347_v9, %v10489_v45  ;;  %v2617_v36 = vadd.f32 %v2553_v27, %v10515_v23  ;;  %3382 = vperm.xlu2 %8275, %v9384_v54  }
 0x413   : > { %v8282_v21 = vpop.eup %8281  ;;  %v2426_v56 = vmul.f32 %v10526_v32, %v10526_v32  ;;  %v2680_v34 = vmul.f32 0.7978846, %v2616_v58  ;;  %3392 = vperm.xlu1 %8274, %v9390_v41  }
 0x414   : > { %v8284_v0 = vpop.eup %8283  ;;  %v2427_v15 = vmul.f32 %v10530_v61, %v10530_v61  ;;  %v2870_v47 = vadd.f32 1.0, %v8282_v21  ;;  %v2681_v28 = vmul.f32 0.7978846, %v2617_v36  ;;  %v2747_v50 = vmul.f32 0.5, %v10530_v61 }
 0x415   : > { %v2490_v17 = vmul.f32 %v2426_v56, %v10526_v32  ;;  %v2871_v2 = vadd.f32 1.0, %v8284_v0  ;;  %8285 = vtanh.f32 %v2680_v34 }
 0x416   : > { %v2491_v48 = vmul.f32 %v2427_v15, %v10530_v61  ;;  %v2934_v6 = vmul.f32 %v2870_v47, %v2742_v39  ;;  %8287 = vtanh.f32 %v2681_v28 }
 0x417   : > { %v2935_v16 = vmul.f32 %v2871_v2, %v2743_v33  ;;  %v2554_v53 = vmul.f32 0.044715, %v2490_v17  ;;  %v2744_v2 = vmul.f32 0.5, %v10512_v26 }
 0x418   : > { %v2261_v8 = vpop.f32.mrf.mxu0  ;;  %v2996_v22 = vpack.c.bf16 %v2934_v6, %v2932_v12  ;;  %v2555_v4 = vmul.f32 0.044715, %v2491_v48  ;;  %v2746_v6 = vmul.f32 0.5, %v10526_v32 }
 0x419   : > { %v10547_v20 = vadd.f32 %v2261_v8, %v10487_v35  ;;  %v2350_v29 = vpop.f32.mrf.mxu1  ;;  %v2997_v40 = vpack.c.bf16 %v2935_v16, %v2933_v3  ;;  %v2618_v52 = vadd.f32 %v2554_v53, %v10526_v32  ;;  %v2745_v3 = vmul.f32 0.5, %v10515_v23 }
 0x41a   : > { %v10551_v57 = vadd.f32 %v2350_v29, %v10489_v45  ;;  %3170 = vmatmul.bf16.vlgmr.msra.gmra.mxu2 %v2996_v22  ;;  %v2619_v43 = vadd.f32 %v2555_v4, %v10530_v61  ;;  %3397 = vperm.xlu2 %8275, %v9393_v1  }
 0x41b   : > { %v2428_v27 = vmul.f32 %v10547_v20, %v10547_v20  ;;  %3259 = vmatmul.bf16.vlgmr.msra.gmra.mxu3 %v2997_v40  ;;  %2300 = vmatmul.bf16.gmra.mxu0 %v7303_v19  ;;  %v2682_v5 = vmul.f32 0.7978846, %v2618_v52  ;;  %v8286_v36 = vpop.eup %8285  ;;  %v13320_v40 = vld [vmem:[#allocation80_spill] sm:$0xff]  ;;  %v13321_v52 = vld [vmem:[#allocation83_spill] sm:$0xff] }
 0x41c   : > { %v2429_v24 = vmul.f32 %v10551_v57, %v10551_v57  ;;  %2389 = vmatmul.bf16.gmra.mxu1 %v7303_v19  ;;  %v2683_v9 = vmul.f32 0.7978846, %v2619_v43  ;;  %v8288_v21 = vpop.eup %8287  ;;  %v2872_v47 = vadd.f32 1.0, %v8286_v36  ;;  %v7307_v43 = vor.u32 %v13321_v52, %v13320_v40  ;;  %3407 = vperm.xlu1 %8274, %v9399_v25  }
 0x41d   : > { %v2492_v58 = vmul.f32 %v2428_v27, %v10547_v20  ;;  %8289 = vtanh.f32 %v2682_v5  ;;  %v2873_v34 = vadd.f32 1.0, %v8288_v21 }
 0x41e   : > { %v2493_v31 = vmul.f32 %v2429_v24, %v10551_v57  ;;  %8291 = vtanh.f32 %v2683_v9  ;;  %v2936_v8 = vmul.f32 %v2872_v47, %v2744_v2 }
 0x41f   : > { %v2556_v11 = vmul.f32 0.044715, %v2492_v58  ;;  %v2937_v4 = vmul.f32 %v2873_v34, %v2745_v3 }
 0x420   : > { %v2557_v56 = vmul.f32 0.044715, %v2493_v31  ;;  %v2263_v60 = vpop.f32.mrf.mxu0 }
 0x421   : > { %v10564_v42 = vadd.f32 %v2263_v60, %v10487_v35  ;;  %v2352_v0 = vpop.f32.mrf.mxu1  ;;  %v2620_v15 = vadd.f32 %v2556_v11, %v10547_v20 }
 0x422   : > { %v10568_v39 = vadd.f32 %v2352_v0, %v10489_v45  ;;  %v2621_v7 = vadd.f32 %v2557_v56, %v10551_v57  ;;  %3412 = vperm.xlu2 %8275, %v9402_v37  }
 0x423   : > { %v8290_v17 = vpop.eup %8289  ;;  %v2430_v33 = vmul.f32 %v10564_v42, %v10564_v42  ;;  %v2684_v19 = vmul.f32 0.7978846, %v2620_v15 }
 0x424   : > { %v8292_v48 = vpop.eup %8291  ;;  %v2431_v12 = vmul.f32 %v10568_v39, %v10568_v39  ;;  %v2874_v28 = vadd.f32 1.0, %v8290_v17  ;;  %v2685_v22 = vmul.f32 0.7978846, %v2621_v7  ;;  %v2751_v40 = vmul.f32 0.5, %v10568_v39  ;;  %3422 = vperm.xlu1 %8274, %v9408_v63  }
 0x425   : > { %v2494_v16 = vmul.f32 %v2430_v33, %v10564_v42  ;;  %v2875_v44 = vadd.f32 1.0, %v8292_v48  ;;  %8293 = vtanh.f32 %v2684_v19 }
 0x426   : > { %v2495_v53 = vmul.f32 %v2431_v12, %v10568_v39  ;;  %v2938_v26 = vmul.f32 %v2874_v28, %v2746_v6  ;;  %8295 = vtanh.f32 %v2685_v22 }
 0x427   : > { %v2939_v29 = vmul.f32 %v2875_v44, %v2747_v50  ;;  %v2558_v32 = vmul.f32 0.044715, %v2494_v16  ;;  %v2748_v44 = vmul.f32 0.5, %v10547_v20 }
 0x428   : > { %v2266_v27 = vpop.f32.mrf.mxu0  ;;  %v2998_v5 = vpack.c.bf16 %v2938_v26, %v2936_v8  ;;  %v2559_v23 = vmul.f32 0.044715, %v2495_v53  ;;  %v2750_v26 = vmul.f32 0.5, %v10564_v42 }
 0x429   : > { %v10587_v61 = vadd.f32 %v2266_v27, %v10487_v35  ;;  %v2355_v24 = vpop.f32.mrf.mxu1  ;;  %v2999_v9 = vpack.c.bf16 %v2939_v29, %v2937_v4  ;;  %v2622_v58 = vadd.f32 %v2558_v32, %v10564_v42  ;;  %v2749_v4 = vmul.f32 0.5, %v10551_v57 }
 0x42a   : > { %v10591_v31 = vadd.f32 %v2355_v24, %v10489_v45  ;;  %3175 = vmatmul.bf16.gmra.mxu2 %v2998_v5  ;;  %v2623_v36 = vadd.f32 %v2559_v23, %v10568_v39  ;;  %3427 = vperm.xlu2 %8275, %v9411_v59  }
 0x42b   : > { %v2432_v11 = vmul.f32 %v10587_v61, %v10587_v61  ;;  %3264 = vmatmul.bf16.gmra.mxu3 %v2999_v9  ;;  %2305 = vmatmul.bf16.gmra.mxu0 %v7307_v43  ;;  %v2686_v21 = vmul.f32 0.7978846, %v2622_v58  ;;  %v8294_v47 = vpop.eup %8293  ;;  %v13322_v9 = vld [vmem:[#allocation86_spill] sm:$0xff]  ;;  %v13323_v58 = vld [vmem:[#allocation89_spill] sm:$0xff] }
 0x42c   : > { %v2433_v56 = vmul.f32 %v10591_v31, %v10591_v31  ;;  %2394 = vmatmul.bf16.gmra.mxu1 %v7307_v43  ;;  %v2687_v60 = vmul.f32 0.7978846, %v2623_v36  ;;  %v8296_v17 = vpop.eup %8295  ;;  %v2876_v28 = vadd.f32 1.0, %v8294_v47  ;;  %v7311_v36 = vor.u32 %v13323_v58, %v13322_v9  ;;  %3437 = vperm.xlu1 %8274, %v9417_v51  }
 0x42d   : > { %v2496_v0 = vmul.f32 %v2432_v11, %v10587_v61  ;;  %8297 = vtanh.f32 %v2686_v21  ;;  %v2877_v19 = vadd.f32 1.0, %v8296_v17 }
 0x42e   : > { %v2497_v15 = vmul.f32 %v2433_v56, %v10591_v31  ;;  %8299 = vtanh.f32 %v2687_v60  ;;  %v2940_v27 = vmul.f32 %v2876_v28, %v2748_v44 }
 0x42f   : > { %v2560_v7 = vmul.f32 0.044715, %v2496_v0  ;;  %v2941_v23 = vmul.f32 %v2877_v19, %v2749_v4 }
 0x430   : > { %v2561_v33 = vmul.f32 0.044715, %v2497_v15  ;;  %v2268_v2 = vpop.f32.mrf.mxu0 }
 0x431   : > { %v10604_v34 = vadd.f32 %v2268_v2, %v10487_v35  ;;  %v2357_v48 = vpop.f32.mrf.mxu1  ;;  %v2624_v12 = vadd.f32 %v2560_v7, %v10587_v61 }
 0x432   : > { %v10608_v6 = vadd.f32 %v2357_v48, %v10489_v45  ;;  %v2625_v3 = vadd.f32 %v2561_v33, %v10591_v31 }
 0x433   : > { %v8298_v16 = vpop.eup %8297  ;;  %v2434_v50 = vmul.f32 %v10604_v34, %v10604_v34  ;;  %v2688_v43 = vmul.f32 0.7978846, %v2624_v12 }
 0x434   : > { %v8300_v53 = vpop.eup %8299  ;;  %v2435_v8 = vmul.f32 %v10608_v6, %v10608_v6  ;;  %v2878_v22 = vadd.f32 1.0, %v8298_v16  ;;  %v2689_v5 = vmul.f32 0.7978846, %v2625_v3  ;;  %v2755_v58 = vmul.f32 0.5, %v10608_v6 }
 0x435   : > { %v2498_v29 = vmul.f32 %v2434_v50, %v10604_v34  ;;  %v2879_v52 = vadd.f32 1.0, %v8300_v53  ;;  %8301 = vtanh.f32 %v2688_v43  ;;  %v2752_v43 = vmul.f32 0.5, %v10587_v61 }
 0x436   : > { %v2499_v32 = vmul.f32 %v2435_v8, %v10608_v6  ;;  %v2942_v20 = vmul.f32 %v2878_v22, %v2750_v26  ;;  %8303 = vtanh.f32 %v2689_v5  ;;  %v2754_v5 = vmul.f32 0.5, %v10604_v34 }
 0x437   : > { %v2943_v24 = vmul.f32 %v2879_v52, %v2751_v40  ;;  %v2562_v42 = vmul.f32 0.044715, %v2498_v29  ;;  %v13324_v29 = vld [vmem:[#allocation114_spill] sm:$0xff] }
 0x438   : > { %v2271_v11 = vpop.f32.mrf.mxu0  ;;  %v3000_v21 = vpack.c.bf16 %v2942_v20, %v2940_v27  ;;  %v2563_v57 = vmul.f32 0.044715, %v2499_v32  ;;  %3442 = vperm.xlu2 %8275, %v13324_v29  }
 0x439   : > { %v10627_v39 = vadd.f32 %v2271_v11, %v10487_v35  ;;  %v2360_v56 = vpop.f32.mrf.mxu1  ;;  %v3001_v60 = vpack.c.bf16 %v2943_v24, %v2941_v23  ;;  %v2626_v0 = vadd.f32 %v2562_v42, %v10604_v34  ;;  %v2753_v24 = vmul.f32 0.5, %v10591_v31 }
 0x43a   : > { %v10631_v15 = vadd.f32 %v2360_v56, %v10489_v45  ;;  %3180 = vmatmul.bf16.gmra.mxu2 %v3000_v21  ;;  %v2627_v47 = vadd.f32 %v2563_v57, %v10608_v6 }
 0x43b   : > { %v2436_v7 = vmul.f32 %v10627_v39, %v10627_v39  ;;  %3269 = vmatmul.bf16.gmra.mxu3 %v3001_v60  ;;  %2310 = vmatmul.bf16.gmra.mxu0 %v7311_v36  ;;  %v2690_v17 = vmul.f32 0.7978846, %v2626_v0  ;;  %v8302_v28 = vpop.eup %8301 }
 0x43c   : > { %v2437_v33 = vmul.f32 %v10631_v15, %v10631_v15  ;;  %2399 = vmatmul.bf16.gmra.mxu1 %v7311_v36  ;;  %v2691_v2 = vmul.f32 0.7978846, %v2627_v47  ;;  %v8304_v16 = vpop.eup %8303  ;;  %v2880_v22 = vadd.f32 1.0, %v8302_v28  ;;  %v13325_v47 = vld [vmem:[#allocation92_spill] sm:$0xff] }
 0x43d   : > { %v2500_v48 = vmul.f32 %v2436_v7, %v10627_v39  ;;  %8305 = vtanh.f32 %v2690_v17  ;;  %v2881_v32 = vadd.f32 1.0, %v8304_v16  ;;  %v13326_v7 = vld [vmem:[#allocation95_spill] sm:$0xff] }
 0x43e   : > { %v2501_v12 = vmul.f32 %v2437_v33, %v10631_v15  ;;  %8307 = vtanh.f32 %v2691_v2  ;;  %v2944_v21 = vmul.f32 %v2880_v22, %v2752_v43  ;;  %v7315_v34 = vor.u32 %v13326_v7, %v13325_v47  ;;  %v13327_v2 = vld [vmem:[#allocation116_spill] sm:$0xff] }
 0x43f   : > { %v2564_v3 = vmul.f32 0.044715, %v2500_v48  ;;  %v2945_v60 = vmul.f32 %v2881_v32, %v2753_v24  ;;  %3452 = vperm.xlu1 %8274, %v13327_v2   ;;  %v13328_v48 = vld [vmem:[#allocation115_spill] sm:$0xff] }
 0x440   : > { %v2565_v50 = vmul.f32 0.044715, %v2501_v12  ;;  %v2273_v44 = vpop.f32.mrf.mxu0  ;;  %3447 = vperm.xlu0 %8273, %v13328_v48  }
 0x441   : > { %v10644_v19 = vadd.f32 %v2273_v44, %v10487_v35  ;;  %v2362_v53 = vpop.f32.mrf.mxu1  ;;  %v2628_v8 = vadd.f32 %v2564_v3, %v10627_v39  ;;  %v13329_v44 = vld [vmem:[#allocation117_spill] sm:$0xff] }
 0x442   : > { %v10648_v26 = vadd.f32 %v2362_v53, %v10489_v45  ;;  %v2629_v4 = vadd.f32 %v2565_v50, %v10631_v15  ;;  %3457 = vperm.xlu2 %8275, %v13329_v44  }
 0x443   : > { %v8306_v40 = vpop.eup %8305  ;;  %v2438_v52 = vmul.f32 %v10644_v19, %v10644_v19  ;;  %v2692_v42 = vmul.f32 0.7978846, %v2628_v8  ;;  %v2758_v7 = vmul.f32 0.5, %v10644_v19 }
 0x444   : > { %v8308_v27 = vpop.eup %8307  ;;  %v2439_v20 = vmul.f32 %v10648_v26, %v10648_v26  ;;  %v2882_v23 = vadd.f32 1.0, %v8306_v40  ;;  %v2693_v57 = vmul.f32 0.7978846, %v2629_v4 }
 0x445   : > { %v2502_v9 = vmul.f32 %v2438_v52, %v10644_v19  ;;  %v2883_v36 = vadd.f32 1.0, %v8308_v27  ;;  %8309 = vtanh.f32 %v2692_v42 }
 0x446   : > { %v2503_v11 = vmul.f32 %v2439_v20, %v10648_v26  ;;  %v2946_v61 = vmul.f32 %v2882_v23, %v2754_v5  ;;  %8311 = vtanh.f32 %v2693_v57  ;;  %v13330_v5 = vld [vmem:[#allocation119_spill] sm:$0xff]  ;;  %v13331_v23 = vld [vmem:[#allocation118_spill] sm:$0xff] }
 0x447   : > { %v2566_v56 = vmul.f32 0.044715, %v2502_v9  ;;  %v2947_v0 = vmul.f32 %v2883_v36, %v2755_v58  ;;  %3467 = vperm.xlu1 %8274, %v13330_v5  }
 0x448   : > { %v2567_v17 = vmul.f32 0.044715, %v2503_v11  ;;  %v2276_v33 = vpop.f32.mrf.mxu0  ;;  %v3002_v31 = vpack.c.bf16 %v2946_v61, %v2944_v21  ;;  %3462 = vperm.xlu0 %8273, %v13331_v23   ;;  %v13332_v21 = vld [vmem:[#allocation120_spill] sm:$0xff]  ;;  %v13337_v23 = vld [vmem:[#allocation123_spill] sm:$0xff] }
 0x449   : > { %v10667_v6 = vadd.f32 %v2276_v33, %v10487_v35  ;;  %v2365_v12 = vpop.f32.mrf.mxu1  ;;  %v3003_v28 = vpack.c.bf16 %v2947_v0, %v2945_v60  ;;  %v2630_v3 = vadd.f32 %v2566_v56, %v10644_v19  ;;  %v2756_v56 = vmul.f32 0.5, %v10627_v39 }
 0x44a   : > { %v10671_v16 = vadd.f32 %v2365_v12, %v10489_v45  ;;  %3185 = vmatmul.bf16.gmra.mxu2 %v3002_v31  ;;  %v2631_v50 = vadd.f32 %v2567_v17, %v10648_v26  ;;  %3472 = vperm.xlu2 %8275, %v13332_v21   ;;  %v2757_v17 = vmul.f32 0.5, %v10631_v15  ;;  %v2759_v31 = vmul.f32 0.5, %v10648_v26 }
 0x44b   : > { %v2440_v53 = vmul.f32 %v10667_v6, %v10667_v6  ;;  %3274 = vmatmul.bf16.gmra.mxu3 %v3003_v28  ;;  %2315 = vmatmul.bf16.gmra.mxu0 %v7315_v34  ;;  %v2694_v8 = vmul.f32 0.7978846, %v2630_v3  ;;  %v8310_v52 = vpop.eup %8309 }
 0x44c   : > { %v2441_v22 = vmul.f32 %v10671_v16, %v10671_v16  ;;  %2404 = vmatmul.bf16.gmra.mxu1 %v7315_v34  ;;  %v2695_v4 = vmul.f32 0.7978846, %v2631_v50  ;;  %v8312_v32 = vpop.eup %8311  ;;  %v2884_v42 = vadd.f32 1.0, %v8310_v52  ;;  %v13336_v52 = vld [vmem:[#allocation121_spill] sm:$0xff] }
 0x44d   : > { %v2504_v29 = vmul.f32 %v2440_v53, %v10667_v6  ;;  %8313 = vtanh.f32 %v2694_v8  ;;  %v2885_v60 = vadd.f32 1.0, %v8312_v32  ;;  %v13333_v8 = vld [vmem:[#allocation98_spill] sm:$0xff] }
 0x44e   : > { %v2505_v40 = vmul.f32 %v2441_v22, %v10671_v16  ;;  %8315 = vtanh.f32 %v2695_v4  ;;  %v2948_v28 = vmul.f32 %v2884_v42, %v2756_v56  ;;  %v13334_v22 = vld [vmem:[#allocation102_spill] sm:$0xff] }
 0x44f   : > { %v2568_v43 = vmul.f32 0.044715, %v2504_v29  ;;  %v2949_v44 = vmul.f32 %v2885_v60, %v2757_v17  ;;  %v7319_v19 = vor.u32 %v13334_v22, %v13333_v8 }
 0x450   : > { %v2569_v27 = vmul.f32 0.044715, %v2505_v40  ;;  %v2278_v20 = vpop.f32.mrf.mxu0  ;;  %v13335_v40 = vld [vmem:[#allocation122_spill] sm:$0xff]  ;;  %3477 = vperm.xlu0 %8273, %v13336_v52  }
 0x451   : > { %v10684_v24 = vadd.f32 %v2278_v20, %v10487_v35  ;;  %v2367_v9 = vpop.f32.mrf.mxu1  ;;  %v2632_v58 = vadd.f32 %v2568_v43, %v10667_v6  ;;  %3482 = vperm.xlu1 %8274, %v13335_v40  }
 0x452   : > { %v10688_v36 = vadd.f32 %v2367_v9, %v10489_v45  ;;  %v2633_v11 = vadd.f32 %v2569_v27, %v10671_v16  ;;  %3487 = vperm.xlu2 %8275, %v13337_v23  }
 0x453   : > { %v8314_v61 = vpop.eup %8313  ;;  %v2442_v57 = vmul.f32 %v10684_v24, %v10684_v24  ;;  %v2696_v48 = vmul.f32 0.7978846, %v2632_v58  ;;  %v2762_v8 = vmul.f32 0.5, %v10684_v24 }
 0x454   : > { %v8316_v0 = vpop.eup %8315  ;;  %v2443_v47 = vmul.f32 %v10688_v36, %v10688_v36  ;;  %v2886_v34 = vadd.f32 1.0, %v8314_v61  ;;  %v2697_v3 = vmul.f32 0.7978846, %v2633_v11 }
 0x455   : > { %v2506_v33 = vmul.f32 %v2442_v57, %v10684_v24  ;;  %v2887_v2 = vadd.f32 1.0, %v8316_v0  ;;  %8317 = vtanh.f32 %v2696_v48 }
 0x456   : > { %v2507_v12 = vmul.f32 %v2443_v47, %v10688_v36  ;;  %v2950_v39 = vmul.f32 %v2886_v34, %v2758_v7  ;;  %8319 = vtanh.f32 %v2697_v3  ;;  %v13338_v7 = vld [vmem:[#allocation125_spill] sm:$0xff]  ;;  %v13339_v34 = vld [vmem:[#allocation124_spill] sm:$0xff]  ;;  %v2760_v3 = vmul.f32 0.5, %v10667_v6 }
 0x457   : > { %v2570_v50 = vmul.f32 0.044715, %v2506_v33  ;;  %v2951_v53 = vmul.f32 %v2887_v2, %v2759_v31 }
 0x458   : > { %v2571_v4 = vmul.f32 0.044715, %v2507_v12  ;;  %v2281_v29 = vpop.f32.mrf.mxu0  ;;  %v3004_v15 = vpack.c.bf16 %v2950_v39, %v2948_v28  ;;  %3492 = vperm.xlu0 %8273, %v13339_v34  }
 0x459   : > { %v10707_v26 = vadd.f32 %v2281_v29, %v10487_v35  ;;  %v2370_v43 = vpop.f32.mrf.mxu1  ;;  %v3005_v32 = vpack.c.bf16 %v2951_v53, %v2949_v44  ;;  %v2634_v27 = vadd.f32 %v2570_v50, %v10684_v24  ;;  %3497 = vperm.xlu1 %8274, %v13338_v7   ;;  %v2763_v29 = vmul.f32 0.5, %v10688_v36 }
 0x45a   : > { %v10711_v20 = vadd.f32 %v2370_v43, %v10489_v45  ;;  %3190 = vmatmul.bf16.gmra.mxu2 %v3004_v15  ;;  %v2635_v5 = vadd.f32 %v2571_v4, %v10688_v36 }
 0x45b   : > { %v2444_v9 = vmul.f32 %v10707_v26, %v10707_v26  ;;  %3279 = vmatmul.bf16.gmra.mxu3 %v3005_v32  ;;  %2320 = vmatmul.bf16.gmra.mxu0 %v7319_v19  ;;  %v2698_v58 = vmul.f32 0.7978846, %v2634_v27  ;;  %v8318_v57 = vpop.eup %8317 }
 0x45c   : > { %v2445_v42 = vmul.f32 %v10711_v20, %v10711_v20  ;;  %2409 = vmatmul.bf16.gmra.mxu1 %v7319_v19  ;;  %v2699_v11 = vmul.f32 0.7978846, %v2635_v5  ;;  %v8320_v60 = vpop.eup %8319  ;;  %v2888_v48 = vadd.f32 1.0, %v8318_v57  ;;  %v2761_v19 = vmul.f32 0.5, %v10671_v16 }
 0x45d   : > { %v2508_v21 = vmul.f32 %v2444_v9, %v10707_v26  ;;  %8321 = vtanh.f32 %v2698_v58  ;;  %v2889_v50 = vadd.f32 1.0, %v8320_v60  ;;  %v13340_v9 = vld [vmem:[#allocation106_spill] sm:$0xff] }
 0x45e   : > { %v2509_v61 = vmul.f32 %v2445_v42, %v10711_v20  ;;  %8323 = vtanh.f32 %v2699_v11  ;;  %v2952_v43 = vmul.f32 %v2888_v48, %v2760_v3  ;;  %v13341_v58 = vld [vmem:[#allocation110_spill] sm:$0xff] }
 0x45f   : > { %v2572_v56 = vmul.f32 0.044715, %v2508_v21  ;;  %v2953_v5 = vmul.f32 %v2889_v50, %v2761_v19  ;;  %v7323_v24 = vor.u32 %v13341_v58, %v13340_v9 }
 0x460   : > { %v2573_v0 = vmul.f32 0.044715, %v2509_v61  ;;  %v2283_v47 = vpop.f32.mrf.mxu0 }
 0x461   : > { %v10724_v17 = vadd.f32 %v2283_v47, %v10487_v35  ;;  %v2372_v33 = vpop.f32.mrf.mxu1  ;;  %v2636_v31 = vadd.f32 %v2572_v56, %v10707_v26 }
 0x462   : > { %v10728_v2 = vadd.f32 %v2372_v33, %v10489_v45  ;;  %v2637_v12 = vadd.f32 %v2573_v0, %v10711_v20 }
 0x463   : > { %v8322_v28 = vpop.eup %8321  ;;  %v2446_v39 = vmul.f32 %v10724_v17, %v10724_v17  ;;  %v2700_v40 = vmul.f32 0.7978846, %v2636_v31 }
 0x464   : > { %v8324_v44 = vpop.eup %8323  ;;  %v2447_v53 = vmul.f32 %v10728_v2, %v10728_v2  ;;  %v2890_v22 = vadd.f32 1.0, %v8322_v28  ;;  %v2701_v32 = vmul.f32 0.7978846, %v2637_v12 }
 0x465   : > { %v2510_v4 = vmul.f32 %v2446_v39, %v10724_v17  ;;  %v2891_v15 = vadd.f32 1.0, %v8324_v44  ;;  %8325 = vtanh.f32 %v2700_v40 }
 0x466   : > { %v2511_v52 = vmul.f32 %v2447_v53, %v10728_v2  ;;  %v2954_v6 = vmul.f32 %v2890_v22, %v2762_v8  ;;  %8327 = vtanh.f32 %v2701_v32 }
 0x467   : > { %v2574_v27 = vmul.f32 0.044715, %v2510_v4  ;;  %v2955_v23 = vmul.f32 %v2891_v15, %v2763_v29  ;;  %v2764_v15 = vmul.f32 0.5, %v10707_v26 }
 0x468   : > { %v2575_v42 = vmul.f32 0.044715, %v2511_v52  ;;  %v2286_v11 = vpop.f32.mrf.mxu0  ;;  %v3006_v16 = vpack.c.bf16 %v2954_v6, %v2952_v43  ;;  %v2766_v6 = vmul.f32 0.5, %v10724_v17 }
 0x469   : > { %v10744_v21 = vadd.f32 %v2286_v11, %v10487_v35  ;;  %v2375_v36 = vpop.f32.mrf.mxu1  ;;  %v3007_v61 = vpack.c.bf16 %v2955_v23, %v2953_v5  ;;  %v2638_v57 = vadd.f32 %v2574_v27, %v10724_v17  ;;  %v2765_v27 = vmul.f32 0.5, %v10711_v20 }
 0x46a   : > { %v10748_v56 = vadd.f32 %v2375_v36, %v10489_v45  ;;  %3195 = vmatmul.bf16.gmra.mxu2 %v3006_v16  ;;  %v2639_v60 = vadd.f32 %v2575_v42, %v10728_v2  ;;  %v2767_v23 = vmul.f32 0.5, %v10728_v2 }
 0x46b   : > { %v2448_v0 = vmul.f32 %v10744_v21, %v10744_v21  ;;  %3284 = vmatmul.bf16.gmra.mxu3 %v3007_v61  ;;  %2325 = vmatmul.bf16.gmra.mxu0 %v7323_v24  ;;  %v2702_v47 = vmul.f32 0.7978846, %v2638_v57  ;;  %v8326_v48 = vpop.eup %8325 }
 0x46c   : > { %v2449_v7 = vmul.f32 %v10748_v56, %v10748_v56  ;;  %2414 = vmatmul.bf16.gmra.mxu1 %v7323_v24  ;;  %v2703_v34 = vmul.f32 0.7978846, %v2639_v60  ;;  %v8328_v28 = vpop.eup %8327  ;;  %v2892_v22 = vadd.f32 1.0, %v8326_v48 }
 0x46d   : > { %v2512_v33 = vmul.f32 %v2448_v0, %v10744_v21  ;;  %8329 = vtanh.f32 %v2702_v47  ;;  %v2893_v40 = vadd.f32 1.0, %v8328_v28 }
 0x46e   : > { %v2513_v31 = vmul.f32 %v2449_v7, %v10748_v56  ;;  %8331 = vtanh.f32 %v2703_v34  ;;  %v2956_v42 = vmul.f32 %v2892_v22, %v2764_v15 }
 0x46f   : > { %v2576_v12 = vmul.f32 0.044715, %v2512_v33  ;;  %v2957_v36 = vmul.f32 %v2893_v40, %v2765_v27  ;;  %v2768_v27 = vmul.f32 0.5, %v10744_v21 }
 0x470   : > { %v2577_v39 = vmul.f32 0.044715, %v2513_v31  ;;  %v2288_v3 = vpop.f32.mrf.mxu0 }
 0x471   : > { %v10758_v50 = vadd.f32 %v2288_v3, %v10487_v35  ;;  %v2377_v44 = vpop.f32.mrf.mxu1  ;;  %v2640_v53 = vadd.f32 %v2576_v12, %v10744_v21 }
 0x472   : > { %v10762_v8 = vadd.f32 %v2377_v44, %v10489_v45  ;;  %v2641_v19 = vadd.f32 %v2577_v39, %v10748_v56 }
 0x473   : > { %v8330_v4 = vpop.eup %8329  ;;  %v2450_v29 = vmul.f32 %v10758_v50, %v10758_v50  ;;  %v2704_v58 = vmul.f32 0.7978846, %v2640_v53 }
 0x474   : > { %v8332_v52 = vpop.eup %8331  ;;  %v2451_v43 = vmul.f32 %v10762_v8, %v10762_v8  ;;  %v2894_v32 = vadd.f32 1.0, %v8330_v4  ;;  %v2705_v11 = vmul.f32 0.7978846, %v2641_v19 }
 0x475   : > { %v2514_v5 = vmul.f32 %v2450_v29, %v10758_v50  ;;  %v2895_v9 = vadd.f32 1.0, %v8332_v52  ;;  %8333 = vtanh.f32 %v2704_v58  ;;  %v2770_v58 = vmul.f32 0.5, %v10758_v50 }
 0x476   : > { %v2515_v24 = vmul.f32 %v2451_v43, %v10762_v8  ;;  %v2958_v26 = vmul.f32 %v2894_v32, %v2766_v6  ;;  %8335 = vtanh.f32 %v2705_v11  ;;  %v2771_v11 = vmul.f32 0.5, %v10762_v8 }
 0x477   : > { %v2578_v16 = vmul.f32 0.044715, %v2514_v5  ;;  %v2959_v61 = vmul.f32 %v2895_v9, %v2767_v23 }
 0x478   : > { %v2579_v57 = vmul.f32 0.044715, %v2515_v24  ;;  %v2291_v60 = vpop.f32.mrf.mxu0  ;;  %v3008_v17 = vpack.c.bf16 %v2958_v26, %v2956_v42  ;;  %v2769_v42 = vmul.f32 0.5, %v10748_v56 }
 0x479   : > { %v10776_v0 = vadd.f32 %v2291_v60, %v10487_v35  ;;  %v2380_v20 = vpop.f32.mrf.mxu1  ;;  %v3009_v47 = vpack.c.bf16 %v2959_v61, %v2957_v36  ;;  %v2642_v2 = vadd.f32 %v2578_v16, %v10758_v50 }
 0x47a   : > { %v10780_v7 = vadd.f32 %v2380_v20, %v10489_v45  ;;  %3200 = vmatmul.bf16.gmra.mxu2 %v3008_v17  ;;  %v2643_v34 = vadd.f32 %v2579_v57, %v10762_v8 }
 0x47b   : > { %v2452_v33 = vmul.f32 %v10776_v0, %v10776_v0  ;;  %3289 = vmatmul.bf16.gmra.mxu3 %v3009_v47  ;;  %v2706_v31 = vmul.f32 0.7978846, %v2642_v2  ;;  %v8334_v3 = vpop.eup %8333 }
 0x47c   : > { %v2453_v48 = vmul.f32 %v10780_v7, %v10780_v7  ;;  %v2707_v12 = vmul.f32 0.7978846, %v2643_v34  ;;  %v8336_v53 = vpop.eup %8335  ;;  %v2896_v52 = vadd.f32 1.0, %v8334_v3 }
 0x47d   : > { %v2516_v28 = vmul.f32 %v2452_v33, %v10776_v0  ;;  %8337 = vtanh.f32 %v2706_v31  ;;  %v2897_v5 = vadd.f32 1.0, %v8336_v53 }
 0x47e   : > { %v2517_v39 = vmul.f32 %v2453_v48, %v10780_v7  ;;  %8339 = vtanh.f32 %v2707_v12  ;;  %v2960_v57 = vmul.f32 %v2896_v52, %v2768_v27 }
 0x47f   : > { %v2580_v44 = vmul.f32 0.044715, %v2516_v28  ;;  %v2961_v20 = vmul.f32 %v2897_v5, %v2769_v42  ;;  %v2772_v42 = vmul.f32 0.5, %v10776_v0 }
 0x480   : > { %v2581_v22 = vmul.f32 0.044715, %v2517_v39  ;;  %v2293_v19 = vpop.f32.mrf.mxu0 }
 0x481   : > { %v10790_v4 = vadd.f32 %v2293_v19, %v10487_v35  ;;  %v2382_v29 = vpop.f32.mrf.mxu1  ;;  %v2644_v15 = vadd.f32 %v2580_v44, %v10776_v0 }
 0x482   : > { %v10794_v40 = vadd.f32 %v2382_v29, %v10489_v45  ;;  %v2645_v43 = vadd.f32 %v2581_v22, %v10780_v7 }
 0x483   : > { %v8338_v6 = vpop.eup %8337  ;;  %v2454_v32 = vmul.f32 %v10790_v4, %v10790_v4  ;;  %v2708_v36 = vmul.f32 0.7978846, %v2644_v15 }
 0x484   : > { %v8340_v23 = vpop.eup %8339  ;;  %v2455_v9 = vmul.f32 %v10794_v40, %v10794_v40  ;;  %v2898_v24 = vadd.f32 1.0, %v8338_v6  ;;  %v2709_v60 = vmul.f32 0.7978846, %v2645_v43 }
 0x485   : > { %v2518_v26 = vmul.f32 %v2454_v32, %v10790_v4  ;;  %v2899_v16 = vadd.f32 1.0, %v8340_v23  ;;  %8341 = vtanh.f32 %v2708_v36  ;;  %v2774_v36 = vmul.f32 0.5, %v10790_v4 }
 0x486   : > { %v2519_v61 = vmul.f32 %v2455_v9, %v10794_v40  ;;  %v2962_v21 = vmul.f32 %v2898_v24, %v2770_v58  ;;  %8343 = vtanh.f32 %v2709_v60  ;;  %v2773_v60 = vmul.f32 0.5, %v10780_v7 }
 0x487   : > { %v2582_v17 = vmul.f32 0.044715, %v2518_v26  ;;  %v2963_v47 = vmul.f32 %v2899_v16, %v2771_v11 }
 0x488   : > { %v2583_v2 = vmul.f32 0.044715, %v2519_v61  ;;  %v2296_v34 = vpop.f32.mrf.mxu0  ;;  %v3010_v50 = vpack.c.bf16 %v2962_v21, %v2960_v57 }
 0x489   : > { %v10808_v33 = vadd.f32 %v2296_v34, %v10487_v35  ;;  %v2385_v56 = vpop.f32.mrf.mxu1  ;;  %v3011_v31 = vpack.c.bf16 %v2963_v47, %v2961_v20  ;;  %v2646_v8 = vadd.f32 %v2582_v17, %v10790_v4  ;;  %v2775_v17 = vmul.f32 0.5, %v10794_v40 }
 0x48a   : > { %v10812_v48 = vadd.f32 %v2385_v56, %v10489_v45  ;;  %3205 = vmatmul.bf16.gmra.mxu2 %v3010_v50  ;;  %v2647_v12 = vadd.f32 %v2583_v2, %v10794_v40 }
 0x48b   : > { %v2456_v28 = vmul.f32 %v10808_v33, %v10808_v33  ;;  %3294 = vmatmul.bf16.gmra.mxu3 %v3011_v31  ;;  %v2710_v39 = vmul.f32 0.7978846, %v2646_v8  ;;  %v8342_v19 = vpop.eup %8341 }
 0x48c   : > { %v2457_v3 = vmul.f32 %v10812_v48, %v10812_v48  ;;  %v2711_v44 = vmul.f32 0.7978846, %v2647_v12  ;;  %v8344_v15 = vpop.eup %8343  ;;  %v2900_v23 = vadd.f32 1.0, %v8342_v19 }
 0x48d   : > { %v2520_v53 = vmul.f32 %v2456_v28, %v10808_v33  ;;  %8345 = vtanh.f32 %v2710_v39  ;;  %v2901_v26 = vadd.f32 1.0, %v8344_v15 }
 0x48e   : > { %v2521_v22 = vmul.f32 %v2457_v3, %v10812_v48  ;;  %8347 = vtanh.f32 %v2711_v44  ;;  %v2964_v2 = vmul.f32 %v2900_v23, %v2772_v42  ;;  %v10849_v44 = vld [vmem:[%s13158_s6 + $0x1] ss:$0 sm:$0xff] }
 0x48f   : > { %v2584_v29 = vmul.f32 0.044715, %v2520_v53  ;;  %v2965_v56 = vmul.f32 %v2901_v26, %v2773_v60 }
 0x490   : > { %v2585_v52 = vmul.f32 0.044715, %v2521_v22  ;;  %v2298_v43 = vpop.f32.mrf.mxu0 }
 0x491   : > { %v10822_v6 = vadd.f32 %v2298_v43, %v10487_v35  ;;  %v2387_v32 = vpop.f32.mrf.mxu1  ;;  %v2648_v27 = vadd.f32 %v2584_v29, %v10808_v33 }
 0x492   : > { %v10826_v5 = vadd.f32 %v2387_v32, %v10489_v45  ;;  %v2649_v9 = vadd.f32 %v2585_v52, %v10812_v48  ;;  %v3343_v32 = vpop.permute.xlu0 %3342 }
 0x493   : > { %v8346_v58 = vpop.eup %8345  ;;  %v2458_v24 = vmul.f32 %v10822_v6, %v10822_v6  ;;  %v2712_v57 = vmul.f32 0.7978846, %v2648_v27 }
 0x494   : > { %v8348_v11 = vpop.eup %8347  ;;  %v2459_v16 = vmul.f32 %v10826_v5, %v10826_v5  ;;  %v2902_v61 = vadd.f32 1.0, %v8346_v58  ;;  %v2713_v34 = vmul.f32 0.7978846, %v2649_v9 }
 0x495   : > { %v2522_v21 = vmul.f32 %v2458_v24, %v10822_v6  ;;  %v2903_v20 = vadd.f32 1.0, %v8348_v11  ;;  %8349 = vtanh.f32 %v2712_v57 }
 0x496   : > { %v2523_v47 = vmul.f32 %v2459_v16, %v10826_v5  ;;  %v2966_v0 = vmul.f32 %v2902_v61, %v2774_v36  ;;  %8351 = vtanh.f32 %v2713_v34  ;;  %v2777_v34 = vmul.f32 0.5, %v10812_v48 }
 0x497   : > { %v2586_v50 = vmul.f32 0.044715, %v2522_v21  ;;  %v2967_v31 = vmul.f32 %v2903_v20, %v2775_v17 }
 0x498   : > { %v2587_v8 = vmul.f32 0.044715, %v2523_v47  ;;  %v2301_v12 = vpop.f32.mrf.mxu0  ;;  %v3012_v4 = vpack.c.bf16 %v2966_v0, %v2964_v2  ;;  %v2776_v0 = vmul.f32 0.5, %v10808_v33 }
 0x499   : > { %v10840_v28 = vadd.f32 %v2301_v12, %v10487_v35  ;;  %v2390_v39 = vpop.f32.mrf.mxu1  ;;  %v3013_v7 = vpack.c.bf16 %v2967_v31, %v2965_v56  ;;  %v2650_v40 = vadd.f32 %v2586_v50, %v10822_v6 }
 0x49a   : > { %v10844_v3 = vadd.f32 %v2390_v39, %v10489_v45  ;;  %3210 = vmatmul.bf16.gmra.mxu2 %v3012_v4  ;;  %v2651_v53 = vadd.f32 %v2587_v8, %v10826_v5  ;;  %v2778_v8 = vmul.f32 0.5, %v10822_v6 }
 0x49b   : > { %v2460_v22 = vmul.f32 %v10840_v28, %v10840_v28  ;;  %3299 = vmatmul.bf16.gmra.mxu3 %v3013_v7  ;;  %v2714_v19 = vmul.f32 0.7978846, %v2650_v40  ;;  %v8350_v27 = vpop.eup %8349 }
 0x49c   : > { %v2461_v29 = vmul.f32 %v10844_v3, %v10844_v3  ;;  %v2715_v15 = vmul.f32 0.7978846, %v2651_v53  ;;  %v8352_v42 = vpop.eup %8351  ;;  %v2904_v57 = vadd.f32 1.0, %v8350_v27  ;;  %v2779_v53 = vmul.f32 0.5, %v10826_v5 }
 0x49d   : > { %v2524_v52 = vmul.f32 %v2460_v22, %v10840_v28  ;;  %v3171_v43 = vpop.f32.mrf.mxu2  ;;  %8353 = vtanh.f32 %v2714_v19  ;;  %v2905_v50 = vadd.f32 1.0, %v8352_v42 }
 0x49e   : > { %v2525_v23 = vmul.f32 %v2461_v29, %v10844_v3  ;;  %v3172_v9 = vadd.f32 %v10849_v44, %v3171_v43  ;;  %v3260_v58 = vpop.f32.mrf.mxu3  ;;  %8355 = vtanh.f32 %v2715_v15  ;;  %v2968_v40 = vmul.f32 %v2904_v57, %v2776_v0  ;;  %v3348_v43 = vpop.permute.xlu0 %3347 }
 0x49f   : > { %v2588_v24 = vmul.f32 0.044715, %v2524_v52 }
 0x4a0   : > { %v2589_v26 = vmul.f32 0.044715, %v2525_v23  ;;  %v3261_v11 = vadd.f32 %v3260_v58, %v3172_v9  ;;  %v2303_v16 = vpop.f32.mrf.mxu0 }
 0x4a1   : > { %v10860_v36 = vadd.f32 %v2303_v16, %v10487_v35  ;;  %v2392_v61 = vpop.f32.mrf.mxu1  ;;  %v2652_v21 = vadd.f32 %v2588_v24, %v10840_v28 }
 0x4a2   : > { %v10864_v60 = vadd.f32 %v2392_v61, %v10489_v45  ;;  %v10866_v17 = vmul.f32 %v3343_v32, %v3261_v11  ;;  %v2653_v20 = vadd.f32 %v2589_v26, %v10844_v3  ;;  %v2969_v32 = vmul.f32 %v2905_v50, %v2777_v34  ;;  %v3353_v34 = vpop.permute.xlu1 %3352 }
 0x4a3   : > { %v8354_v47 = vpop.eup %8353  ;;  %v2462_v2 = vmul.f32 %v10860_v36, %v10860_v36  ;;  %v2716_v4 = vmul.f32 0.7978846, %v2652_v21 }
 0x4a4   : > { %v8356_v56 = vpop.eup %8355  ;;  %v2463_v31 = vmul.f32 %v10864_v60, %v10864_v60  ;;  %v2906_v12 = vadd.f32 1.0, %v8354_v47  ;;  %v2717_v15 = vmul.f32 0.7978846, %v2653_v20 }
 0x4a5   : > { %v2526_v39 = vmul.f32 %v2462_v2, %v10860_v36  ;;  %v3173_v7 = vpop.f32.mrf.mxu2  ;;  %v2907_v22 = vadd.f32 1.0, %v8356_v56  ;;  %8357 = vtanh.f32 %v2716_v4 }
 0x4a6   : > { %v2527_v33 = vmul.f32 %v2463_v31, %v10864_v60  ;;  %v3174_v48 = vadd.f32 %v10849_v44, %v3173_v7  ;;  %v3262_v19 = vpop.f32.mrf.mxu3  ;;  %v2970_v29 = vmul.f32 %v2906_v12, %v2778_v8  ;;  %8359 = vtanh.f32 %v2717_v15 }
 0x4a7   : > { %v2590_v52 = vmul.f32 0.044715, %v2526_v39  ;;  %v2971_v6 = vmul.f32 %v2907_v22, %v2779_v53 }
 0x4a8   : > { %v2591_v27 = vmul.f32 0.044715, %v2527_v33  ;;  %v3263_v23 = vadd.f32 %v3262_v19, %v3174_v48  ;;  %v2306_v9 = vpop.f32.mrf.mxu0  ;;  %v3014_v58 = vpack.c.bf16 %v2970_v29, %v2968_v40 }
 0x4a9   : > { %v10881_v24 = vadd.f32 %v2306_v9, %v10487_v35  ;;  %v2395_v5 = vpop.f32.mrf.mxu1  ;;  %v3015_v42 = vpack.c.bf16 %v2971_v6, %v2969_v32  ;;  %v2654_v26 = vadd.f32 %v2590_v52, %v10860_v36  ;;  %v2780_v32 = vmul.f32 0.5, %v10840_v28 }
 0x4aa   : > { %v10885_v11 = vadd.f32 %v2395_v5, %v10489_v45  ;;  %v10887_v16 = vmul.f32 %v3348_v43, %v3263_v23  ;;  %3215 = vmatmul.bf16.gmra.mxu2 %v3014_v58  ;;  %v2655_v61 = vadd.f32 %v2591_v27, %v10864_v60  ;;  %v2781_v6 = vmul.f32 0.5, %v10844_v3 }
 0x4ab   : > { %v2464_v57 = vmul.f32 %v10881_v24, %v10881_v24  ;;  %3304 = vmatmul.bf16.gmra.mxu3 %v3015_v42  ;;  %v2718_v21 = vmul.f32 0.7978846, %v2654_v26  ;;  %v8358_v50 = vpop.eup %8357  ;;  %v2782_v58 = vmul.f32 0.5, %v10860_v36 }
 0x4ac   : > { %v2465_v20 = vmul.f32 %v10885_v11, %v10885_v11  ;;  %v2719_v47 = vmul.f32 0.7978846, %v2655_v61  ;;  %v8360_v4 = vpop.eup %8359  ;;  %v2908_v33 = vadd.f32 1.0, %v8358_v50  ;;  %v3358_v50 = vpop.permute.xlu1 %3357 }
 0x4ad   : > { %v2528_v2 = vmul.f32 %v2464_v57, %v10881_v24  ;;  %v3176_v0 = vpop.f32.mrf.mxu2  ;;  %8361 = vtanh.f32 %v2718_v21  ;;  %v2909_v27 = vadd.f32 1.0, %v8360_v4  ;;  %v2783_v21 = vmul.f32 0.5, %v10864_v60 }
 0x4ae   : > { %v2529_v56 = vmul.f32 %v2465_v20, %v10885_v11  ;;  %v3177_v31 = vadd.f32 %v10849_v44, %v3176_v0  ;;  %v3265_v8 = vpop.f32.mrf.mxu3  ;;  %8363 = vtanh.f32 %v2719_v47  ;;  %v2972_v57 = vmul.f32 %v2908_v33, %v2780_v32 }
 0x4af   : > { %v2592_v12 = vmul.f32 0.044715, %v2528_v2 }
 0x4b0   : > { %v2593_v39 = vmul.f32 0.044715, %v2529_v56  ;;  %v3266_v7 = vadd.f32 %v3265_v8, %v3177_v31  ;;  %v2308_v40 = vpop.f32.mrf.mxu0  ;;  %v2973_v56 = vmul.f32 %v2909_v27, %v2781_v6 }
 0x4b1   : > { %v10898_v53 = vadd.f32 %v2308_v40, %v10487_v35  ;;  %v2397_v22 = vpop.f32.mrf.mxu1  ;;  %v2656_v48 = vadd.f32 %v2592_v12, %v10881_v24 }
 0x4b2   : > { %v10902_v19 = vadd.f32 %v2397_v22, %v10489_v45  ;;  %v10904_v29 = vmul.f32 %v3353_v34, %v3266_v7  ;;  %v2657_v15 = vadd.f32 %v2593_v39, %v10885_v11 }
 0x4b3   : > { %v8362_v52 = vpop.eup %8361  ;;  %v2466_v43 = vmul.f32 %v10898_v53, %v10898_v53  ;;  %v2720_v42 = vmul.f32 0.7978846, %v2656_v48 }
 0x4b4   : > { %v8364_v23 = vpop.eup %8363  ;;  %v2467_v9 = vmul.f32 %v10902_v19, %v10902_v19  ;;  %v2910_v5 = vadd.f32 1.0, %v8362_v52  ;;  %v2721_v0 = vmul.f32 0.7978846, %v2657_v15 }
 0x4b5   : > { %v2530_v26 = vmul.f32 %v2466_v43, %v10898_v53  ;;  %v3178_v61 = vpop.f32.mrf.mxu2  ;;  %v2911_v20 = vadd.f32 1.0, %v8364_v23  ;;  %8365 = vtanh.f32 %v2720_v42  ;;  %v3363_v23 = vpop.permute.xlu2 %3362 }
 0x4b6   : > { %v2531_v28 = vmul.f32 %v2467_v9, %v10902_v19  ;;  %v3179_v3 = vadd.f32 %v10849_v44, %v3178_v61  ;;  %v3267_v47 = vpop.f32.mrf.mxu3  ;;  %v2974_v2 = vmul.f32 %v2910_v5, %v2782_v58  ;;  %8367 = vtanh.f32 %v2721_v0 }
 0x4b7   : > { %v2594_v34 = vmul.f32 0.044715, %v2530_v26  ;;  %v2975_v36 = vmul.f32 %v2911_v20, %v2783_v21 }
 0x4b8   : > { %v2595_v31 = vmul.f32 0.044715, %v2531_v28  ;;  %v3268_v8 = vadd.f32 %v3267_v47, %v3179_v3  ;;  %v2311_v12 = vpop.f32.mrf.mxu0  ;;  %v3016_v4 = vpack.c.bf16 %v2974_v2, %v2972_v57 }
 0x4b9   : > { %v10919_v39 = vadd.f32 %v2311_v12, %v10487_v35  ;;  %v2400_v60 = vpop.f32.mrf.mxu1  ;;  %v3017_v7 = vpack.c.bf16 %v2975_v36, %v2973_v56  ;;  %v2658_v40 = vadd.f32 %v2594_v34, %v10898_v53 }
 0x4ba   : > { %v10923_v22 = vadd.f32 %v2400_v60, %v10489_v45  ;;  %v10925_v33 = vmul.f32 %v3358_v50, %v3268_v8  ;;  %3220 = vmatmul.bf16.gmra.mxu2 %v3016_v4  ;;  %v2659_v48 = vadd.f32 %v2595_v31, %v10902_v19  ;;  %v2784_v31 = vmul.f32 0.5, %v10881_v24 }
 0x4bb   : > { %v2468_v15 = vmul.f32 %v10919_v39, %v10919_v39  ;;  %3309 = vmatmul.bf16.gmra.mxu3 %v3017_v7  ;;  %v2722_v52 = vmul.f32 0.7978846, %v2658_v40  ;;  %v8366_v9 = vpop.eup %8365  ;;  %v2785_v8 = vmul.f32 0.5, %v10885_v11  ;;  %v2786_v40 = vmul.f32 0.5, %v10898_v53 }
 0x4bc   : > { %v2469_v43 = vmul.f32 %v10923_v22, %v10923_v22  ;;  %v2723_v32 = vmul.f32 0.7978846, %v2659_v48  ;;  %v8368_v61 = vpop.eup %8367  ;;  %v2912_v2 = vadd.f32 1.0, %v8366_v9 }
 0x4bd   : > { %v2532_v6 = vmul.f32 %v2468_v15, %v10919_v39  ;;  %v3181_v27 = vpop.f32.mrf.mxu2  ;;  %8369 = vtanh.f32 %v2722_v52  ;;  %v2913_v12 = vadd.f32 1.0, %v8368_v61 }
 0x4be   : > { %v2533_v58 = vmul.f32 %v2469_v43, %v10923_v22  ;;  %v3182_v5 = vadd.f32 %v10849_v44, %v3181_v27  ;;  %v3270_v42 = vpop.f32.mrf.mxu3  ;;  %8371 = vtanh.f32 %v2723_v32  ;;  %v2976_v43 = vmul.f32 %v2912_v2, %v2784_v31 }
 0x4bf   : > { %v2596_v26 = vmul.f32 0.044715, %v2532_v6  ;;  %v2787_v32 = vmul.f32 0.5, %v10902_v19 }
 0x4c0   : > { %v2597_v57 = vmul.f32 0.044715, %v2533_v58  ;;  %v3271_v21 = vadd.f32 %v3270_v42, %v3182_v5  ;;  %v2313_v20 = vpop.f32.mrf.mxu0  ;;  %v3368_v5 = vpop.permute.xlu2 %3367  ;;  %v2977_v42 = vmul.f32 %v2913_v12, %v2785_v8 }
 0x4c1   : > { %v2660_v28 = vadd.f32 %v2596_v26, %v10919_v39  ;;  %v10937_v3 = vadd.f32 %v2313_v20, %v10487_v35  ;;  %v2402_v47 = vpop.f32.mrf.mxu1 }
 0x4c2   : > { %v2661_v0 = vadd.f32 %v2597_v57, %v10923_v22  ;;  %v10941_v34 = vadd.f32 %v2402_v47, %v10489_v45  ;;  %v10943_v50 = vmul.f32 %v3363_v23, %v3271_v21 }
 0x4c3   : > { %v8370_v56 = vpop.eup %8369  ;;  %v2470_v36 = vmul.f32 %v10937_v3, %v10937_v3  ;;  %v2724_v60 = vmul.f32 0.7978846, %v2660_v28 }
 0x4c4   : > { %v8372_v4 = vpop.eup %8371  ;;  %v2471_v7 = vmul.f32 %v10941_v34, %v10941_v34  ;;  %v2914_v48 = vadd.f32 1.0, %v8370_v56  ;;  %v2725_v27 = vmul.f32 0.7978846, %v2661_v0 }
 0x4c5   : > { %v2534_v15 = vmul.f32 %v2470_v36, %v10937_v3  ;;  %v3183_v52 = vpop.f32.mrf.mxu2  ;;  %v2915_v6 = vadd.f32 1.0, %v8372_v4  ;;  %8373 = vtanh.f32 %v2724_v60 }
 0x4c6   : > { %v2535_v24 = vmul.f32 %v2471_v7, %v10941_v34  ;;  %v3184_v11 = vadd.f32 %v10849_v44, %v3183_v52  ;;  %v3272_v23 = vpop.f32.mrf.mxu3  ;;  %v2978_v9 = vmul.f32 %v2914_v48, %v2786_v40  ;;  %8375 = vtanh.f32 %v2725_v27 }
 0x4c7   : > { %v2598_v58 = vmul.f32 0.044715, %v2534_v15  ;;  %v2979_v26 = vmul.f32 %v2915_v6, %v2787_v32 }
 0x4c8   : > { %v2599_v53 = vmul.f32 0.044715, %v2535_v24  ;;  %v3273_v61 = vadd.f32 %v3272_v23, %v3184_v11  ;;  %v2316_v57 = vpop.f32.mrf.mxu0  ;;  %v3018_v21 = vpack.c.bf16 %v2978_v9, %v2976_v43  ;;  %v3373_v43 = vpop.permute.xlu0 %3372 }
 0x4c9   : > { %v2662_v20 = vadd.f32 %v2598_v58, %v10937_v3  ;;  %v10958_v19 = vadd.f32 %v2316_v57, %v10487_v35  ;;  %v2405_v28 = vpop.f32.mrf.mxu1  ;;  %v3019_v47 = vpack.c.bf16 %v2979_v26, %v2977_v42  ;;  %v2788_v57 = vmul.f32 0.5, %v10919_v39 }
 0x4ca   : > { %v2663_v2 = vadd.f32 %v2599_v53, %v10941_v34  ;;  %v10962_v0 = vadd.f32 %v2405_v28, %v10489_v45  ;;  %v10964_v56 = vmul.f32 %v3368_v5, %v3273_v61  ;;  %3225 = vmatmul.bf16.gmra.mxu2 %v3018_v21  ;;  %v2789_v21 = vmul.f32 0.5, %v10923_v22 }
 0x4cb   : > { %v2726_v36 = vmul.f32 0.7978846, %v2662_v20  ;;  %v2472_v31 = vmul.f32 %v10958_v19, %v10958_v19  ;;  %3314 = vmatmul.bf16.gmra.mxu3 %v3019_v47  ;;  %v8374_v7 = vpop.eup %8373 }
 0x4cc   : > { %v2727_v8 = vmul.f32 0.7978846, %v2663_v2  ;;  %v2473_v12 = vmul.f32 %v10962_v0, %v10962_v0  ;;  %v8376_v32 = vpop.eup %8375  ;;  %v2916_v58 = vadd.f32 1.0, %v8374_v7 }
 0x4cd   : > { %8377 = vtanh.f32 %v2726_v36  ;;  %v2536_v4 = vmul.f32 %v2472_v31, %v10958_v19  ;;  %v3186_v60 = vpop.f32.mrf.mxu2  ;;  %v2917_v20 = vadd.f32 1.0, %v8376_v32  ;;  %v2790_v36 = vmul.f32 0.5, %v10937_v3 }
 0x4ce   : > { %8379 = vtanh.f32 %v2727_v8  ;;  %v2537_v40 = vmul.f32 %v2473_v12, %v10962_v0  ;;  %v3187_v48 = vadd.f32 %v10849_v44, %v3186_v60  ;;  %v3275_v15 = vpop.f32.mrf.mxu3  ;;  %v2791_v60 = vmul.f32 0.5, %v10941_v34 }
 0x4cf   : > { %v2600_v52 = vmul.f32 0.044715, %v2536_v4  ;;  %v2980_v4 = vmul.f32 %v2916_v58, %v2788_v57  ;;  %v2981_v32 = vmul.f32 %v2917_v20, %v2789_v21 }
 0x4d0   : > { %v2601_v6 = vmul.f32 0.044715, %v2537_v40  ;;  %v3276_v27 = vadd.f32 %v3275_v15, %v3187_v48  ;;  %v2318_v24 = vpop.f32.mrf.mxu0 }
 0x4d1   : > { %v2664_v11 = vadd.f32 %v2600_v52, %v10958_v19  ;;  %v10975_v23 = vadd.f32 %v2318_v24, %v10487_v35  ;;  %v2407_v9 = vpop.f32.mrf.mxu1 }
 0x4d2   : > { %v2665_v5 = vadd.f32 %v2601_v6, %v10962_v0  ;;  %v10979_v42 = vadd.f32 %v2407_v9, %v10489_v45  ;;  %v10981_v26 = vmul.f32 %v3373_v43, %v3276_v27  ;;  %v3378_v43 = vpop.permute.xlu1 %3377 }
 0x4d3   : > { %v8378_v53 = vpop.eup %8377  ;;  %v2474_v61 = vmul.f32 %v10975_v23, %v10975_v23  ;;  %v2728_v47 = vmul.f32 0.7978846, %v2664_v11 }
 0x4d4   : > { %v8380_v28 = vpop.eup %8379  ;;  %v2475_v2 = vmul.f32 %v10979_v42, %v10979_v42  ;;  %v2918_v31 = vadd.f32 1.0, %v8378_v53  ;;  %v2729_v40 = vmul.f32 0.7978846, %v2665_v5 }
 0x4d5   : > { %v2538_v8 = vmul.f32 %v2474_v61, %v10975_v23  ;;  %v3188_v12 = vpop.f32.mrf.mxu2  ;;  %v2919_v7 = vadd.f32 1.0, %v8380_v28  ;;  %8381 = vtanh.f32 %v2728_v47 }
 0x4d6   : > { %v2539_v39 = vmul.f32 %v2475_v2, %v10979_v42  ;;  %v3189_v22 = vadd.f32 %v10849_v44, %v3188_v12  ;;  %v3277_v48 = vpop.f32.mrf.mxu3  ;;  %v2982_v15 = vmul.f32 %v2918_v31, %v2790_v36  ;;  %8383 = vtanh.f32 %v2729_v40 }
 0x4d7   : > { %v2602_v52 = vmul.f32 0.044715, %v2538_v8  ;;  %v2983_v6 = vmul.f32 %v2919_v7, %v2791_v60  ;;  %v3383_v7 = vpop.permute.xlu2 %3382 }
 0x4d8   : > { %v2603_v3 = vmul.f32 0.044715, %v2539_v39  ;;  %v3278_v27 = vadd.f32 %v3277_v48, %v3189_v22  ;;  %v2321_v24 = vpop.f32.mrf.mxu0  ;;  %v3020_v11 = vpack.c.bf16 %v2982_v15, %v2980_v4 }
 0x4d9   : > { %v2666_v9 = vadd.f32 %v2602_v52, %v10975_v23  ;;  %v10996_v34 = vadd.f32 %v2321_v24, %v10487_v35  ;;  %v2410_v58 = vpop.f32.mrf.mxu1  ;;  %v3021_v5 = vpack.c.bf16 %v2983_v6, %v2981_v32 }
 0x4da   : > { %v2667_v53 = vadd.f32 %v2603_v3, %v10979_v42  ;;  %v11000_v61 = vadd.f32 %v2410_v58, %v10489_v45  ;;  %v11002_v57 = vmul.f32 %v3378_v43, %v3278_v27  ;;  %3230 = vmatmul.bf16.gmra.mxu2 %v3020_v11  ;;  %v2793_v58 = vmul.f32 0.5, %v10962_v0 }
 0x4db   : > { %v2730_v21 = vmul.f32 0.7978846, %v2666_v9  ;;  %v2476_v20 = vmul.f32 %v10996_v34, %v10996_v34  ;;  %3319 = vmatmul.bf16.gmra.mxu3 %v3021_v5  ;;  %v8382_v31 = vpop.eup %8381  ;;  %v2792_v9 = vmul.f32 0.5, %v10958_v19 }
 0x4dc   : > { %v2731_v28 = vmul.f32 0.7978846, %v2667_v53  ;;  %v2477_v47 = vmul.f32 %v11000_v61, %v11000_v61  ;;  %v8384_v40 = vpop.eup %8383  ;;  %v2920_v32 = vadd.f32 1.0, %v8382_v31 }
 0x4dd   : > { %8385 = vtanh.f32 %v2730_v21  ;;  %v2540_v2 = vmul.f32 %v2476_v20, %v10996_v34  ;;  %v3191_v36 = vpop.f32.mrf.mxu2  ;;  %v2921_v5 = vadd.f32 1.0, %v8384_v40 }
 0x4de   : > { %8387 = vtanh.f32 %v2731_v28  ;;  %v2541_v8 = vmul.f32 %v2477_v47, %v11000_v61  ;;  %v3192_v12 = vadd.f32 %v10849_v44, %v3191_v36  ;;  %v3280_v4 = vpop.f32.mrf.mxu3  ;;  %v2794_v28 = vmul.f32 0.5, %v10975_v23 }
 0x4df   : > { %v2604_v60 = vmul.f32 0.044715, %v2540_v2  ;;  %v2984_v31 = vmul.f32 %v2920_v32, %v2792_v9 }
 0x4e0   : > { %v2605_v39 = vmul.f32 0.044715, %v2541_v8  ;;  %v3281_v22 = vadd.f32 %v3280_v4, %v3192_v12  ;;  %v2323_v48 = vpop.f32.mrf.mxu0  ;;  %v2795_v8 = vmul.f32 0.5, %v10979_v42 }
 0x4e1   : > { %v2668_v15 = vadd.f32 %v2604_v60, %v10996_v34  ;;  %v11013_v52 = vadd.f32 %v2323_v48, %v10487_v35  ;;  %v2412_v43 = vpop.f32.mrf.mxu1 }
 0x4e2   : > { %v2669_v6 = vadd.f32 %v2605_v39, %v11000_v61  ;;  %v11017_v3 = vadd.f32 %v2412_v43, %v10489_v45  ;;  %v11019_v27 = vmul.f32 %v3383_v7, %v3281_v22  ;;  %v3388_v39 = vpop.permute.xlu0 %3387  ;;  %v2985_v22 = vmul.f32 %v2921_v5, %v2793_v58 }
 0x4e3   : > { %v8386_v24 = vpop.eup %8385  ;;  %v2478_v11 = vmul.f32 %v11013_v52, %v11013_v52  ;;  %v2732_v21 = vmul.f32 0.7978846, %v2668_v15 }
 0x4e4   : > { %v8388_v53 = vpop.eup %8387  ;;  %v2479_v20 = vmul.f32 %v11017_v3, %v11017_v3  ;;  %v2922_v47 = vadd.f32 1.0, %v8386_v24  ;;  %v2733_v4 = vmul.f32 0.7978846, %v2669_v6 }
 0x4e5   : > { %v2542_v2 = vmul.f32 %v2478_v11, %v11013_v52  ;;  %v3193_v36 = vpop.f32.mrf.mxu2  ;;  %v2923_v12 = vadd.f32 1.0, %v8388_v53  ;;  %8389 = vtanh.f32 %v2732_v21 }
 0x4e6   : > { %v2543_v19 = vmul.f32 %v2479_v20, %v11017_v3  ;;  %v3194_v0 = vadd.f32 %v10849_v44, %v3193_v36  ;;  %v3282_v60 = vpop.f32.mrf.mxu3  ;;  %v2986_v7 = vmul.f32 %v2922_v47, %v2794_v28  ;;  %8391 = vtanh.f32 %v2733_v4 }
 0x4e7   : > { %v2606_v40 = vmul.f32 0.044715, %v2542_v2  ;;  %v2987_v48 = vmul.f32 %v2923_v12, %v2795_v8 }
 0x4e8   : > { %v2607_v23 = vmul.f32 0.044715, %v2543_v19  ;;  %v3283_v15 = vadd.f32 %v3282_v60, %v3194_v0  ;;  %v2326_v43 = vpop.f32.mrf.mxu0  ;;  %v3022_v24 = vpack.c.bf16 %v2986_v7, %v2984_v31  ;;  %v3393_v19 = vpop.permute.xlu1 %3392 }
 0x4e9   : > { %v2670_v32 = vadd.f32 %v2606_v40, %v11013_v52  ;;  %v11034_v42 = vadd.f32 %v2326_v43, %v10487_v35  ;;  %v2415_v6 = vpop.f32.mrf.mxu1  ;;  %v3023_v11 = vpack.c.bf16 %v2987_v48, %v2985_v22 }
 0x4ea   : > { %v2671_v9 = vadd.f32 %v2607_v23, %v11017_v3  ;;  %v11038_v53 = vadd.f32 %v2415_v6, %v10489_v45  ;;  %v11040_v58 = vmul.f32 %v3388_v39, %v3283_v15  ;;  %3235 = vmatmul.bf16.gmra.mxu2 %v3022_v24 }
 0x4eb   : > { %v2734_v5 = vmul.f32 0.7978846, %v2670_v32  ;;  %v2480_v21 = vmul.f32 %v11034_v42, %v11034_v42  ;;  %3324 = vmatmul.bf16.gmra.mxu3 %v3023_v11  ;;  %v8390_v36 = vpop.eup %8389  ;;  %v2796_v11 = vmul.f32 0.5, %v10996_v34 }
 0x4ec   : > { %v2735_v20 = vmul.f32 0.7978846, %v2671_v9  ;;  %v2481_v28 = vmul.f32 %v11038_v53, %v11038_v53  ;;  %v8392_v0 = vpop.eup %8391  ;;  %v2924_v23 = vadd.f32 1.0, %v8390_v36  ;;  %v2797_v9 = vmul.f32 0.5, %v11000_v61 }
 0x4ed   : > { %8393 = vtanh.f32 %v2734_v5  ;;  %v2544_v47 = vmul.f32 %v2480_v21, %v11034_v42  ;;  %v3196_v2 = vpop.f32.mrf.mxu2  ;;  %v2925_v5 = vadd.f32 1.0, %v8392_v0  ;;  %v3398_v0 = vpop.permute.xlu2 %3397 }
 0x4ee   : > { %8395 = vtanh.f32 %v2735_v20  ;;  %v2545_v31 = vmul.f32 %v2481_v28, %v11038_v53  ;;  %v3197_v8 = vadd.f32 %v10849_v44, %v3196_v2  ;;  %v3285_v12 = vpop.f32.mrf.mxu3  ;;  %v2798_v28 = vmul.f32 0.5, %v11013_v52 }
 0x4ef   : > { %v2608_v4 = vmul.f32 0.044715, %v2544_v47  ;;  %v2799_v47 = vmul.f32 0.5, %v11017_v3 }
 0x4f0   : > { %v2609_v60 = vmul.f32 0.044715, %v2545_v31  ;;  %v3286_v7 = vadd.f32 %v3285_v12, %v3197_v8  ;;  %v2328_v40 = vpop.f32.mrf.mxu0 }
 0x4f1   : > { %v2672_v39 = vadd.f32 %v2608_v4, %v11034_v42  ;;  %v2329_v22 = vadd.f32 %v2328_v40, %v10487_v35  ;;  %v2417_v48 = vpop.f32.mrf.mxu1 }
 0x4f2   : > { %v2673_v15 = vadd.f32 %v2609_v60, %v11038_v53  ;;  %v2418_v43 = vadd.f32 %v2417_v48, %v10489_v45  ;;  %v11053_v24 = vmul.f32 %v3393_v19, %v3286_v7  ;;  %v2988_v45 = vmul.f32 %v2924_v23, %v2796_v11 }
 0x4f3   : > { %v8394_v32 = vpop.eup %8393  ;;  %v2482_v6 = vmul.f32 %v2329_v22, %v2329_v22  ;;  %v2736_v2 = vmul.f32 0.7978846, %v2672_v39  ;;  %v2989_v7 = vmul.f32 %v2925_v5, %v2797_v9 }
 0x4f4   : > { %v8396_v21 = vpop.eup %8395  ;;  %v2483_v20 = vmul.f32 %v2418_v43, %v2418_v43  ;;  %v2926_v35 = vadd.f32 1.0, %v8394_v32  ;;  %v2737_v12 = vmul.f32 0.7978846, %v2673_v15 }
 0x4f5   : > { %v2546_v36 = vmul.f32 %v2482_v6, %v2329_v22  ;;  %v3198_v31 = vpop.f32.mrf.mxu2  ;;  %v2927_v8 = vadd.f32 1.0, %v8396_v21  ;;  %8397 = vtanh.f32 %v2736_v2 }
 0x4f6   : > { %v2547_v4 = vmul.f32 %v2483_v20, %v2418_v43  ;;  %v3199_v19 = vadd.f32 %v10849_v44, %v3198_v31  ;;  %v3287_v34 = vpop.f32.mrf.mxu3  ;;  %v2990_v60 = vmul.f32 %v2926_v35, %v2798_v28  ;;  %8399 = vtanh.f32 %v2737_v12  ;;  %v3403_v28 = vpop.permute.xlu0 %3402 }
 0x4f7   : > { %v2610_v61 = vmul.f32 0.044715, %v2546_v36  ;;  %v2991_v40 = vmul.f32 %v2927_v8, %v2799_v47  ;;  %v2800_v12 = vmul.f32 0.5, %v11034_v42 }
 0x4f8   : > { %v2611_v48 = vmul.f32 0.044715, %v2547_v4  ;;  %v3288_v52 = vadd.f32 %v3287_v34, %v3199_v19  ;;  %v3024_v32 = vpack.c.bf16 %v2990_v60, %v2988_v45  ;;  %v2802_v4 = vmul.f32 0.5, %v2329_v22 }
 0x4f9   : > { %v2674_v3 = vadd.f32 %v2610_v61, %v2329_v22  ;;  %v3025_v39 = vpack.c.bf16 %v2991_v40, %v2989_v7  ;;  %v2801_v60 = vmul.f32 0.5, %v11038_v53  ;;  %v2803_v61 = vmul.f32 0.5, %v2418_v43 }
 0x4fa   : > { %v2675_v6 = vadd.f32 %v2611_v48, %v2418_v43  ;;  %v11060_v23 = vmul.f32 %v3398_v0, %v3288_v52  ;;  %3240 = vmatmul.bf16.gmra.mxu2 %v3024_v32  ;;  %v3408_v32 = vpop.permute.xlu1 %3407  ;;  %v3413_v43 = vpop.permute.xlu2 %3412 }
 0x4fb   : > { %v2738_v15 = vmul.f32 0.7978846, %v2674_v3  ;;  %3329 = vmatmul.bf16.gmra.mxu3 %v3025_v39  ;;  %v8398_v20 = vpop.eup %8397 }
 0x4fc   : > { %v2739_v11 = vmul.f32 0.7978846, %v2675_v6  ;;  %v8400_v35 = vpop.eup %8399  ;;  %v2928_v36 = vadd.f32 1.0, %v8398_v20 }
 0x4fd   : > { %8401 = vtanh.f32 %v2738_v15  ;;  %v3201_v21 = vpop.f32.mrf.mxu2  ;;  %v2929_v45 = vadd.f32 1.0, %v8400_v35 }
 0x4fe   : > { %8403 = vtanh.f32 %v2739_v11  ;;  %v3202_v9 = vadd.f32 %v10849_v44, %v3201_v21  ;;  %v3290_v5 = vpop.f32.mrf.mxu3  ;;  %v2992_v48 = vmul.f32 %v2928_v36, %v2800_v12 }
 0x4ff   : > { %v2993_v3 = vmul.f32 %v2929_v45, %v2801_v60 }
 0x500   : > { %v3291_v47 = vadd.f32 %v3290_v5, %v3202_v9 }
 0x502   : > { %v11063_v2 = vmul.f32 %v3403_v28, %v3291_v47  ;;  %v3418_v47 = vpop.permute.xlu0 %3417 }
 0x503   : > { %v8402_v31 = vpop.eup %8401 }
 0x504   : > { %v8404_v8 = vpop.eup %8403  ;;  %v2930_v19 = vadd.f32 1.0, %v8402_v31 }
 0x505   : > { %v3203_v34 = vpop.f32.mrf.mxu2  ;;  %v2931_v0 = vadd.f32 1.0, %v8404_v8 }
 0x506   : > { %v3204_v7 = vadd.f32 %v10849_v44, %v3203_v34  ;;  %v3292_v40 = vpop.f32.mrf.mxu3  ;;  %v2994_v52 = vmul.f32 %v2930_v19, %v2802_v4  ;;  %v3423_v4 = vpop.permute.xlu1 %3422 }
 0x507   : > { %v2995_v39 = vmul.f32 %v2931_v0, %v2803_v61 }
 0x508   : > { %v3293_v6 = vadd.f32 %v3292_v40, %v3204_v7  ;;  %v3026_v15 = vpack.c.bf16 %v2994_v52, %v2992_v48  ;;  %v3428_v7 = vpop.permute.xlu2 %3427 }
 0x509   : > { %v3027_v11 = vpack.c.bf16 %v2995_v39, %v2993_v3 }
 0x50a   : > { %v11068_v21 = vmul.f32 %v3408_v32, %v3293_v6  ;;  %3245 = vmatmul.bf16.gmra.mxu2 %v3026_v15  ;;  %v3433_v6 = vpop.permute.xlu0 %3432 }
 0x50b   : > { %3334 = vmatmul.bf16.gmra.mxu3 %v3027_v11 }
 0x50d   : > { %v3206_v42 = vpop.f32.mrf.mxu2 }
 0x50e   : > { %v3207_v53 = vadd.f32 %v10849_v44, %v3206_v42  ;;  %v3295_v22 = vpop.f32.mrf.mxu3 }
 0x510   : > { %v3296_v9 = vadd.f32 %v3295_v22, %v3207_v53 }
 0x512   : > { %v11071_v5 = vmul.f32 %v3413_v43, %v3296_v9  ;;  %v3438_v43 = vpop.permute.xlu1 %3437 }
 0x515   : > { %v3208_v20 = vpop.f32.mrf.mxu2 }
 0x516   : > { %v3209_v28 = vadd.f32 %v10849_v44, %v3208_v20  ;;  %v3297_v35 = vpop.f32.mrf.mxu3 }
 0x518   : > { %v3298_v36 = vadd.f32 %v3297_v35, %v3209_v28 }
 0x51a   : > { %v11074_v31 = vmul.f32 %v3418_v47, %v3298_v36  ;;  %v3443_v36 = vpop.permute.xlu2 %3442 }
 0x51d   : > { %v3211_v45 = vpop.f32.mrf.mxu2 }
 0x51e   : > { %v3212_v8 = vadd.f32 %v10849_v44, %v3211_v45  ;;  %v3300_v12 = vpop.f32.mrf.mxu3 }
 0x520   : > { %v3301_v19 = vadd.f32 %v3300_v12, %v3212_v8 }
 0x522   : > { %v11077_v34 = vmul.f32 %v3423_v4, %v3301_v19 }
 0x525   : > { %v3213_v60 = vpop.f32.mrf.mxu2 }
 0x526   : > { %v3214_v61 = vadd.f32 %v10849_v44, %v3213_v60  ;;  %v3302_v0 = vpop.f32.mrf.mxu3  ;;  %v3448_v60 = vpop.permute.xlu0 %3447 }
 0x528   : > { %v3303_v40 = vadd.f32 %v3302_v0, %v3214_v61 }
 0x52a   : > { %v11080_v48 = vmul.f32 %v3428_v7, %v3303_v40 }
 0x52d   : > { %v3216_v52 = vpop.f32.mrf.mxu2 }
 0x52e   : > { %v3217_v32 = vadd.f32 %v10849_v44, %v3216_v52  ;;  %v3305_v3 = vpop.f32.mrf.mxu3 }
 0x530   : > { %v3306_v39 = vadd.f32 %v3305_v3, %v3217_v32  ;;  %v3453_v32 = vpop.permute.xlu1 %3452 }
 0x532   : > { %v11083_v15 = vmul.f32 %v3433_v6, %v3306_v39 }
 0x535   : > { %v3218_v11 = vpop.f32.mrf.mxu2 }
 0x536   : > { %v3219_v42 = vadd.f32 %v10849_v44, %v3218_v11  ;;  %v3307_v53 = vpop.f32.mrf.mxu3 }
 0x538   : > { %v3308_v22 = vadd.f32 %v3307_v53, %v3219_v42  ;;  %v3458_v53 = vpop.permute.xlu2 %3457 }
 0x53a   : > { %v11086_v9 = vmul.f32 %v3438_v43, %v3308_v22 }
 0x53d   : > { %v3221_v20 = vpop.f32.mrf.mxu2 }
 0x53e   : > { %v3222_v28 = vadd.f32 %v10849_v44, %v3221_v20  ;;  %v3310_v35 = vpop.f32.mrf.mxu3 }
 0x540   : > { %v3311_v47 = vadd.f32 %v3310_v35, %v3222_v28 }
 0x542   : > { %v11089_v45 = vmul.f32 %v3443_v36, %v3311_v47  ;;  %v3463_v47 = vpop.permute.xlu0 %3462 }
 0x545   : > { %v3223_v8 = vpop.f32.mrf.mxu2 }
 0x546   : > { %v3224_v12 = vadd.f32 %v10849_v44, %v3223_v8  ;;  %v3312_v4 = vpop.f32.mrf.mxu3 }
 0x548   : > { %v3313_v19 = vadd.f32 %v3312_v4, %v3224_v12 }
 0x54a   : > { %v11092_v61 = vmul.f32 %v3448_v60, %v3313_v19  ;;  %v3468_v60 = vpop.permute.xlu1 %3467 }
 0x54d   : > { %v3226_v0 = vpop.f32.mrf.mxu2 }
 0x54e   : > { %v3227_v7 = vadd.f32 %v10849_v44, %v3226_v0  ;;  %v3315_v40 = vpop.f32.mrf.mxu3 }
 0x550   : > { %v3316_v52 = vadd.f32 %v3315_v40, %v3227_v7 }
 0x552   : > { %v11095_v3 = vmul.f32 %v3453_v32, %v3316_v52 }
 0x555   : > { %v3228_v39 = vpop.f32.mrf.mxu2 }
 0x556   : > { %v3229_v6 = vadd.f32 %v10849_v44, %v3228_v39  ;;  %v3317_v11 = vpop.f32.mrf.mxu3  ;;  %v3473_v39 = vpop.permute.xlu2 %3472 }
 0x558   : > { %v3318_v42 = vadd.f32 %v3317_v11, %v3229_v6 }
 0x55a   : > { %v11098_v22 = vmul.f32 %v3458_v53, %v3318_v42 }
 0x55d   : > { %v3231_v43 = vpop.f32.mrf.mxu2 }
 0x55e   : > { %v3232_v20 = vadd.f32 %v10849_v44, %v3231_v43  ;;  %v3320_v28 = vpop.f32.mrf.mxu3 }
 0x560   : > { %v3321_v35 = vadd.f32 %v3320_v28, %v3232_v20  ;;  %v3478_v20 = vpop.permute.xlu0 %3477 }
 0x562   : > { %v11101_v36 = vmul.f32 %v3463_v47, %v3321_v35 }
 0x565   : > { %v3233_v8 = vpop.f32.mrf.mxu2 }
 0x566   : > { %v3234_v12 = vadd.f32 %v10849_v44, %v3233_v8  ;;  %v3322_v4 = vpop.f32.mrf.mxu3 }
 0x568   : > { %v3323_v19 = vadd.f32 %v3322_v4, %v3234_v12  ;;  %v3483_v4 = vpop.permute.xlu1 %3482 }
 0x56a   : > { %v11104_v0 = vmul.f32 %v3468_v60, %v3323_v19 }
 0x56d   : > { %v3236_v7 = vpop.f32.mrf.mxu2 }
 0x56e   : > { %v3237_v40 = vadd.f32 %v10849_v44, %v3236_v7  ;;  %v3325_v52 = vpop.f32.mrf.mxu3 }
 0x570   : > { %v3326_v32 = vadd.f32 %v3325_v52, %v3237_v40 }
 0x572   : > { %v11107_v6 = vmul.f32 %v3473_v39, %v3326_v32  ;;  %v3488_v32 = vpop.permute.xlu2 %3487 }
 0x575   : > { %v3238_v11 = vpop.f32.mrf.mxu2 }
 0x576   : > { %v3239_v42 = vadd.f32 %v10849_v44, %v3238_v11  ;;  %v3327_v53 = vpop.f32.mrf.mxu3 }
 0x578   : > { %v3328_v43 = vadd.f32 %v3327_v53, %v3239_v42  ;;  %v8405_v42 = vld [vmem:[%s13158_s6 + $0x1] ss:$0 sm:$0xff] }
 0x57a   : > { %v11110_v28 = vmul.f32 %v3478_v20, %v3328_v43 }
 0x57d   : > { %v3241_v35 = vpop.f32.mrf.mxu2 }
 0x57e   : > { %v3242_v47 = vadd.f32 %v10849_v44, %v3241_v35  ;;  %v3330_v8 = vpop.f32.mrf.mxu3  ;;  %v3493_v35 = vpop.permute.xlu0 %3492 }
 0x580   : > { %v3331_v12 = vadd.f32 %v3330_v8, %v3242_v47 }
 0x582   : > { %v11113_v19 = vmul.f32 %v3483_v4, %v3331_v12 }
 0x585   : > { %v3243_v60 = vpop.f32.mrf.mxu2 }
 0x586   : > { %v3244_v7 = vadd.f32 %v10849_v44, %v3243_v60  ;;  %v3332_v40 = vpop.f32.mrf.mxu3  ;;  %v3498_v60 = vpop.permute.xlu1 %3497 }
 0x588   : > { %v3333_v52 = vadd.f32 %v3332_v40, %v3244_v7 }
 0x58a   : > { %v11116_v39 = vmul.f32 %v3488_v32, %v3333_v52 }
 0x58d   : > { %v3246_v11 = vpop.f32.mrf.mxu2 }
 0x58e   : > { %v3247_v53 = vadd.f32 %v8405_v42, %v3246_v11  ;;  %v3335_v43 = vpop.f32.mrf.mxu3 }
 0x590   : > { %v3336_v20 = vadd.f32 %v3335_v43, %v3247_v53 }
 0x592   : > { %v11121_v47 = vmul.f32 %v3493_v35, %v3336_v20 }
 0x595   : > { %v3248_v8 = vpop.f32.mrf.mxu2 }
 0x596   : > { %v3249_v12 = vadd.f32 %v8405_v42, %v3248_v8  ;;  %v3337_v4 = vpop.f32.mrf.mxu3  ;;  %3535 = sbr.rel (%p7453_p7) target bundleno = 1467 (0x5bb), region = 72 }
 0x598   : > { %v3338_v44 = vadd.f32 %v3337_v4, %v3249_v12 }
 0x59a   : > { %v11123_v7 = vmul.f32 %v3498_v60, %v3338_v44 }
 0x59b   : > { %3536 = vst [vmem:[%s8934_s27] sm:$0xff] %v10866_v17 }
 0x59c   : > { %3537 = vst [vmem:[%s8934_s27 + $0x8] sm:$0xff] %v10887_v16 }
 0x59d   : > { %3538 = vst [vmem:[%s8934_s27 + $0x10] sm:$0xff] %v10904_v29 }
 0x59e   : > { %3539 = vst [vmem:[%s8934_s27 + $0x18] sm:$0xff] %v10925_v33 }
 0x59f   : > { %3540 = vst [vmem:[%s8934_s27 + $0x20] sm:$0xff] %v10943_v50 }
 0x5a0   : > { %3541 = vst [vmem:[%s8934_s27 + $0x28] sm:$0xff] %v10964_v56 }
 0x5a1   : > { %3542 = vst [vmem:[%s8934_s27 + $0x30] sm:$0xff] %v10981_v26 }
 0x5a2   : > { %3543 = vst [vmem:[%s8934_s27 + $0x38] sm:$0xff] %v11002_v57 }
 0x5a3   : > { %3544 = vst [vmem:[%s8934_s27 + $0x40] sm:$0xff] %v11019_v27 }
 0x5a4   : > { %3545 = vst [vmem:[%s8934_s27 + $0x48] sm:$0xff] %v11040_v58 }
 0x5a5   : > { %3546 = vst [vmem:[%s8934_s27 + $0x50] sm:$0xff] %v11053_v24 }
 0x5a6   : > { %3547 = vst [vmem:[%s8934_s27 + $0x58] sm:$0xff] %v11060_v23 }
 0x5a7   : > { %3548 = vst [vmem:[%s8934_s27 + $0x60] sm:$0xff] %v11063_v2 }
 0x5a8   : > { %3549 = vst [vmem:[%s8934_s27 + $0x68] sm:$0xff] %v11068_v21 }
 0x5a9   : > { %3550 = vst [vmem:[%s8934_s27 + $0x70] sm:$0xff] %v11071_v5 }
 0x5aa   : > { %3551 = vst [vmem:[%s8934_s27 + $0x78] sm:$0xff] %v11074_v31 }
 0x5ab   : > { %3552 = vst [vmem:[%s8934_s27 + $0x80] sm:$0xff] %v11077_v34 }
 0x5ac   : > { %3553 = vst [vmem:[%s8934_s27 + $0x88] sm:$0xff] %v11080_v48 }
 0x5ad   : > { %3554 = vst [vmem:[%s8934_s27 + $0x90] sm:$0xff] %v11083_v15 }
 0x5ae   : > { %3555 = vst [vmem:[%s8934_s27 + $0x98] sm:$0xff] %v11086_v9 }
 0x5af   : > { %3556 = vst [vmem:[%s8934_s27 + $0xa0] sm:$0xff] %v11089_v45 }
 0x5b0   : > { %3557 = vst [vmem:[%s8934_s27 + $0xa8] sm:$0xff] %v11092_v61 }
 0x5b1   : > { %3558 = vst [vmem:[%s8934_s27 + $0xb0] sm:$0xff] %v11095_v3 }
 0x5b2   : > { %3559 = vst [vmem:[%s8934_s27 + $0xb8] sm:$0xff] %v11098_v22 }
 0x5b3   : > { %3560 = vst [vmem:[%s8934_s27 + $0xc0] sm:$0xff] %v11101_v36 }
 0x5b4   : > { %3561 = vst [vmem:[%s8934_s27 + $0xc8] sm:$0xff] %v11104_v0 }
 0x5b5   : > { %3562 = vst [vmem:[%s8934_s27 + $0xd0] sm:$0xff] %v11107_v6 }
 0x5b6   : > { %3563 = vst [vmem:[%s8934_s27 + $0xd8] sm:$0xff] %v11110_v28 }
 0x5b7   : > { %3564 = vst [vmem:[%s8934_s27 + $0xe0] sm:$0xff] %v11113_v19 }
 0x5b8   : > { %3565 = vst [vmem:[%s8934_s27 + $0xe8] sm:$0xff] %v11116_v39 }
 0x5b9   : > { %3566 = vst [vmem:[%s8934_s27 + $0xf0] sm:$0xff] %v11121_v47 }
 0x5ba   : > { %3567 = vst [vmem:[%s8934_s27 + $0xf8] sm:$0xff] %v11123_v7 }
 0x5bb PF: > { %p7454_p8 = scmp.eq.s32.totalorder %s8920_s10, 1 }
 0x5bd   : > { %3571 = sbr.rel (%p7454_p8) target bundleno = 1509 (0x5e5), region = 76 }
 0x5c2   : > { %v3572_v40 = vld [vmem:[%s8934_s27] sm:$0xff]  ;;  %v3573_v52 = vld [vmem:[%s8934_s27 + $0x8] sm:$0xff]  ;;  %v3574_v32 = vld [vmem:[%s8934_s27 + $0x10] sm:$0xff] }
 0x5c3   : > { %v3604_v11 = vadd.f32 %v3572_v40, %v10866_v17  ;;  %v3605_v42 = vadd.f32 %v3573_v52, %v10887_v16  ;;  %v3606_v53 = vadd.f32 %v3574_v32, %v10904_v29  ;;  %v3575_v43 = vld [vmem:[%s8934_s27 + $0x18] sm:$0xff]  ;;  %v3576_v20 = vld [vmem:[%s8934_s27 + $0x20] sm:$0xff]  ;;  %v3577_v35 = vld [vmem:[%s8934_s27 + $0x28] sm:$0xff] }
 0x5c4   : > { %v3607_v8 = vadd.f32 %v3575_v43, %v10925_v33  ;;  %v3578_v12 = vld [vmem:[%s8934_s27 + $0x30] sm:$0xff]  ;;  %v3608_v4 = vadd.f32 %v3576_v20, %v10943_v50  ;;  %v3579_v17 = vld [vmem:[%s8934_s27 + $0x38] sm:$0xff]  ;;  %v3609_v16 = vadd.f32 %v3577_v35, %v10964_v56  ;;  %v3580_v29 = vld [vmem:[%s8934_s27 + $0x40] sm:$0xff] }
 0x5c5   : > { %3636 = vst [vmem:[%s8934_s27] sm:$0xff] %v3604_v11  ;;  %v3610_v44 = vadd.f32 %v3578_v12, %v10981_v26  ;;  %v3581_v33 = vld [vmem:[%s8934_s27 + $0x48] sm:$0xff]  ;;  %v3611_v60 = vadd.f32 %v3579_v17, %v11002_v57  ;;  %v3582_v50 = vld [vmem:[%s8934_s27 + $0x50] sm:$0xff]  ;;  %v3612_v40 = vadd.f32 %v3580_v29, %v11019_v27  ;;  %v3583_v56 = vld [vmem:[%s8934_s27 + $0x58] sm:$0xff] }
 0x5c6   : > { %3637 = vst [vmem:[%s8934_s27 + $0x8] sm:$0xff] %v3605_v42  ;;  %v3613_v52 = vadd.f32 %v3581_v33, %v11040_v58  ;;  %v3584_v26 = vld [vmem:[%s8934_s27 + $0x60] sm:$0xff]  ;;  %v3614_v32 = vadd.f32 %v3582_v50, %v11053_v24  ;;  %v3585_v57 = vld [vmem:[%s8934_s27 + $0x68] sm:$0xff]  ;;  %v3615_v11 = vadd.f32 %v3583_v56, %v11060_v23  ;;  %v3586_v27 = vld [vmem:[%s8934_s27 + $0x70] sm:$0xff] }
 0x5c7   : > { %3638 = vst [vmem:[%s8934_s27 + $0x10] sm:$0xff] %v3606_v53  ;;  %v3616_v42 = vadd.f32 %v3584_v26, %v11063_v2  ;;  %v3587_v58 = vld [vmem:[%s8934_s27 + $0x78] sm:$0xff]  ;;  %v3617_v53 = vadd.f32 %v3585_v57, %v11068_v21  ;;  %v3588_v24 = vld [vmem:[%s8934_s27 + $0x80] sm:$0xff]  ;;  %v3618_v43 = vadd.f32 %v3586_v27, %v11071_v5  ;;  %v3589_v23 = vld [vmem:[%s8934_s27 + $0x88] sm:$0xff] }
 0x5c8   : > { %3639 = vst [vmem:[%s8934_s27 + $0x18] sm:$0xff] %v3607_v8  ;;  %v3619_v20 = vadd.f32 %v3587_v58, %v11074_v31  ;;  %v3590_v2 = vld [vmem:[%s8934_s27 + $0x90] sm:$0xff]  ;;  %v3620_v35 = vadd.f32 %v3588_v24, %v11077_v34  ;;  %v3591_v21 = vld [vmem:[%s8934_s27 + $0x98] sm:$0xff]  ;;  %v3621_v8 = vadd.f32 %v3589_v23, %v11080_v48  ;;  %v3592_v5 = vld [vmem:[%s8934_s27 + $0xa0] sm:$0xff] }
 0x5c9   : > { %3640 = vst [vmem:[%s8934_s27 + $0x20] sm:$0xff] %v3608_v4  ;;  %v3622_v12 = vadd.f32 %v3590_v2, %v11083_v15  ;;  %v3593_v31 = vld [vmem:[%s8934_s27 + $0xa8] sm:$0xff]  ;;  %v3623_v4 = vadd.f32 %v3591_v21, %v11086_v9  ;;  %v3594_v34 = vld [vmem:[%s8934_s27 + $0xb0] sm:$0xff]  ;;  %v3624_v17 = vadd.f32 %v3592_v5, %v11089_v45  ;;  %v3595_v48 = vld [vmem:[%s8934_s27 + $0xb8] sm:$0xff] }
 0x5ca   : > { %3641 = vst [vmem:[%s8934_s27 + $0x28] sm:$0xff] %v3609_v16  ;;  %v3625_v16 = vadd.f32 %v3593_v31, %v11092_v61  ;;  %v3596_v15 = vld [vmem:[%s8934_s27 + $0xc0] sm:$0xff]  ;;  %v3626_v29 = vadd.f32 %v3594_v34, %v11095_v3  ;;  %v3597_v9 = vld [vmem:[%s8934_s27 + $0xc8] sm:$0xff]  ;;  %v3598_v45 = vld [vmem:[%s8934_s27 + $0xd0] sm:$0xff] }
 0x5cb   : > { %3642 = vst [vmem:[%s8934_s27 + $0x30] sm:$0xff] %v3610_v44  ;;  %v3627_v44 = vadd.f32 %v3595_v48, %v11098_v22  ;;  %v3628_v33 = vadd.f32 %v3596_v15, %v11101_v36  ;;  %v3599_v61 = vld [vmem:[%s8934_s27 + $0xd8] sm:$0xff]  ;;  %v3600_v50 = vld [vmem:[%s8934_s27 + $0xe0] sm:$0xff]  ;;  %v3630_v3 = vadd.f32 %v3598_v45, %v11107_v6  ;;  %v3601_v22 = vld [vmem:[%s8934_s27 + $0xe8] sm:$0xff] }
 0x5cc   : > { %3643 = vst [vmem:[%s8934_s27 + $0x38] sm:$0xff] %v3611_v60  ;;  %v3629_v60 = vadd.f32 %v3597_v9, %v11104_v0  ;;  %v3602_v56 = vld [vmem:[%s8934_s27 + $0xf0] sm:$0xff]  ;;  %v3632_v36 = vadd.f32 %v3600_v50, %v11113_v19  ;;  %v3633_v0 = vadd.f32 %v3601_v22, %v11116_v39 }
 0x5cd   : > { %3644 = vst [vmem:[%s8934_s27 + $0x40] sm:$0xff] %v3612_v40  ;;  %v3631_v40 = vadd.f32 %v3599_v61, %v11110_v28  ;;  %v3634_v26 = vadd.f32 %v3602_v56, %v11121_v47 }
 0x5ce   : > { %3645 = vst [vmem:[%s8934_s27 + $0x48] sm:$0xff] %v3613_v52  ;;  %v3603_v52 = vld [vmem:[%s8934_s27 + $0xf8] sm:$0xff] }
 0x5cf   : > { %3646 = vst [vmem:[%s8934_s27 + $0x50] sm:$0xff] %v3614_v32  ;;  %v3635_v6 = vadd.f32 %v3603_v52, %v11123_v7 }
 0x5d0   : > { %3647 = vst [vmem:[%s8934_s27 + $0x58] sm:$0xff] %v3615_v11 }
 0x5d1   : > { %3648 = vst [vmem:[%s8934_s27 + $0x60] sm:$0xff] %v3616_v42 }
 0x5d2   : > { %3649 = vst [vmem:[%s8934_s27 + $0x68] sm:$0xff] %v3617_v53 }
 0x5d3   : > { %3650 = vst [vmem:[%s8934_s27 + $0x70] sm:$0xff] %v3618_v43 }
 0x5d4   : > { %3651 = vst [vmem:[%s8934_s27 + $0x78] sm:$0xff] %v3619_v20 }
 0x5d5   : > { %3652 = vst [vmem:[%s8934_s27 + $0x80] sm:$0xff] %v3620_v35 }
 0x5d6   : > { %3653 = vst [vmem:[%s8934_s27 + $0x88] sm:$0xff] %v3621_v8 }
 0x5d7   : > { %3654 = vst [vmem:[%s8934_s27 + $0x90] sm:$0xff] %v3622_v12 }
 0x5d8   : > { %3655 = vst [vmem:[%s8934_s27 + $0x98] sm:$0xff] %v3623_v4 }
 0x5d9   : > { %3656 = vst [vmem:[%s8934_s27 + $0xa0] sm:$0xff] %v3624_v17 }
 0x5da   : > { %3657 = vst [vmem:[%s8934_s27 + $0xa8] sm:$0xff] %v3625_v16 }
 0x5db   : > { %3658 = vst [vmem:[%s8934_s27 + $0xb0] sm:$0xff] %v3626_v29 }
 0x5dc   : > { %3659 = vst [vmem:[%s8934_s27 + $0xb8] sm:$0xff] %v3627_v44 }
 0x5dd   : > { %3660 = vst [vmem:[%s8934_s27 + $0xc0] sm:$0xff] %v3628_v33 }
 0x5de   : > { %3661 = vst [vmem:[%s8934_s27 + $0xc8] sm:$0xff] %v3629_v60 }
 0x5df   : > { %3662 = vst [vmem:[%s8934_s27 + $0xd0] sm:$0xff] %v3630_v3 }
 0x5e0   : > { %3663 = vst [vmem:[%s8934_s27 + $0xd8] sm:$0xff] %v3631_v40 }
 0x5e1   : > { %3664 = vst [vmem:[%s8934_s27 + $0xe0] sm:$0xff] %v3632_v36 }
 0x5e2   : > { %3665 = vst [vmem:[%s8934_s27 + $0xe8] sm:$0xff] %v3633_v0 }
 0x5e3   : > { %3666 = vst [vmem:[%s8934_s27 + $0xf0] sm:$0xff] %v3634_v26 }
 0x5e4   : > { %3667 = vst [vmem:[%s8934_s27 + $0xf8] sm:$0xff] %v3635_v6 }
 0x5e5 PF: > { %s3668_s29 = sadd.s32 2, %s9357_s28 }
 0x5e6   : > { %s3669_s9 = sld [smem:[#allocation3 + %s3668_s29]] }
 0x5ec   : > { %p7455_p9 = scmp.eq.s32.totalorder %s3669_s9, 0 }
 0x5ed   : > { %p7666_p10 = scmp.ne.s32.totalorder (!%p7455_p9), %s8920_s10, 2 }
 0x5ee   : > { %3673 = sbr.rel (%p7455_p9) target bundleno = 2175 (0x87f), region = 80 }
 0x5f3   : > { %v7595_v28 = vld [vmem:[%s13155_s3 + $0x170] sm:$0xf]  ;;  %v8029_v19 = vld [vmem:[%s13155_s3 + $0x174] sm:$0xf0]  ;;  %v8028_v39 = vld [vmem:[%s13155_s3 + $0x174] sm:$0xf] }
 0x5f4   : > { %v7596_v47 = vor.u32 %v8029_v19, %v7595_v28  ;;  %v7597_v7 = vld [vmem:[%s13155_s3 + $0x178] sm:$0xf0]  ;;  %v7587_v32 = vld [vmem:[%s13155_s3 + $0x160] sm:$0xf]  ;;  %v8027_v57 = vld [vmem:[%s13155_s3 + $0x164] sm:$0xf0] }
 0x5f5   : > { %v7600_v11 = vor.u32 %v8028_v39, %v7597_v7  ;;  %v8026_v27 = vld [vmem:[%s13155_s3 + $0x164] sm:$0xf]  ;;  %v7589_v42 = vld [vmem:[%s13155_s3 + $0x168] sm:$0xf0]  ;;  %v7588_v58 = vor.u32 %v8027_v57, %v7587_v32  ;;  %v7579_v24 = vld [vmem:[%s13155_s3 + $0x150] sm:$0xf] }
 0x5f6   : > { %3874 = vmatpush.bf16.msra.mxu0 %v7596_v47  ;;  %v7592_v53 = vor.u32 %v8026_v27, %v7589_v42  ;;  %v8025_v43 = vld [vmem:[%s13155_s3 + $0x154] sm:$0xf0]  ;;  %v8024_v23 = vld [vmem:[%s13155_s3 + $0x154] sm:$0xf]  ;;  %v7581_v20 = vld [vmem:[%s13155_s3 + $0x158] sm:$0xf0] }
 0x5f7   : > { %3963 = vmatpush.bf16.msra.mxu1 %v7600_v11  ;;  %v7580_v2 = vor.u32 %v8025_v43, %v7579_v24  ;;  %v7584_v35 = vor.u32 %v8024_v23, %v7581_v20  ;;  %v7571_v21 = vld [vmem:[%s13155_s3 + $0x140] sm:$0xf]  ;;  %v8023_v8 = vld [vmem:[%s13155_s3 + $0x144] sm:$0xf0]  ;;  %v8022_v5 = vld [vmem:[%s13155_s3 + $0x144] sm:$0xf] }
 0x5f8   : > { %v7573_v12 = vld [vmem:[%s13155_s3 + $0x148] sm:$0xf0]  ;;  %v7572_v31 = vor.u32 %v8023_v8, %v7571_v21  ;;  %v7563_v34 = vld [vmem:[%s13155_s3 + $0x130] sm:$0xf]  ;;  %v8021_v17 = vld [vmem:[%s13155_s3 + $0x134] sm:$0xf0] }
 0x5f9   : > { %v7576_v4 = vor.u32 %v8022_v5, %v7573_v12  ;;  %v8020_v48 = vld [vmem:[%s13155_s3 + $0x134] sm:$0xf]  ;;  %v7565_v16 = vld [vmem:[%s13155_s3 + $0x138] sm:$0xf0]  ;;  %v7564_v15 = vor.u32 %v8021_v17, %v7563_v34  ;;  %v7555_v9 = vld [vmem:[%s13155_s3 + $0x120] sm:$0xf] }
 0x5fa   : > { %3875 = vmatpush.bf16.msra.mxu0 %v7588_v58  ;;  %v7568_v29 = vor.u32 %v8020_v48, %v7565_v16  ;;  %v8019_v44 = vld [vmem:[%s13155_s3 + $0x124] sm:$0xf0]  ;;  %v8018_v45 = vld [vmem:[%s13155_s3 + $0x124] sm:$0xf]  ;;  %v7557_v33 = vld [vmem:[%s13155_s3 + $0x128] sm:$0xf0] }
 0x5fb   : > { %3964 = vmatpush.bf16.msra.mxu1 %v7592_v53  ;;  %v7556_v61 = vor.u32 %v8019_v44, %v7555_v9  ;;  %v7560_v60 = vor.u32 %v8018_v45, %v7557_v33  ;;  %v7547_v50 = vld [vmem:[%s13155_s3 + $0x110] sm:$0xf]  ;;  %v8017_v3 = vld [vmem:[%s13155_s3 + $0x114] sm:$0xf0]  ;;  %v8016_v22 = vld [vmem:[%s13155_s3 + $0x114] sm:$0xf] }
 0x5fc   : > { %v7549_v40 = vld [vmem:[%s13155_s3 + $0x118] sm:$0xf0]  ;;  %v7548_v56 = vor.u32 %v8017_v3, %v7547_v50  ;;  %v7539_v52 = vld [vmem:[%s13155_s3 + $0x100] sm:$0xf]  ;;  %v8015_v0 = vld [vmem:[%s13155_s3 + $0x104] sm:$0xf0] }
 0x5fd   : > { %v7552_v36 = vor.u32 %v8016_v22, %v7549_v40  ;;  %v8014_v26 = vld [vmem:[%s13155_s3 + $0x104] sm:$0xf]  ;;  %v7541_v6 = vld [vmem:[%s13155_s3 + $0x108] sm:$0xf0]  ;;  %v7540_v28 = vor.u32 %v8015_v0, %v7539_v52  ;;  %v13344_v32 = vld [vmem:[#allocation19_spill] sm:$0xff] }
 0x5fe   : > { %3876 = vmatpush.bf16.msra.mxu0 %v7580_v2  ;;  %v7544_v19 = vor.u32 %v8014_v26, %v7541_v6  ;;  %v13342_v39 = vld [vmem:[#allocation13_spill] sm:$0xff]  ;;  %v13343_v47 = vld [vmem:[#allocation16_spill] sm:$0xff]  ;;  %v13345_v57 = vld [vmem:[#allocation22_spill] sm:$0xff] }
 0x5ff   : > { %3965 = vmatpush.bf16.msra.mxu1 %v7584_v35  ;;  %v7476_v7 = vor.u32 %v13343_v47, %v13342_v39  ;;  %v7480_v11 = vor.u32 %v13345_v57, %v13344_v32  ;;  %v13346_v27 = vld [vmem:[#allocation25_spill] sm:$0xff]  ;;  %v13347_v42 = vld [vmem:[#allocation28_spill] sm:$0xff]  ;;  %v13348_v53 = vld [vmem:[#allocation31_spill] sm:$0xff] }
 0x600   : > { %v7484_v58 = vor.u32 %v13347_v42, %v13346_v27  ;;  %v13349_v24 = vld [vmem:[#allocation34_spill] sm:$0xff]  ;;  %v13350_v23 = vld [vmem:[#allocation37_spill] sm:$0xff]  ;;  %v13351_v20 = vld [vmem:[#allocation40_spill] sm:$0xff] }
 0x601   : > { %v7488_v43 = vor.u32 %v13349_v24, %v13348_v53  ;;  %v7492_v2 = vor.u32 %v13351_v20, %v13350_v23  ;;  %v13352_v35 = vld [vmem:[#allocation43_spill] sm:$0xff]  ;;  %v13353_v21 = vld [vmem:[#allocation46_spill] sm:$0xff]  ;;  %v13354_v5 = vld [vmem:[#allocation49_spill] sm:$0xff] }
 0x602   : > { %3877 = vmatpush.bf16.msra.mxu0 %v7572_v31  ;;  %v7496_v8 = vor.u32 %v13353_v21, %v13352_v35  ;;  %v13355_v12 = vld [vmem:[#allocation52_spill] sm:$0xff]  ;;  %v8045_v34 = vld [vmem:[#allocation5 + $0x178] sm:$0xff]  ;;  %v8036_v17 = vld [vmem:[#allocation5 + $0x130] sm:$0xff] }
 0x603   : > { %3966 = vmatpush.bf16.msra.mxu1 %v7576_v4  ;;  %v7500_v31 = vor.u32 %v13355_v12, %v13354_v5  ;;  %v8037_v4 = vld [vmem:[#allocation5 + $0x138] sm:$0xff]  ;;  %4883 = vmatpush.bf16.msra.mxu3 %v8045_v34  ;;  %v8044_v48 = vld [vmem:[#allocation5 + $0x170] sm:$0xff]  ;;  %v8035_v16 = vld [vmem:[#allocation5 + $0x128] sm:$0xff] }
 0x604   : > { %4794 = vmatpush.bf16.msra.mxu2 %v8037_v4  ;;  %v8042_v9 = vld [vmem:[#allocation5 + $0x160] sm:$0xff]  ;;  %v13356_v44 = vld [vmem:[#allocation55_spill] sm:$0xff]  ;;  %v13357_v45 = vld [vmem:[#allocation58_spill] sm:$0xff] }
 0x605   : > { %v7504_v33 = vor.u32 %v13357_v45, %v13356_v44  ;;  %v8032_v50 = vld [vmem:[#allocation5 + $0x110] sm:$0xff]  ;;  %v7472_v22 = vld [vmem:[%s13156_s4 + $0x4] sm:$0x3]  ;;  %v8031_v40 = vld [vmem:[#allocation5 + $0x108] sm:$0xff] }
 0x606   : > { %3878 = vmatpush.bf16.msra.mxu0 %v7564_v15  ;;  %v8043_v15 = vld [vmem:[#allocation5 + $0x168] sm:$0xff]  ;;  %v8040_v3 = vld [vmem:[#allocation5 + $0x150] sm:$0xff]  ;;  %v11405_v52 = vperm.slane %v7472_v22, 1  ;;  %v8030_v0 = vld [vmem:[#allocation5 + $0x100] sm:$0xff] }
 0x607   : > { %3967 = vmatpush.bf16.msra.mxu1 %v7568_v29  ;;  %4884 = vmatpush.bf16.msra.mxu3 %v8044_v48  ;;  %v8034_v29 = vld [vmem:[#allocation5 + $0x120] sm:$0xff]  ;;  %v13358_v6 = vld [vmem:[#allocation61_spill] sm:$0xff]  ;;  %v13360_v34 = vld [vmem:[#allocation67_spill] sm:$0xff] }
 0x608   : > { %4795 = vmatpush.bf16.msra.mxu2 %v8036_v17  ;;  %v8038_v26 = vld [vmem:[#allocation5 + $0x140] sm:$0xff]  ;;  %v13361_v17 = vld [vmem:[#allocation70_spill] sm:$0xff] }
 0x609   : > { %v7512_v48 = vor.u32 %v13361_v17, %v13360_v34 }
 0x60a   : > { %3879 = vmatpush.bf16.msra.mxu0 %v7556_v61  ;;  %v8033_v61 = vld [vmem:[#allocation5 + $0x118] sm:$0xff] }
 0x60b   : > { %3968 = vmatpush.bf16.msra.mxu1 %v7560_v60  ;;  %4885 = vmatpush.bf16.msra.mxu3 %v8043_v15  ;;  %v8041_v60 = vld [vmem:[#allocation5 + $0x158] sm:$0xff] }
 0x60c   : > { %4796 = vmatpush.bf16.msra.mxu2 %v8035_v16 }
 0x60e   : > { %3880 = vmatpush.bf16.msra.mxu0 %v7548_v56  ;;  %v8039_v56 = vld [vmem:[#allocation5 + $0x148] sm:$0xff] }
 0x60f   : > { %3969 = vmatpush.bf16.msra.mxu1 %v7552_v36  ;;  %4886 = vmatpush.bf16.msra.mxu3 %v8042_v9  ;;  %v11403_v36 = vperm.slane %v7472_v22, 0 }
 0x610   : > { %4797 = vmatpush.bf16.msra.mxu2 %v8034_v29 }
 0x612   : > { %3881 = vmatpush.bf16.msra.mxu0 %v7540_v28  ;;  %v13359_v28 = vld [vmem:[#allocation64_spill] sm:$0xff] }
 0x613   : > { %3970 = vmatpush.bf16.msra.mxu1 %v7544_v19  ;;  %4887 = vmatpush.bf16.msra.mxu3 %v8041_v60  ;;  %v7508_v19 = vor.u32 %v13359_v28, %v13358_v6  ;;  %v8804_v6 = vmov 2  }
 0x614   : > { %4798 = vmatpush.bf16.msra.mxu2 %v8033_v61  ;;  %8406 = vset.pattern.permute.xlu0 %v8804_v6 }
 0x615   : > { %3882 = vmatmul.bf16.vlgmr.msra.gmra.mxu0 %v7476_v7  ;;  %8407 = vset.pattern.permute.xlu1 %v8804_v6 }
 0x616   : > { %3971 = vmatmul.bf16.vlgmr.msra.gmra.mxu1 %v7476_v7  ;;  %4974 = vperm.xlu0 %8406, %v9354_v18  }
 0x617   : > { %4888 = vmatpush.bf16.msra.mxu3 %v8040_v3  ;;  %8408 = vset.pattern.permute.xlu2 %v8804_v6 }
 0x618   : > { %4799 = vmatpush.bf16.msra.mxu2 %v8032_v50 }
 0x61b   : > { %4889 = vmatpush.bf16.msra.mxu3 %v8039_v56 }
 0x61c   : > { %4800 = vmatpush.bf16.msra.mxu2 %v8031_v40 }
 0x61e   : > { %4979 = vperm.xlu0 %8406, %v9360_v14  }
 0x61f   : > { %4890 = vmatpush.bf16.msra.mxu3 %v8038_v26 }
 0x620   : > { %4801 = vmatpush.bf16.msra.mxu2 %v8030_v0 }
 0x625   : > { %3887 = vmatmul.bf16.gmra.mxu0 %v7480_v11 }
 0x626   : > { %3976 = vmatmul.bf16.gmra.mxu1 %v7480_v11  ;;  %5004 = vperm.xlu0 %8406, %v9378_v38  }
 0x62e   : > { %5019 = vperm.xlu0 %8406, %v9387_v62  }
 0x635   : > { %3892 = vmatmul.bf16.gmra.mxu0 %v7484_v58 }
 0x636   : > { %3981 = vmatmul.bf16.gmra.mxu1 %v7484_v58  ;;  %5034 = vperm.xlu0 %8406, %v9396_v13  }
 0x63e   : > { %5049 = vperm.xlu0 %8406, %v9405_v49  }
 0x645   : > { %3897 = vmatmul.bf16.gmra.mxu0 %v7488_v43 }
 0x646   : > { %3986 = vmatmul.bf16.gmra.mxu1 %v7488_v43  ;;  %5064 = vperm.xlu0 %8406, %v9414_v55  }
 0x655   : > { %3902 = vmatmul.bf16.gmra.mxu0 %v7492_v2 }
 0x656   : > { %3991 = vmatmul.bf16.gmra.mxu1 %v7492_v2 }
 0x665   : > { %3907 = vmatmul.bf16.gmra.mxu0 %v7496_v8 }
 0x666   : > { %3996 = vmatmul.bf16.gmra.mxu1 %v7496_v8 }
 0x675   : > { %3912 = vmatmul.bf16.gmra.mxu0 %v7500_v31 }
 0x676   : > { %4001 = vmatmul.bf16.gmra.mxu1 %v7500_v31 }
 0x685   : > { %3917 = vmatmul.bf16.gmra.mxu0 %v7504_v33 }
 0x686   : > { %4006 = vmatmul.bf16.gmra.mxu1 %v7504_v33 }
 0x692   : > { %v3883_v39 = vpop.f32.mrf.mxu0 }
 0x693   : > { %v11410_v47 = vadd.f32 %v3883_v39, %v11403_v36  ;;  %v3972_v7 = vpop.f32.mrf.mxu1 }
 0x694   : > { %v11413_v32 = vadd.f32 %v3972_v7, %v11405_v52  ;;  %v13362_v7 = vld [vmem:[#allocation112_spill] sm:$0xff] }
 0x695   : > { %v4052_v57 = vmul.f32 %v11410_v47, %v11410_v47  ;;  %3922 = vmatmul.bf16.gmra.mxu0 %v7508_v19  ;;  %4984 = vperm.xlu1 %8407, %v13362_v7  }
 0x696   : > { %v4053_v11 = vmul.f32 %v11413_v32, %v11413_v32  ;;  %4011 = vmatmul.bf16.gmra.mxu1 %v7508_v19 }
 0x697   : > { %v4116_v27 = vmul.f32 %v4052_v57, %v11410_v47 }
 0x698   : > { %v4117_v42 = vmul.f32 %v4053_v11, %v11413_v32 }
 0x699   : > { %v4180_v58 = vmul.f32 0.044715, %v4116_v27 }
 0x69a   : > { %v4181_v53 = vmul.f32 0.044715, %v4117_v42  ;;  %v3885_v24 = vpop.f32.mrf.mxu0 }
 0x69b   : > { %v3886_v43 = vadd.f32 %v3885_v24, %v11403_v36  ;;  %v3974_v23 = vpop.f32.mrf.mxu1  ;;  %v4244_v20 = vadd.f32 %v4180_v58, %v11410_v47  ;;  %v13363_v24 = vld [vmem:[#allocation113_spill] sm:$0xff] }
 0x69c   : > { %v3975_v2 = vadd.f32 %v3974_v23, %v11405_v52  ;;  %v4245_v35 = vadd.f32 %v4181_v53, %v11413_v32  ;;  %4994 = vperm.xlu2 %8408, %v13363_v24  }
 0x69d   : > { %v4054_v21 = vmul.f32 %v3886_v43, %v3886_v43  ;;  %v4308_v12 = vmul.f32 0.7978846, %v4244_v20  ;;  %4989 = vperm.xlu1 %8407, %v9366_v10  }
 0x69e   : > { %v4055_v8 = vmul.f32 %v3975_v2, %v3975_v2  ;;  %v4309_v4 = vmul.f32 0.7978846, %v4245_v35  ;;  %v4372_v35 = vmul.f32 0.5, %v11410_v47  ;;  %v4375_v17 = vmul.f32 0.5, %v3975_v2 }
 0x69f   : > { %v4118_v5 = vmul.f32 %v4054_v21, %v3886_v43  ;;  %8410 = vtanh.f32 %v4308_v12  ;;  %v4374_v12 = vmul.f32 0.5, %v3886_v43 }
 0x6a0   : > { %v4119_v31 = vmul.f32 %v4055_v8, %v3975_v2  ;;  %8412 = vtanh.f32 %v4309_v4  ;;  %v4373_v4 = vmul.f32 0.5, %v11413_v32 }
 0x6a1   : > { %v4182_v16 = vmul.f32 0.044715, %v4118_v5 }
 0x6a2   : > { %v3888_v15 = vpop.f32.mrf.mxu0  ;;  %v4183_v29 = vmul.f32 0.044715, %v4119_v31 }
 0x6a3   : > { %v11428_v9 = vadd.f32 %v3888_v15, %v11403_v36  ;;  %v3977_v44 = vpop.f32.mrf.mxu1  ;;  %v4246_v45 = vadd.f32 %v4182_v16, %v3886_v43 }
 0x6a4   : > { %v11431_v33 = vadd.f32 %v3977_v44, %v11405_v52  ;;  %v4247_v61 = vadd.f32 %v4183_v29, %v3975_v2  ;;  %4999 = vperm.xlu2 %8408, %v9375_v30  }
 0x6a5   : > { %v4056_v60 = vmul.f32 %v11428_v9, %v11428_v9  ;;  %3927 = vmatmul.bf16.gmra.mxu0 %v7512_v48  ;;  %v4310_v50 = vmul.f32 0.7978846, %v4246_v45  ;;  %v8411_v0 = vpop.eup %8410  ;;  %5009 = vperm.xlu1 %8407, %v9381_v46  }
 0x6a6   : > { %v4057_v3 = vmul.f32 %v11431_v33, %v11431_v33  ;;  %4016 = vmatmul.bf16.gmra.mxu1 %v7512_v48  ;;  %v4311_v22 = vmul.f32 0.7978846, %v4247_v61  ;;  %v8413_v28 = vpop.eup %8412  ;;  %v4500_v58 = vadd.f32 1.0, %v8411_v0 }
 0x6a7   : > { %v4120_v40 = vmul.f32 %v4056_v60, %v11428_v9  ;;  %8414 = vtanh.f32 %v4310_v50  ;;  %v4501_v21 = vadd.f32 1.0, %v8413_v28  ;;  %v13364_v60 = vld [vmem:[#allocation73_spill] sm:$0xff]  ;;  %v13365_v50 = vld [vmem:[#allocation76_spill] sm:$0xff] }
 0x6a8   : > { %v4121_v56 = vmul.f32 %v4057_v3, %v11431_v33  ;;  %8416 = vtanh.f32 %v4311_v22  ;;  %v4564_v29 = vmul.f32 %v4500_v58, %v4372_v35  ;;  %v7516_v3 = vor.u32 %v13365_v50, %v13364_v60 }
 0x6a9   : > { %v4184_v26 = vmul.f32 0.044715, %v4120_v40  ;;  %v4565_v47 = vmul.f32 %v4501_v21, %v4373_v4 }
 0x6aa   : > { %v4185_v19 = vmul.f32 0.044715, %v4121_v56  ;;  %v3890_v39 = vpop.f32.mrf.mxu0 }
 0x6ab   : > { %v11442_v57 = vadd.f32 %v3890_v39, %v11403_v36  ;;  %v3979_v11 = vpop.f32.mrf.mxu1  ;;  %v4248_v27 = vadd.f32 %v4184_v26, %v11428_v9 }
 0x6ac   : > { %v11446_v42 = vadd.f32 %v3979_v11, %v11405_v52  ;;  %v4249_v53 = vadd.f32 %v4185_v19, %v11431_v33  ;;  %5014 = vperm.xlu2 %8408, %v9384_v54  }
 0x6ad   : > { %v8415_v23 = vpop.eup %8414  ;;  %v4058_v20 = vmul.f32 %v11442_v57, %v11442_v57  ;;  %v4312_v16 = vmul.f32 0.7978846, %v4248_v27  ;;  %5024 = vperm.xlu1 %8407, %v9390_v41  }
 0x6ae   : > { %v8417_v8 = vpop.eup %8416  ;;  %v4059_v5 = vmul.f32 %v11446_v42, %v11446_v42  ;;  %v4502_v31 = vadd.f32 1.0, %v8415_v23  ;;  %v4313_v45 = vmul.f32 0.7978846, %v4249_v53  ;;  %v4379_v60 = vmul.f32 0.5, %v11446_v42 }
 0x6af   : > { %v4122_v34 = vmul.f32 %v4058_v20, %v11442_v57  ;;  %v4503_v48 = vadd.f32 1.0, %v8417_v8  ;;  %8418 = vtanh.f32 %v4312_v16 }
 0x6b0   : > { %v4123_v15 = vmul.f32 %v4059_v5, %v11446_v42  ;;  %v4566_v44 = vmul.f32 %v4502_v31, %v4374_v12  ;;  %8420 = vtanh.f32 %v4313_v45 }
 0x6b1   : > { %v4567_v61 = vmul.f32 %v4503_v48, %v4375_v17  ;;  %v4186_v22 = vmul.f32 0.044715, %v4122_v34  ;;  %v4376_v48 = vmul.f32 0.5, %v11428_v9 }
 0x6b2   : > { %v3893_v43 = vpop.f32.mrf.mxu0  ;;  %v4628_v40 = vpack.c.bf16 %v4566_v44, %v4564_v29  ;;  %v4187_v56 = vmul.f32 0.044715, %v4123_v15  ;;  %v4378_v44 = vmul.f32 0.5, %v11442_v57 }
 0x6b3   : > { %v11463_v32 = vadd.f32 %v3893_v43, %v11403_v36  ;;  %v3982_v2 = vpop.f32.mrf.mxu1  ;;  %v4629_v0 = vpack.c.bf16 %v4567_v61, %v4565_v47  ;;  %v4250_v26 = vadd.f32 %v4186_v22, %v11442_v57  ;;  %v4377_v47 = vmul.f32 0.5, %v11431_v33 }
 0x6b4   : > { %v11467_v6 = vadd.f32 %v3982_v2, %v11405_v52  ;;  %4802 = vmatmul.bf16.vlgmr.msra.gmra.mxu2 %v4628_v40  ;;  %v4251_v28 = vadd.f32 %v4187_v56, %v11446_v42  ;;  %5029 = vperm.xlu2 %8408, %v9393_v1  }
 0x6b5   : > { %v4060_v19 = vmul.f32 %v11463_v32, %v11463_v32  ;;  %4891 = vmatmul.bf16.vlgmr.msra.gmra.mxu3 %v4629_v0  ;;  %3932 = vmatmul.bf16.gmra.mxu0 %v7516_v3  ;;  %v4314_v39 = vmul.f32 0.7978846, %v4250_v26  ;;  %v8419_v53 = vpop.eup %8418  ;;  %v13366_v0 = vld [vmem:[#allocation79_spill] sm:$0xff]  ;;  %v13367_v26 = vld [vmem:[#allocation82_spill] sm:$0xff] }
 0x6b6   : > { %v4061_v7 = vmul.f32 %v11467_v6, %v11467_v6  ;;  %4021 = vmatmul.bf16.gmra.mxu1 %v7516_v3  ;;  %v4315_v11 = vmul.f32 0.7978846, %v4251_v28  ;;  %v8421_v23 = vpop.eup %8420  ;;  %v4504_v31 = vadd.f32 1.0, %v8419_v53  ;;  %v7520_v28 = vor.u32 %v13367_v26, %v13366_v0  ;;  %5039 = vperm.xlu1 %8407, %v9399_v25  }
 0x6b7   : > { %v4124_v27 = vmul.f32 %v4060_v19, %v11463_v32  ;;  %8422 = vtanh.f32 %v4314_v39  ;;  %v4505_v16 = vadd.f32 1.0, %v8421_v23 }
 0x6b8   : > { %v4125_v58 = vmul.f32 %v4061_v7, %v11467_v6  ;;  %8424 = vtanh.f32 %v4315_v11  ;;  %v4568_v43 = vmul.f32 %v4504_v31, %v4376_v48 }
 0x6b9   : > { %v4188_v24 = vmul.f32 0.044715, %v4124_v27  ;;  %v4569_v56 = vmul.f32 %v4505_v16, %v4377_v47 }
 0x6ba   : > { %v4189_v20 = vmul.f32 0.044715, %v4125_v58  ;;  %v3895_v35 = vpop.f32.mrf.mxu0 }
 0x6bb   : > { %v11480_v21 = vadd.f32 %v3895_v35, %v11403_v36  ;;  %v3984_v8 = vpop.f32.mrf.mxu1  ;;  %v4252_v5 = vadd.f32 %v4188_v24, %v11463_v32 }
 0x6bc   : > { %v11484_v12 = vadd.f32 %v3984_v8, %v11405_v52  ;;  %v4253_v4 = vadd.f32 %v4189_v20, %v11467_v6  ;;  %5044 = vperm.xlu2 %8408, %v9402_v37  }
 0x6bd   : > { %v8423_v34 = vpop.eup %8422  ;;  %v4062_v17 = vmul.f32 %v11480_v21, %v11480_v21  ;;  %v4316_v3 = vmul.f32 0.7978846, %v4252_v5 }
 0x6be   : > { %v8425_v15 = vpop.eup %8424  ;;  %v4063_v29 = vmul.f32 %v11484_v12, %v11484_v12  ;;  %v4506_v45 = vadd.f32 1.0, %v8423_v34  ;;  %v4317_v40 = vmul.f32 0.7978846, %v4253_v4  ;;  %v4383_v0 = vmul.f32 0.5, %v11484_v12  ;;  %5054 = vperm.xlu1 %8407, %v9408_v63  }
 0x6bf   : > { %v4126_v61 = vmul.f32 %v4062_v17, %v11480_v21  ;;  %v4507_v50 = vadd.f32 1.0, %v8425_v15  ;;  %8426 = vtanh.f32 %v4316_v3 }
 0x6c0   : > { %v4127_v22 = vmul.f32 %v4063_v29, %v11484_v12  ;;  %v4570_v9 = vmul.f32 %v4506_v45, %v4378_v44  ;;  %8428 = vtanh.f32 %v4317_v40 }
 0x6c1   : > { %v4571_v2 = vmul.f32 %v4507_v50, %v4379_v60  ;;  %v4190_v57 = vmul.f32 0.044715, %v4126_v61  ;;  %v4380_v50 = vmul.f32 0.5, %v11463_v32 }
 0x6c2   : > { %v3898_v19 = vpop.f32.mrf.mxu0  ;;  %v4630_v39 = vpack.c.bf16 %v4570_v9, %v4568_v43  ;;  %v4191_v33 = vmul.f32 0.044715, %v4127_v22  ;;  %v4382_v9 = vmul.f32 0.5, %v11480_v21 }
 0x6c3   : > { %v11503_v42 = vadd.f32 %v3898_v19, %v11403_v36  ;;  %v3987_v7 = vpop.f32.mrf.mxu1  ;;  %v4631_v11 = vpack.c.bf16 %v4571_v2, %v4569_v56  ;;  %v4254_v27 = vadd.f32 %v4190_v57, %v11480_v21  ;;  %v4381_v56 = vmul.f32 0.5, %v11467_v6 }
 0x6c4   : > { %v11507_v58 = vadd.f32 %v3987_v7, %v11405_v52  ;;  %4807 = vmatmul.bf16.gmra.mxu2 %v4630_v39  ;;  %v4255_v53 = vadd.f32 %v4191_v33, %v11484_v12  ;;  %5059 = vperm.xlu2 %8408, %v9411_v59  }
 0x6c5   : > { %v4064_v24 = vmul.f32 %v11503_v42, %v11503_v42  ;;  %4896 = vmatmul.bf16.gmra.mxu3 %v4631_v11  ;;  %3937 = vmatmul.bf16.gmra.mxu0 %v7520_v28  ;;  %v4318_v23 = vmul.f32 0.7978846, %v4254_v27  ;;  %v8427_v31 = vpop.eup %8426  ;;  %v13368_v11 = vld [vmem:[#allocation85_spill] sm:$0xff]  ;;  %v13369_v27 = vld [vmem:[#allocation88_spill] sm:$0xff] }
 0x6c6   : > { %v4065_v20 = vmul.f32 %v11507_v58, %v11507_v58  ;;  %4026 = vmatmul.bf16.gmra.mxu1 %v7520_v28  ;;  %v4319_v35 = vmul.f32 0.7978846, %v4255_v53  ;;  %v8429_v34 = vpop.eup %8428  ;;  %v4508_v45 = vadd.f32 1.0, %v8427_v31  ;;  %v7524_v53 = vor.u32 %v13369_v27, %v13368_v11  ;;  %5069 = vperm.xlu1 %8407, %v9417_v51  }
 0x6c7   : > { %v4128_v8 = vmul.f32 %v4064_v24, %v11503_v42  ;;  %8430 = vtanh.f32 %v4318_v23  ;;  %v4509_v3 = vadd.f32 1.0, %v8429_v34 }
 0x6c8   : > { %v4129_v5 = vmul.f32 %v4065_v20, %v11507_v58  ;;  %8432 = vtanh.f32 %v4319_v35  ;;  %v4572_v19 = vmul.f32 %v4508_v45, %v4380_v50 }
 0x6c9   : > { %v4192_v4 = vmul.f32 0.044715, %v4128_v8  ;;  %v4573_v33 = vmul.f32 %v4509_v3, %v4381_v56 }
 0x6ca   : > { %v4193_v17 = vmul.f32 0.044715, %v4129_v5  ;;  %v3900_v48 = vpop.f32.mrf.mxu0 }
 0x6cb   : > { %v11520_v16 = vadd.f32 %v3900_v48, %v11403_v36  ;;  %v3989_v15 = vpop.f32.mrf.mxu1  ;;  %v4256_v29 = vadd.f32 %v4192_v4, %v11503_v42 }
 0x6cc   : > { %v11524_v44 = vadd.f32 %v3989_v15, %v11405_v52  ;;  %v4257_v47 = vadd.f32 %v4193_v17, %v11507_v58 }
 0x6cd   : > { %v8431_v61 = vpop.eup %8430  ;;  %v4066_v60 = vmul.f32 %v11520_v16, %v11520_v16  ;;  %v4320_v28 = vmul.f32 0.7978846, %v4256_v29 }
 0x6ce   : > { %v8433_v22 = vpop.eup %8432  ;;  %v4067_v43 = vmul.f32 %v11524_v44, %v11524_v44  ;;  %v4510_v40 = vadd.f32 1.0, %v8431_v61  ;;  %v4321_v39 = vmul.f32 0.7978846, %v4257_v47  ;;  %v4387_v27 = vmul.f32 0.5, %v11524_v44 }
 0x6cf   : > { %v4130_v2 = vmul.f32 %v4066_v60, %v11520_v16  ;;  %v4511_v26 = vadd.f32 1.0, %v8433_v22  ;;  %8434 = vtanh.f32 %v4320_v28  ;;  %v4384_v28 = vmul.f32 0.5, %v11503_v42 }
 0x6d0   : > { %v4131_v57 = vmul.f32 %v4067_v43, %v11524_v44  ;;  %v4574_v32 = vmul.f32 %v4510_v40, %v4382_v9  ;;  %8436 = vtanh.f32 %v4321_v39  ;;  %v4386_v39 = vmul.f32 0.5, %v11520_v16 }
 0x6d1   : > { %v4575_v7 = vmul.f32 %v4511_v26, %v4383_v0  ;;  %v4194_v21 = vmul.f32 0.044715, %v4130_v2  ;;  %v13370_v2 = vld [vmem:[#allocation114_spill] sm:$0xff] }
 0x6d2   : > { %v3903_v24 = vpop.f32.mrf.mxu0  ;;  %v4632_v23 = vpack.c.bf16 %v4574_v32, %v4572_v19  ;;  %v4195_v6 = vmul.f32 0.044715, %v4131_v57  ;;  %5074 = vperm.xlu2 %8408, %v13370_v2  }
 0x6d3   : > { %v11543_v12 = vadd.f32 %v3903_v24, %v11403_v36  ;;  %v3992_v20 = vpop.f32.mrf.mxu1  ;;  %v4633_v35 = vpack.c.bf16 %v4575_v7, %v4573_v33  ;;  %v4258_v8 = vadd.f32 %v4194_v21, %v11520_v16  ;;  %v4385_v7 = vmul.f32 0.5, %v11507_v58 }
 0x6d4   : > { %v11547_v5 = vadd.f32 %v3992_v20, %v11405_v52  ;;  %4812 = vmatmul.bf16.gmra.mxu2 %v4632_v23  ;;  %v4259_v31 = vadd.f32 %v4195_v6, %v11524_v44 }
 0x6d5   : > { %v4068_v4 = vmul.f32 %v11543_v12, %v11543_v12  ;;  %4901 = vmatmul.bf16.gmra.mxu3 %v4633_v35  ;;  %3942 = vmatmul.bf16.gmra.mxu0 %v7524_v53  ;;  %v4322_v34 = vmul.f32 0.7978846, %v4258_v8  ;;  %v8435_v45 = vpop.eup %8434 }
 0x6d6   : > { %v4069_v17 = vmul.f32 %v11547_v5, %v11547_v5  ;;  %4031 = vmatmul.bf16.gmra.mxu1 %v7524_v53  ;;  %v4323_v48 = vmul.f32 0.7978846, %v4259_v31  ;;  %v8437_v61 = vpop.eup %8436  ;;  %v4512_v40 = vadd.f32 1.0, %v8435_v45  ;;  %v13371_v31 = vld [vmem:[#allocation91_spill] sm:$0xff] }
 0x6d7   : > { %v4132_v15 = vmul.f32 %v4068_v4, %v11543_v12  ;;  %8438 = vtanh.f32 %v4322_v34  ;;  %v4513_v57 = vadd.f32 1.0, %v8437_v61  ;;  %v13372_v4 = vld [vmem:[#allocation94_spill] sm:$0xff] }
 0x6d8   : > { %v4133_v29 = vmul.f32 %v4069_v17, %v11547_v5  ;;  %8440 = vtanh.f32 %v4323_v48  ;;  %v4576_v23 = vmul.f32 %v4512_v40, %v4384_v28  ;;  %v7528_v16 = vor.u32 %v13372_v4, %v13371_v31  ;;  %v13373_v48 = vld [vmem:[#allocation116_spill] sm:$0xff] }
 0x6d9   : > { %v4196_v47 = vmul.f32 0.044715, %v4132_v15  ;;  %v4577_v35 = vmul.f32 %v4513_v57, %v4385_v7  ;;  %5084 = vperm.xlu1 %8407, %v13373_v48   ;;  %v13374_v15 = vld [vmem:[#allocation115_spill] sm:$0xff] }
 0x6da   : > { %v4197_v60 = vmul.f32 0.044715, %v4133_v29  ;;  %v3905_v50 = vpop.f32.mrf.mxu0  ;;  %5079 = vperm.xlu0 %8406, %v13374_v15  }
 0x6db   : > { %v11560_v3 = vadd.f32 %v3905_v50, %v11403_v36  ;;  %v3994_v22 = vpop.f32.mrf.mxu1  ;;  %v4260_v43 = vadd.f32 %v4196_v47, %v11543_v12  ;;  %v13375_v50 = vld [vmem:[#allocation117_spill] sm:$0xff] }
 0x6dc   : > { %v11564_v9 = vadd.f32 %v3994_v22, %v11405_v52  ;;  %v4261_v56 = vadd.f32 %v4197_v60, %v11547_v5  ;;  %5089 = vperm.xlu2 %8408, %v13375_v50  }
 0x6dd   : > { %v8439_v0 = vpop.eup %8438  ;;  %v4070_v26 = vmul.f32 %v11560_v3, %v11560_v3  ;;  %v4324_v21 = vmul.f32 0.7978846, %v4260_v43  ;;  %v4390_v4 = vmul.f32 0.5, %v11560_v3 }
 0x6de   : > { %v8441_v19 = vpop.eup %8440  ;;  %v4071_v32 = vmul.f32 %v11564_v9, %v11564_v9  ;;  %v4514_v33 = vadd.f32 1.0, %v8439_v0  ;;  %v4325_v6 = vmul.f32 0.7978846, %v4261_v56 }
 0x6df   : > { %v4134_v11 = vmul.f32 %v4070_v26, %v11560_v3  ;;  %v4515_v53 = vadd.f32 1.0, %v8441_v19  ;;  %8442 = vtanh.f32 %v4324_v21 }
 0x6e0   : > { %v4135_v24 = vmul.f32 %v4071_v32, %v11564_v9  ;;  %v4578_v42 = vmul.f32 %v4514_v33, %v4386_v39  ;;  %8444 = vtanh.f32 %v4325_v6  ;;  %v13376_v39 = vld [vmem:[#allocation119_spill] sm:$0xff]  ;;  %v13377_v33 = vld [vmem:[#allocation118_spill] sm:$0xff] }
 0x6e1   : > { %v4198_v20 = vmul.f32 0.044715, %v4134_v11  ;;  %v4579_v8 = vmul.f32 %v4515_v53, %v4387_v27  ;;  %5099 = vperm.xlu1 %8407, %v13376_v39  }
 0x6e2   : > { %v4199_v34 = vmul.f32 0.044715, %v4135_v24  ;;  %v3908_v17 = vpop.f32.mrf.mxu0  ;;  %v4634_v58 = vpack.c.bf16 %v4578_v42, %v4576_v23  ;;  %5094 = vperm.xlu0 %8406, %v13377_v33   ;;  %v13378_v23 = vld [vmem:[#allocation120_spill] sm:$0xff]  ;;  %v13383_v33 = vld [vmem:[#allocation123_spill] sm:$0xff] }
 0x6e3   : > { %v11583_v44 = vadd.f32 %v3908_v17, %v11403_v36  ;;  %v3997_v29 = vpop.f32.mrf.mxu1  ;;  %v4635_v45 = vpack.c.bf16 %v4579_v8, %v4577_v35  ;;  %v4262_v47 = vadd.f32 %v4198_v20, %v11560_v3  ;;  %v4388_v20 = vmul.f32 0.5, %v11543_v12 }
 0x6e4   : > { %v11587_v61 = vadd.f32 %v3997_v29, %v11405_v52  ;;  %4817 = vmatmul.bf16.gmra.mxu2 %v4634_v58  ;;  %v4263_v60 = vadd.f32 %v4199_v34, %v11564_v9  ;;  %5104 = vperm.xlu2 %8408, %v13378_v23   ;;  %v4389_v34 = vmul.f32 0.5, %v11547_v5  ;;  %v4391_v58 = vmul.f32 0.5, %v11564_v9 }
 0x6e5   : > { %v4072_v22 = vmul.f32 %v11583_v44, %v11583_v44  ;;  %4906 = vmatmul.bf16.gmra.mxu3 %v4635_v45  ;;  %3947 = vmatmul.bf16.gmra.mxu0 %v7528_v16  ;;  %v4326_v43 = vmul.f32 0.7978846, %v4262_v47  ;;  %v8443_v26 = vpop.eup %8442 }
 0x6e6   : > { %v4073_v40 = vmul.f32 %v11587_v61, %v11587_v61  ;;  %4036 = vmatmul.bf16.gmra.mxu1 %v7528_v16  ;;  %v4327_v56 = vmul.f32 0.7978846, %v4263_v60  ;;  %v8445_v57 = vpop.eup %8444  ;;  %v4516_v21 = vadd.f32 1.0, %v8443_v26  ;;  %v13382_v26 = vld [vmem:[#allocation121_spill] sm:$0xff] }
 0x6e7   : > { %v4136_v2 = vmul.f32 %v4072_v22, %v11583_v44  ;;  %8446 = vtanh.f32 %v4326_v43  ;;  %v4517_v35 = vadd.f32 1.0, %v8445_v57  ;;  %v13379_v43 = vld [vmem:[#allocation97_spill] sm:$0xff] }
 0x6e8   : > { %v4137_v0 = vmul.f32 %v4073_v40, %v11587_v61  ;;  %8448 = vtanh.f32 %v4327_v56  ;;  %v4580_v45 = vmul.f32 %v4516_v21, %v4388_v20  ;;  %v13380_v40 = vld [vmem:[#allocation101_spill] sm:$0xff] }
 0x6e9   : > { %v4200_v28 = vmul.f32 0.044715, %v4136_v2  ;;  %v4581_v50 = vmul.f32 %v4517_v35, %v4389_v34  ;;  %v7532_v3 = vor.u32 %v13380_v40, %v13379_v43 }
 0x6ea   : > { %v4201_v19 = vmul.f32 0.044715, %v4137_v0  ;;  %v3910_v32 = vpop.f32.mrf.mxu0  ;;  %v13381_v0 = vld [vmem:[#allocation122_spill] sm:$0xff]  ;;  %5109 = vperm.xlu0 %8406, %v13382_v26  }
 0x6eb   : > { %v11600_v7 = vadd.f32 %v3910_v32, %v11403_v36  ;;  %v3999_v11 = vpop.f32.mrf.mxu1  ;;  %v4264_v27 = vadd.f32 %v4200_v28, %v11583_v44  ;;  %5114 = vperm.xlu1 %8407, %v13381_v0  }
 0x6ec   : > { %v11604_v53 = vadd.f32 %v3999_v11, %v11405_v52  ;;  %v4265_v24 = vadd.f32 %v4201_v19, %v11587_v61  ;;  %5119 = vperm.xlu2 %8408, %v13383_v33  }
 0x6ed   : > { %v8447_v42 = vpop.eup %8446  ;;  %v4074_v6 = vmul.f32 %v11600_v7, %v11600_v7  ;;  %v4328_v15 = vmul.f32 0.7978846, %v4264_v27  ;;  %v4394_v43 = vmul.f32 0.5, %v11600_v7 }
 0x6ee   : > { %v8449_v8 = vpop.eup %8448  ;;  %v4075_v31 = vmul.f32 %v11604_v53, %v11604_v53  ;;  %v4518_v16 = vadd.f32 1.0, %v8447_v42  ;;  %v4329_v47 = vmul.f32 0.7978846, %v4265_v24 }
 0x6ef   : > { %v4138_v17 = vmul.f32 %v4074_v6, %v11600_v7  ;;  %v4519_v48 = vadd.f32 1.0, %v8449_v8  ;;  %8450 = vtanh.f32 %v4328_v15 }
 0x6f0   : > { %v4139_v29 = vmul.f32 %v4075_v31, %v11604_v53  ;;  %v4582_v12 = vmul.f32 %v4518_v16, %v4390_v4  ;;  %8452 = vtanh.f32 %v4329_v47  ;;  %v13384_v4 = vld [vmem:[#allocation125_spill] sm:$0xff]  ;;  %v13385_v16 = vld [vmem:[#allocation124_spill] sm:$0xff]  ;;  %v4392_v47 = vmul.f32 0.5, %v11583_v44 }
 0x6f1   : > { %v4202_v60 = vmul.f32 0.044715, %v4138_v17  ;;  %v4583_v22 = vmul.f32 %v4519_v48, %v4391_v58 }
 0x6f2   : > { %v4203_v56 = vmul.f32 0.044715, %v4139_v29  ;;  %v3913_v2 = vpop.f32.mrf.mxu0  ;;  %v4636_v5 = vpack.c.bf16 %v4582_v12, %v4580_v45  ;;  %5124 = vperm.xlu0 %8406, %v13385_v16  }
 0x6f3   : > { %v11623_v9 = vadd.f32 %v3913_v2, %v11403_v36  ;;  %v4002_v28 = vpop.f32.mrf.mxu1  ;;  %v4637_v57 = vpack.c.bf16 %v4583_v22, %v4581_v50  ;;  %v4266_v19 = vadd.f32 %v4202_v60, %v11600_v7  ;;  %5129 = vperm.xlu1 %8407, %v13384_v4   ;;  %v4395_v2 = vmul.f32 0.5, %v11604_v53 }
 0x6f4   : > { %v11627_v32 = vadd.f32 %v4002_v28, %v11405_v52  ;;  %4822 = vmatmul.bf16.gmra.mxu2 %v4636_v5  ;;  %v4267_v39 = vadd.f32 %v4203_v56, %v11604_v53 }
 0x6f5   : > { %v4076_v11 = vmul.f32 %v11623_v9, %v11623_v9  ;;  %4911 = vmatmul.bf16.gmra.mxu3 %v4637_v57  ;;  %3952 = vmatmul.bf16.gmra.mxu0 %v7532_v3  ;;  %v4330_v27 = vmul.f32 0.7978846, %v4266_v19  ;;  %v8451_v6 = vpop.eup %8450 }
 0x6f6   : > { %v4077_v21 = vmul.f32 %v11627_v32, %v11627_v32  ;;  %4041 = vmatmul.bf16.gmra.mxu1 %v7532_v3  ;;  %v4331_v24 = vmul.f32 0.7978846, %v4267_v39  ;;  %v8453_v35 = vpop.eup %8452  ;;  %v4520_v15 = vadd.f32 1.0, %v8451_v6  ;;  %v4393_v3 = vmul.f32 0.5, %v11587_v61 }
 0x6f7   : > { %v4140_v23 = vmul.f32 %v4076_v11, %v11623_v9  ;;  %8454 = vtanh.f32 %v4330_v27  ;;  %v4521_v60 = vadd.f32 1.0, %v8453_v35  ;;  %v13386_v11 = vld [vmem:[#allocation105_spill] sm:$0xff] }
 0x6f8   : > { %v4141_v42 = vmul.f32 %v4077_v21, %v11627_v32  ;;  %8456 = vtanh.f32 %v4331_v24  ;;  %v4584_v28 = vmul.f32 %v4520_v15, %v4392_v47  ;;  %v13387_v27 = vld [vmem:[#allocation109_spill] sm:$0xff] }
 0x6f9   : > { %v4204_v20 = vmul.f32 0.044715, %v4140_v23  ;;  %v4585_v39 = vmul.f32 %v4521_v60, %v4393_v3  ;;  %v7536_v7 = vor.u32 %v13387_v27, %v13386_v11 }
 0x6fa   : > { %v4205_v8 = vmul.f32 0.044715, %v4141_v42  ;;  %v3915_v31 = vpop.f32.mrf.mxu0 }
 0x6fb   : > { %v11640_v34 = vadd.f32 %v3915_v31, %v11403_v36  ;;  %v4004_v17 = vpop.f32.mrf.mxu1  ;;  %v4268_v58 = vadd.f32 %v4204_v20, %v11623_v9 }
 0x6fc   : > { %v11644_v48 = vadd.f32 %v4004_v17, %v11405_v52  ;;  %v4269_v29 = vadd.f32 %v4205_v8, %v11627_v32 }
 0x6fd   : > { %v8455_v45 = vpop.eup %8454  ;;  %v4078_v12 = vmul.f32 %v11640_v34, %v11640_v34  ;;  %v4332_v0 = vmul.f32 0.7978846, %v4268_v58 }
 0x6fe   : > { %v8457_v50 = vpop.eup %8456  ;;  %v4079_v22 = vmul.f32 %v11644_v48, %v11644_v48  ;;  %v4522_v40 = vadd.f32 1.0, %v8455_v45  ;;  %v4333_v57 = vmul.f32 0.7978846, %v4269_v29 }
 0x6ff   : > { %v4142_v56 = vmul.f32 %v4078_v12, %v11640_v34  ;;  %v4523_v5 = vadd.f32 1.0, %v8457_v50  ;;  %8458 = vtanh.f32 %v4332_v0 }
 0x700   : > { %v4143_v26 = vmul.f32 %v4079_v22, %v11644_v48  ;;  %v4586_v44 = vmul.f32 %v4522_v40, %v4394_v43  ;;  %8460 = vtanh.f32 %v4333_v57 }
 0x701   : > { %v4206_v19 = vmul.f32 0.044715, %v4142_v56  ;;  %v4587_v33 = vmul.f32 %v4523_v5, %v4395_v2  ;;  %v4396_v5 = vmul.f32 0.5, %v11623_v9 }
 0x702   : > { %v4207_v21 = vmul.f32 0.044715, %v4143_v26  ;;  %v3918_v24 = vpop.f32.mrf.mxu0  ;;  %v4638_v61 = vpack.c.bf16 %v4586_v44, %v4584_v28  ;;  %v4398_v44 = vmul.f32 0.5, %v11640_v34 }
 0x703   : > { %v11660_v23 = vadd.f32 %v3918_v24, %v11403_v36  ;;  %v4007_v53 = vpop.f32.mrf.mxu1  ;;  %v4639_v42 = vpack.c.bf16 %v4587_v33, %v4585_v39  ;;  %v4270_v6 = vadd.f32 %v4206_v19, %v11640_v34  ;;  %v4397_v19 = vmul.f32 0.5, %v11627_v32 }
 0x704   : > { %v11664_v20 = vadd.f32 %v4007_v53, %v11405_v52  ;;  %4827 = vmatmul.bf16.gmra.mxu2 %v4638_v61  ;;  %v4271_v35 = vadd.f32 %v4207_v21, %v11644_v48  ;;  %v4399_v33 = vmul.f32 0.5, %v11644_v48 }
 0x705   : > { %v4080_v8 = vmul.f32 %v11660_v23, %v11660_v23  ;;  %4916 = vmatmul.bf16.gmra.mxu3 %v4639_v42  ;;  %3957 = vmatmul.bf16.gmra.mxu0 %v7536_v7  ;;  %v4334_v31 = vmul.f32 0.7978846, %v4270_v6  ;;  %v8459_v15 = vpop.eup %8458 }
 0x706   : > { %v4081_v4 = vmul.f32 %v11664_v20, %v11664_v20  ;;  %4046 = vmatmul.bf16.gmra.mxu1 %v7536_v7  ;;  %v4335_v16 = vmul.f32 0.7978846, %v4271_v35  ;;  %v8461_v45 = vpop.eup %8460  ;;  %v4524_v40 = vadd.f32 1.0, %v8459_v15 }
 0x707   : > { %v4144_v17 = vmul.f32 %v4080_v8, %v11660_v23  ;;  %8462 = vtanh.f32 %v4334_v31  ;;  %v4525_v0 = vadd.f32 1.0, %v8461_v45 }
 0x708   : > { %v4145_v58 = vmul.f32 %v4081_v4, %v11664_v20  ;;  %8464 = vtanh.f32 %v4335_v16  ;;  %v4588_v21 = vmul.f32 %v4524_v40, %v4396_v5 }
 0x709   : > { %v4208_v29 = vmul.f32 0.044715, %v4144_v17  ;;  %v4589_v53 = vmul.f32 %v4525_v0, %v4397_v19  ;;  %v4400_v19 = vmul.f32 0.5, %v11660_v23 }
 0x70a   : > { %v4209_v12 = vmul.f32 0.044715, %v4145_v58  ;;  %v3920_v47 = vpop.f32.mrf.mxu0 }
 0x70b   : > { %v11674_v60 = vadd.f32 %v3920_v47, %v11403_v36  ;;  %v4009_v50 = vpop.f32.mrf.mxu1  ;;  %v4272_v22 = vadd.f32 %v4208_v29, %v11660_v23 }
 0x70c   : > { %v11678_v43 = vadd.f32 %v4009_v50, %v11405_v52  ;;  %v4273_v3 = vadd.f32 %v4209_v12, %v11664_v20 }
 0x70d   : > { %v8463_v56 = vpop.eup %8462  ;;  %v4082_v2 = vmul.f32 %v11674_v60, %v11674_v60  ;;  %v4336_v27 = vmul.f32 0.7978846, %v4272_v22 }
 0x70e   : > { %v8465_v26 = vpop.eup %8464  ;;  %v4083_v28 = vmul.f32 %v11678_v43, %v11678_v43  ;;  %v4526_v57 = vadd.f32 1.0, %v8463_v56  ;;  %v4337_v24 = vmul.f32 0.7978846, %v4273_v3 }
 0x70f   : > { %v4146_v39 = vmul.f32 %v4082_v2, %v11674_v60  ;;  %v4527_v11 = vadd.f32 1.0, %v8465_v26  ;;  %8466 = vtanh.f32 %v4336_v27  ;;  %v4402_v27 = vmul.f32 0.5, %v11674_v60 }
 0x710   : > { %v4147_v7 = vmul.f32 %v4083_v28, %v11678_v43  ;;  %v4590_v9 = vmul.f32 %v4526_v57, %v4398_v44  ;;  %8468 = vtanh.f32 %v4337_v24  ;;  %v4403_v24 = vmul.f32 0.5, %v11678_v43 }
 0x711   : > { %v4210_v61 = vmul.f32 0.044715, %v4146_v39  ;;  %v4591_v42 = vmul.f32 %v4527_v11, %v4399_v33 }
 0x712   : > { %v4211_v6 = vmul.f32 0.044715, %v4147_v7  ;;  %v3923_v35 = vpop.f32.mrf.mxu0  ;;  %v4640_v34 = vpack.c.bf16 %v4590_v9, %v4588_v21  ;;  %v4401_v21 = vmul.f32 0.5, %v11664_v20 }
 0x713   : > { %v11692_v8 = vadd.f32 %v3923_v35, %v11403_v36  ;;  %v4012_v32 = vpop.f32.mrf.mxu1  ;;  %v4641_v31 = vpack.c.bf16 %v4591_v42, %v4589_v53  ;;  %v4274_v48 = vadd.f32 %v4210_v61, %v11674_v60 }
 0x714   : > { %v11696_v4 = vadd.f32 %v4012_v32, %v11405_v52  ;;  %4832 = vmatmul.bf16.gmra.mxu2 %v4640_v34  ;;  %v4275_v16 = vadd.f32 %v4211_v6, %v11678_v43 }
 0x715   : > { %v4084_v17 = vmul.f32 %v11692_v8, %v11692_v8  ;;  %4921 = vmatmul.bf16.gmra.mxu3 %v4641_v31  ;;  %v4338_v58 = vmul.f32 0.7978846, %v4274_v48  ;;  %v8467_v47 = vpop.eup %8466 }
 0x716   : > { %v4085_v15 = vmul.f32 %v11696_v4, %v11696_v4  ;;  %v4339_v29 = vmul.f32 0.7978846, %v4275_v16  ;;  %v8469_v22 = vpop.eup %8468  ;;  %v4528_v26 = vadd.f32 1.0, %v8467_v47 }
 0x717   : > { %v4148_v45 = vmul.f32 %v4084_v17, %v11692_v8  ;;  %8470 = vtanh.f32 %v4338_v58  ;;  %v4529_v39 = vadd.f32 1.0, %v8469_v22 }
 0x718   : > { %v4149_v12 = vmul.f32 %v4085_v15, %v11696_v4  ;;  %8472 = vtanh.f32 %v4339_v29  ;;  %v4592_v6 = vmul.f32 %v4528_v26, %v4400_v19 }
 0x719   : > { %v4212_v50 = vmul.f32 0.044715, %v4148_v45  ;;  %v4593_v32 = vmul.f32 %v4529_v39, %v4401_v21  ;;  %v4404_v21 = vmul.f32 0.5, %v11692_v8 }
 0x71a   : > { %v4213_v40 = vmul.f32 0.044715, %v4149_v12  ;;  %v3925_v3 = vpop.f32.mrf.mxu0 }
 0x71b   : > { %v11706_v56 = vadd.f32 %v3925_v3, %v11403_v36  ;;  %v4014_v2 = vpop.f32.mrf.mxu1  ;;  %v4276_v5 = vadd.f32 %v4212_v50, %v11692_v8 }
 0x71c   : > { %v11710_v0 = vadd.f32 %v4014_v2, %v11405_v52  ;;  %v4277_v28 = vadd.f32 %v4213_v40, %v11696_v4 }
 0x71d   : > { %v8471_v44 = vpop.eup %8470  ;;  %v4086_v57 = vmul.f32 %v11706_v56, %v11706_v56  ;;  %v4340_v53 = vmul.f32 0.7978846, %v4276_v5 }
 0x71e   : > { %v8473_v33 = vpop.eup %8472  ;;  %v4087_v11 = vmul.f32 %v11710_v0, %v11710_v0  ;;  %v4530_v7 = vadd.f32 1.0, %v8471_v44  ;;  %v4341_v35 = vmul.f32 0.7978846, %v4277_v28 }
 0x71f   : > { %v4150_v9 = vmul.f32 %v4086_v57, %v11706_v56  ;;  %v4531_v61 = vadd.f32 1.0, %v8473_v33  ;;  %8474 = vtanh.f32 %v4340_v53  ;;  %v4406_v53 = vmul.f32 0.5, %v11706_v56 }
 0x720   : > { %v4151_v42 = vmul.f32 %v4087_v11, %v11710_v0  ;;  %v4594_v23 = vmul.f32 %v4530_v7, %v4402_v27  ;;  %8476 = vtanh.f32 %v4341_v35  ;;  %v4405_v35 = vmul.f32 0.5, %v11696_v4 }
 0x721   : > { %v4214_v34 = vmul.f32 0.044715, %v4150_v9  ;;  %v4595_v31 = vmul.f32 %v4531_v61, %v4403_v24 }
 0x722   : > { %v4215_v48 = vmul.f32 0.044715, %v4151_v42  ;;  %v3928_v16 = vpop.f32.mrf.mxu0  ;;  %v4642_v60 = vpack.c.bf16 %v4594_v23, %v4592_v6 }
 0x723   : > { %v11724_v17 = vadd.f32 %v3928_v16, %v11403_v36  ;;  %v4017_v20 = vpop.f32.mrf.mxu1  ;;  %v4643_v58 = vpack.c.bf16 %v4595_v31, %v4593_v32  ;;  %v4278_v43 = vadd.f32 %v4214_v34, %v11706_v56  ;;  %v4407_v34 = vmul.f32 0.5, %v11710_v0 }
 0x724   : > { %v11728_v15 = vadd.f32 %v4017_v20, %v11405_v52  ;;  %4837 = vmatmul.bf16.gmra.mxu2 %v4642_v60  ;;  %v4279_v29 = vadd.f32 %v4215_v48, %v11710_v0 }
 0x725   : > { %v4088_v45 = vmul.f32 %v11724_v17, %v11724_v17  ;;  %4926 = vmatmul.bf16.gmra.mxu3 %v4643_v58  ;;  %v4342_v12 = vmul.f32 0.7978846, %v4278_v43  ;;  %v8475_v3 = vpop.eup %8474 }
 0x726   : > { %v4089_v47 = vmul.f32 %v11728_v15, %v11728_v15  ;;  %v4343_v50 = vmul.f32 0.7978846, %v4279_v29  ;;  %v8477_v5 = vpop.eup %8476  ;;  %v4532_v33 = vadd.f32 1.0, %v8475_v3 }
 0x727   : > { %v4152_v22 = vmul.f32 %v4088_v45, %v11724_v17  ;;  %8478 = vtanh.f32 %v4342_v12  ;;  %v4533_v9 = vadd.f32 1.0, %v8477_v5 }
 0x728   : > { %v4153_v40 = vmul.f32 %v4089_v47, %v11728_v15  ;;  %8480 = vtanh.f32 %v4343_v50  ;;  %v4596_v48 = vmul.f32 %v4532_v33, %v4404_v21  ;;  %v11765_v50 = vld [vmem:[%s13158_s6 + $0x2] ss:$0 sm:$0xff] }
 0x729   : > { %v4216_v2 = vmul.f32 0.044715, %v4152_v22  ;;  %v4597_v20 = vmul.f32 %v4533_v9, %v4405_v35 }
 0x72a   : > { %v4217_v26 = vmul.f32 0.044715, %v4153_v40  ;;  %v3930_v28 = vpop.f32.mrf.mxu0 }
 0x72b   : > { %v11738_v44 = vadd.f32 %v3930_v28, %v11403_v36  ;;  %v4019_v57 = vpop.f32.mrf.mxu1  ;;  %v4280_v19 = vadd.f32 %v4216_v2, %v11724_v17 }
 0x72c   : > { %v11742_v39 = vadd.f32 %v4019_v57, %v11405_v52  ;;  %v4281_v11 = vadd.f32 %v4217_v26, %v11728_v15  ;;  %v4975_v57 = vpop.permute.xlu0 %4974 }
 0x72d   : > { %v8479_v27 = vpop.eup %8478  ;;  %v4090_v7 = vmul.f32 %v11738_v44, %v11738_v44  ;;  %v4344_v6 = vmul.f32 0.7978846, %v4280_v19 }
 0x72e   : > { %v8481_v24 = vpop.eup %8480  ;;  %v4091_v61 = vmul.f32 %v11742_v39, %v11742_v39  ;;  %v4534_v42 = vadd.f32 1.0, %v8479_v27  ;;  %v4345_v16 = vmul.f32 0.7978846, %v4281_v11 }
 0x72f   : > { %v4154_v23 = vmul.f32 %v4090_v7, %v11738_v44  ;;  %v4535_v32 = vadd.f32 1.0, %v8481_v24  ;;  %8482 = vtanh.f32 %v4344_v6 }
 0x730   : > { %v4155_v31 = vmul.f32 %v4091_v61, %v11742_v39  ;;  %v4598_v8 = vmul.f32 %v4534_v42, %v4406_v53  ;;  %8484 = vtanh.f32 %v4345_v16  ;;  %v4409_v16 = vmul.f32 0.5, %v11728_v15 }
 0x731   : > { %v4218_v60 = vmul.f32 0.044715, %v4154_v23  ;;  %v4599_v58 = vmul.f32 %v4535_v32, %v4407_v34 }
 0x732   : > { %v4219_v43 = vmul.f32 0.044715, %v4155_v31  ;;  %v3933_v29 = vpop.f32.mrf.mxu0  ;;  %v4644_v56 = vpack.c.bf16 %v4598_v8, %v4596_v48  ;;  %v4408_v8 = vmul.f32 0.5, %v11724_v17 }
 0x733   : > { %v11756_v45 = vadd.f32 %v3933_v29, %v11403_v36  ;;  %v4022_v12 = vpop.f32.mrf.mxu1  ;;  %v4645_v4 = vpack.c.bf16 %v4599_v58, %v4597_v20  ;;  %v4282_v0 = vadd.f32 %v4218_v60, %v11738_v44 }
 0x734   : > { %v11760_v47 = vadd.f32 %v4022_v12, %v11405_v52  ;;  %4842 = vmatmul.bf16.gmra.mxu2 %v4644_v56  ;;  %v4283_v22 = vadd.f32 %v4219_v43, %v11742_v39  ;;  %v4410_v43 = vmul.f32 0.5, %v11738_v44 }
 0x735   : > { %v4092_v40 = vmul.f32 %v11756_v45, %v11756_v45  ;;  %4931 = vmatmul.bf16.gmra.mxu3 %v4645_v4  ;;  %v4346_v3 = vmul.f32 0.7978846, %v4282_v0  ;;  %v8483_v19 = vpop.eup %8482 }
 0x736   : > { %v4093_v2 = vmul.f32 %v11760_v47, %v11760_v47  ;;  %v4347_v5 = vmul.f32 0.7978846, %v4283_v22  ;;  %v8485_v21 = vpop.eup %8484  ;;  %v4536_v6 = vadd.f32 1.0, %v8483_v19  ;;  %v4411_v22 = vmul.f32 0.5, %v11742_v39 }
 0x737   : > { %v4156_v26 = vmul.f32 %v4092_v40, %v11756_v45  ;;  %v4803_v28 = vpop.f32.mrf.mxu2  ;;  %8486 = vtanh.f32 %v4346_v3  ;;  %v4537_v60 = vadd.f32 1.0, %v8485_v21 }
 0x738   : > { %v4157_v33 = vmul.f32 %v4093_v2, %v11760_v47  ;;  %v4804_v11 = vadd.f32 %v11765_v50, %v4803_v28  ;;  %v4892_v27 = vpop.f32.mrf.mxu3  ;;  %8488 = vtanh.f32 %v4347_v5  ;;  %v4600_v0 = vmul.f32 %v4536_v6, %v4408_v8  ;;  %v4980_v28 = vpop.permute.xlu0 %4979 }
 0x739   : > { %v4220_v7 = vmul.f32 0.044715, %v4156_v26 }
 0x73a   : > { %v4221_v9 = vmul.f32 0.044715, %v4157_v33  ;;  %v4893_v24 = vadd.f32 %v4892_v27, %v4804_v11  ;;  %v3935_v61 = vpop.f32.mrf.mxu0 }
 0x73b   : > { %v11776_v53 = vadd.f32 %v3935_v61, %v11403_v36  ;;  %v4024_v42 = vpop.f32.mrf.mxu1  ;;  %v4284_v23 = vadd.f32 %v4220_v7, %v11756_v45 }
 0x73c   : > { %v11780_v35 = vadd.f32 %v4024_v42, %v11405_v52  ;;  %v11782_v34 = vmul.f32 %v4975_v57, %v4893_v24  ;;  %v4285_v32 = vadd.f32 %v4221_v9, %v11760_v47  ;;  %v4601_v57 = vmul.f32 %v4537_v60, %v4409_v16  ;;  %v4985_v16 = vpop.permute.xlu1 %4984 }
 0x73d   : > { %v8487_v31 = vpop.eup %8486  ;;  %v4094_v48 = vmul.f32 %v11776_v53, %v11776_v53  ;;  %v4348_v56 = vmul.f32 0.7978846, %v4284_v23 }
 0x73e   : > { %v8489_v20 = vpop.eup %8488  ;;  %v4095_v58 = vmul.f32 %v11780_v35, %v11780_v35  ;;  %v4538_v29 = vadd.f32 1.0, %v8487_v31  ;;  %v4349_v5 = vmul.f32 0.7978846, %v4285_v32 }
 0x73f   : > { %v4158_v12 = vmul.f32 %v4094_v48, %v11776_v53  ;;  %v4805_v4 = vpop.f32.mrf.mxu2  ;;  %v4539_v40 = vadd.f32 1.0, %v8489_v20  ;;  %8490 = vtanh.f32 %v4348_v56 }
 0x740   : > { %v4159_v17 = vmul.f32 %v4095_v58, %v11780_v35  ;;  %v4806_v15 = vadd.f32 %v11765_v50, %v4805_v4  ;;  %v4894_v3 = vpop.f32.mrf.mxu3  ;;  %v4602_v2 = vmul.f32 %v4538_v29, %v4410_v43  ;;  %8492 = vtanh.f32 %v4349_v5 }
 0x741   : > { %v4222_v26 = vmul.f32 0.044715, %v4158_v12  ;;  %v4603_v44 = vmul.f32 %v4539_v40, %v4411_v22 }
 0x742   : > { %v4223_v19 = vmul.f32 0.044715, %v4159_v17  ;;  %v4895_v33 = vadd.f32 %v4894_v3, %v4806_v15  ;;  %v3938_v11 = vpop.f32.mrf.mxu0  ;;  %v4646_v27 = vpack.c.bf16 %v4602_v2, %v4600_v0 }
 0x743   : > { %v11797_v7 = vadd.f32 %v3938_v11, %v11403_v36  ;;  %v4027_v39 = vpop.f32.mrf.mxu1  ;;  %v4647_v21 = vpack.c.bf16 %v4603_v44, %v4601_v57  ;;  %v4286_v9 = vadd.f32 %v4222_v26, %v11776_v53  ;;  %v4412_v57 = vmul.f32 0.5, %v11756_v45 }
 0x744   : > { %v11801_v24 = vadd.f32 %v4027_v39, %v11405_v52  ;;  %v11803_v61 = vmul.f32 %v4980_v28, %v4895_v33  ;;  %4847 = vmatmul.bf16.gmra.mxu2 %v4646_v27  ;;  %v4287_v42 = vadd.f32 %v4223_v19, %v11780_v35  ;;  %v4413_v44 = vmul.f32 0.5, %v11760_v47 }
 0x745   : > { %v4096_v6 = vmul.f32 %v11797_v7, %v11797_v7  ;;  %4936 = vmatmul.bf16.gmra.mxu3 %v4647_v21  ;;  %v4350_v23 = vmul.f32 0.7978846, %v4286_v9  ;;  %v8491_v60 = vpop.eup %8490  ;;  %v4414_v27 = vmul.f32 0.5, %v11776_v53 }
 0x746   : > { %v4097_v32 = vmul.f32 %v11801_v24, %v11801_v24  ;;  %v4351_v31 = vmul.f32 0.7978846, %v4287_v42  ;;  %v8493_v56 = vpop.eup %8492  ;;  %v4540_v17 = vadd.f32 1.0, %v8491_v60  ;;  %v4990_v60 = vpop.permute.xlu1 %4989 }
 0x747   : > { %v4160_v48 = vmul.f32 %v4096_v6, %v11797_v7  ;;  %v4808_v8 = vpop.f32.mrf.mxu2  ;;  %8494 = vtanh.f32 %v4350_v23  ;;  %v4541_v19 = vadd.f32 1.0, %v8493_v56  ;;  %v4415_v23 = vmul.f32 0.5, %v11780_v35 }
 0x748   : > { %v4161_v20 = vmul.f32 %v4097_v32, %v11801_v24  ;;  %v4809_v58 = vadd.f32 %v11765_v50, %v4808_v8  ;;  %v4897_v43 = vpop.f32.mrf.mxu3  ;;  %8496 = vtanh.f32 %v4351_v31  ;;  %v4604_v6 = vmul.f32 %v4540_v17, %v4412_v57 }
 0x749   : > { %v4224_v29 = vmul.f32 0.044715, %v4160_v48 }
 0x74a   : > { %v4225_v12 = vmul.f32 0.044715, %v4161_v20  ;;  %v4898_v4 = vadd.f32 %v4897_v43, %v4809_v58  ;;  %v3940_v0 = vpop.f32.mrf.mxu0  ;;  %v4605_v20 = vmul.f32 %v4541_v19, %v4413_v44 }
 0x74b   : > { %v11814_v22 = vadd.f32 %v3940_v0, %v11403_v36  ;;  %v4029_v40 = vpop.f32.mrf.mxu1  ;;  %v4288_v15 = vadd.f32 %v4224_v29, %v11797_v7 }
 0x74c   : > { %v11818_v3 = vadd.f32 %v4029_v40, %v11405_v52  ;;  %v11820_v2 = vmul.f32 %v4985_v16, %v4898_v4  ;;  %v4289_v5 = vadd.f32 %v4225_v12, %v11801_v24 }
 0x74d   : > { %v8495_v26 = vpop.eup %8494  ;;  %v4098_v28 = vmul.f32 %v11814_v22, %v11814_v22  ;;  %v4352_v21 = vmul.f32 0.7978846, %v4288_v15 }
 0x74e   : > { %v8497_v33 = vpop.eup %8496  ;;  %v4099_v11 = vmul.f32 %v11818_v3, %v11818_v3  ;;  %v4542_v39 = vadd.f32 1.0, %v8495_v26  ;;  %v4353_v8 = vmul.f32 0.7978846, %v4289_v5 }
 0x74f   : > { %v4162_v9 = vmul.f32 %v4098_v28, %v11814_v22  ;;  %v4810_v42 = vpop.f32.mrf.mxu2  ;;  %v4543_v32 = vadd.f32 1.0, %v8497_v33  ;;  %8498 = vtanh.f32 %v4352_v21  ;;  %v4995_v33 = vpop.permute.xlu2 %4994 }
 0x750   : > { %v4163_v45 = vmul.f32 %v4099_v11, %v11818_v3  ;;  %v4811_v47 = vadd.f32 %v11765_v50, %v4810_v42  ;;  %v4899_v31 = vpop.f32.mrf.mxu3  ;;  %v4606_v48 = vmul.f32 %v4542_v39, %v4414_v27  ;;  %8500 = vtanh.f32 %v4353_v8 }
 0x751   : > { %v4226_v16 = vmul.f32 0.044715, %v4162_v9  ;;  %v4607_v53 = vmul.f32 %v4543_v32, %v4415_v23 }
 0x752   : > { %v4227_v58 = vmul.f32 0.044715, %v4163_v45  ;;  %v4900_v43 = vadd.f32 %v4899_v31, %v4811_v47  ;;  %v3943_v29 = vpop.f32.mrf.mxu0  ;;  %v4648_v56 = vpack.c.bf16 %v4606_v48, %v4604_v6 }
 0x753   : > { %v11835_v12 = vadd.f32 %v3943_v29, %v11403_v36  ;;  %v4032_v35 = vpop.f32.mrf.mxu1  ;;  %v4649_v4 = vpack.c.bf16 %v4607_v53, %v4605_v20  ;;  %v4290_v0 = vadd.f32 %v4226_v16, %v11814_v22 }
 0x754   : > { %v11839_v40 = vadd.f32 %v4032_v35, %v11405_v52  ;;  %v11841_v17 = vmul.f32 %v4990_v60, %v4900_v43  ;;  %4852 = vmatmul.bf16.gmra.mxu2 %v4648_v56  ;;  %v4291_v15 = vadd.f32 %v4227_v58, %v11818_v3  ;;  %v4416_v58 = vmul.f32 0.5, %v11797_v7 }
 0x755   : > { %v4100_v5 = vmul.f32 %v11835_v12, %v11835_v12  ;;  %4941 = vmatmul.bf16.gmra.mxu3 %v4649_v4  ;;  %v4354_v26 = vmul.f32 0.7978846, %v4290_v0  ;;  %v8499_v11 = vpop.eup %8498  ;;  %v4417_v43 = vmul.f32 0.5, %v11801_v24  ;;  %v4418_v0 = vmul.f32 0.5, %v11814_v22 }
 0x756   : > { %v4101_v28 = vmul.f32 %v11839_v40, %v11839_v40  ;;  %v4355_v57 = vmul.f32 0.7978846, %v4291_v15  ;;  %v8501_v42 = vpop.eup %8500  ;;  %v4544_v48 = vadd.f32 1.0, %v8499_v11 }
 0x757   : > { %v4164_v44 = vmul.f32 %v4100_v5, %v11835_v12  ;;  %v4813_v19 = vpop.f32.mrf.mxu2  ;;  %8502 = vtanh.f32 %v4354_v26  ;;  %v4545_v29 = vadd.f32 1.0, %v8501_v42 }
 0x758   : > { %v4165_v27 = vmul.f32 %v4101_v28, %v11839_v40  ;;  %v4814_v39 = vadd.f32 %v11765_v50, %v4813_v19  ;;  %v4902_v21 = vpop.f32.mrf.mxu3  ;;  %8504 = vtanh.f32 %v4355_v57  ;;  %v4608_v28 = vmul.f32 %v4544_v48, %v4416_v58 }
 0x759   : > { %v4228_v9 = vmul.f32 0.044715, %v4164_v44  ;;  %v4419_v57 = vmul.f32 0.5, %v11818_v3 }
 0x75a   : > { %v4229_v6 = vmul.f32 0.044715, %v4165_v27  ;;  %v4903_v23 = vadd.f32 %v4902_v21, %v4814_v39  ;;  %v3945_v32 = vpop.f32.mrf.mxu0  ;;  %v5000_v39 = vpop.permute.xlu2 %4999  ;;  %v4609_v21 = vmul.f32 %v4545_v29, %v4417_v43 }
 0x75b   : > { %v4292_v45 = vadd.f32 %v4228_v9, %v11835_v12  ;;  %v11853_v47 = vadd.f32 %v3945_v32, %v11403_v36  ;;  %v4034_v31 = vpop.f32.mrf.mxu1 }
 0x75c   : > { %v4293_v8 = vadd.f32 %v4229_v6, %v11839_v40  ;;  %v11857_v16 = vadd.f32 %v4034_v31, %v11405_v52  ;;  %v11859_v60 = vmul.f32 %v4995_v33, %v4903_v23 }
 0x75d   : > { %v8503_v20 = vpop.eup %8502  ;;  %v4102_v53 = vmul.f32 %v11853_v47, %v11853_v47  ;;  %v4356_v35 = vmul.f32 0.7978846, %v4292_v45 }
 0x75e   : > { %v8505_v56 = vpop.eup %8504  ;;  %v4103_v4 = vmul.f32 %v11857_v16, %v11857_v16  ;;  %v4546_v15 = vadd.f32 1.0, %v8503_v20  ;;  %v4357_v19 = vmul.f32 0.7978846, %v4293_v8 }
 0x75f   : > { %v4166_v5 = vmul.f32 %v4102_v53, %v11853_v47  ;;  %v4815_v26 = vpop.f32.mrf.mxu2  ;;  %v4547_v44 = vadd.f32 1.0, %v8505_v56  ;;  %8506 = vtanh.f32 %v4356_v35 }
 0x760   : > { %v4167_v7 = vmul.f32 %v4103_v4, %v11857_v16  ;;  %v4816_v24 = vadd.f32 %v11765_v50, %v4815_v26  ;;  %v4904_v33 = vpop.f32.mrf.mxu3  ;;  %v4610_v11 = vmul.f32 %v4546_v15, %v4418_v0  ;;  %8508 = vtanh.f32 %v4357_v19 }
 0x761   : > { %v4230_v27 = vmul.f32 0.044715, %v4166_v5  ;;  %v4611_v9 = vmul.f32 %v4547_v44, %v4419_v57 }
 0x762   : > { %v4231_v22 = vmul.f32 0.044715, %v4167_v7  ;;  %v4905_v42 = vadd.f32 %v4904_v33, %v4816_v24  ;;  %v3948_v6 = vpop.f32.mrf.mxu0  ;;  %v4650_v23 = vpack.c.bf16 %v4610_v11, %v4608_v28  ;;  %v5005_v28 = vpop.permute.xlu0 %5004 }
 0x763   : > { %v4294_v32 = vadd.f32 %v4230_v27, %v11853_v47  ;;  %v11874_v3 = vadd.f32 %v3948_v6, %v11403_v36  ;;  %v4037_v45 = vpop.f32.mrf.mxu1  ;;  %v4651_v31 = vpack.c.bf16 %v4611_v9, %v4609_v21  ;;  %v4420_v6 = vmul.f32 0.5, %v11835_v12 }
 0x764   : > { %v4295_v48 = vadd.f32 %v4231_v22, %v11857_v16  ;;  %v11878_v8 = vadd.f32 %v4037_v45, %v11405_v52  ;;  %v11880_v20 = vmul.f32 %v5000_v39, %v4905_v42  ;;  %4857 = vmatmul.bf16.gmra.mxu2 %v4650_v23  ;;  %v4421_v23 = vmul.f32 0.5, %v11839_v40 }
 0x765   : > { %v4358_v53 = vmul.f32 0.7978846, %v4294_v32  ;;  %v4104_v58 = vmul.f32 %v11874_v3, %v11874_v3  ;;  %4946 = vmatmul.bf16.gmra.mxu3 %v4651_v31  ;;  %v8507_v4 = vpop.eup %8506 }
 0x766   : > { %v4359_v43 = vmul.f32 0.7978846, %v4295_v48  ;;  %v4105_v29 = vmul.f32 %v11878_v8, %v11878_v8  ;;  %v8509_v57 = vpop.eup %8508  ;;  %v4548_v27 = vadd.f32 1.0, %v8507_v4 }
 0x767   : > { %8510 = vtanh.f32 %v4358_v53  ;;  %v4168_v56 = vmul.f32 %v4104_v58, %v11874_v3  ;;  %v4818_v35 = vpop.f32.mrf.mxu2  ;;  %v4549_v32 = vadd.f32 1.0, %v8509_v57  ;;  %v4422_v53 = vmul.f32 0.5, %v11853_v47 }
 0x768   : > { %8512 = vtanh.f32 %v4359_v43  ;;  %v4169_v0 = vmul.f32 %v4105_v29, %v11878_v8  ;;  %v4819_v15 = vadd.f32 %v11765_v50, %v4818_v35  ;;  %v4907_v5 = vpop.f32.mrf.mxu3  ;;  %v4423_v35 = vmul.f32 0.5, %v11857_v16 }
 0x769   : > { %v4232_v26 = vmul.f32 0.044715, %v4168_v56  ;;  %v4612_v56 = vmul.f32 %v4548_v27, %v4420_v6  ;;  %v4613_v57 = vmul.f32 %v4549_v32, %v4421_v23 }
 0x76a   : > { %v4233_v44 = vmul.f32 0.044715, %v4169_v0  ;;  %v4908_v19 = vadd.f32 %v4907_v5, %v4819_v15  ;;  %v3950_v7 = vpop.f32.mrf.mxu0 }
 0x76b   : > { %v4296_v24 = vadd.f32 %v4232_v26, %v11874_v3  ;;  %v11891_v33 = vadd.f32 %v3950_v7, %v11403_v36  ;;  %v4039_v11 = vpop.f32.mrf.mxu1 }
 0x76c   : > { %v4297_v39 = vadd.f32 %v4233_v44, %v11878_v8  ;;  %v11895_v21 = vadd.f32 %v4039_v11, %v11405_v52  ;;  %v11897_v9 = vmul.f32 %v5005_v28, %v4908_v19  ;;  %v5010_v28 = vpop.permute.xlu1 %5009 }
 0x76d   : > { %v8511_v22 = vpop.eup %8510  ;;  %v4106_v42 = vmul.f32 %v11891_v33, %v11891_v33  ;;  %v4360_v31 = vmul.f32 0.7978846, %v4296_v24 }
 0x76e   : > { %v8513_v45 = vpop.eup %8512  ;;  %v4107_v48 = vmul.f32 %v11895_v21, %v11895_v21  ;;  %v4550_v58 = vadd.f32 1.0, %v8511_v22  ;;  %v4361_v0 = vmul.f32 0.7978846, %v4297_v39 }
 0x76f   : > { %v4170_v43 = vmul.f32 %v4106_v42, %v11891_v33  ;;  %v4820_v29 = vpop.f32.mrf.mxu2  ;;  %v4551_v4 = vadd.f32 1.0, %v8513_v45  ;;  %8514 = vtanh.f32 %v4360_v31 }
 0x770   : > { %v4171_v12 = vmul.f32 %v4107_v48, %v11895_v21  ;;  %v4821_v40 = vadd.f32 %v11765_v50, %v4820_v29  ;;  %v4909_v15 = vpop.f32.mrf.mxu3  ;;  %v4614_v5 = vmul.f32 %v4550_v58, %v4422_v53  ;;  %8516 = vtanh.f32 %v4361_v0 }
 0x771   : > { %v4234_v26 = vmul.f32 0.044715, %v4170_v43  ;;  %v4615_v44 = vmul.f32 %v4551_v4, %v4423_v35  ;;  %v5015_v4 = vpop.permute.xlu2 %5014 }
 0x772   : > { %v4235_v47 = vmul.f32 0.044715, %v4171_v12  ;;  %v4910_v19 = vadd.f32 %v4909_v15, %v4821_v40  ;;  %v3953_v7 = vpop.f32.mrf.mxu0  ;;  %v4652_v24 = vpack.c.bf16 %v4614_v5, %v4612_v56 }
 0x773   : > { %v4298_v11 = vadd.f32 %v4234_v26, %v11891_v33  ;;  %v11912_v16 = vadd.f32 %v3953_v7, %v11403_v36  ;;  %v4042_v27 = vpop.f32.mrf.mxu1  ;;  %v4653_v39 = vpack.c.bf16 %v4615_v44, %v4613_v57 }
 0x774   : > { %v4299_v22 = vadd.f32 %v4235_v47, %v11895_v21  ;;  %v11916_v42 = vadd.f32 %v4042_v27, %v11405_v52  ;;  %v11918_v6 = vmul.f32 %v5010_v28, %v4910_v19  ;;  %4862 = vmatmul.bf16.gmra.mxu2 %v4652_v24  ;;  %v4425_v27 = vmul.f32 0.5, %v11878_v8 }
 0x775   : > { %v4362_v23 = vmul.f32 0.7978846, %v4298_v11  ;;  %v4108_v32 = vmul.f32 %v11912_v16, %v11912_v16  ;;  %4951 = vmatmul.bf16.gmra.mxu3 %v4653_v39  ;;  %v8515_v58 = vpop.eup %8514  ;;  %v4424_v11 = vmul.f32 0.5, %v11874_v3 }
 0x776   : > { %v4363_v45 = vmul.f32 0.7978846, %v4299_v22  ;;  %v4109_v31 = vmul.f32 %v11916_v42, %v11916_v42  ;;  %v8517_v0 = vpop.eup %8516  ;;  %v4552_v57 = vadd.f32 1.0, %v8515_v58 }
 0x777   : > { %8518 = vtanh.f32 %v4362_v23  ;;  %v4172_v48 = vmul.f32 %v4108_v32, %v11912_v16  ;;  %v4823_v53 = vpop.f32.mrf.mxu2  ;;  %v4553_v39 = vadd.f32 1.0, %v8517_v0 }
 0x778   : > { %8520 = vtanh.f32 %v4363_v45  ;;  %v4173_v43 = vmul.f32 %v4109_v31, %v11916_v42  ;;  %v4824_v29 = vadd.f32 %v11765_v50, %v4823_v53  ;;  %v4912_v56 = vpop.f32.mrf.mxu3  ;;  %v4426_v45 = vmul.f32 0.5, %v11891_v33 }
 0x779   : > { %v4236_v35 = vmul.f32 0.044715, %v4172_v48  ;;  %v4616_v58 = vmul.f32 %v4552_v57, %v4424_v11 }
 0x77a   : > { %v4237_v12 = vmul.f32 0.044715, %v4173_v43  ;;  %v4913_v40 = vadd.f32 %v4912_v56, %v4824_v29  ;;  %v3955_v15 = vpop.f32.mrf.mxu0  ;;  %v4427_v43 = vmul.f32 0.5, %v11895_v21 }
 0x77b   : > { %v4300_v5 = vadd.f32 %v4236_v35, %v11912_v16  ;;  %v11929_v26 = vadd.f32 %v3955_v15, %v11403_v36  ;;  %v4044_v28 = vpop.f32.mrf.mxu1 }
 0x77c   : > { %v4301_v44 = vadd.f32 %v4237_v12, %v11916_v42  ;;  %v11933_v47 = vadd.f32 %v4044_v28, %v11405_v52  ;;  %v11935_v19 = vmul.f32 %v5015_v4, %v4913_v40  ;;  %v5020_v12 = vpop.permute.xlu0 %5019  ;;  %v4617_v40 = vmul.f32 %v4553_v39, %v4425_v27 }
 0x77d   : > { %v8519_v7 = vpop.eup %8518  ;;  %v4110_v24 = vmul.f32 %v11929_v26, %v11929_v26  ;;  %v4364_v23 = vmul.f32 0.7978846, %v4300_v5 }
 0x77e   : > { %v8521_v22 = vpop.eup %8520  ;;  %v4111_v32 = vmul.f32 %v11933_v47, %v11933_v47  ;;  %v4554_v31 = vadd.f32 1.0, %v8519_v7  ;;  %v4365_v56 = vmul.f32 0.7978846, %v4301_v44 }
 0x77f   : > { %v4174_v48 = vmul.f32 %v4110_v24, %v11929_v26  ;;  %v4825_v53 = vpop.f32.mrf.mxu2  ;;  %v4555_v29 = vadd.f32 1.0, %v8521_v22  ;;  %8522 = vtanh.f32 %v4364_v23 }
 0x780   : > { %v4175_v3 = vmul.f32 %v4111_v32, %v11933_v47  ;;  %v4826_v8 = vadd.f32 %v11765_v50, %v4825_v53  ;;  %v4914_v35 = vpop.f32.mrf.mxu3  ;;  %v4618_v4 = vmul.f32 %v4554_v31, %v4426_v45  ;;  %8524 = vtanh.f32 %v4365_v56 }
 0x781   : > { %v4238_v0 = vmul.f32 0.044715, %v4174_v48  ;;  %v4619_v15 = vmul.f32 %v4555_v29, %v4427_v43 }
 0x782   : > { %v4239_v33 = vmul.f32 0.044715, %v4175_v3  ;;  %v4915_v5 = vadd.f32 %v4914_v35, %v4826_v8  ;;  %v3958_v28 = vpop.f32.mrf.mxu0  ;;  %v4654_v7 = vpack.c.bf16 %v4618_v4, %v4616_v58  ;;  %v5025_v3 = vpop.permute.xlu1 %5024 }
 0x783   : > { %v4302_v57 = vadd.f32 %v4238_v0, %v11929_v26  ;;  %v11950_v21 = vadd.f32 %v3958_v28, %v11403_v36  ;;  %v4047_v44 = vpop.f32.mrf.mxu1  ;;  %v4655_v24 = vpack.c.bf16 %v4619_v15, %v4617_v40 }
 0x784   : > { %v4303_v11 = vadd.f32 %v4239_v33, %v11933_v47  ;;  %v11954_v22 = vadd.f32 %v4047_v44, %v11405_v52  ;;  %v11956_v27 = vmul.f32 %v5020_v12, %v4915_v5  ;;  %4867 = vmatmul.bf16.gmra.mxu2 %v4654_v7 }
 0x785   : > { %v4366_v39 = vmul.f32 0.7978846, %v4302_v57  ;;  %v4112_v23 = vmul.f32 %v11950_v21, %v11950_v21  ;;  %4956 = vmatmul.bf16.gmra.mxu3 %v4655_v24  ;;  %v8523_v53 = vpop.eup %8522  ;;  %v4428_v24 = vmul.f32 0.5, %v11912_v16 }
 0x786   : > { %v4367_v32 = vmul.f32 0.7978846, %v4303_v11  ;;  %v4113_v45 = vmul.f32 %v11954_v22, %v11954_v22  ;;  %v8525_v8 = vpop.eup %8524  ;;  %v4556_v33 = vadd.f32 1.0, %v8523_v53  ;;  %v4429_v11 = vmul.f32 0.5, %v11916_v42 }
 0x787   : > { %8526 = vtanh.f32 %v4366_v39  ;;  %v4176_v31 = vmul.f32 %v4112_v23, %v11950_v21  ;;  %v4828_v48 = vpop.f32.mrf.mxu2  ;;  %v4557_v39 = vadd.f32 1.0, %v8525_v8  ;;  %v5030_v8 = vpop.permute.xlu2 %5029 }
 0x788   : > { %8528 = vtanh.f32 %v4367_v32  ;;  %v4177_v58 = vmul.f32 %v4113_v45, %v11954_v22  ;;  %v4829_v43 = vadd.f32 %v11765_v50, %v4828_v48  ;;  %v4917_v29 = vpop.f32.mrf.mxu3  ;;  %v4430_v45 = vmul.f32 0.5, %v11929_v26 }
 0x789   : > { %v4240_v56 = vmul.f32 0.044715, %v4176_v31  ;;  %v4431_v31 = vmul.f32 0.5, %v11933_v47 }
 0x78a   : > { %v4241_v35 = vmul.f32 0.044715, %v4177_v58  ;;  %v4918_v4 = vadd.f32 %v4917_v29, %v4829_v43  ;;  %v3960_v0 = vpop.f32.mrf.mxu0 }
 0x78b   : > { %v4304_v12 = vadd.f32 %v4240_v56, %v11950_v21  ;;  %v3961_v40 = vadd.f32 %v3960_v0, %v11403_v36  ;;  %v4049_v15 = vpop.f32.mrf.mxu1 }
 0x78c   : > { %v4305_v5 = vadd.f32 %v4241_v35, %v11954_v22  ;;  %v4050_v28 = vadd.f32 %v4049_v15, %v11405_v52  ;;  %v11969_v7 = vmul.f32 %v5025_v3, %v4918_v4  ;;  %v4620_v52 = vmul.f32 %v4556_v33, %v4428_v24 }
 0x78d   : > { %v8527_v57 = vpop.eup %8526  ;;  %v4114_v44 = vmul.f32 %v3961_v40, %v3961_v40  ;;  %v4368_v48 = vmul.f32 0.7978846, %v4304_v12  ;;  %v4621_v4 = vmul.f32 %v4557_v39, %v4429_v11 }
 0x78e   : > { %v8529_v23 = vpop.eup %8528  ;;  %v4115_v32 = vmul.f32 %v4050_v28, %v4050_v28  ;;  %v4558_v36 = vadd.f32 1.0, %v8527_v57  ;;  %v4369_v29 = vmul.f32 0.7978846, %v4305_v5 }
 0x78f   : > { %v4178_v53 = vmul.f32 %v4114_v44, %v3961_v40  ;;  %v4830_v58 = vpop.f32.mrf.mxu2  ;;  %v4559_v43 = vadd.f32 1.0, %v8529_v23  ;;  %8530 = vtanh.f32 %v4368_v48 }
 0x790   : > { %v4179_v56 = vmul.f32 %v4115_v32, %v4050_v28  ;;  %v4831_v3 = vadd.f32 %v11765_v50, %v4830_v58  ;;  %v4919_v16 = vpop.f32.mrf.mxu3  ;;  %v4622_v35 = vmul.f32 %v4558_v36, %v4430_v45  ;;  %8532 = vtanh.f32 %v4369_v29  ;;  %v5035_v45 = vpop.permute.xlu0 %5034 }
 0x791   : > { %v4242_v42 = vmul.f32 0.044715, %v4178_v53  ;;  %v4623_v0 = vmul.f32 %v4559_v43, %v4431_v31  ;;  %v4432_v29 = vmul.f32 0.5, %v11950_v21 }
 0x792   : > { %v4243_v15 = vmul.f32 0.044715, %v4179_v56  ;;  %v4920_v26 = vadd.f32 %v4919_v16, %v4831_v3  ;;  %v4656_v57 = vpack.c.bf16 %v4622_v35, %v4620_v52  ;;  %v4434_v56 = vmul.f32 0.5, %v3961_v40 }
 0x793   : > { %v4306_v47 = vadd.f32 %v4242_v42, %v3961_v40  ;;  %v4657_v12 = vpack.c.bf16 %v4623_v0, %v4621_v4  ;;  %v4433_v35 = vmul.f32 0.5, %v11954_v22  ;;  %v4435_v42 = vmul.f32 0.5, %v4050_v28 }
 0x794   : > { %v4307_v44 = vadd.f32 %v4243_v15, %v4050_v28  ;;  %v11976_v33 = vmul.f32 %v5030_v8, %v4920_v26  ;;  %4872 = vmatmul.bf16.gmra.mxu2 %v4656_v57  ;;  %v5040_v57 = vpop.permute.xlu1 %5039  ;;  %v5045_v28 = vpop.permute.xlu2 %5044 }
 0x795   : > { %v4370_v5 = vmul.f32 0.7978846, %v4306_v47  ;;  %4961 = vmatmul.bf16.gmra.mxu3 %v4657_v12  ;;  %v8531_v32 = vpop.eup %8530 }
 0x796   : > { %v4371_v24 = vmul.f32 0.7978846, %v4307_v44  ;;  %v8533_v36 = vpop.eup %8532  ;;  %v4560_v53 = vadd.f32 1.0, %v8531_v32 }
 0x797   : > { %8534 = vtanh.f32 %v4370_v5  ;;  %v4833_v23 = vpop.f32.mrf.mxu2  ;;  %v4561_v52 = vadd.f32 1.0, %v8533_v36 }
 0x798   : > { %8536 = vtanh.f32 %v4371_v24  ;;  %v4834_v11 = vadd.f32 %v11765_v50, %v4833_v23  ;;  %v4922_v39 = vpop.f32.mrf.mxu3  ;;  %v4624_v15 = vmul.f32 %v4560_v53, %v4432_v29 }
 0x799   : > { %v4625_v47 = vmul.f32 %v4561_v52, %v4433_v35 }
 0x79a   : > { %v4923_v31 = vadd.f32 %v4922_v39, %v4834_v11 }
 0x79c   : > { %v11979_v48 = vmul.f32 %v5035_v45, %v4923_v31  ;;  %v5050_v31 = vpop.permute.xlu0 %5049 }
 0x79d   : > { %v8535_v58 = vpop.eup %8534 }
 0x79e   : > { %v8537_v43 = vpop.eup %8536  ;;  %v4562_v3 = vadd.f32 1.0, %v8535_v58 }
 0x79f   : > { %v4835_v16 = vpop.f32.mrf.mxu2  ;;  %v4563_v8 = vadd.f32 1.0, %v8537_v43 }
 0x7a0   : > { %v4836_v4 = vadd.f32 %v11765_v50, %v4835_v16  ;;  %v4924_v0 = vpop.f32.mrf.mxu3  ;;  %v4626_v26 = vmul.f32 %v4562_v3, %v4434_v56  ;;  %v5055_v56 = vpop.permute.xlu1 %5054 }
 0x7a1   : > { %v4627_v12 = vmul.f32 %v4563_v8, %v4435_v42 }
 0x7a2   : > { %v4925_v44 = vadd.f32 %v4924_v0, %v4836_v4  ;;  %v4658_v5 = vpack.c.bf16 %v4626_v26, %v4624_v15  ;;  %v5060_v4 = vpop.permute.xlu2 %5059 }
 0x7a3   : > { %v4659_v24 = vpack.c.bf16 %v4627_v12, %v4625_v47 }
 0x7a4   : > { %v11984_v23 = vmul.f32 %v5040_v57, %v4925_v44  ;;  %4877 = vmatmul.bf16.gmra.mxu2 %v4658_v5  ;;  %v5065_v44 = vpop.permute.xlu0 %5064 }
 0x7a5   : > { %4966 = vmatmul.bf16.gmra.mxu3 %v4659_v24 }
 0x7a7   : > { %v4838_v21 = vpop.f32.mrf.mxu2 }
 0x7a8   : > { %v4839_v22 = vadd.f32 %v11765_v50, %v4838_v21  ;;  %v4927_v40 = vpop.f32.mrf.mxu3 }
 0x7aa   : > { %v4928_v11 = vadd.f32 %v4927_v40, %v4839_v22 }
 0x7ac   : > { %v11987_v39 = vmul.f32 %v5045_v28, %v4928_v11  ;;  %v5070_v28 = vpop.permute.xlu1 %5069 }
 0x7af   : > { %v4840_v32 = vpop.f32.mrf.mxu2 }
 0x7b0   : > { %v4841_v45 = vadd.f32 %v11765_v50, %v4840_v32  ;;  %v4929_v36 = vpop.f32.mrf.mxu3 }
 0x7b2   : > { %v4930_v53 = vadd.f32 %v4929_v36, %v4841_v45 }
 0x7b4   : > { %v11990_v58 = vmul.f32 %v5050_v31, %v4930_v53  ;;  %v5075_v53 = vpop.permute.xlu2 %5074 }
 0x7b7   : > { %v4843_v52 = vpop.f32.mrf.mxu2 }
 0x7b8   : > { %v4844_v43 = vadd.f32 %v11765_v50, %v4843_v52  ;;  %v4932_v29 = vpop.f32.mrf.mxu3 }
 0x7ba   : > { %v4933_v3 = vadd.f32 %v4932_v29, %v4844_v43 }
 0x7bc   : > { %v11993_v16 = vmul.f32 %v5055_v56, %v4933_v3 }
 0x7bf   : > { %v4845_v35 = vpop.f32.mrf.mxu2 }
 0x7c0   : > { %v4846_v42 = vadd.f32 %v11765_v50, %v4845_v35  ;;  %v4934_v8 = vpop.f32.mrf.mxu3  ;;  %v5080_v35 = vpop.permute.xlu0 %5079 }
 0x7c2   : > { %v4935_v0 = vadd.f32 %v4934_v8, %v4846_v42 }
 0x7c4   : > { %v11996_v15 = vmul.f32 %v5060_v4, %v4935_v0 }
 0x7c7   : > { %v4848_v26 = vpop.f32.mrf.mxu2 }
 0x7c8   : > { %v4849_v57 = vadd.f32 %v11765_v50, %v4848_v26  ;;  %v4937_v47 = vpop.f32.mrf.mxu3 }
 0x7ca   : > { %v4938_v12 = vadd.f32 %v4937_v47, %v4849_v57  ;;  %v5085_v57 = vpop.permute.xlu1 %5084 }
 0x7cc   : > { %v11999_v5 = vmul.f32 %v5065_v44, %v4938_v12 }
 0x7cf   : > { %v4850_v24 = vpop.f32.mrf.mxu2 }
 0x7d0   : > { %v4851_v21 = vadd.f32 %v11765_v50, %v4850_v24  ;;  %v4939_v22 = vpop.f32.mrf.mxu3 }
 0x7d2   : > { %v4940_v40 = vadd.f32 %v4939_v22, %v4851_v21  ;;  %v5090_v22 = vpop.permute.xlu2 %5089 }
 0x7d4   : > { %v12002_v11 = vmul.f32 %v5070_v28, %v4940_v40 }
 0x7d7   : > { %v4853_v32 = vpop.f32.mrf.mxu2 }
 0x7d8   : > { %v4854_v45 = vadd.f32 %v11765_v50, %v4853_v32  ;;  %v4942_v36 = vpop.f32.mrf.mxu3 }
 0x7da   : > { %v4943_v31 = vadd.f32 %v4942_v36, %v4854_v45 }
 0x7dc   : > { %v12005_v52 = vmul.f32 %v5075_v53, %v4943_v31  ;;  %v5095_v31 = vpop.permute.xlu0 %5094 }
 0x7df   : > { %v4855_v43 = vpop.f32.mrf.mxu2 }
 0x7e0   : > { %v4856_v29 = vadd.f32 %v11765_v50, %v4855_v43  ;;  %v4944_v56 = vpop.f32.mrf.mxu3 }
 0x7e2   : > { %v4945_v3 = vadd.f32 %v4944_v56, %v4856_v29 }
 0x7e4   : > { %v12008_v42 = vmul.f32 %v5080_v35, %v4945_v3  ;;  %v5100_v35 = vpop.permute.xlu1 %5099 }
 0x7e7   : > { %v4858_v8 = vpop.f32.mrf.mxu2 }
 0x7e8   : > { %v4859_v4 = vadd.f32 %v11765_v50, %v4858_v8  ;;  %v4947_v0 = vpop.f32.mrf.mxu3 }
 0x7ea   : > { %v4948_v26 = vadd.f32 %v4947_v0, %v4859_v4 }
 0x7ec   : > { %v12011_v47 = vmul.f32 %v5085_v57, %v4948_v26 }
 0x7ef   : > { %v4860_v12 = vpop.f32.mrf.mxu2 }
 0x7f0   : > { %v4861_v44 = vadd.f32 %v11765_v50, %v4860_v12  ;;  %v4949_v24 = vpop.f32.mrf.mxu3  ;;  %v5105_v12 = vpop.permute.xlu2 %5104 }
 0x7f2   : > { %v4950_v21 = vadd.f32 %v4949_v24, %v4861_v44 }
 0x7f4   : > { %v12014_v40 = vmul.f32 %v5090_v22, %v4950_v21 }
 0x7f7   : > { %v4863_v28 = vpop.f32.mrf.mxu2 }
 0x7f8   : > { %v4864_v32 = vadd.f32 %v11765_v50, %v4863_v28  ;;  %v4952_v45 = vpop.f32.mrf.mxu3 }
 0x7fa   : > { %v4953_v36 = vadd.f32 %v4952_v45, %v4864_v32  ;;  %v5110_v32 = vpop.permute.xlu0 %5109 }
 0x7fc   : > { %v12017_v53 = vmul.f32 %v5095_v31, %v4953_v36 }
 0x7ff   : > { %v4865_v43 = vpop.f32.mrf.mxu2 }
 0x800   : > { %v4866_v29 = vadd.f32 %v11765_v50, %v4865_v43  ;;  %v4954_v56 = vpop.f32.mrf.mxu3 }
 0x802   : > { %v4955_v3 = vadd.f32 %v4954_v56, %v4866_v29  ;;  %v5115_v56 = vpop.permute.xlu1 %5114 }
 0x804   : > { %v12020_v8 = vmul.f32 %v5100_v35, %v4955_v3 }
 0x807   : > { %v4868_v4 = vpop.f32.mrf.mxu2 }
 0x808   : > { %v4869_v0 = vadd.f32 %v11765_v50, %v4868_v4  ;;  %v4957_v26 = vpop.f32.mrf.mxu3 }
 0x80a   : > { %v4958_v57 = vadd.f32 %v4957_v26, %v4869_v0 }
 0x80c   : > { %v12023_v44 = vmul.f32 %v5105_v12, %v4958_v57  ;;  %v5120_v57 = vpop.permute.xlu2 %5119 }
 0x80f   : > { %v4870_v24 = vpop.f32.mrf.mxu2 }
 0x810   : > { %v4871_v21 = vadd.f32 %v11765_v50, %v4870_v24  ;;  %v4959_v22 = vpop.f32.mrf.mxu3 }
 0x812   : > { %v4960_v28 = vadd.f32 %v4959_v22, %v4871_v21  ;;  %v8538_v21 = vld [vmem:[%s13158_s6 + $0x2] ss:$0 sm:$0xff] }
 0x814   : > { %v12026_v45 = vmul.f32 %v5110_v32, %v4960_v28 }
 0x817   : > { %v4873_v36 = vpop.f32.mrf.mxu2 }
 0x818   : > { %v4874_v31 = vadd.f32 %v11765_v50, %v4873_v36  ;;  %v4962_v43 = vpop.f32.mrf.mxu3  ;;  %v5125_v36 = vpop.permute.xlu0 %5124 }
 0x81a   : > { %v4963_v29 = vadd.f32 %v4962_v43, %v4874_v31 }
 0x81c   : > { %v12029_v3 = vmul.f32 %v5115_v56, %v4963_v29 }
 0x81f   : > { %v4875_v35 = vpop.f32.mrf.mxu2 }
 0x820   : > { %v4876_v4 = vadd.f32 %v11765_v50, %v4875_v35  ;;  %v4964_v0 = vpop.f32.mrf.mxu3  ;;  %v5130_v35 = vpop.permute.xlu1 %5129 }
 0x822   : > { %v4965_v26 = vadd.f32 %v4964_v0, %v4876_v4 }
 0x824   : > { %v12032_v12 = vmul.f32 %v5120_v57, %v4965_v26 }
 0x827   : > { %v4878_v24 = vpop.f32.mrf.mxu2 }
 0x828   : > { %v4879_v22 = vadd.f32 %v8538_v21, %v4878_v24  ;;  %v4967_v28 = vpop.f32.mrf.mxu3 }
 0x82a   : > { %v4968_v32 = vadd.f32 %v4967_v28, %v4879_v22 }
 0x82c   : > { %v12037_v31 = vmul.f32 %v5125_v36, %v4968_v32 }
 0x82f   : > { %v4880_v43 = vpop.f32.mrf.mxu2 }
 0x830   : > { %v4881_v29 = vadd.f32 %v8538_v21, %v4880_v43  ;;  %v4969_v56 = vpop.f32.mrf.mxu3  ;;  %5167 = sbr.rel (%p7666_p10) target bundleno = 2133 (0x855), region = 84 }
 0x832   : > { %v4970_v50 = vadd.f32 %v4969_v56, %v4881_v29 }
 0x834   : > { %v12039_v4 = vmul.f32 %v5130_v35, %v4970_v50 }
 0x835   : > { %5168 = vst [vmem:[%s8934_s27] sm:$0xff] %v11782_v34 }
 0x836   : > { %5169 = vst [vmem:[%s8934_s27 + $0x8] sm:$0xff] %v11803_v61 }
 0x837   : > { %5170 = vst [vmem:[%s8934_s27 + $0x10] sm:$0xff] %v11820_v2 }
 0x838   : > { %5171 = vst [vmem:[%s8934_s27 + $0x18] sm:$0xff] %v11841_v17 }
 0x839   : > { %5172 = vst [vmem:[%s8934_s27 + $0x20] sm:$0xff] %v11859_v60 }
 0x83a   : > { %5173 = vst [vmem:[%s8934_s27 + $0x28] sm:$0xff] %v11880_v20 }
 0x83b   : > { %5174 = vst [vmem:[%s8934_s27 + $0x30] sm:$0xff] %v11897_v9 }
 0x83c   : > { %5175 = vst [vmem:[%s8934_s27 + $0x38] sm:$0xff] %v11918_v6 }
 0x83d   : > { %5176 = vst [vmem:[%s8934_s27 + $0x40] sm:$0xff] %v11935_v19 }
 0x83e   : > { %5177 = vst [vmem:[%s8934_s27 + $0x48] sm:$0xff] %v11956_v27 }
 0x83f   : > { %5178 = vst [vmem:[%s8934_s27 + $0x50] sm:$0xff] %v11969_v7 }
 0x840   : > { %5179 = vst [vmem:[%s8934_s27 + $0x58] sm:$0xff] %v11976_v33 }
 0x841   : > { %5180 = vst [vmem:[%s8934_s27 + $0x60] sm:$0xff] %v11979_v48 }
 0x842   : > { %5181 = vst [vmem:[%s8934_s27 + $0x68] sm:$0xff] %v11984_v23 }
 0x843   : > { %5182 = vst [vmem:[%s8934_s27 + $0x70] sm:$0xff] %v11987_v39 }
 0x844   : > { %5183 = vst [vmem:[%s8934_s27 + $0x78] sm:$0xff] %v11990_v58 }
 0x845   : > { %5184 = vst [vmem:[%s8934_s27 + $0x80] sm:$0xff] %v11993_v16 }
 0x846   : > { %5185 = vst [vmem:[%s8934_s27 + $0x88] sm:$0xff] %v11996_v15 }
 0x847   : > { %5186 = vst [vmem:[%s8934_s27 + $0x90] sm:$0xff] %v11999_v5 }
 0x848   : > { %5187 = vst [vmem:[%s8934_s27 + $0x98] sm:$0xff] %v12002_v11 }
 0x849   : > { %5188 = vst [vmem:[%s8934_s27 + $0xa0] sm:$0xff] %v12005_v52 }
 0x84a   : > { %5189 = vst [vmem:[%s8934_s27 + $0xa8] sm:$0xff] %v12008_v42 }
 0x84b   : > { %5190 = vst [vmem:[%s8934_s27 + $0xb0] sm:$0xff] %v12011_v47 }
 0x84c   : > { %5191 = vst [vmem:[%s8934_s27 + $0xb8] sm:$0xff] %v12014_v40 }
 0x84d   : > { %5192 = vst [vmem:[%s8934_s27 + $0xc0] sm:$0xff] %v12017_v53 }
 0x84e   : > { %5193 = vst [vmem:[%s8934_s27 + $0xc8] sm:$0xff] %v12020_v8 }
 0x84f   : > { %5194 = vst [vmem:[%s8934_s27 + $0xd0] sm:$0xff] %v12023_v44 }
 0x850   : > { %5195 = vst [vmem:[%s8934_s27 + $0xd8] sm:$0xff] %v12026_v45 }
 0x851   : > { %5196 = vst [vmem:[%s8934_s27 + $0xe0] sm:$0xff] %v12029_v3 }
 0x852   : > { %5197 = vst [vmem:[%s8934_s27 + $0xe8] sm:$0xff] %v12032_v12 }
 0x853   : > { %5198 = vst [vmem:[%s8934_s27 + $0xf0] sm:$0xff] %v12037_v31 }
 0x854   : > { %5199 = vst [vmem:[%s8934_s27 + $0xf8] sm:$0xff] %v12039_v4 }
 0x855 PF: > { %p7667_p11 = scmp.eq.s32.totalorder %s8920_s10, 2 }
 0x857   : > { %5203 = sbr.rel (%p7667_p11) target bundleno = 2175 (0x87f), region = 88 }
 0x85c   : > { %v5204_v0 = vld [vmem:[%s8934_s27] sm:$0xff]  ;;  %v5205_v26 = vld [vmem:[%s8934_s27 + $0x8] sm:$0xff]  ;;  %v5206_v57 = vld [vmem:[%s8934_s27 + $0x10] sm:$0xff] }
 0x85d   : > { %v5236_v24 = vadd.f32 %v5204_v0, %v11782_v34  ;;  %v5237_v21 = vadd.f32 %v5205_v26, %v11803_v61  ;;  %v5238_v22 = vadd.f32 %v5206_v57, %v11820_v2  ;;  %v5207_v28 = vld [vmem:[%s8934_s27 + $0x18] sm:$0xff]  ;;  %v5208_v32 = vld [vmem:[%s8934_s27 + $0x20] sm:$0xff]  ;;  %v5209_v36 = vld [vmem:[%s8934_s27 + $0x28] sm:$0xff] }
 0x85e   : > { %v5239_v43 = vadd.f32 %v5207_v28, %v11841_v17  ;;  %v5210_v29 = vld [vmem:[%s8934_s27 + $0x30] sm:$0xff]  ;;  %v5240_v56 = vadd.f32 %v5208_v32, %v11859_v60  ;;  %v5211_v34 = vld [vmem:[%s8934_s27 + $0x38] sm:$0xff]  ;;  %v5241_v61 = vadd.f32 %v5209_v36, %v11880_v20  ;;  %v5212_v2 = vld [vmem:[%s8934_s27 + $0x40] sm:$0xff] }
 0x85f   : > { %5268 = vst [vmem:[%s8934_s27] sm:$0xff] %v5236_v24  ;;  %v5242_v50 = vadd.f32 %v5210_v29, %v11897_v9  ;;  %v5213_v17 = vld [vmem:[%s8934_s27 + $0x48] sm:$0xff]  ;;  %v5243_v35 = vadd.f32 %v5211_v34, %v11918_v6  ;;  %v5214_v60 = vld [vmem:[%s8934_s27 + $0x50] sm:$0xff]  ;;  %v5244_v0 = vadd.f32 %v5212_v2, %v11935_v19  ;;  %v5215_v20 = vld [vmem:[%s8934_s27 + $0x58] sm:$0xff] }
 0x860   : > { %5269 = vst [vmem:[%s8934_s27 + $0x8] sm:$0xff] %v5237_v21  ;;  %v5245_v26 = vadd.f32 %v5213_v17, %v11956_v27  ;;  %v5216_v9 = vld [vmem:[%s8934_s27 + $0x60] sm:$0xff]  ;;  %v5246_v57 = vadd.f32 %v5214_v60, %v11969_v7  ;;  %v5217_v6 = vld [vmem:[%s8934_s27 + $0x68] sm:$0xff]  ;;  %v5247_v24 = vadd.f32 %v5215_v20, %v11976_v33  ;;  %v5218_v19 = vld [vmem:[%s8934_s27 + $0x70] sm:$0xff] }
 0x861   : > { %5270 = vst [vmem:[%s8934_s27 + $0x10] sm:$0xff] %v5238_v22  ;;  %v5248_v21 = vadd.f32 %v5216_v9, %v11979_v48  ;;  %v5219_v27 = vld [vmem:[%s8934_s27 + $0x78] sm:$0xff]  ;;  %v5249_v22 = vadd.f32 %v5217_v6, %v11984_v23  ;;  %v5220_v7 = vld [vmem:[%s8934_s27 + $0x80] sm:$0xff]  ;;  %v5250_v28 = vadd.f32 %v5218_v19, %v11987_v39  ;;  %v5221_v33 = vld [vmem:[%s8934_s27 + $0x88] sm:$0xff] }
 0x862   : > { %5271 = vst [vmem:[%s8934_s27 + $0x18] sm:$0xff] %v5239_v43  ;;  %v5251_v32 = vadd.f32 %v5219_v27, %v11990_v58  ;;  %v5222_v48 = vld [vmem:[%s8934_s27 + $0x90] sm:$0xff]  ;;  %v5252_v36 = vadd.f32 %v5220_v7, %v11993_v16  ;;  %v5223_v23 = vld [vmem:[%s8934_s27 + $0x98] sm:$0xff]  ;;  %v5253_v43 = vadd.f32 %v5221_v33, %v11996_v15  ;;  %v5224_v39 = vld [vmem:[%s8934_s27 + $0xa0] sm:$0xff] }
 0x863   : > { %5272 = vst [vmem:[%s8934_s27 + $0x20] sm:$0xff] %v5240_v56  ;;  %v5254_v29 = vadd.f32 %v5222_v48, %v11999_v5  ;;  %v5225_v58 = vld [vmem:[%s8934_s27 + $0xa8] sm:$0xff]  ;;  %v5255_v56 = vadd.f32 %v5223_v23, %v12002_v11  ;;  %v5226_v16 = vld [vmem:[%s8934_s27 + $0xb0] sm:$0xff]  ;;  %v5256_v34 = vadd.f32 %v5224_v39, %v12005_v52  ;;  %v5227_v15 = vld [vmem:[%s8934_s27 + $0xb8] sm:$0xff] }
 0x864   : > { %5273 = vst [vmem:[%s8934_s27 + $0x28] sm:$0xff] %v5241_v61  ;;  %v5257_v61 = vadd.f32 %v5225_v58, %v12008_v42  ;;  %v5228_v5 = vld [vmem:[%s8934_s27 + $0xc0] sm:$0xff]  ;;  %v5258_v2 = vadd.f32 %v5226_v16, %v12011_v47  ;;  %v5229_v11 = vld [vmem:[%s8934_s27 + $0xc8] sm:$0xff]  ;;  %v5230_v52 = vld [vmem:[%s8934_s27 + $0xd0] sm:$0xff] }
 0x865   : > { %5274 = vst [vmem:[%s8934_s27 + $0x30] sm:$0xff] %v5242_v50  ;;  %v5259_v50 = vadd.f32 %v5227_v15, %v12014_v40  ;;  %v5260_v17 = vadd.f32 %v5228_v5, %v12017_v53  ;;  %v5231_v42 = vld [vmem:[%s8934_s27 + $0xd8] sm:$0xff]  ;;  %v5232_v60 = vld [vmem:[%s8934_s27 + $0xe0] sm:$0xff]  ;;  %v5262_v47 = vadd.f32 %v5230_v52, %v12023_v44  ;;  %v5233_v40 = vld [vmem:[%s8934_s27 + $0xe8] sm:$0xff] }
 0x866   : > { %5275 = vst [vmem:[%s8934_s27 + $0x38] sm:$0xff] %v5243_v35  ;;  %v5261_v35 = vadd.f32 %v5229_v11, %v12020_v8  ;;  %v5234_v20 = vld [vmem:[%s8934_s27 + $0xf0] sm:$0xff]  ;;  %v5264_v53 = vadd.f32 %v5232_v60, %v12029_v3  ;;  %v5265_v8 = vadd.f32 %v5233_v40, %v12032_v12 }
 0x867   : > { %5276 = vst [vmem:[%s8934_s27 + $0x40] sm:$0xff] %v5244_v0  ;;  %v5263_v0 = vadd.f32 %v5231_v42, %v12026_v45  ;;  %v5266_v9 = vadd.f32 %v5234_v20, %v12037_v31 }
 0x868   : > { %5277 = vst [vmem:[%s8934_s27 + $0x48] sm:$0xff] %v5245_v26  ;;  %v5235_v26 = vld [vmem:[%s8934_s27 + $0xf8] sm:$0xff] }
 0x869   : > { %5278 = vst [vmem:[%s8934_s27 + $0x50] sm:$0xff] %v5246_v57  ;;  %v5267_v44 = vadd.f32 %v5235_v26, %v12039_v4 }
 0x86a   : > { %5279 = vst [vmem:[%s8934_s27 + $0x58] sm:$0xff] %v5247_v24 }
 0x86b   : > { %5280 = vst [vmem:[%s8934_s27 + $0x60] sm:$0xff] %v5248_v21 }
 0x86c   : > { %5281 = vst [vmem:[%s8934_s27 + $0x68] sm:$0xff] %v5249_v22 }
 0x86d   : > { %5282 = vst [vmem:[%s8934_s27 + $0x70] sm:$0xff] %v5250_v28 }
 0x86e   : > { %5283 = vst [vmem:[%s8934_s27 + $0x78] sm:$0xff] %v5251_v32 }
 0x86f   : > { %5284 = vst [vmem:[%s8934_s27 + $0x80] sm:$0xff] %v5252_v36 }
 0x870   : > { %5285 = vst [vmem:[%s8934_s27 + $0x88] sm:$0xff] %v5253_v43 }
 0x871   : > { %5286 = vst [vmem:[%s8934_s27 + $0x90] sm:$0xff] %v5254_v29 }
 0x872   : > { %5287 = vst [vmem:[%s8934_s27 + $0x98] sm:$0xff] %v5255_v56 }
 0x873   : > { %5288 = vst [vmem:[%s8934_s27 + $0xa0] sm:$0xff] %v5256_v34 }
 0x874   : > { %5289 = vst [vmem:[%s8934_s27 + $0xa8] sm:$0xff] %v5257_v61 }
 0x875   : > { %5290 = vst [vmem:[%s8934_s27 + $0xb0] sm:$0xff] %v5258_v2 }
 0x876   : > { %5291 = vst [vmem:[%s8934_s27 + $0xb8] sm:$0xff] %v5259_v50 }
 0x877   : > { %5292 = vst [vmem:[%s8934_s27 + $0xc0] sm:$0xff] %v5260_v17 }
 0x878   : > { %5293 = vst [vmem:[%s8934_s27 + $0xc8] sm:$0xff] %v5261_v35 }
 0x879   : > { %5294 = vst [vmem:[%s8934_s27 + $0xd0] sm:$0xff] %v5262_v47 }
 0x87a   : > { %5295 = vst [vmem:[%s8934_s27 + $0xd8] sm:$0xff] %v5263_v0 }
 0x87b   : > { %5296 = vst [vmem:[%s8934_s27 + $0xe0] sm:$0xff] %v5264_v53 }
 0x87c   : > { %5297 = vst [vmem:[%s8934_s27 + $0xe8] sm:$0xff] %v5265_v8 }
 0x87d   : > { %5298 = vst [vmem:[%s8934_s27 + $0xf0] sm:$0xff] %v5266_v9 }
 0x87e   : > { %5299 = vst [vmem:[%s8934_s27 + $0xf8] sm:$0xff] %v5267_v44 }
 0x87f PF: > { %s5300_s19 = sadd.s32 3, %s9357_s28 }
 0x880   : > { %s5301_s23 = sld [smem:[#allocation3 + %s5300_s19]] }
 0x886   : > { %p7668_p12 = scmp.eq.s32.totalorder %s5301_s23, 0 }
 0x887   : > { %p7879_p13 = scmp.ne.s32.totalorder (!%p7668_p12), %s8920_s10, 3 }
 0x888   : > { %5305 = sbr.rel (%p7668_p12) target bundleno = 2841 (0xb19), region = 92 }
 0x88d   : > { %v7808_v45 = vld [vmem:[%s13155_s3 + $0x1f0] sm:$0xf]  ;;  %v8061_v3 = vld [vmem:[%s13155_s3 + $0x1f4] sm:$0xf0]  ;;  %v8060_v12 = vld [vmem:[%s13155_s3 + $0x1f4] sm:$0xf] }
 0x88e   : > { %v7809_v31 = vor.u32 %v8061_v3, %v7808_v45  ;;  %v7810_v4 = vld [vmem:[%s13155_s3 + $0x1f8] sm:$0xf0]  ;;  %v7800_v57 = vld [vmem:[%s13155_s3 + $0x1e0] sm:$0xf]  ;;  %v8059_v6 = vld [vmem:[%s13155_s3 + $0x1e4] sm:$0xf0] }
 0x88f   : > { %v7813_v24 = vor.u32 %v8060_v12, %v7810_v4  ;;  %v8058_v19 = vld [vmem:[%s13155_s3 + $0x1e4] sm:$0xf]  ;;  %v7802_v21 = vld [vmem:[%s13155_s3 + $0x1e8] sm:$0xf0]  ;;  %v7801_v27 = vor.u32 %v8059_v6, %v7800_v57  ;;  %v7792_v7 = vld [vmem:[%s13155_s3 + $0x1d0] sm:$0xf] }
 0x890   : > { %5506 = vmatpush.bf16.msra.mxu0 %v7809_v31  ;;  %v7805_v22 = vor.u32 %v8058_v19, %v7802_v21  ;;  %v8057_v28 = vld [vmem:[%s13155_s3 + $0x1d4] sm:$0xf0]  ;;  %v8056_v33 = vld [vmem:[%s13155_s3 + $0x1d4] sm:$0xf]  ;;  %v7794_v32 = vld [vmem:[%s13155_s3 + $0x1d8] sm:$0xf0] }
 0x891   : > { %5595 = vmatpush.bf16.msra.mxu1 %v7813_v24  ;;  %v7793_v48 = vor.u32 %v8057_v28, %v7792_v7  ;;  %v7797_v36 = vor.u32 %v8056_v33, %v7794_v32  ;;  %v7784_v23 = vld [vmem:[%s13155_s3 + $0x1c0] sm:$0xf]  ;;  %v8055_v43 = vld [vmem:[%s13155_s3 + $0x1c4] sm:$0xf0]  ;;  %v8054_v39 = vld [vmem:[%s13155_s3 + $0x1c4] sm:$0xf] }
 0x892   : > { %v7786_v29 = vld [vmem:[%s13155_s3 + $0x1c8] sm:$0xf0]  ;;  %v7785_v58 = vor.u32 %v8055_v43, %v7784_v23  ;;  %v7776_v16 = vld [vmem:[%s13155_s3 + $0x1b0] sm:$0xf]  ;;  %v8053_v34 = vld [vmem:[%s13155_s3 + $0x1b4] sm:$0xf0] }
 0x893   : > { %v7789_v56 = vor.u32 %v8054_v39, %v7786_v29  ;;  %v8052_v15 = vld [vmem:[%s13155_s3 + $0x1b4] sm:$0xf]  ;;  %v7778_v61 = vld [vmem:[%s13155_s3 + $0x1b8] sm:$0xf0]  ;;  %v7777_v5 = vor.u32 %v8053_v34, %v7776_v16  ;;  %v7768_v11 = vld [vmem:[%s13155_s3 + $0x1a0] sm:$0xf] }
 0x894   : > { %5507 = vmatpush.bf16.msra.mxu0 %v7801_v27  ;;  %v7781_v2 = vor.u32 %v8052_v15, %v7778_v61  ;;  %v8051_v50 = vld [vmem:[%s13155_s3 + $0x1a4] sm:$0xf0]  ;;  %v8050_v52 = vld [vmem:[%s13155_s3 + $0x1a4] sm:$0xf]  ;;  %v7770_v17 = vld [vmem:[%s13155_s3 + $0x1a8] sm:$0xf0] }
 0x895   : > { %5596 = vmatpush.bf16.msra.mxu1 %v7805_v22  ;;  %v7769_v42 = vor.u32 %v8051_v50, %v7768_v11  ;;  %v7773_v35 = vor.u32 %v8050_v52, %v7770_v17  ;;  %v7760_v60 = vld [vmem:[%s13155_s3 + $0x190] sm:$0xf]  ;;  %v8049_v47 = vld [vmem:[%s13155_s3 + $0x194] sm:$0xf0]  ;;  %v8048_v40 = vld [vmem:[%s13155_s3 + $0x194] sm:$0xf] }
 0x896   : > { %v7762_v0 = vld [vmem:[%s13155_s3 + $0x198] sm:$0xf0]  ;;  %v7761_v20 = vor.u32 %v8049_v47, %v7760_v60  ;;  %v7752_v26 = vld [vmem:[%s13155_s3 + $0x180] sm:$0xf]  ;;  %v8047_v8 = vld [vmem:[%s13155_s3 + $0x184] sm:$0xf0] }
 0x897   : > { %v7765_v53 = vor.u32 %v8048_v40, %v7762_v0  ;;  %v8046_v9 = vld [vmem:[%s13155_s3 + $0x184] sm:$0xf]  ;;  %v7754_v44 = vld [vmem:[%s13155_s3 + $0x188] sm:$0xf0]  ;;  %v7753_v45 = vor.u32 %v8047_v8, %v7752_v26  ;;  %v13389_v31 = vld [vmem:[#allocation15_spill] sm:$0xff] }
 0x898   : > { %5508 = vmatpush.bf16.msra.mxu0 %v7793_v48  ;;  %v7757_v3 = vor.u32 %v8046_v9, %v7754_v44  ;;  %v13388_v12 = vld [vmem:[#allocation12_spill] sm:$0xff]  ;;  %v13390_v57 = vld [vmem:[#allocation18_spill] sm:$0xff]  ;;  %v13391_v6 = vld [vmem:[#allocation21_spill] sm:$0xff] }
 0x899   : > { %5597 = vmatpush.bf16.msra.mxu1 %v7797_v36  ;;  %v7689_v4 = vor.u32 %v13389_v31, %v13388_v12  ;;  %v7693_v24 = vor.u32 %v13391_v6, %v13390_v57  ;;  %v13392_v19 = vld [vmem:[#allocation24_spill] sm:$0xff]  ;;  %v13393_v21 = vld [vmem:[#allocation27_spill] sm:$0xff]  ;;  %v13394_v22 = vld [vmem:[#allocation30_spill] sm:$0xff] }
 0x89a   : > { %v7697_v27 = vor.u32 %v13393_v21, %v13392_v19  ;;  %v13395_v7 = vld [vmem:[#allocation33_spill] sm:$0xff]  ;;  %v13396_v33 = vld [vmem:[#allocation36_spill] sm:$0xff]  ;;  %v13397_v32 = vld [vmem:[#allocation39_spill] sm:$0xff] }
 0x89b   : > { %v7701_v28 = vor.u32 %v13395_v7, %v13394_v22  ;;  %v7705_v48 = vor.u32 %v13397_v32, %v13396_v33  ;;  %v13398_v36 = vld [vmem:[#allocation42_spill] sm:$0xff]  ;;  %v13399_v23 = vld [vmem:[#allocation45_spill] sm:$0xff]  ;;  %v13400_v39 = vld [vmem:[#allocation48_spill] sm:$0xff] }
 0x89c   : > { %5509 = vmatpush.bf16.msra.mxu0 %v7785_v58  ;;  %v7709_v43 = vor.u32 %v13399_v23, %v13398_v36  ;;  %v13401_v29 = vld [vmem:[#allocation51_spill] sm:$0xff]  ;;  %v8068_v34 = vld [vmem:[#allocation5 + $0x1b0] sm:$0xff]  ;;  %v8067_v61 = vld [vmem:[#allocation5 + $0x1a8] sm:$0xff] }
 0x89d   : > { %5598 = vmatpush.bf16.msra.mxu1 %v7789_v56  ;;  %v7713_v58 = vor.u32 %v13401_v29, %v13400_v39  ;;  %v8069_v56 = vld [vmem:[#allocation5 + $0x1b8] sm:$0xff]  ;;  %v8076_v15 = vld [vmem:[#allocation5 + $0x1f0] sm:$0xff]  ;;  %v8074_v11 = vld [vmem:[#allocation5 + $0x1e0] sm:$0xff] }
 0x89e   : > { %v8077_v16 = vld [vmem:[#allocation5 + $0x1f8] sm:$0xff]  ;;  %6426 = vmatpush.bf16.msra.mxu2 %v8069_v56  ;;  %v13402_v50 = vld [vmem:[#allocation54_spill] sm:$0xff]  ;;  %v13403_v52 = vld [vmem:[#allocation57_spill] sm:$0xff] }
 0x89f   : > { %6515 = vmatpush.bf16.msra.mxu3 %v8077_v16  ;;  %v7717_v17 = vor.u32 %v13403_v52, %v13402_v50  ;;  %v8064_v60 = vld [vmem:[#allocation5 + $0x190] sm:$0xff]  ;;  %v7685_v40 = vld [vmem:[%s13156_s4 + $0x6] sm:$0x3]  ;;  %v8063_v0 = vld [vmem:[#allocation5 + $0x188] sm:$0xff] }
 0x8a0   : > { %5510 = vmatpush.bf16.msra.mxu0 %v7777_v5  ;;  %v8075_v5 = vld [vmem:[#allocation5 + $0x1e8] sm:$0xff]  ;;  %v8072_v47 = vld [vmem:[#allocation5 + $0x1d0] sm:$0xff]  ;;  %v12321_v26 = vperm.slane %v7685_v40, 1  ;;  %v8062_v8 = vld [vmem:[#allocation5 + $0x180] sm:$0xff] }
 0x8a1   : > { %5599 = vmatpush.bf16.msra.mxu1 %v7781_v2  ;;  %v8066_v2 = vld [vmem:[#allocation5 + $0x1a0] sm:$0xff]  ;;  %v13406_v16 = vld [vmem:[#allocation66_spill] sm:$0xff] }
 0x8a2   : > { %6427 = vmatpush.bf16.msra.mxu2 %v8068_v34  ;;  %v8070_v9 = vld [vmem:[#allocation5 + $0x1c0] sm:$0xff]  ;;  %v13407_v34 = vld [vmem:[#allocation69_spill] sm:$0xff] }
 0x8a3   : > { %6516 = vmatpush.bf16.msra.mxu3 %v8076_v15  ;;  %v13404_v44 = vld [vmem:[#allocation60_spill] sm:$0xff]  ;;  %v7725_v15 = vor.u32 %v13407_v34, %v13406_v16 }
 0x8a4   : > { %5511 = vmatpush.bf16.msra.mxu0 %v7769_v42  ;;  %v8065_v42 = vld [vmem:[#allocation5 + $0x198] sm:$0xff] }
 0x8a5   : > { %5600 = vmatpush.bf16.msra.mxu1 %v7773_v35  ;;  %v8073_v35 = vld [vmem:[#allocation5 + $0x1d8] sm:$0xff] }
 0x8a6   : > { %6428 = vmatpush.bf16.msra.mxu2 %v8067_v61 }
 0x8a7   : > { %6517 = vmatpush.bf16.msra.mxu3 %v8075_v5 }
 0x8a8   : > { %5512 = vmatpush.bf16.msra.mxu0 %v7761_v20  ;;  %v8071_v20 = vld [vmem:[#allocation5 + $0x1c8] sm:$0xff] }
 0x8a9   : > { %5601 = vmatpush.bf16.msra.mxu1 %v7765_v53  ;;  %v12319_v53 = vperm.slane %v7685_v40, 0 }
 0x8aa   : > { %6429 = vmatpush.bf16.msra.mxu2 %v8066_v2 }
 0x8ab   : > { %6518 = vmatpush.bf16.msra.mxu3 %v8074_v11 }
 0x8ac   : > { %5513 = vmatpush.bf16.msra.mxu0 %v7753_v45  ;;  %v13405_v45 = vld [vmem:[#allocation63_spill] sm:$0xff] }
 0x8ad   : > { %5602 = vmatpush.bf16.msra.mxu1 %v7757_v3  ;;  %v7721_v3 = vor.u32 %v13405_v45, %v13404_v44  ;;  %v8805_v44 = vmov 3  }
 0x8ae   : > { %6430 = vmatpush.bf16.msra.mxu2 %v8065_v42  ;;  %8539 = vset.pattern.permute.xlu0 %v8805_v44 }
 0x8af   : > { %5514 = vmatmul.bf16.vlgmr.msra.gmra.mxu0 %v7689_v4  ;;  %6519 = vmatpush.bf16.msra.mxu3 %v8073_v35 }
 0x8b0   : > { %5603 = vmatmul.bf16.vlgmr.msra.gmra.mxu1 %v7689_v4  ;;  %8540 = vset.pattern.permute.xlu1 %v8805_v44 }
 0x8b1   : > { %6606 = vperm.xlu0 %8539, %v9354_v18   ;;  %8541 = vset.pattern.permute.xlu2 %v8805_v44 }
 0x8b2   : > { %6431 = vmatpush.bf16.msra.mxu2 %v8064_v60 }
 0x8b3   : > { %6520 = vmatpush.bf16.msra.mxu3 %v8072_v47 }
 0x8b6   : > { %6432 = vmatpush.bf16.msra.mxu2 %v8063_v0 }
 0x8b7   : > { %6521 = vmatpush.bf16.msra.mxu3 %v8071_v20 }
 0x8b9   : > { %6611 = vperm.xlu0 %8539, %v9360_v14  }
 0x8ba   : > { %6433 = vmatpush.bf16.msra.mxu2 %v8062_v8 }
 0x8bb   : > { %6522 = vmatpush.bf16.msra.mxu3 %v8070_v9 }
 0x8bf   : > { %5519 = vmatmul.bf16.gmra.mxu0 %v7693_v24 }
 0x8c0   : > { %5608 = vmatmul.bf16.gmra.mxu1 %v7693_v24 }
 0x8c1   : > { %6636 = vperm.xlu0 %8539, %v9378_v38  }
 0x8c9   : > { %6651 = vperm.xlu0 %8539, %v9387_v62  }
 0x8cf   : > { %5524 = vmatmul.bf16.gmra.mxu0 %v7697_v27 }
 0x8d0   : > { %5613 = vmatmul.bf16.gmra.mxu1 %v7697_v27 }
 0x8d1   : > { %6666 = vperm.xlu0 %8539, %v9396_v13  }
 0x8d9   : > { %6681 = vperm.xlu0 %8539, %v9405_v49  }
 0x8df   : > { %5529 = vmatmul.bf16.gmra.mxu0 %v7701_v28 }
 0x8e0   : > { %5618 = vmatmul.bf16.gmra.mxu1 %v7701_v28 }
 0x8e1   : > { %6696 = vperm.xlu0 %8539, %v9414_v55  }
 0x8ef   : > { %5534 = vmatmul.bf16.gmra.mxu0 %v7705_v48 }
 0x8f0   : > { %5623 = vmatmul.bf16.gmra.mxu1 %v7705_v48 }
 0x8ff   : > { %5539 = vmatmul.bf16.gmra.mxu0 %v7709_v43 }
 0x900   : > { %5628 = vmatmul.bf16.gmra.mxu1 %v7709_v43 }
 0x90f   : > { %5544 = vmatmul.bf16.gmra.mxu0 %v7713_v58 }
 0x910   : > { %5633 = vmatmul.bf16.gmra.mxu1 %v7713_v58 }
 0x91f   : > { %5549 = vmatmul.bf16.gmra.mxu0 %v7717_v17 }
 0x920   : > { %5638 = vmatmul.bf16.gmra.mxu1 %v7717_v17 }
 0x92c   : > { %v5515_v12 = vpop.f32.mrf.mxu0 }
 0x92d   : > { %v12326_v31 = vadd.f32 %v5515_v12, %v12319_v53  ;;  %v5604_v4 = vpop.f32.mrf.mxu1 }
 0x92e   : > { %v12329_v57 = vadd.f32 %v5604_v4, %v12321_v26  ;;  %v13408_v4 = vld [vmem:[#allocation112_spill] sm:$0xff] }
 0x92f   : > { %v5684_v6 = vmul.f32 %v12326_v31, %v12326_v31  ;;  %5554 = vmatmul.bf16.gmra.mxu0 %v7721_v3  ;;  %6616 = vperm.xlu1 %8540, %v13408_v4  }
 0x930   : > { %v5685_v24 = vmul.f32 %v12329_v57, %v12329_v57  ;;  %5643 = vmatmul.bf16.gmra.mxu1 %v7721_v3 }
 0x931   : > { %v5748_v19 = vmul.f32 %v5684_v6, %v12326_v31 }
 0x932   : > { %v5749_v21 = vmul.f32 %v5685_v24, %v12329_v57 }
 0x933   : > { %v5812_v27 = vmul.f32 0.044715, %v5748_v19 }
 0x934   : > { %v5813_v22 = vmul.f32 0.044715, %v5749_v21  ;;  %v5517_v7 = vpop.f32.mrf.mxu0 }
 0x935   : > { %v5518_v28 = vadd.f32 %v5517_v7, %v12319_v53  ;;  %v5606_v33 = vpop.f32.mrf.mxu1  ;;  %v5876_v32 = vadd.f32 %v5812_v27, %v12326_v31  ;;  %v13409_v7 = vld [vmem:[#allocation113_spill] sm:$0xff] }
 0x936   : > { %v5607_v48 = vadd.f32 %v5606_v33, %v12321_v26  ;;  %v5877_v36 = vadd.f32 %v5813_v22, %v12329_v57  ;;  %6626 = vperm.xlu2 %8541, %v13409_v7  }
 0x937   : > { %v5686_v23 = vmul.f32 %v5518_v28, %v5518_v28  ;;  %v5940_v29 = vmul.f32 0.7978846, %v5876_v32  ;;  %v6004_v32 = vmul.f32 0.5, %v12326_v31  ;;  %6621 = vperm.xlu1 %8540, %v9366_v10  }
 0x938   : > { %v5687_v43 = vmul.f32 %v5607_v48, %v5607_v48  ;;  %v5941_v56 = vmul.f32 0.7978846, %v5877_v36  ;;  %v6007_v16 = vmul.f32 0.5, %v5607_v48 }
 0x939   : > { %v5750_v39 = vmul.f32 %v5686_v23, %v5518_v28  ;;  %8543 = vtanh.f32 %v5940_v29 }
 0x93a   : > { %v5751_v58 = vmul.f32 %v5687_v43, %v5607_v48  ;;  %8545 = vtanh.f32 %v5941_v56 }
 0x93b   : > { %v5814_v61 = vmul.f32 0.044715, %v5750_v39  ;;  %v6006_v39 = vmul.f32 0.5, %v5518_v28 }
 0x93c   : > { %v5520_v5 = vpop.f32.mrf.mxu0  ;;  %v5815_v2 = vmul.f32 0.044715, %v5751_v58  ;;  %v6005_v58 = vmul.f32 0.5, %v12329_v57 }
 0x93d   : > { %v12344_v11 = vadd.f32 %v5520_v5, %v12319_v53  ;;  %v5609_v50 = vpop.f32.mrf.mxu1  ;;  %v5878_v52 = vadd.f32 %v5814_v61, %v5518_v28 }
 0x93e   : > { %v12347_v17 = vadd.f32 %v5609_v50, %v12321_v26  ;;  %v5879_v42 = vadd.f32 %v5815_v2, %v5607_v48  ;;  %6631 = vperm.xlu2 %8541, %v9375_v30  }
 0x93f   : > { %v5688_v35 = vmul.f32 %v12344_v11, %v12344_v11  ;;  %5559 = vmatmul.bf16.gmra.mxu0 %v7725_v15  ;;  %v5942_v60 = vmul.f32 0.7978846, %v5878_v52  ;;  %v8544_v8 = vpop.eup %8543  ;;  %6641 = vperm.xlu1 %8540, %v9381_v46   ;;  %v6008_v46 = vmul.f32 0.5, %v12344_v11 }
 0x940   : > { %v5689_v47 = vmul.f32 %v12347_v17, %v12347_v17  ;;  %5648 = vmatmul.bf16.gmra.mxu1 %v7725_v15  ;;  %v5943_v40 = vmul.f32 0.7978846, %v5879_v42  ;;  %v8546_v45 = vpop.eup %8545  ;;  %v6132_v27 = vadd.f32 1.0, %v8544_v8  ;;  %v13410_v42 = vld [vmem:[#allocation72_spill] sm:$0xff] }
 0x941   : > { %v5752_v0 = vmul.f32 %v5688_v35, %v12344_v11  ;;  %8547 = vtanh.f32 %v5942_v60  ;;  %v6133_v36 = vadd.f32 1.0, %v8546_v45  ;;  %v13411_v35 = vld [vmem:[#allocation75_spill] sm:$0xff] }
 0x942   : > { %v5753_v20 = vmul.f32 %v5689_v47, %v12347_v17  ;;  %8549 = vtanh.f32 %v5943_v40  ;;  %v6196_v5 = vmul.f32 %v6132_v27, %v6004_v32  ;;  %v7729_v60 = vor.u32 %v13411_v35, %v13410_v42  ;;  %v13412_v35 = vld [vmem:[#allocation78_spill] sm:$0xff] }
 0x943   : > { %v5816_v9 = vmul.f32 0.044715, %v5752_v0  ;;  %v6197_v31 = vmul.f32 %v6133_v36, %v6005_v58 }
 0x944   : > { %v5817_v3 = vmul.f32 0.044715, %v5753_v20  ;;  %v5522_v12 = vpop.f32.mrf.mxu0 }
 0x945   : > { %v12358_v6 = vadd.f32 %v5522_v12, %v12319_v53  ;;  %v5611_v24 = vpop.f32.mrf.mxu1  ;;  %v5880_v19 = vadd.f32 %v5816_v9, %v12344_v11 }
 0x946   : > { %v12362_v21 = vadd.f32 %v5611_v24, %v12321_v26  ;;  %v5881_v22 = vadd.f32 %v5817_v3, %v12347_v17  ;;  %6646 = vperm.xlu2 %8541, %v9384_v54  }
 0x947   : > { %v8548_v33 = vpop.eup %8547  ;;  %v5690_v18 = vmul.f32 %v12358_v6, %v12358_v6  ;;  %v5944_v15 = vmul.f32 0.7978846, %v5880_v19  ;;  %6656 = vperm.xlu1 %8540, %v9390_v41  }
 0x948   : > { %v8550_v23 = vpop.eup %8549  ;;  %v5691_v43 = vmul.f32 %v12362_v21, %v12362_v21  ;;  %v6134_v29 = vadd.f32 1.0, %v8548_v33  ;;  %v5945_v50 = vmul.f32 0.7978846, %v5881_v22  ;;  %v6011_v54 = vmul.f32 0.5, %v12362_v21 }
 0x949   : > { %v5754_v56 = vmul.f32 %v5690_v18, %v12358_v6  ;;  %v6135_v34 = vadd.f32 1.0, %v8550_v23  ;;  %8551 = vtanh.f32 %v5944_v15 }
 0x94a   : > { %v5755_v61 = vmul.f32 %v5691_v43, %v12362_v21  ;;  %v6198_v2 = vmul.f32 %v6134_v29, %v6006_v39  ;;  %8553 = vtanh.f32 %v5945_v50 }
 0x94b   : > { %v6199_v52 = vmul.f32 %v6135_v34, %v6007_v16  ;;  %v5818_v47 = vmul.f32 0.044715, %v5754_v56  ;;  %v6010_v56 = vmul.f32 0.5, %v12358_v6  ;;  %v6009_v34 = vmul.f32 0.5, %v12347_v17 }
 0x94c   : > { %v5525_v28 = vpop.f32.mrf.mxu0  ;;  %v6260_v40 = vpack.c.bf16 %v6198_v2, %v6196_v5  ;;  %v5819_v0 = vmul.f32 0.044715, %v5755_v61 }
 0x94d   : > { %v12379_v57 = vadd.f32 %v5525_v28, %v12319_v53  ;;  %v5614_v48 = vpop.f32.mrf.mxu1  ;;  %v6261_v20 = vpack.c.bf16 %v6199_v52, %v6197_v31  ;;  %v5882_v8 = vadd.f32 %v5818_v47, %v12358_v6 }
 0x94e   : > { %v12383_v9 = vadd.f32 %v5614_v48, %v12321_v26  ;;  %6434 = vmatmul.bf16.vlgmr.msra.gmra.mxu2 %v6260_v40  ;;  %v5883_v44 = vadd.f32 %v5819_v0, %v12362_v21  ;;  %6661 = vperm.xlu2 %8541, %v9393_v1  }
 0x94f   : > { %v5692_v10 = vmul.f32 %v12379_v57, %v12379_v57  ;;  %6523 = vmatmul.bf16.vlgmr.msra.gmra.mxu3 %v6261_v20  ;;  %5564 = vmatmul.bf16.gmra.mxu0 %v7729_v60  ;;  %v5946_v14 = vmul.f32 0.7978846, %v5882_v8  ;;  %v8552_v24 = vpop.eup %8551 }
 0x950   : > { %v5693_v45 = vmul.f32 %v12383_v9, %v12383_v9  ;;  %5653 = vmatmul.bf16.gmra.mxu1 %v7729_v60  ;;  %v5947_v3 = vmul.f32 0.7978846, %v5883_v44  ;;  %v8554_v30 = vpop.eup %8553  ;;  %v6136_v36 = vadd.f32 1.0, %v8552_v24  ;;  %v13413_v60 = vld [vmem:[#allocation81_spill] sm:$0xff]  ;;  %6671 = vperm.xlu1 %8540, %v9399_v25   ;;  %v6012_v25 = vmul.f32 0.5, %v12379_v57 }
 0x951   : > { %v5756_v12 = vmul.f32 %v5692_v10, %v12379_v57  ;;  %8555 = vtanh.f32 %v5946_v14  ;;  %v6137_v39 = vadd.f32 1.0, %v8554_v30  ;;  %v7733_v47 = vor.u32 %v13413_v60, %v13412_v35 }
 0x952   : > { %v5757_v4 = vmul.f32 %v5693_v45, %v12383_v9  ;;  %8557 = vtanh.f32 %v5947_v3  ;;  %v6200_v50 = vmul.f32 %v6136_v36, %v6008_v46 }
 0x953   : > { %v5820_v19 = vmul.f32 0.044715, %v5756_v12  ;;  %v6201_v52 = vmul.f32 %v6137_v39, %v6009_v34 }
 0x954   : > { %v5821_v27 = vmul.f32 0.044715, %v5757_v4  ;;  %v5527_v22 = vpop.f32.mrf.mxu0 }
 0x955   : > { %v12396_v7 = vadd.f32 %v5527_v22, %v12319_v53  ;;  %v5616_v33 = vpop.f32.mrf.mxu1  ;;  %v5884_v18 = vadd.f32 %v5820_v19, %v12379_v57 }
 0x956   : > { %v12400_v32 = vadd.f32 %v5616_v33, %v12321_v26  ;;  %v5885_v23 = vadd.f32 %v5821_v27, %v12383_v9  ;;  %6676 = vperm.xlu2 %8541, %v9402_v37  }
 0x957   : > { %v8556_v43 = vpop.eup %8555  ;;  %v5694_v38 = vmul.f32 %v12396_v7, %v12396_v7  ;;  %v5948_v5 = vmul.f32 0.7978846, %v5884_v18  ;;  %v6014_v39 = vmul.f32 0.5, %v12396_v7 }
 0x958   : > { %v8558_v29 = vpop.eup %8557  ;;  %v5695_v58 = vmul.f32 %v12400_v32, %v12400_v32  ;;  %v6138_v16 = vadd.f32 1.0, %v8556_v43  ;;  %v5949_v31 = vmul.f32 0.7978846, %v5885_v23  ;;  %v6015_v37 = vmul.f32 0.5, %v12400_v32  ;;  %6686 = vperm.xlu1 %8540, %v9408_v63  }
 0x959   : > { %v5758_v15 = vmul.f32 %v5694_v38, %v12396_v7  ;;  %v6139_v61 = vadd.f32 1.0, %v8558_v29  ;;  %8559 = vtanh.f32 %v5948_v5 }
 0x95a   : > { %v5759_v2 = vmul.f32 %v5695_v58, %v12400_v32  ;;  %v6202_v11 = vmul.f32 %v6138_v16, %v6010_v56  ;;  %8561 = vtanh.f32 %v5949_v31  ;;  %v6013_v58 = vmul.f32 0.5, %v12383_v9 }
 0x95b   : > { %v6203_v42 = vmul.f32 %v6139_v61, %v6011_v54  ;;  %v5822_v6 = vmul.f32 0.044715, %v5758_v15 }
 0x95c   : > { %v5530_v28 = vpop.f32.mrf.mxu0  ;;  %v6262_v40 = vpack.c.bf16 %v6202_v11, %v6200_v50  ;;  %v5823_v17 = vmul.f32 0.044715, %v5759_v2  ;;  %v13414_v50 = vld [vmem:[#allocation84_spill] sm:$0xff]  ;;  %v13415_v11 = vld [vmem:[#allocation87_spill] sm:$0xff] }
 0x95d   : > { %v12419_v21 = vadd.f32 %v5530_v28, %v12319_v53  ;;  %v5619_v0 = vpop.f32.mrf.mxu1  ;;  %v6263_v48 = vpack.c.bf16 %v6203_v42, %v6201_v52  ;;  %v5886_v20 = vadd.f32 %v5822_v6, %v12396_v7  ;;  %v7737_v31 = vor.u32 %v13415_v11, %v13414_v50 }
 0x95e   : > { %v12423_v8 = vadd.f32 %v5619_v0, %v12321_v26  ;;  %6439 = vmatmul.bf16.gmra.mxu2 %v6262_v40  ;;  %v5887_v44 = vadd.f32 %v5823_v17, %v12400_v32  ;;  %6691 = vperm.xlu2 %8541, %v9411_v59  }
 0x95f   : > { %v5696_v41 = vmul.f32 %v12419_v21, %v12419_v21  ;;  %6528 = vmatmul.bf16.gmra.mxu3 %v6263_v48  ;;  %5569 = vmatmul.bf16.gmra.mxu0 %v7733_v47  ;;  %v5950_v62 = vmul.f32 0.7978846, %v5886_v20  ;;  %v8560_v12 = vpop.eup %8559  ;;  %v6016_v55 = vmul.f32 0.5, %v12419_v21 }
 0x960   : > { %v5697_v10 = vmul.f32 %v12423_v8, %v12423_v8  ;;  %5658 = vmatmul.bf16.gmra.mxu1 %v7733_v47  ;;  %v5951_v14 = vmul.f32 0.7978846, %v5887_v44  ;;  %v8562_v1 = vpop.eup %8561  ;;  %v6140_v18 = vadd.f32 1.0, %v8560_v12  ;;  %6701 = vperm.xlu1 %8540, %v9417_v51  }
 0x961   : > { %v5760_v45 = vmul.f32 %v5696_v41, %v12419_v21  ;;  %8563 = vtanh.f32 %v5950_v62  ;;  %v6141_v43 = vadd.f32 1.0, %v8562_v1  ;;  %v13416_v1 = vld [vmem:[#allocation114_spill] sm:$0xff] }
 0x962   : > { %v5761_v3 = vmul.f32 %v5697_v10, %v12423_v8  ;;  %8565 = vtanh.f32 %v5951_v14  ;;  %v6204_v54 = vmul.f32 %v6140_v18, %v6012_v25 }
 0x963   : > { %v5824_v4 = vmul.f32 0.044715, %v5760_v45  ;;  %v6205_v5 = vmul.f32 %v6141_v43, %v6013_v58 }
 0x964   : > { %v5825_v24 = vmul.f32 0.044715, %v5761_v3  ;;  %v5532_v19 = vpop.f32.mrf.mxu0 }
 0x965   : > { %v12436_v30 = vadd.f32 %v5532_v19, %v12319_v53  ;;  %v5621_v27 = vpop.f32.mrf.mxu1  ;;  %v5888_v22 = vadd.f32 %v5824_v4, %v12419_v21 }
 0x966   : > { %v12440_v33 = vadd.f32 %v5621_v27, %v12321_v26  ;;  %v5889_v36 = vadd.f32 %v5825_v24, %v12423_v8  ;;  %6706 = vperm.xlu2 %8541, %v13416_v1  }
 0x967   : > { %v8564_v23 = vpop.eup %8563  ;;  %v5698_v13 = vmul.f32 %v12436_v30, %v12436_v30  ;;  %v5952_v34 = vmul.f32 0.7978846, %v5888_v22  ;;  %v6018_v18 = vmul.f32 0.5, %v12436_v30 }
 0x968   : > { %v8566_v38 = vpop.eup %8565  ;;  %v5699_v46 = vmul.f32 %v12440_v33, %v12440_v33  ;;  %v6142_v29 = vadd.f32 1.0, %v8564_v23  ;;  %v5953_v61 = vmul.f32 0.7978846, %v5889_v36  ;;  %v6017_v23 = vmul.f32 0.5, %v12423_v8 }
 0x969   : > { %v5762_v56 = vmul.f32 %v5698_v13, %v12436_v30  ;;  %v6143_v16 = vadd.f32 1.0, %v8566_v38  ;;  %8567 = vtanh.f32 %v5952_v34  ;;  %v6019_v25 = vmul.f32 0.5, %v12440_v33  ;;  %v13418_v34 = vld [vmem:[#allocation93_spill] sm:$0xff] }
 0x96a   : > { %v5763_v15 = vmul.f32 %v5699_v46, %v12440_v33  ;;  %v6206_v57 = vmul.f32 %v6142_v29, %v6014_v39  ;;  %8569 = vtanh.f32 %v5953_v61  ;;  %v13420_v61 = vld [vmem:[#allocation115_spill] sm:$0xff] }
 0x96b   : > { %v6207_v2 = vmul.f32 %v6143_v16, %v6015_v37  ;;  %v5826_v7 = vmul.f32 0.044715, %v5762_v56  ;;  %v13417_v16 = vld [vmem:[#allocation90_spill] sm:$0xff]  ;;  %6711 = vperm.xlu0 %8539, %v13420_v61   ;;  %v13429_v61 = vld [vmem:[#allocation123_spill] sm:$0xff] }
 0x96c   : > { %v5535_v52 = vpop.f32.mrf.mxu0  ;;  %v6264_v42 = vpack.c.bf16 %v6206_v57, %v6204_v54  ;;  %v5827_v9 = vmul.f32 0.044715, %v5763_v15  ;;  %v13419_v57 = vld [vmem:[#allocation116_spill] sm:$0xff] }
 0x96d   : > { %v12459_v32 = vadd.f32 %v5535_v52, %v12319_v53  ;;  %v5624_v35 = vpop.f32.mrf.mxu1  ;;  %v6265_v60 = vpack.c.bf16 %v6207_v2, %v6205_v5  ;;  %v5890_v47 = vadd.f32 %v5826_v7, %v12436_v30  ;;  %v7741_v30 = vor.u32 %v13418_v34, %v13417_v16  ;;  %6716 = vperm.xlu1 %8540, %v13419_v57   ;;  %v13421_v7 = vld [vmem:[#allocation117_spill] sm:$0xff]  ;;  %v13427_v16 = vld [vmem:[#allocation122_spill] sm:$0xff] }
 0x96e   : > { %v12463_v6 = vadd.f32 %v5624_v35, %v12321_v26  ;;  %6444 = vmatmul.bf16.gmra.mxu2 %v6264_v42  ;;  %v5891_v28 = vadd.f32 %v5827_v9, %v12440_v33  ;;  %6721 = vperm.xlu2 %8541, %v13421_v7   ;;  %v13428_v34 = vld [vmem:[#allocation121_spill] sm:$0xff] }
 0x96f   : > { %v5700_v49 = vmul.f32 %v12459_v32, %v12459_v32  ;;  %6533 = vmatmul.bf16.gmra.mxu3 %v6265_v60  ;;  %5574 = vmatmul.bf16.gmra.mxu0 %v7737_v31  ;;  %v5954_v63 = vmul.f32 0.7978846, %v5890_v47  ;;  %v8568_v20 = vpop.eup %8567  ;;  %v6020_v1 = vmul.f32 0.5, %v12459_v32 }
 0x970   : > { %v5701_v40 = vmul.f32 %v12463_v6, %v12463_v6  ;;  %5663 = vmatmul.bf16.gmra.mxu1 %v7737_v31  ;;  %v5955_v17 = vmul.f32 0.7978846, %v5891_v28  ;;  %v8570_v59 = vpop.eup %8569  ;;  %v6144_v12 = vadd.f32 1.0, %v8568_v20 }
 0x971   : > { %v5764_v0 = vmul.f32 %v5700_v49, %v12459_v32  ;;  %8571 = vtanh.f32 %v5954_v63  ;;  %v6145_v19 = vadd.f32 1.0, %v8570_v59 }
 0x972   : > { %v5765_v48 = vmul.f32 %v5701_v40, %v12463_v6  ;;  %8573 = vtanh.f32 %v5955_v17  ;;  %v6208_v39 = vmul.f32 %v6144_v12, %v6016_v55 }
 0x973   : > { %v5828_v44 = vmul.f32 0.044715, %v5764_v0  ;;  %v6209_v56 = vmul.f32 %v6145_v19, %v6017_v23  ;;  %v13422_v0 = vld [vmem:[#allocation119_spill] sm:$0xff] }
 0x974   : > { %v5829_v41 = vmul.f32 0.044715, %v5765_v48  ;;  %v5537_v62 = vpop.f32.mrf.mxu0  ;;  %v13423_v48 = vld [vmem:[#allocation118_spill] sm:$0xff] }
 0x975   : > { %v12476_v10 = vadd.f32 %v5537_v62, %v12319_v53  ;;  %v5626_v14 = vpop.f32.mrf.mxu1  ;;  %v5892_v45 = vadd.f32 %v5828_v44, %v12459_v32  ;;  %6731 = vperm.xlu1 %8540, %v13422_v0   ;;  %6726 = vperm.xlu0 %8539, %v13423_v48  }
 0x976   : > { %v12480_v3 = vadd.f32 %v5626_v14, %v12321_v26  ;;  %v5893_v4 = vadd.f32 %v5829_v41, %v12463_v6 }
 0x977   : > { %v8572_v24 = vpop.eup %8571  ;;  %v5702_v51 = vmul.f32 %v12476_v10, %v12476_v10  ;;  %v5956_v38 = vmul.f32 0.7978846, %v5892_v45  ;;  %v13424_v45 = vld [vmem:[#allocation120_spill] sm:$0xff]  ;;  %v6022_v19 = vmul.f32 0.5, %v12476_v10 }
 0x978   : > { %v8574_v27 = vpop.eup %8573  ;;  %v5703_v22 = vmul.f32 %v12480_v3, %v12480_v3  ;;  %v6146_v36 = vadd.f32 1.0, %v8572_v24  ;;  %v5957_v29 = vmul.f32 0.7978846, %v5893_v4  ;;  %6736 = vperm.xlu2 %8541, %v13424_v45  }
 0x979   : > { %v5766_v13 = vmul.f32 %v5702_v51, %v12476_v10  ;;  %v6147_v43 = vadd.f32 1.0, %v8574_v27  ;;  %8575 = vtanh.f32 %v5956_v38 }
 0x97a   : > { %v5767_v46 = vmul.f32 %v5703_v22, %v12480_v3  ;;  %v6210_v21 = vmul.f32 %v6146_v36, %v6018_v18  ;;  %8577 = vtanh.f32 %v5957_v29  ;;  %v6021_v22 = vmul.f32 0.5, %v12463_v6  ;;  %v13425_v29 = vld [vmem:[#allocation96_spill] sm:$0xff] }
 0x97b   : > { %v5830_v58 = vmul.f32 0.044715, %v5766_v13  ;;  %v6211_v37 = vmul.f32 %v6147_v43, %v6019_v25  ;;  %v6023_v36 = vmul.f32 0.5, %v12480_v3 }
 0x97c   : > { %v5831_v15 = vmul.f32 0.044715, %v5767_v46  ;;  %v5540_v54 = vpop.f32.mrf.mxu0  ;;  %v6266_v8 = vpack.c.bf16 %v6210_v21, %v6208_v39 }
 0x97d   : > { %v12499_v33 = vadd.f32 %v5540_v54, %v12319_v53  ;;  %v5629_v5 = vpop.f32.mrf.mxu1  ;;  %v6267_v2 = vpack.c.bf16 %v6211_v37, %v6209_v56  ;;  %v5894_v50 = vadd.f32 %v5830_v58, %v12476_v10  ;;  %v13426_v58 = vld [vmem:[#allocation100_spill] sm:$0xff]  ;;  %6746 = vperm.xlu1 %8540, %v13427_v16   ;;  %6741 = vperm.xlu0 %8539, %v13428_v34  }
 0x97e   : > { %v12503_v11 = vadd.f32 %v5629_v5, %v12321_v26  ;;  %6449 = vmatmul.bf16.gmra.mxu2 %v6266_v8  ;;  %v5895_v31 = vadd.f32 %v5831_v15, %v12480_v3  ;;  %v7745_v10 = vor.u32 %v13426_v58, %v13425_v29 }
 0x97f   : > { %v5704_v52 = vmul.f32 %v12499_v33, %v12499_v33  ;;  %6538 = vmatmul.bf16.gmra.mxu3 %v6267_v2  ;;  %5579 = vmatmul.bf16.gmra.mxu0 %v7741_v30  ;;  %v5958_v42 = vmul.f32 0.7978846, %v5894_v50  ;;  %v8576_v28 = vpop.eup %8575 }
 0x980   : > { %v5705_v9 = vmul.f32 %v12503_v11, %v12503_v11  ;;  %5668 = vmatmul.bf16.gmra.mxu1 %v7741_v30  ;;  %v5959_v35 = vmul.f32 0.7978846, %v5895_v31  ;;  %v8578_v63 = vpop.eup %8577  ;;  %v6148_v62 = vadd.f32 1.0, %v8576_v28  ;;  %6751 = vperm.xlu2 %8541, %v13429_v61   ;;  %v13430_v28 = vld [vmem:[#allocation125_spill] sm:$0xff] }
 0x981   : > { %v5768_v60 = vmul.f32 %v5704_v52, %v12499_v33  ;;  %8579 = vtanh.f32 %v5958_v42  ;;  %v6149_v24 = vadd.f32 1.0, %v8578_v63 }
 0x982   : > { %v5769_v47 = vmul.f32 %v5705_v9, %v12503_v11  ;;  %8581 = vtanh.f32 %v5959_v35  ;;  %v6212_v43 = vmul.f32 %v6148_v62, %v6020_v1 }
 0x983   : > { %v5832_v49 = vmul.f32 0.044715, %v5768_v60  ;;  %v6213_v39 = vmul.f32 %v6149_v24, %v6021_v22 }
 0x984   : > { %v5833_v40 = vmul.f32 0.044715, %v5769_v47  ;;  %v5542_v17 = vpop.f32.mrf.mxu0 }
 0x985   : > { %v12516_v20 = vadd.f32 %v5542_v17, %v12319_v53  ;;  %v5631_v44 = vpop.f32.mrf.mxu1  ;;  %v5896_v59 = vadd.f32 %v5832_v49, %v12499_v33  ;;  %6761 = vperm.xlu1 %8540, %v13430_v28   ;;  %v13431_v49 = vld [vmem:[#allocation124_spill] sm:$0xff] }
 0x986   : > { %v12520_v41 = vadd.f32 %v5631_v44, %v12321_v26  ;;  %v5897_v14 = vadd.f32 %v5833_v40, %v12503_v11  ;;  %6756 = vperm.xlu0 %8539, %v13431_v49  }
 0x987   : > { %v8580_v12 = vpop.eup %8579  ;;  %v5706_v4 = vmul.f32 %v12516_v20, %v12516_v20  ;;  %v5960_v13 = vmul.f32 0.7978846, %v5896_v59  ;;  %v6026_v1 = vmul.f32 0.5, %v12516_v20 }
 0x988   : > { %v8582_v51 = vpop.eup %8581  ;;  %v5707_v55 = vmul.f32 %v12520_v41, %v12520_v41  ;;  %v6150_v27 = vadd.f32 1.0, %v8580_v12  ;;  %v5961_v38 = vmul.f32 0.7978846, %v5897_v14  ;;  %v6024_v14 = vmul.f32 0.5, %v12499_v33 }
 0x989   : > { %v5770_v18 = vmul.f32 %v5706_v4, %v12516_v20  ;;  %v6151_v23 = vadd.f32 1.0, %v8582_v51  ;;  %8583 = vtanh.f32 %v5960_v13  ;;  %v6025_v51 = vmul.f32 0.5, %v12503_v11 }
 0x98a   : > { %v5771_v25 = vmul.f32 %v5707_v55, %v12520_v41  ;;  %v6214_v32 = vmul.f32 %v6150_v27, %v6022_v19  ;;  %8585 = vtanh.f32 %v5961_v38  ;;  %v6027_v19 = vmul.f32 0.5, %v12520_v41  ;;  %v13433_v38 = vld [vmem:[#allocation108_spill] sm:$0xff] }
 0x98b   : > { %v5834_v46 = vmul.f32 0.044715, %v5770_v18  ;;  %v6215_v21 = vmul.f32 %v6151_v23, %v6023_v36 }
 0x98c   : > { %v5835_v56 = vmul.f32 0.044715, %v5771_v25  ;;  %v5545_v37 = vpop.f32.mrf.mxu0  ;;  %v6268_v6 = vpack.c.bf16 %v6214_v32, %v6212_v43  ;;  %v13432_v32 = vld [vmem:[#allocation104_spill] sm:$0xff] }
 0x98d   : > { %v12539_v3 = vadd.f32 %v5545_v37, %v12319_v53  ;;  %v5634_v30 = vpop.f32.mrf.mxu1  ;;  %v6269_v15 = vpack.c.bf16 %v6215_v21, %v6213_v39  ;;  %v5898_v54 = vadd.f32 %v5834_v46, %v12516_v20  ;;  %v7749_v20 = vor.u32 %v13433_v38, %v13432_v32 }
 0x98e   : > { %v12543_v8 = vadd.f32 %v5634_v30, %v12321_v26  ;;  %6454 = vmatmul.bf16.gmra.mxu2 %v6268_v6  ;;  %v5899_v57 = vadd.f32 %v5835_v56, %v12520_v41 }
 0x98f   : > { %v5708_v5 = vmul.f32 %v12539_v3, %v12539_v3  ;;  %6543 = vmatmul.bf16.gmra.mxu3 %v6269_v15  ;;  %5584 = vmatmul.bf16.gmra.mxu0 %v7745_v10  ;;  %v5962_v2 = vmul.f32 0.7978846, %v5898_v54  ;;  %v8584_v42 = vpop.eup %8583 }
 0x990   : > { %v5709_v50 = vmul.f32 %v12543_v8, %v12543_v8  ;;  %5673 = vmatmul.bf16.gmra.mxu1 %v7745_v10  ;;  %v5963_v31 = vmul.f32 0.7978846, %v5899_v57  ;;  %v8586_v35 = vpop.eup %8585  ;;  %v6152_v48 = vadd.f32 1.0, %v8584_v42 }
 0x991   : > { %v5772_v7 = vmul.f32 %v5708_v5, %v12539_v3  ;;  %8587 = vtanh.f32 %v5962_v2  ;;  %v6153_v45 = vadd.f32 1.0, %v8586_v35 }
 0x992   : > { %v5773_v52 = vmul.f32 %v5709_v50, %v12543_v8  ;;  %8589 = vtanh.f32 %v5963_v31  ;;  %v6216_v36 = vmul.f32 %v6152_v48, %v6024_v14 }
 0x993   : > { %v5836_v9 = vmul.f32 0.044715, %v5772_v7  ;;  %v6217_v25 = vmul.f32 %v6153_v45, %v6025_v51 }
 0x994   : > { %v5837_v60 = vmul.f32 0.044715, %v5773_v52  ;;  %v5547_v47 = vpop.f32.mrf.mxu0 }
 0x995   : > { %v12556_v63 = vadd.f32 %v5547_v47, %v12319_v53  ;;  %v5636_v40 = vpop.f32.mrf.mxu1  ;;  %v5900_v17 = vadd.f32 %v5836_v9, %v12539_v3  ;;  %v6028_v47 = vmul.f32 0.5, %v12539_v3 }
 0x996   : > { %v12560_v0 = vadd.f32 %v5636_v40, %v12321_v26  ;;  %v5901_v44 = vadd.f32 %v5837_v60, %v12543_v8 }
 0x997   : > { %v8588_v59 = vpop.eup %8587  ;;  %v5710_v62 = vmul.f32 %v12556_v63, %v12556_v63  ;;  %v5964_v22 = vmul.f32 0.7978846, %v5900_v17  ;;  %v6030_v17 = vmul.f32 0.5, %v12556_v63 }
 0x998   : > { %v8590_v12 = vpop.eup %8589  ;;  %v5711_v4 = vmul.f32 %v12560_v0, %v12560_v0  ;;  %v6154_v24 = vadd.f32 1.0, %v8588_v59  ;;  %v5965_v23 = vmul.f32 0.7978846, %v5901_v44  ;;  %v6029_v44 = vmul.f32 0.5, %v12543_v8 }
 0x999   : > { %v5774_v55 = vmul.f32 %v5710_v62, %v12556_v63  ;;  %v6155_v27 = vadd.f32 1.0, %v8590_v12  ;;  %8591 = vtanh.f32 %v5964_v22  ;;  %v6031_v62 = vmul.f32 0.5, %v12560_v0 }
 0x99a   : > { %v5775_v18 = vmul.f32 %v5711_v4, %v12560_v0  ;;  %v6218_v33 = vmul.f32 %v6154_v24, %v6026_v1  ;;  %8593 = vtanh.f32 %v5965_v23 }
 0x99b   : > { %v5838_v13 = vmul.f32 0.044715, %v5774_v55  ;;  %v6219_v43 = vmul.f32 %v6155_v27, %v6027_v19 }
 0x99c   : > { %v5839_v46 = vmul.f32 0.044715, %v5775_v18  ;;  %v5550_v39 = vpop.f32.mrf.mxu0  ;;  %v6270_v11 = vpack.c.bf16 %v6218_v33, %v6216_v36 }
 0x99d   : > { %v12576_v21 = vadd.f32 %v5550_v39, %v12319_v53  ;;  %v5639_v41 = vpop.f32.mrf.mxu1  ;;  %v6271_v29 = vpack.c.bf16 %v6219_v43, %v6217_v25  ;;  %v5902_v58 = vadd.f32 %v5838_v13, %v12556_v63 }
 0x99e   : > { %v12580_v10 = vadd.f32 %v5639_v41, %v12321_v26  ;;  %6459 = vmatmul.bf16.gmra.mxu2 %v6270_v11  ;;  %v5903_v56 = vadd.f32 %v5839_v46, %v12560_v0 }
 0x99f   : > { %v5712_v37 = vmul.f32 %v12576_v21, %v12576_v21  ;;  %6548 = vmatmul.bf16.gmra.mxu3 %v6271_v29  ;;  %5589 = vmatmul.bf16.gmra.mxu0 %v7749_v20  ;;  %v5966_v6 = vmul.f32 0.7978846, %v5902_v58  ;;  %v8592_v54 = vpop.eup %8591 }
 0x9a0   : > { %v5713_v16 = vmul.f32 %v12580_v10, %v12580_v10  ;;  %5678 = vmatmul.bf16.gmra.mxu1 %v7749_v20  ;;  %v5967_v34 = vmul.f32 0.7978846, %v5903_v56  ;;  %v8594_v61 = vpop.eup %8593  ;;  %v6156_v42 = vadd.f32 1.0, %v8592_v54 }
 0x9a1   : > { %v5776_v30 = vmul.f32 %v5712_v37, %v12576_v21  ;;  %8595 = vtanh.f32 %v5966_v6  ;;  %v6157_v28 = vadd.f32 1.0, %v8594_v61 }
 0x9a2   : > { %v5777_v15 = vmul.f32 %v5713_v16, %v12580_v10  ;;  %8597 = vtanh.f32 %v5967_v34  ;;  %v6220_v4 = vmul.f32 %v6156_v42, %v6028_v47 }
 0x9a3   : > { %v5840_v57 = vmul.f32 0.044715, %v5776_v30  ;;  %v6221_v51 = vmul.f32 %v6157_v28, %v6029_v44 }
 0x9a4   : > { %v5841_v5 = vmul.f32 0.044715, %v5777_v15  ;;  %v5552_v2 = vpop.f32.mrf.mxu0  ;;  %v6032_v15 = vmul.f32 0.5, %v12576_v21 }
 0x9a5   : > { %v12590_v50 = vadd.f32 %v5552_v2, %v12319_v53  ;;  %v5641_v31 = vpop.f32.mrf.mxu1  ;;  %v5904_v7 = vadd.f32 %v5840_v57, %v12576_v21 }
 0x9a6   : > { %v12594_v52 = vadd.f32 %v5641_v31, %v12321_v26  ;;  %v5905_v9 = vadd.f32 %v5841_v5, %v12580_v10  ;;  %v6033_v31 = vmul.f32 0.5, %v12580_v10 }
 0x9a7   : > { %v8596_v35 = vpop.eup %8595  ;;  %v5714_v60 = vmul.f32 %v12590_v50, %v12590_v50  ;;  %v5968_v45 = vmul.f32 0.7978846, %v5904_v7  ;;  %v6034_v5 = vmul.f32 0.5, %v12590_v50 }
 0x9a8   : > { %v8598_v49 = vpop.eup %8597  ;;  %v5715_v40 = vmul.f32 %v12594_v52, %v12594_v52  ;;  %v6158_v48 = vadd.f32 1.0, %v8596_v35  ;;  %v5969_v1 = vmul.f32 0.7978846, %v5905_v9  ;;  %v6035_v42 = vmul.f32 0.5, %v12594_v52 }
 0x9a9   : > { %v5778_v59 = vmul.f32 %v5714_v60, %v12590_v50  ;;  %v6159_v14 = vadd.f32 1.0, %v8598_v49  ;;  %8599 = vtanh.f32 %v5968_v45 }
 0x9aa   : > { %v5779_v12 = vmul.f32 %v5715_v40, %v12594_v52  ;;  %v6222_v3 = vmul.f32 %v6158_v48, %v6030_v17  ;;  %8601 = vtanh.f32 %v5969_v1 }
 0x9ab   : > { %v5842_v24 = vmul.f32 0.044715, %v5778_v59  ;;  %v6223_v55 = vmul.f32 %v6159_v14, %v6031_v62 }
 0x9ac   : > { %v5843_v19 = vmul.f32 0.044715, %v5779_v12  ;;  %v5555_v27 = vpop.f32.mrf.mxu0  ;;  %v6272_v63 = vpack.c.bf16 %v6222_v3, %v6220_v4 }
 0x9ad   : > { %v12608_v22 = vadd.f32 %v5555_v27, %v12319_v53  ;;  %v5644_v8 = vpop.f32.mrf.mxu1  ;;  %v6273_v18 = vpack.c.bf16 %v6223_v55, %v6221_v51  ;;  %v5906_v0 = vadd.f32 %v5842_v24, %v12590_v50 }
 0x9ae   : > { %v12612_v36 = vadd.f32 %v5644_v8, %v12321_v26  ;;  %6464 = vmatmul.bf16.gmra.mxu2 %v6272_v63  ;;  %v5907_v33 = vadd.f32 %v5843_v19, %v12594_v52 }
 0x9af   : > { %v5716_v23 = vmul.f32 %v12608_v22, %v12608_v22  ;;  %6553 = vmatmul.bf16.gmra.mxu3 %v6273_v18  ;;  %v5970_v13 = vmul.f32 0.7978846, %v5906_v0  ;;  %v8600_v20 = vpop.eup %8599 }
 0x9b0   : > { %v5717_v25 = vmul.f32 %v12612_v36, %v12612_v36  ;;  %v5971_v43 = vmul.f32 0.7978846, %v5907_v33  ;;  %v8602_v39 = vpop.eup %8601  ;;  %v6160_v6 = vadd.f32 1.0, %v8600_v20 }
 0x9b1   : > { %v5780_v32 = vmul.f32 %v5716_v23, %v12608_v22  ;;  %8603 = vtanh.f32 %v5970_v13  ;;  %v6161_v54 = vadd.f32 1.0, %v8602_v39 }
 0x9b2   : > { %v5781_v38 = vmul.f32 %v5717_v25, %v12612_v36  ;;  %8605 = vtanh.f32 %v5971_v43  ;;  %v6224_v47 = vmul.f32 %v6160_v6, %v6032_v15  ;;  %v6037_v6 = vmul.f32 0.5, %v12612_v36 }
 0x9b3   : > { %v5844_v46 = vmul.f32 0.044715, %v5780_v32  ;;  %v6225_v40 = vmul.f32 %v6161_v54, %v6033_v31 }
 0x9b4   : > { %v5845_v11 = vmul.f32 0.044715, %v5781_v38  ;;  %v5557_v41 = vpop.f32.mrf.mxu0  ;;  %v6036_v38 = vmul.f32 0.5, %v12608_v22 }
 0x9b5   : > { %v12622_v29 = vadd.f32 %v5557_v41, %v12319_v53  ;;  %v5646_v58 = vpop.f32.mrf.mxu1  ;;  %v5908_v56 = vadd.f32 %v5844_v46, %v12608_v22 }
 0x9b6   : > { %v12626_v37 = vadd.f32 %v5646_v58, %v12321_v26  ;;  %v5909_v16 = vadd.f32 %v5845_v11, %v12612_v36 }
 0x9b7   : > { %v8604_v34 = vpop.eup %8603  ;;  %v5718_v30 = vmul.f32 %v12622_v29, %v12622_v29  ;;  %v5972_v35 = vmul.f32 0.7978846, %v5908_v56  ;;  %v6038_v11 = vmul.f32 0.5, %v12622_v29 }
 0x9b8   : > { %v8606_v57 = vpop.eup %8605  ;;  %v5719_v61 = vmul.f32 %v12626_v37, %v12626_v37  ;;  %v6162_v2 = vadd.f32 1.0, %v8604_v34  ;;  %v5973_v28 = vmul.f32 0.7978846, %v5909_v16  ;;  %v6039_v16 = vmul.f32 0.5, %v12626_v37 }
 0x9b9   : > { %v5782_v7 = vmul.f32 %v5718_v30, %v12622_v29  ;;  %v6163_v9 = vadd.f32 1.0, %v8606_v57  ;;  %8607 = vtanh.f32 %v5972_v35  ;;  %v12681_v35 = vld [vmem:[%s13158_s6 + $0x3] ss:$0 sm:$0xff] }
 0x9ba   : > { %v5783_v60 = vmul.f32 %v5719_v61, %v12626_v37  ;;  %v6226_v21 = vmul.f32 %v6162_v2, %v6034_v5  ;;  %8609 = vtanh.f32 %v5973_v28 }
 0x9bb   : > { %v5846_v49 = vmul.f32 0.044715, %v5782_v7  ;;  %v6227_v17 = vmul.f32 %v6163_v9, %v6035_v42 }
 0x9bc   : > { %v5847_v48 = vmul.f32 0.044715, %v5783_v60  ;;  %v5560_v44 = vpop.f32.mrf.mxu0  ;;  %v6274_v50 = vpack.c.bf16 %v6226_v21, %v6224_v47 }
 0x9bd   : > { %v12640_v59 = vadd.f32 %v5560_v44, %v12319_v53  ;;  %v5649_v10 = vpop.f32.mrf.mxu1  ;;  %v6275_v62 = vpack.c.bf16 %v6227_v17, %v6225_v40  ;;  %v5910_v52 = vadd.f32 %v5846_v49, %v12622_v29 }
 0x9be   : > { %v12644_v14 = vadd.f32 %v5649_v10, %v12321_v26  ;;  %6469 = vmatmul.bf16.gmra.mxu2 %v6274_v50  ;;  %v5911_v45 = vadd.f32 %v5847_v48, %v12626_v37  ;;  %v6607_v48 = vpop.permute.xlu0 %6606 }
 0x9bf   : > { %v5720_v12 = vmul.f32 %v12640_v59, %v12640_v59  ;;  %6558 = vmatmul.bf16.gmra.mxu3 %v6275_v62  ;;  %v5974_v4 = vmul.f32 0.7978846, %v5910_v52  ;;  %v8608_v55 = vpop.eup %8607 }
 0x9c0   : > { %v5721_v3 = vmul.f32 %v12644_v14, %v12644_v14  ;;  %v5975_v1 = vmul.f32 0.7978846, %v5911_v45  ;;  %v8610_v27 = vpop.eup %8609  ;;  %v6164_v13 = vadd.f32 1.0, %v8608_v55 }
 0x9c1   : > { %v5784_v24 = vmul.f32 %v5720_v12, %v12640_v59  ;;  %8611 = vtanh.f32 %v5974_v4  ;;  %v6165_v20 = vadd.f32 1.0, %v8610_v27 }
 0x9c2   : > { %v5785_v51 = vmul.f32 %v5721_v3, %v12644_v14  ;;  %8613 = vtanh.f32 %v5975_v1  ;;  %v6228_v15 = vmul.f32 %v6164_v13, %v6036_v38  ;;  %v6041_v13 = vmul.f32 0.5, %v12644_v14 }
 0x9c3   : > { %v5848_v19 = vmul.f32 0.044715, %v5784_v24  ;;  %v6229_v61 = vmul.f32 %v6165_v20, %v6037_v6 }
 0x9c4   : > { %v5849_v63 = vmul.f32 0.044715, %v5785_v51  ;;  %v5562_v8 = vpop.f32.mrf.mxu0 }
 0x9c5   : > { %v12654_v18 = vadd.f32 %v5562_v8, %v12319_v53  ;;  %v5651_v0 = vpop.f32.mrf.mxu1  ;;  %v5912_v33 = vadd.f32 %v5848_v19, %v12640_v59 }
 0x9c6   : > { %v12658_v23 = vadd.f32 %v5651_v0, %v12321_v26  ;;  %v5913_v25 = vadd.f32 %v5849_v63, %v12644_v14 }
 0x9c7   : > { %v8612_v43 = vpop.eup %8611  ;;  %v5722_v32 = vmul.f32 %v12654_v18, %v12654_v18  ;;  %v5976_v58 = vmul.f32 0.7978846, %v5912_v33  ;;  %v6040_v33 = vmul.f32 0.5, %v12640_v59  ;;  %v6042_v38 = vmul.f32 0.5, %v12654_v18 }
 0x9c8   : > { %v8614_v46 = vpop.eup %8613  ;;  %v5723_v39 = vmul.f32 %v12658_v23, %v12658_v23  ;;  %v6166_v41 = vadd.f32 1.0, %v8612_v43  ;;  %v5977_v54 = vmul.f32 0.7978846, %v5913_v25 }
 0x9c9   : > { %v5786_v56 = vmul.f32 %v5722_v32, %v12654_v18  ;;  %v6167_v34 = vadd.f32 1.0, %v8614_v46  ;;  %8615 = vtanh.f32 %v5976_v58  ;;  %v6043_v58 = vmul.f32 0.5, %v12658_v23 }
 0x9ca   : > { %v5787_v30 = vmul.f32 %v5723_v39, %v12658_v23  ;;  %v6230_v22 = vmul.f32 %v6166_v41, %v6038_v11  ;;  %8617 = vtanh.f32 %v5977_v54 }
 0x9cb   : > { %v5850_v57 = vmul.f32 0.044715, %v5786_v56  ;;  %v6231_v5 = vmul.f32 %v6167_v34, %v6039_v16 }
 0x9cc   : > { %v5851_v2 = vmul.f32 0.044715, %v5787_v30  ;;  %v5565_v31 = vpop.f32.mrf.mxu0  ;;  %v6276_v29 = vpack.c.bf16 %v6230_v22, %v6228_v15  ;;  %v6612_v15 = vpop.permute.xlu0 %6611 }
 0x9cd   : > { %v12672_v7 = vadd.f32 %v5565_v31, %v12319_v53  ;;  %v5654_v42 = vpop.f32.mrf.mxu1  ;;  %v6277_v36 = vpack.c.bf16 %v6231_v5, %v6229_v61  ;;  %v5914_v37 = vadd.f32 %v5850_v57, %v12654_v18 }
 0x9ce   : > { %v12676_v9 = vadd.f32 %v5654_v42, %v12321_v26  ;;  %6474 = vmatmul.bf16.gmra.mxu2 %v6276_v29  ;;  %v5915_v60 = vadd.f32 %v5851_v2, %v12658_v23 }
 0x9cf   : > { %v5724_v47 = vmul.f32 %v12672_v7, %v12672_v7  ;;  %6563 = vmatmul.bf16.gmra.mxu3 %v6277_v36  ;;  %v5978_v21 = vmul.f32 0.7978846, %v5914_v37  ;;  %v8616_v44 = vpop.eup %8615 }
 0x9d0   : > { %v5725_v28 = vmul.f32 %v12676_v9, %v12676_v9  ;;  %v5979_v49 = vmul.f32 0.7978846, %v5915_v60  ;;  %v8618_v45 = vpop.eup %8617  ;;  %v6168_v51 = vadd.f32 1.0, %v8616_v44 }
 0x9d1   : > { %v5788_v40 = vmul.f32 %v5724_v47, %v12672_v7  ;;  %v6435_v17 = vpop.f32.mrf.mxu2  ;;  %8619 = vtanh.f32 %v5978_v21  ;;  %v6169_v25 = vadd.f32 1.0, %v8618_v45 }
 0x9d2   : > { %v5789_v50 = vmul.f32 %v5725_v28, %v12676_v9  ;;  %v6436_v10 = vadd.f32 %v12681_v35, %v6435_v17  ;;  %v6524_v62 = vpop.f32.mrf.mxu3  ;;  %8621 = vtanh.f32 %v5979_v49  ;;  %v6232_v41 = vmul.f32 %v6168_v51, %v6040_v33  ;;  %v6617_v17 = vpop.permute.xlu1 %6616 }
 0x9d3   : > { %v5852_v52 = vmul.f32 0.044715, %v5788_v40  ;;  %v6233_v22 = vmul.f32 %v6169_v25, %v6041_v13  ;;  %v6044_v25 = vmul.f32 0.5, %v12672_v7 }
 0x9d4   : > { %v5853_v12 = vmul.f32 0.044715, %v5789_v50  ;;  %v6525_v4 = vadd.f32 %v6524_v62, %v6436_v10  ;;  %v5567_v3 = vpop.f32.mrf.mxu0 }
 0x9d5   : > { %v12692_v1 = vadd.f32 %v5567_v3, %v12319_v53  ;;  %v5656_v24 = vpop.f32.mrf.mxu1  ;;  %v5916_v55 = vadd.f32 %v5852_v52, %v12672_v7 }
 0x9d6   : > { %v12696_v19 = vadd.f32 %v5656_v24, %v12321_v26  ;;  %v12698_v27 = vmul.f32 %v6607_v48, %v6525_v4  ;;  %v5917_v63 = vadd.f32 %v5853_v12, %v12676_v9 }
 0x9d7   : > { %v8620_v8 = vpop.eup %8619  ;;  %v5726_v0 = vmul.f32 %v12692_v1, %v12692_v1  ;;  %v5980_v46 = vmul.f32 0.7978846, %v5916_v55 }
 0x9d8   : > { %v8622_v43 = vpop.eup %8621  ;;  %v5727_v32 = vmul.f32 %v12696_v19, %v12696_v19  ;;  %v6170_v20 = vadd.f32 1.0, %v8620_v8  ;;  %v5981_v34 = vmul.f32 0.7978846, %v5917_v63 }
 0x9d9   : > { %v5790_v39 = vmul.f32 %v5726_v0, %v12692_v1  ;;  %v6437_v11 = vpop.f32.mrf.mxu2  ;;  %v6171_v56 = vadd.f32 1.0, %v8622_v43  ;;  %8623 = vtanh.f32 %v5980_v46  ;;  %v6045_v43 = vmul.f32 0.5, %v12676_v9 }
 0x9da   : > { %v5791_v59 = vmul.f32 %v5727_v32, %v12696_v19  ;;  %v6438_v14 = vadd.f32 %v12681_v35, %v6437_v11  ;;  %v6526_v6 = vpop.f32.mrf.mxu3  ;;  %v6234_v16 = vmul.f32 %v6170_v20, %v6042_v38  ;;  %8625 = vtanh.f32 %v5981_v34 }
 0x9db   : > { %v5854_v30 = vmul.f32 0.044715, %v5790_v39  ;;  %v6235_v18 = vmul.f32 %v6171_v56, %v6043_v58  ;;  %v6046_v46 = vmul.f32 0.5, %v12692_v1 }
 0x9dc   : > { %v5855_v54 = vmul.f32 0.044715, %v5791_v59  ;;  %v6527_v57 = vadd.f32 %v6526_v6, %v6438_v14  ;;  %v5570_v61 = vpop.f32.mrf.mxu0  ;;  %v6278_v5 = vpack.c.bf16 %v6234_v16, %v6232_v41  ;;  %v6047_v59 = vmul.f32 0.5, %v12696_v19 }
 0x9dd   : > { %v12713_v2 = vadd.f32 %v5570_v61, %v12319_v53  ;;  %v5659_v23 = vpop.f32.mrf.mxu1  ;;  %v6279_v31 = vpack.c.bf16 %v6235_v18, %v6233_v22  ;;  %v5918_v29 = vadd.f32 %v5854_v30, %v12692_v1 }
 0x9de   : > { %v12717_v42 = vadd.f32 %v5659_v23, %v12321_v26  ;;  %v12719_v36 = vmul.f32 %v6612_v15, %v6527_v57  ;;  %6479 = vmatmul.bf16.gmra.mxu2 %v6278_v5  ;;  %v5919_v37 = vadd.f32 %v5855_v54, %v12696_v19  ;;  %v6622_v15 = vpop.permute.xlu1 %6621 }
 0x9df   : > { %v5728_v60 = vmul.f32 %v12713_v2, %v12713_v2  ;;  %6568 = vmatmul.bf16.gmra.mxu3 %v6279_v31  ;;  %v5982_v47 = vmul.f32 0.7978846, %v5918_v29  ;;  %v8624_v48 = vpop.eup %8623 }
 0x9e0   : > { %v5729_v21 = vmul.f32 %v12717_v42, %v12717_v42  ;;  %v5983_v28 = vmul.f32 0.7978846, %v5919_v37  ;;  %v8626_v52 = vpop.eup %8625  ;;  %v6172_v51 = vadd.f32 1.0, %v8624_v48  ;;  %v6627_v48 = vpop.permute.xlu2 %6626 }
 0x9e1   : > { %v5792_v49 = vmul.f32 %v5728_v60, %v12713_v2  ;;  %v6440_v40 = vpop.f32.mrf.mxu2  ;;  %8627 = vtanh.f32 %v5982_v47  ;;  %v6173_v32 = vadd.f32 1.0, %v8626_v52 }
 0x9e2   : > { %v5793_v44 = vmul.f32 %v5729_v21, %v12717_v42  ;;  %v6441_v50 = vadd.f32 %v12681_v35, %v6440_v40  ;;  %v6529_v10 = vpop.f32.mrf.mxu3  ;;  %8629 = vtanh.f32 %v5983_v28  ;;  %v6236_v56 = vmul.f32 %v6172_v51, %v6044_v25 }
 0x9e3   : > { %v5856_v62 = vmul.f32 0.044715, %v5792_v49  ;;  %v6237_v22 = vmul.f32 %v6173_v32, %v6045_v43 }
 0x9e4   : > { %v5857_v45 = vmul.f32 0.044715, %v5793_v44  ;;  %v6530_v12 = vadd.f32 %v6529_v10, %v6441_v50  ;;  %v5572_v4 = vpop.f32.mrf.mxu0 }
 0x9e5   : > { %v12730_v3 = vadd.f32 %v5572_v4, %v12319_v53  ;;  %v5661_v24 = vpop.f32.mrf.mxu1  ;;  %v5920_v55 = vadd.f32 %v5856_v62, %v12713_v2 }
 0x9e6   : > { %v12734_v63 = vadd.f32 %v5661_v24, %v12321_v26  ;;  %v12736_v8 = vmul.f32 %v6617_v17, %v6530_v12  ;;  %v5921_v0 = vadd.f32 %v5857_v45, %v12717_v42 }
 0x9e7   : > { %v8628_v33 = vpop.eup %8627  ;;  %v5730_v13 = vmul.f32 %v12730_v3, %v12730_v3  ;;  %v5984_v11 = vmul.f32 0.7978846, %v5920_v55 }
 0x9e8   : > { %v8630_v38 = vpop.eup %8629  ;;  %v5731_v20 = vmul.f32 %v12734_v63, %v12734_v63  ;;  %v6174_v39 = vadd.f32 1.0, %v8628_v33  ;;  %v5985_v34 = vmul.f32 0.7978846, %v5921_v0 }
 0x9e9   : > { %v5794_v41 = vmul.f32 %v5730_v13, %v12730_v3  ;;  %v6442_v58 = vpop.f32.mrf.mxu2  ;;  %v6175_v14 = vadd.f32 1.0, %v8630_v38  ;;  %8631 = vtanh.f32 %v5984_v11 }
 0x9ea   : > { %v5795_v7 = vmul.f32 %v5731_v20, %v12734_v63  ;;  %v6443_v9 = vadd.f32 %v12681_v35, %v6442_v58  ;;  %v6531_v6 = vpop.f32.mrf.mxu3  ;;  %v6238_v16 = vmul.f32 %v6174_v39, %v6046_v46  ;;  %8633 = vtanh.f32 %v5985_v34 }
 0x9eb   : > { %v5858_v30 = vmul.f32 0.044715, %v5794_v41  ;;  %v6239_v1 = vmul.f32 %v6175_v14, %v6047_v59  ;;  %v6048_v20 = vmul.f32 0.5, %v12713_v2  ;;  %v6049_v46 = vmul.f32 0.5, %v12717_v42 }
 0x9ec   : > { %v5859_v18 = vmul.f32 0.044715, %v5795_v7  ;;  %v6532_v54 = vadd.f32 %v6531_v6, %v6443_v9  ;;  %v5575_v57 = vpop.f32.mrf.mxu0  ;;  %v6280_v61 = vpack.c.bf16 %v6238_v16, %v6236_v56  ;;  %v6050_v56 = vmul.f32 0.5, %v12730_v3 }
 0x9ed   : > { %v12751_v5 = vadd.f32 %v5575_v57, %v12319_v53  ;;  %v5664_v19 = vpop.f32.mrf.mxu1  ;;  %v6281_v23 = vpack.c.bf16 %v6239_v1, %v6237_v22  ;;  %v5922_v31 = vadd.f32 %v5858_v30, %v12730_v3  ;;  %v6051_v6 = vmul.f32 0.5, %v12734_v63  ;;  %v6632_v1 = vpop.permute.xlu2 %6631 }
 0x9ee   : > { %v12755_v29 = vadd.f32 %v5664_v19, %v12321_v26  ;;  %v12757_v37 = vmul.f32 %v6622_v15, %v6532_v54  ;;  %6484 = vmatmul.bf16.gmra.mxu2 %v6280_v61  ;;  %v5923_v60 = vadd.f32 %v5859_v18, %v12734_v63 }
 0x9ef   : > { %v5732_v47 = vmul.f32 %v12751_v5, %v12751_v5  ;;  %6573 = vmatmul.bf16.gmra.mxu3 %v6281_v23  ;;  %v5986_v21 = vmul.f32 0.7978846, %v5922_v31  ;;  %v8632_v44 = vpop.eup %8631 }
 0x9f0   : > { %v5733_v28 = vmul.f32 %v12755_v29, %v12755_v29  ;;  %v5987_v49 = vmul.f32 0.7978846, %v5923_v60  ;;  %v8634_v45 = vpop.eup %8633  ;;  %v6176_v33 = vadd.f32 1.0, %v8632_v44 }
 0x9f1   : > { %v5796_v40 = vmul.f32 %v5732_v47, %v12751_v5  ;;  %v6445_v17 = vpop.f32.mrf.mxu2  ;;  %8635 = vtanh.f32 %v5986_v21  ;;  %v6177_v39 = vadd.f32 1.0, %v8634_v45 }
 0x9f2   : > { %v5797_v50 = vmul.f32 %v5733_v28, %v12755_v29  ;;  %v6446_v10 = vadd.f32 %v12681_v35, %v6445_v17  ;;  %v6534_v62 = vpop.f32.mrf.mxu3  ;;  %8637 = vtanh.f32 %v5987_v49  ;;  %v6240_v9 = vmul.f32 %v6176_v33, %v6048_v20 }
 0x9f3   : > { %v5860_v52 = vmul.f32 0.044715, %v5796_v40  ;;  %v6241_v18 = vmul.f32 %v6177_v39, %v6049_v46 }
 0x9f4   : > { %v5861_v12 = vmul.f32 0.044715, %v5797_v50  ;;  %v6535_v4 = vadd.f32 %v6534_v62, %v6446_v10  ;;  %v5577_v24 = vpop.f32.mrf.mxu0 }
 0x9f5   : > { %v5924_v51 = vadd.f32 %v5860_v52, %v12751_v5  ;;  %v12769_v55 = vadd.f32 %v5577_v24, %v12319_v53  ;;  %v5666_v0 = vpop.f32.mrf.mxu1 }
 0x9f6   : > { %v5925_v13 = vadd.f32 %v5861_v12, %v12755_v29  ;;  %v12773_v25 = vadd.f32 %v5666_v0, %v12321_v26  ;;  %v12775_v43 = vmul.f32 %v6627_v48, %v6535_v4  ;;  %v6637_v4 = vpop.permute.xlu0 %6636 }
 0x9f7   : > { %v8636_v32 = vpop.eup %8635  ;;  %v5734_v38 = vmul.f32 %v12769_v55, %v12769_v55  ;;  %v5988_v41 = vmul.f32 0.7978846, %v5924_v51 }
 0x9f8   : > { %v8638_v11 = vpop.eup %8637  ;;  %v5735_v58 = vmul.f32 %v12773_v25, %v12773_v25  ;;  %v6178_v59 = vadd.f32 1.0, %v8636_v32  ;;  %v5989_v34 = vmul.f32 0.7978846, %v5925_v13 }
 0x9f9   : > { %v5798_v14 = vmul.f32 %v5734_v38, %v12769_v55  ;;  %v6447_v7 = vpop.f32.mrf.mxu2  ;;  %v6179_v16 = vadd.f32 1.0, %v8638_v11  ;;  %8639 = vtanh.f32 %v5988_v41 }
 0x9fa   : > { %v5799_v2 = vmul.f32 %v5735_v58, %v12773_v25  ;;  %v6448_v42 = vadd.f32 %v12681_v35, %v6447_v7  ;;  %v6536_v30 = vpop.f32.mrf.mxu3  ;;  %v6242_v15 = vmul.f32 %v6178_v59, %v6050_v56  ;;  %8641 = vtanh.f32 %v5989_v34 }
 0x9fb   : > { %v5862_v22 = vmul.f32 0.044715, %v5798_v14  ;;  %v6243_v54 = vmul.f32 %v6179_v16, %v6051_v6  ;;  %v6052_v56 = vmul.f32 0.5, %v12751_v5  ;;  %v6053_v59 = vmul.f32 0.5, %v12755_v29 }
 0x9fc   : > { %v5863_v3 = vmul.f32 0.044715, %v5799_v2  ;;  %v6537_v57 = vadd.f32 %v6536_v30, %v6448_v42  ;;  %v5580_v61 = vpop.f32.mrf.mxu0  ;;  %v6282_v19 = vpack.c.bf16 %v6242_v15, %v6240_v9  ;;  %v6054_v16 = vmul.f32 0.5, %v12769_v55 }
 0x9fd   : > { %v5926_v23 = vadd.f32 %v5862_v22, %v12769_v55  ;;  %v12790_v63 = vadd.f32 %v5580_v61, %v12319_v53  ;;  %v5669_v31 = vpop.f32.mrf.mxu1  ;;  %v6283_v60 = vpack.c.bf16 %v6243_v54, %v6241_v18  ;;  %v6055_v15 = vmul.f32 0.5, %v12773_v25 }
 0x9fe   : > { %v5927_v47 = vadd.f32 %v5863_v3, %v12773_v25  ;;  %v12794_v21 = vadd.f32 %v5669_v31, %v12321_v26  ;;  %v12796_v28 = vmul.f32 %v6632_v1, %v6537_v57  ;;  %6489 = vmatmul.bf16.gmra.mxu2 %v6282_v19  ;;  %v6642_v57 = vpop.permute.xlu1 %6641 }
 0x9ff   : > { %v5990_v49 = vmul.f32 0.7978846, %v5926_v23  ;;  %v5736_v40 = vmul.f32 %v12790_v63, %v12790_v63  ;;  %6578 = vmatmul.bf16.gmra.mxu3 %v6283_v60  ;;  %v8640_v10 = vpop.eup %8639 }
 0xa00   : > { %v5991_v17 = vmul.f32 0.7978846, %v5927_v47  ;;  %v5737_v48 = vmul.f32 %v12794_v21, %v12794_v21  ;;  %v8642_v24 = vpop.eup %8641  ;;  %v6180_v20 = vadd.f32 1.0, %v8640_v10 }
 0xa01   : > { %8643 = vtanh.f32 %v5990_v49  ;;  %v5800_v44 = vmul.f32 %v5736_v40, %v12790_v63  ;;  %v6450_v50 = vpop.f32.mrf.mxu2  ;;  %v6181_v14 = vadd.f32 1.0, %v8642_v24 }
 0xa02   : > { %8645 = vtanh.f32 %v5991_v17  ;;  %v5801_v62 = vmul.f32 %v5737_v48, %v12794_v21  ;;  %v6451_v52 = vadd.f32 %v12681_v35, %v6450_v50  ;;  %v6539_v45 = vpop.f32.mrf.mxu3  ;;  %v6244_v30 = vmul.f32 %v6180_v20, %v6052_v56 }
 0xa03   : > { %v5864_v12 = vmul.f32 0.044715, %v5800_v44  ;;  %v6245_v61 = vmul.f32 %v6181_v14, %v6053_v59 }
 0xa04   : > { %v5865_v51 = vmul.f32 0.044715, %v5801_v62  ;;  %v6540_v0 = vadd.f32 %v6539_v45, %v6451_v52  ;;  %v5582_v33 = vpop.f32.mrf.mxu0 }
 0xa05   : > { %v5928_v13 = vadd.f32 %v5864_v12, %v12790_v63  ;;  %v12807_v32 = vadd.f32 %v5582_v33, %v12319_v53  ;;  %v5671_v38 = vpop.f32.mrf.mxu1 }
 0xa06   : > { %v5929_v46 = vadd.f32 %v5865_v51, %v12794_v21  ;;  %v12811_v39 = vadd.f32 %v5671_v38, %v12321_v26  ;;  %v12813_v11 = vmul.f32 %v6637_v4, %v6540_v0 }
 0xa07   : > { %v8644_v41 = vpop.eup %8643  ;;  %v5738_v58 = vmul.f32 %v12807_v32, %v12807_v32  ;;  %v5992_v9 = vmul.f32 0.7978846, %v5928_v13  ;;  %v6647_v13 = vpop.permute.xlu2 %6646 }
 0xa08   : > { %v8646_v7 = vpop.eup %8645  ;;  %v5739_v6 = vmul.f32 %v12811_v39, %v12811_v39  ;;  %v6182_v34 = vadd.f32 1.0, %v8644_v41  ;;  %v5993_v1 = vmul.f32 0.7978846, %v5929_v46 }
 0xa09   : > { %v5802_v2 = vmul.f32 %v5738_v58, %v12807_v32  ;;  %v6452_v42 = vpop.f32.mrf.mxu2  ;;  %v6183_v22 = vadd.f32 1.0, %v8646_v7  ;;  %8647 = vtanh.f32 %v5992_v9 }
 0xa0a   : > { %v5803_v5 = vmul.f32 %v5739_v6, %v12811_v39  ;;  %v6453_v29 = vadd.f32 %v12681_v35, %v6452_v42  ;;  %v6541_v18 = vpop.f32.mrf.mxu3  ;;  %v6246_v54 = vmul.f32 %v6182_v34, %v6054_v16  ;;  %8649 = vtanh.f32 %v5993_v1 }
 0xa0b   : > { %v5866_v3 = vmul.f32 0.044715, %v5802_v2  ;;  %v6247_v19 = vmul.f32 %v6183_v22, %v6055_v15  ;;  %v6056_v2 = vmul.f32 0.5, %v12790_v63  ;;  %v6057_v42 = vmul.f32 0.5, %v12794_v21 }
 0xa0c   : > { %v5867_v55 = vmul.f32 0.044715, %v5803_v5  ;;  %v6542_v23 = vadd.f32 %v6541_v18, %v6453_v29  ;;  %v5585_v31 = vpop.f32.mrf.mxu0  ;;  %v6284_v60 = vpack.c.bf16 %v6246_v54, %v6244_v30  ;;  %v6058_v5 = vmul.f32 0.5, %v12807_v32 }
 0xa0d   : > { %v5930_v47 = vadd.f32 %v5866_v3, %v12807_v32  ;;  %v12828_v25 = vadd.f32 %v5585_v31, %v12319_v53  ;;  %v5674_v49 = vpop.f32.mrf.mxu1  ;;  %v6285_v40 = vpack.c.bf16 %v6247_v19, %v6245_v61 }
 0xa0e   : > { %v5931_v17 = vadd.f32 %v5867_v55, %v12811_v39  ;;  %v12832_v48 = vadd.f32 %v5674_v49, %v12321_v26  ;;  %v12834_v44 = vmul.f32 %v6642_v57, %v6542_v23  ;;  %6494 = vmatmul.bf16.gmra.mxu2 %v6284_v60  ;;  %v6059_v57 = vmul.f32 0.5, %v12811_v39  ;;  %v6652_v60 = vpop.permute.xlu0 %6651 }
 0xa0f   : > { %v5994_v50 = vmul.f32 0.7978846, %v5930_v47  ;;  %v5740_v10 = vmul.f32 %v12828_v25, %v12828_v25  ;;  %6583 = vmatmul.bf16.gmra.mxu3 %v6285_v40  ;;  %v8648_v4 = vpop.eup %8647 }
 0xa10   : > { %v5995_v62 = vmul.f32 0.7978846, %v5931_v17  ;;  %v5741_v52 = vmul.f32 %v12832_v48, %v12832_v48  ;;  %v8650_v38 = vpop.eup %8649  ;;  %v6184_v14 = vadd.f32 1.0, %v8648_v4 }
 0xa11   : > { %8651 = vtanh.f32 %v5994_v50  ;;  %v5804_v45 = vmul.f32 %v5740_v10, %v12828_v25  ;;  %v6455_v12 = vpop.f32.mrf.mxu2  ;;  %v6185_v30 = vadd.f32 1.0, %v8650_v38 }
 0xa12   : > { %8653 = vtanh.f32 %v5995_v62  ;;  %v5805_v24 = vmul.f32 %v5741_v52, %v12832_v48  ;;  %v6456_v51 = vadd.f32 %v12681_v35, %v6455_v12  ;;  %v6544_v0 = vpop.f32.mrf.mxu3  ;;  %v6248_v3 = vmul.f32 %v6184_v14, %v6056_v2  ;;  %v6657_v14 = vpop.permute.xlu1 %6656 }
 0xa13   : > { %v5868_v33 = vmul.f32 0.044715, %v5804_v45  ;;  %v6249_v47 = vmul.f32 %v6185_v30, %v6057_v42 }
 0xa14   : > { %v5869_v20 = vmul.f32 0.044715, %v5805_v24  ;;  %v6545_v46 = vadd.f32 %v6544_v0, %v6456_v51  ;;  %v5587_v41 = vpop.f32.mrf.mxu0 }
 0xa15   : > { %v5932_v58 = vadd.f32 %v5868_v33, %v12828_v25  ;;  %v12845_v56 = vadd.f32 %v5587_v41, %v12319_v53  ;;  %v5676_v59 = vpop.f32.mrf.mxu1 }
 0xa16   : > { %v5933_v7 = vadd.f32 %v5869_v20, %v12832_v48  ;;  %v12849_v9 = vadd.f32 %v5676_v59, %v12321_v26  ;;  %v12851_v6 = vmul.f32 %v6647_v13, %v6545_v46 }
 0xa17   : > { %v8652_v16 = vpop.eup %8651  ;;  %v5742_v34 = vmul.f32 %v12845_v56, %v12845_v56  ;;  %v5996_v22 = vmul.f32 0.7978846, %v5932_v58 }
 0xa18   : > { %v8654_v15 = vpop.eup %8653  ;;  %v5743_v1 = vmul.f32 %v12849_v9, %v12849_v9  ;;  %v6186_v29 = vadd.f32 1.0, %v8652_v16  ;;  %v5997_v19 = vmul.f32 0.7978846, %v5933_v7 }
 0xa19   : > { %v5806_v18 = vmul.f32 %v5742_v34, %v12845_v56  ;;  %v6457_v54 = vpop.f32.mrf.mxu2  ;;  %v6187_v61 = vadd.f32 1.0, %v8654_v15  ;;  %8655 = vtanh.f32 %v5996_v22 }
 0xa1a   : > { %v5807_v63 = vmul.f32 %v5743_v1, %v12849_v9  ;;  %v6458_v21 = vadd.f32 %v12681_v35, %v6457_v54  ;;  %v6546_v55 = vpop.f32.mrf.mxu3  ;;  %v6250_v23 = vmul.f32 %v6186_v29, %v6058_v5  ;;  %8657 = vtanh.f32 %v5997_v19 }
 0xa1b   : > { %v5870_v31 = vmul.f32 0.044715, %v5806_v18  ;;  %v6251_v49 = vmul.f32 %v6187_v61, %v6059_v57  ;;  %v6061_v57 = vmul.f32 0.5, %v12832_v48 }
 0xa1c   : > { %v5871_v32 = vmul.f32 0.044715, %v5807_v63  ;;  %v6547_v40 = vadd.f32 %v6546_v55, %v6458_v21  ;;  %v5590_v17 = vpop.f32.mrf.mxu0  ;;  %v6286_v50 = vpack.c.bf16 %v6250_v23, %v6248_v3  ;;  %v6060_v3 = vmul.f32 0.5, %v12828_v25 }
 0xa1d   : > { %v5934_v10 = vadd.f32 %v5870_v31, %v12845_v56  ;;  %v12866_v39 = vadd.f32 %v5590_v17, %v12319_v53  ;;  %v5679_v62 = vpop.f32.mrf.mxu1  ;;  %v6287_v52 = vpack.c.bf16 %v6251_v49, %v6249_v47  ;;  %v6062_v21 = vmul.f32 0.5, %v12845_v56 }
 0xa1e   : > { %v5935_v45 = vadd.f32 %v5871_v32, %v12849_v9  ;;  %v12870_v12 = vadd.f32 %v5679_v62, %v12321_v26  ;;  %v12872_v4 = vmul.f32 %v6652_v60, %v6547_v40  ;;  %6499 = vmatmul.bf16.gmra.mxu2 %v6286_v50  ;;  %v6063_v55 = vmul.f32 0.5, %v12849_v9  ;;  %v6662_v50 = vpop.permute.xlu2 %6661 }
 0xa1f   : > { %v5998_v24 = vmul.f32 0.7978846, %v5934_v10  ;;  %v5744_v51 = vmul.f32 %v12866_v39, %v12866_v39  ;;  %6588 = vmatmul.bf16.gmra.mxu3 %v6287_v52  ;;  %v8656_v20 = vpop.eup %8655 }
 0xa20   : > { %v5999_v0 = vmul.f32 0.7978846, %v5935_v45  ;;  %v5745_v33 = vmul.f32 %v12870_v12, %v12870_v12  ;;  %v8658_v7 = vpop.eup %8657  ;;  %v6188_v22 = vadd.f32 1.0, %v8656_v20 }
 0xa21   : > { %8659 = vtanh.f32 %v5998_v24  ;;  %v5808_v13 = vmul.f32 %v5744_v51, %v12866_v39  ;;  %v6460_v38 = vpop.f32.mrf.mxu2  ;;  %v6189_v61 = vadd.f32 1.0, %v8658_v7 }
 0xa22   : > { %8661 = vtanh.f32 %v5999_v0  ;;  %v5809_v46 = vmul.f32 %v5745_v33, %v12870_v12  ;;  %v6461_v41 = vadd.f32 %v12681_v35, %v6460_v38  ;;  %v6549_v58 = vpop.f32.mrf.mxu3 }
 0xa23   : > { %v5872_v59 = vmul.f32 0.044715, %v5808_v13  ;;  %v6253_v10 = vmul.f32 %v6189_v61, %v6061_v57 }
 0xa24   : > { %v5873_v16 = vmul.f32 0.044715, %v5809_v46  ;;  %v6550_v34 = vadd.f32 %v6549_v58, %v6461_v41  ;;  %v5592_v2 = vpop.f32.mrf.mxu0  ;;  %v6667_v58 = vpop.permute.xlu0 %6666 }
 0xa25   : > { %v5936_v42 = vadd.f32 %v5872_v59, %v12866_v39  ;;  %v5593_v30 = vadd.f32 %v5592_v2, %v12319_v53  ;;  %v5681_v15 = vpop.f32.mrf.mxu1 }
 0xa26   : > { %v5937_v1 = vadd.f32 %v5873_v16, %v12870_v12  ;;  %v5682_v5 = vadd.f32 %v5681_v15, %v12321_v26  ;;  %v12885_v29 = vmul.f32 %v6657_v14, %v6550_v34  ;;  %v6252_v26 = vmul.f32 %v6188_v22, %v6060_v3 }
 0xa27   : > { %v8660_v18 = vpop.eup %8659  ;;  %v5746_v54 = vmul.f32 %v5593_v30, %v5593_v30  ;;  %v6000_v23 = vmul.f32 0.7978846, %v5936_v42  ;;  %v6064_v15 = vmul.f32 0.5, %v12866_v39  ;;  %v6066_v22 = vmul.f32 0.5, %v5593_v30 }
 0xa28   : > { %v8662_v19 = vpop.eup %8661  ;;  %v5747_v63 = vmul.f32 %v5682_v5, %v5682_v5  ;;  %v6190_v53 = vadd.f32 1.0, %v8660_v18  ;;  %v6001_v49 = vmul.f32 0.7978846, %v5937_v1  ;;  %v6067_v3 = vmul.f32 0.5, %v5682_v5 }
 0xa29   : > { %v5810_v31 = vmul.f32 %v5746_v54, %v5593_v30  ;;  %v6462_v60 = vpop.f32.mrf.mxu2  ;;  %v6191_v47 = vadd.f32 1.0, %v8662_v19  ;;  %8663 = vtanh.f32 %v6000_v23  ;;  %v6065_v54 = vmul.f32 0.5, %v12870_v12 }
 0xa2a   : > { %v5811_v32 = vmul.f32 %v5747_v63, %v5682_v5  ;;  %v6463_v40 = vadd.f32 %v12681_v35, %v6462_v60  ;;  %v6551_v25 = vpop.f32.mrf.mxu3  ;;  %v6254_v17 = vmul.f32 %v6190_v53, %v6062_v21  ;;  %8665 = vtanh.f32 %v6001_v49  ;;  %v6672_v53 = vpop.permute.xlu1 %6671 }
 0xa2b   : > { %v5874_v48 = vmul.f32 0.044715, %v5810_v31  ;;  %v6255_v62 = vmul.f32 %v6191_v47, %v6063_v55 }
 0xa2c   : > { %v5875_v52 = vmul.f32 0.044715, %v5811_v32  ;;  %v6552_v56 = vadd.f32 %v6551_v25, %v6463_v40  ;;  %v6288_v45 = vpack.c.bf16 %v6254_v17, %v6252_v26 }
 0xa2d   : > { %v5938_v9 = vadd.f32 %v5874_v48, %v5593_v30  ;;  %v6289_v24 = vpack.c.bf16 %v6255_v62, %v6253_v10  ;;  %v6682_v48 = vpop.permute.xlu0 %6681 }
 0xa2e   : > { %v5939_v51 = vadd.f32 %v5875_v52, %v5682_v5  ;;  %v12892_v0 = vmul.f32 %v6662_v50, %v6552_v56  ;;  %6504 = vmatmul.bf16.gmra.mxu2 %v6288_v45  ;;  %v6677_v5 = vpop.permute.xlu2 %6676 }
 0xa2f   : > { %v6002_v33 = vmul.f32 0.7978846, %v5938_v9  ;;  %6593 = vmatmul.bf16.gmra.mxu3 %v6289_v24  ;;  %v8664_v41 = vpop.eup %8663 }
 0xa30   : > { %v6003_v13 = vmul.f32 0.7978846, %v5939_v51  ;;  %v8666_v59 = vpop.eup %8665  ;;  %v6192_v16 = vadd.f32 1.0, %v8664_v41 }
 0xa31   : > { %8667 = vtanh.f32 %v6002_v33  ;;  %v6465_v38 = vpop.f32.mrf.mxu2  ;;  %v6193_v2 = vadd.f32 1.0, %v8666_v59 }
 0xa32   : > { %8669 = vtanh.f32 %v6003_v13  ;;  %v6466_v20 = vadd.f32 %v12681_v35, %v6465_v38  ;;  %v6554_v46 = vpop.f32.mrf.mxu3  ;;  %v6256_v63 = vmul.f32 %v6192_v16, %v6064_v15  ;;  %v6687_v45 = vpop.permute.xlu1 %6686 }
 0xa33   : > { %v6257_v55 = vmul.f32 %v6193_v2, %v6065_v54 }
 0xa34   : > { %v6555_v14 = vadd.f32 %v6554_v46, %v6466_v20 }
 0xa35   : > { %v6697_v16 = vpop.permute.xlu0 %6696 }
 0xa36   : > { %v12895_v7 = vmul.f32 %v6667_v58, %v6555_v14  ;;  %v6692_v38 = vpop.permute.xlu2 %6691 }
 0xa37   : > { %v8668_v34 = vpop.eup %8667 }
 0xa38   : > { %v8670_v42 = vpop.eup %8669  ;;  %v6194_v1 = vadd.f32 1.0, %v8668_v34 }
 0xa39   : > { %v6467_v18 = vpop.f32.mrf.mxu2  ;;  %v6195_v57 = vadd.f32 1.0, %v8670_v42 }
 0xa3a   : > { %v6468_v61 = vadd.f32 %v12681_v35, %v6467_v18  ;;  %v6556_v19 = vpop.f32.mrf.mxu3  ;;  %v6258_v21 = vmul.f32 %v6194_v1, %v6066_v22  ;;  %v6702_v1 = vpop.permute.xlu1 %6701 }
 0xa3b   : > { %v6259_v23 = vmul.f32 %v6195_v57, %v6067_v3 }
 0xa3c   : > { %v6557_v31 = vadd.f32 %v6556_v19, %v6468_v61  ;;  %v6290_v60 = vpack.c.bf16 %v6258_v21, %v6256_v63 }
 0xa3d   : > { %v6291_v26 = vpack.c.bf16 %v6259_v23, %v6257_v55 }
 0xa3e   : > { %v12900_v47 = vmul.f32 %v6672_v53, %v6557_v31  ;;  %6509 = vmatmul.bf16.gmra.mxu2 %v6290_v60  ;;  %v6707_v19 = vpop.permute.xlu2 %6706  ;;  %v6712_v31 = vpop.permute.xlu0 %6711 }
 0xa3f   : > { %6598 = vmatmul.bf16.gmra.mxu3 %v6291_v26 }
 0xa41   : > { %v6470_v39 = vpop.f32.mrf.mxu2 }
 0xa42   : > { %v6471_v12 = vadd.f32 %v12681_v35, %v6470_v39  ;;  %v6559_v30 = vpop.f32.mrf.mxu3 }
 0xa44   : > { %v6560_v49 = vadd.f32 %v6559_v30, %v6471_v12 }
 0xa46   : > { %v12903_v32 = vmul.f32 %v6677_v5, %v6560_v49  ;;  %v6717_v5 = vpop.permute.xlu1 %6716 }
 0xa49   : > { %v6472_v40 = vpop.f32.mrf.mxu2 }
 0xa4a   : > { %v6473_v25 = vadd.f32 %v12681_v35, %v6472_v40  ;;  %v6561_v17 = vpop.f32.mrf.mxu3 }
 0xa4c   : > { %v6562_v50 = vadd.f32 %v6561_v17, %v6473_v25 }
 0xa4e   : > { %v12906_v10 = vmul.f32 %v6682_v48, %v6562_v50  ;;  %v6722_v50 = vpop.permute.xlu2 %6721 }
 0xa51   : > { %v6475_v62 = vpop.f32.mrf.mxu2 }
 0xa52   : > { %v6476_v52 = vadd.f32 %v12681_v35, %v6475_v62  ;;  %v6564_v56 = vpop.f32.mrf.mxu3 }
 0xa54   : > { %v6565_v9 = vadd.f32 %v6564_v56, %v6476_v52 }
 0xa56   : > { %v12909_v24 = vmul.f32 %v6687_v45, %v6565_v9 }
 0xa59   : > { %v6477_v51 = vpop.f32.mrf.mxu2 }
 0xa5a   : > { %v6478_v33 = vadd.f32 %v12681_v35, %v6477_v51  ;;  %v6566_v13 = vpop.f32.mrf.mxu3  ;;  %v6727_v51 = vpop.permute.xlu0 %6726 }
 0xa5c   : > { %v6567_v20 = vadd.f32 %v6566_v13, %v6478_v33 }
 0xa5e   : > { %v12912_v46 = vmul.f32 %v6692_v38, %v6567_v20 }
 0xa61   : > { %v6480_v41 = vpop.f32.mrf.mxu2 }
 0xa62   : > { %v6481_v58 = vadd.f32 %v12681_v35, %v6480_v41  ;;  %v6569_v59 = vpop.f32.mrf.mxu3 }
 0xa64   : > { %v6570_v14 = vadd.f32 %v6569_v59, %v6481_v58  ;;  %v6732_v58 = vpop.permute.xlu1 %6731 }
 0xa66   : > { %v12915_v34 = vmul.f32 %v6697_v16, %v6570_v14 }
 0xa69   : > { %v6482_v2 = vpop.f32.mrf.mxu2 }
 0xa6a   : > { %v6483_v42 = vadd.f32 %v12681_v35, %v6482_v2  ;;  %v6571_v15 = vpop.f32.mrf.mxu3 }
 0xa6c   : > { %v6572_v22 = vadd.f32 %v6571_v15, %v6483_v42  ;;  %v6737_v15 = vpop.permute.xlu2 %6736 }
 0xa6e   : > { %v12918_v18 = vmul.f32 %v6702_v1, %v6572_v22 }
 0xa71   : > { %v6485_v54 = vpop.f32.mrf.mxu2 }
 0xa72   : > { %v6486_v3 = vadd.f32 %v12681_v35, %v6485_v54  ;;  %v6574_v57 = vpop.f32.mrf.mxu3 }
 0xa74   : > { %v6575_v61 = vadd.f32 %v6574_v57, %v6486_v3 }
 0xa76   : > { %v12921_v63 = vmul.f32 %v6707_v19, %v6575_v61  ;;  %v6742_v61 = vpop.permute.xlu0 %6741 }
 0xa79   : > { %v6487_v21 = vpop.f32.mrf.mxu2 }
 0xa7a   : > { %v6488_v53 = vadd.f32 %v12681_v35, %v6487_v21  ;;  %v6576_v55 = vpop.f32.mrf.mxu3 }
 0xa7c   : > { %v6577_v23 = vadd.f32 %v6576_v55, %v6488_v53 }
 0xa7e   : > { %v12924_v60 = vmul.f32 %v6712_v31, %v6577_v23  ;;  %v6747_v31 = vpop.permute.xlu1 %6746 }
 0xa81   : > { %v6490_v26 = vpop.f32.mrf.mxu2 }
 0xa82   : > { %v6491_v39 = vadd.f32 %v12681_v35, %v6490_v26  ;;  %v6579_v12 = vpop.f32.mrf.mxu3 }
 0xa84   : > { %v6580_v30 = vadd.f32 %v6579_v12, %v6491_v39 }
 0xa86   : > { %v12927_v49 = vmul.f32 %v6717_v5, %v6580_v30 }
 0xa89   : > { %v6492_v40 = vpop.f32.mrf.mxu2 }
 0xa8a   : > { %v6493_v25 = vadd.f32 %v12681_v35, %v6492_v40  ;;  %v6581_v17 = vpop.f32.mrf.mxu3  ;;  %v6752_v40 = vpop.permute.xlu2 %6751 }
 0xa8c   : > { %v6582_v48 = vadd.f32 %v6581_v17, %v6493_v25 }
 0xa8e   : > { %v12930_v62 = vmul.f32 %v6722_v50, %v6582_v48  ;;  %v8671_v48 = vld [vmem:[%s13158_s6 + $0x3] ss:$0 sm:$0xff] }
 0xa91   : > { %v6495_v52 = vpop.f32.mrf.mxu2 }
 0xa92   : > { %v6496_v56 = vadd.f32 %v12681_v35, %v6495_v52  ;;  %v6584_v45 = vpop.f32.mrf.mxu3 }
 0xa94   : > { %v6585_v9 = vadd.f32 %v6584_v45, %v6496_v56  ;;  %v6757_v45 = vpop.permute.xlu0 %6756 }
 0xa96   : > { %v12933_v33 = vmul.f32 %v6727_v51, %v6585_v9 }
 0xa99   : > { %v6497_v13 = vpop.f32.mrf.mxu2 }
 0xa9a   : > { %v6498_v38 = vadd.f32 %v12681_v35, %v6497_v13  ;;  %v6586_v20 = vpop.f32.mrf.mxu3 }
 0xa9c   : > { %v6587_v41 = vadd.f32 %v6586_v20, %v6498_v38  ;;  %v6762_v20 = vpop.permute.xlu1 %6761 }
 0xa9e   : > { %v12936_v59 = vmul.f32 %v6732_v58, %v6587_v41 }
 0xaa1   : > { %v6500_v14 = vpop.f32.mrf.mxu2 }
 0xaa2   : > { %v6501_v16 = vadd.f32 %v12681_v35, %v6500_v14  ;;  %v6589_v2 = vpop.f32.mrf.mxu3 }
 0xaa4   : > { %v6590_v42 = vadd.f32 %v6589_v2, %v6501_v16 }
 0xaa6   : > { %v12939_v22 = vmul.f32 %v6737_v15, %v6590_v42 }
 0xaa9   : > { %v6502_v1 = vpop.f32.mrf.mxu2 }
 0xaaa   : > { %v6503_v54 = vadd.f32 %v12681_v35, %v6502_v1  ;;  %v6591_v3 = vpop.f32.mrf.mxu3 }
 0xaac   : > { %v6592_v57 = vadd.f32 %v6591_v3, %v6503_v54 }
 0xaae   : > { %v12942_v19 = vmul.f32 %v6742_v61, %v6592_v57 }
 0xab1   : > { %v6505_v21 = vpop.f32.mrf.mxu2 }
 0xab2   : > { %v6506_v53 = vadd.f32 %v12681_v35, %v6505_v21  ;;  %v6594_v55 = vpop.f32.mrf.mxu3 }
 0xab4   : > { %v6595_v23 = vadd.f32 %v6594_v55, %v6506_v53 }
 0xab6   : > { %v12945_v26 = vmul.f32 %v6747_v31, %v6595_v23 }
 0xab9   : > { %v6507_v39 = vpop.f32.mrf.mxu2 }
 0xaba   : > { %v6508_v12 = vadd.f32 %v12681_v35, %v6507_v39  ;;  %v6596_v30 = vpop.f32.mrf.mxu3 }
 0xabc   : > { %v6597_v5 = vadd.f32 %v6596_v30, %v6508_v12 }
 0xabe   : > { %v12948_v25 = vmul.f32 %v6752_v40, %v6597_v5 }
 0xac1   : > { %v6510_v17 = vpop.f32.mrf.mxu2 }
 0xac2   : > { %v6511_v50 = vadd.f32 %v8671_v48, %v6510_v17  ;;  %v6599_v52 = vpop.f32.mrf.mxu3 }
 0xac4   : > { %v6600_v56 = vadd.f32 %v6599_v52, %v6511_v50 }
 0xac6   : > { %v12953_v9 = vmul.f32 %v6757_v45, %v6600_v56 }
 0xac9   : > { %v6512_v51 = vpop.f32.mrf.mxu2 }
 0xaca   : > { %v6513_v13 = vadd.f32 %v8671_v48, %v6512_v51  ;;  %v6601_v38 = vpop.f32.mrf.mxu3  ;;  %6799 = sbr.rel (%p7879_p13) target bundleno = 2799 (0xaef), region = 96 }
 0xacc   : > { %v6602_v35 = vadd.f32 %v6601_v38, %v6513_v13 }
 0xace   : > { %v12955_v41 = vmul.f32 %v6762_v20, %v6602_v35 }
 0xacf   : > { %6800 = vst [vmem:[%s8934_s27] sm:$0xff] %v12698_v27 }
 0xad0   : > { %6801 = vst [vmem:[%s8934_s27 + $0x8] sm:$0xff] %v12719_v36 }
 0xad1   : > { %6802 = vst [vmem:[%s8934_s27 + $0x10] sm:$0xff] %v12736_v8 }
 0xad2   : > { %6803 = vst [vmem:[%s8934_s27 + $0x18] sm:$0xff] %v12757_v37 }
 0xad3   : > { %6804 = vst [vmem:[%s8934_s27 + $0x20] sm:$0xff] %v12775_v43 }
 0xad4   : > { %6805 = vst [vmem:[%s8934_s27 + $0x28] sm:$0xff] %v12796_v28 }
 0xad5   : > { %6806 = vst [vmem:[%s8934_s27 + $0x30] sm:$0xff] %v12813_v11 }
 0xad6   : > { %6807 = vst [vmem:[%s8934_s27 + $0x38] sm:$0xff] %v12834_v44 }
 0xad7   : > { %6808 = vst [vmem:[%s8934_s27 + $0x40] sm:$0xff] %v12851_v6 }
 0xad8   : > { %6809 = vst [vmem:[%s8934_s27 + $0x48] sm:$0xff] %v12872_v4 }
 0xad9   : > { %6810 = vst [vmem:[%s8934_s27 + $0x50] sm:$0xff] %v12885_v29 }
 0xada   : > { %6811 = vst [vmem:[%s8934_s27 + $0x58] sm:$0xff] %v12892_v0 }
 0xadb   : > { %6812 = vst [vmem:[%s8934_s27 + $0x60] sm:$0xff] %v12895_v7 }
 0xadc   : > { %6813 = vst [vmem:[%s8934_s27 + $0x68] sm:$0xff] %v12900_v47 }
 0xadd   : > { %6814 = vst [vmem:[%s8934_s27 + $0x70] sm:$0xff] %v12903_v32 }
 0xade   : > { %6815 = vst [vmem:[%s8934_s27 + $0x78] sm:$0xff] %v12906_v10 }
 0xadf   : > { %6816 = vst [vmem:[%s8934_s27 + $0x80] sm:$0xff] %v12909_v24 }
 0xae0   : > { %6817 = vst [vmem:[%s8934_s27 + $0x88] sm:$0xff] %v12912_v46 }
 0xae1   : > { %6818 = vst [vmem:[%s8934_s27 + $0x90] sm:$0xff] %v12915_v34 }
 0xae2   : > { %6819 = vst [vmem:[%s8934_s27 + $0x98] sm:$0xff] %v12918_v18 }
 0xae3   : > { %6820 = vst [vmem:[%s8934_s27 + $0xa0] sm:$0xff] %v12921_v63 }
 0xae4   : > { %6821 = vst [vmem:[%s8934_s27 + $0xa8] sm:$0xff] %v12924_v60 }
 0xae5   : > { %6822 = vst [vmem:[%s8934_s27 + $0xb0] sm:$0xff] %v12927_v49 }
 0xae6   : > { %6823 = vst [vmem:[%s8934_s27 + $0xb8] sm:$0xff] %v12930_v62 }
 0xae7   : > { %6824 = vst [vmem:[%s8934_s27 + $0xc0] sm:$0xff] %v12933_v33 }
 0xae8   : > { %6825 = vst [vmem:[%s8934_s27 + $0xc8] sm:$0xff] %v12936_v59 }
 0xae9   : > { %6826 = vst [vmem:[%s8934_s27 + $0xd0] sm:$0xff] %v12939_v22 }
 0xaea   : > { %6827 = vst [vmem:[%s8934_s27 + $0xd8] sm:$0xff] %v12942_v19 }
 0xaeb   : > { %6828 = vst [vmem:[%s8934_s27 + $0xe0] sm:$0xff] %v12945_v26 }
 0xaec   : > { %6829 = vst [vmem:[%s8934_s27 + $0xe8] sm:$0xff] %v12948_v25 }
 0xaed   : > { %6830 = vst [vmem:[%s8934_s27 + $0xf0] sm:$0xff] %v12953_v9 }
 0xaee   : > { %6831 = vst [vmem:[%s8934_s27 + $0xf8] sm:$0xff] %v12955_v41 }
 0xaef PF: > { %p7880_p0 = scmp.eq.s32.totalorder %s8920_s10, 3 }
 0xaf1   : > { %6835 = sbr.rel (%p7880_p0) target bundleno = 2841 (0xb19), region = 100 }
 0xaf6   : > { %v6836_v58 = vld [vmem:[%s8934_s27] sm:$0xff]  ;;  %v6837_v14 = vld [vmem:[%s8934_s27 + $0x8] sm:$0xff]  ;;  %v6838_v16 = vld [vmem:[%s8934_s27 + $0x10] sm:$0xff] }
 0xaf7   : > { %v6868_v2 = vadd.f32 %v6836_v58, %v12698_v27  ;;  %v6869_v42 = vadd.f32 %v6837_v14, %v12719_v36  ;;  %v6870_v15 = vadd.f32 %v6838_v16, %v12736_v8  ;;  %v6839_v1 = vld [vmem:[%s8934_s27 + $0x18] sm:$0xff]  ;;  %v6840_v54 = vld [vmem:[%s8934_s27 + $0x20] sm:$0xff]  ;;  %v6841_v3 = vld [vmem:[%s8934_s27 + $0x28] sm:$0xff] }
 0xaf8   : > { %v6871_v57 = vadd.f32 %v6839_v1, %v12757_v37  ;;  %v6842_v61 = vld [vmem:[%s8934_s27 + $0x30] sm:$0xff]  ;;  %v6872_v21 = vadd.f32 %v6840_v54, %v12775_v43  ;;  %v6843_v27 = vld [vmem:[%s8934_s27 + $0x38] sm:$0xff]  ;;  %v6873_v36 = vadd.f32 %v6841_v3, %v12796_v28  ;;  %v6844_v8 = vld [vmem:[%s8934_s27 + $0x40] sm:$0xff] }
 0xaf9   : > { %6900 = vst [vmem:[%s8934_s27] sm:$0xff] %v6868_v2  ;;  %v6874_v53 = vadd.f32 %v6842_v61, %v12813_v11  ;;  %v6845_v37 = vld [vmem:[%s8934_s27 + $0x48] sm:$0xff]  ;;  %v6875_v55 = vadd.f32 %v6843_v27, %v12834_v44  ;;  %v6846_v43 = vld [vmem:[%s8934_s27 + $0x50] sm:$0xff]  ;;  %v6876_v23 = vadd.f32 %v6844_v8, %v12851_v6  ;;  %v6847_v28 = vld [vmem:[%s8934_s27 + $0x58] sm:$0xff] }
 0xafa   : > { %6901 = vst [vmem:[%s8934_s27 + $0x8] sm:$0xff] %v6869_v42  ;;  %v6877_v31 = vadd.f32 %v6845_v37, %v12872_v4  ;;  %v6848_v11 = vld [vmem:[%s8934_s27 + $0x60] sm:$0xff]  ;;  %v6878_v39 = vadd.f32 %v6846_v43, %v12885_v29  ;;  %v6849_v44 = vld [vmem:[%s8934_s27 + $0x68] sm:$0xff]  ;;  %v6879_v12 = vadd.f32 %v6847_v28, %v12892_v0  ;;  %v6850_v6 = vld [vmem:[%s8934_s27 + $0x70] sm:$0xff] }
 0xafb   : > { %6902 = vst [vmem:[%s8934_s27 + $0x10] sm:$0xff] %v6870_v15  ;;  %v6880_v30 = vadd.f32 %v6848_v11, %v12895_v7  ;;  %v6851_v4 = vld [vmem:[%s8934_s27 + $0x78] sm:$0xff]  ;;  %v6881_v5 = vadd.f32 %v6849_v44, %v12900_v47  ;;  %v6852_v29 = vld [vmem:[%s8934_s27 + $0x80] sm:$0xff]  ;;  %v6882_v40 = vadd.f32 %v6850_v6, %v12903_v32  ;;  %v6853_v0 = vld [vmem:[%s8934_s27 + $0x88] sm:$0xff] }
 0xafc   : > { %6903 = vst [vmem:[%s8934_s27 + $0x18] sm:$0xff] %v6871_v57  ;;  %v6883_v17 = vadd.f32 %v6851_v4, %v12906_v10  ;;  %v6854_v7 = vld [vmem:[%s8934_s27 + $0x90] sm:$0xff]  ;;  %v6884_v48 = vadd.f32 %v6852_v29, %v12909_v24  ;;  %v6855_v47 = vld [vmem:[%s8934_s27 + $0x98] sm:$0xff]  ;;  %v6885_v50 = vadd.f32 %v6853_v0, %v12912_v46  ;;  %v6856_v32 = vld [vmem:[%s8934_s27 + $0xa0] sm:$0xff] }
 0xafd   : > { %6904 = vst [vmem:[%s8934_s27 + $0x20] sm:$0xff] %v6872_v21  ;;  %v6886_v52 = vadd.f32 %v6854_v7, %v12915_v34  ;;  %v6857_v10 = vld [vmem:[%s8934_s27 + $0xa8] sm:$0xff]  ;;  %v6887_v56 = vadd.f32 %v6855_v47, %v12918_v18  ;;  %v6858_v24 = vld [vmem:[%s8934_s27 + $0xb0] sm:$0xff]  ;;  %v6888_v45 = vadd.f32 %v6856_v32, %v12921_v63  ;;  %v6859_v46 = vld [vmem:[%s8934_s27 + $0xb8] sm:$0xff] }
 0xafe   : > { %6905 = vst [vmem:[%s8934_s27 + $0x28] sm:$0xff] %v6873_v36  ;;  %v6889_v51 = vadd.f32 %v6857_v10, %v12924_v60  ;;  %v6860_v34 = vld [vmem:[%s8934_s27 + $0xc0] sm:$0xff]  ;;  %v6890_v13 = vadd.f32 %v6858_v24, %v12927_v49  ;;  %v6861_v18 = vld [vmem:[%s8934_s27 + $0xc8] sm:$0xff]  ;;  %v6891_v38 = vadd.f32 %v6859_v46, %v12930_v62  ;;  %v6862_v63 = vld [vmem:[%s8934_s27 + $0xd0] sm:$0xff] }
 0xaff   : > { %6906 = vst [vmem:[%s8934_s27 + $0x30] sm:$0xff] %v6874_v53  ;;  %v6892_v35 = vadd.f32 %v6860_v34, %v12933_v33  ;;  %v6863_v60 = vld [vmem:[%s8934_s27 + $0xd8] sm:$0xff]  ;;  %v6893_v20 = vadd.f32 %v6861_v18, %v12936_v59  ;;  %v6864_v58 = vld [vmem:[%s8934_s27 + $0xe0] sm:$0xff]  ;;  %v6894_v49 = vadd.f32 %v6862_v63, %v12939_v22  ;;  %v6865_v62 = vld [vmem:[%s8934_s27 + $0xe8] sm:$0xff] }
 0xb00   : > { %6907 = vst [vmem:[%s8934_s27 + $0x38] sm:$0xff] %v6875_v55  ;;  %v6895_v14 = vadd.f32 %v6863_v60, %v12942_v19  ;;  %v6866_v16 = vld [vmem:[%s8934_s27 + $0xf0] sm:$0xff]  ;;  %v6896_v33 = vadd.f32 %v6864_v58, %v12945_v26  ;;  %v6867_v2 = vld [vmem:[%s8934_s27 + $0xf8] sm:$0xff]  ;;  %v6897_v59 = vadd.f32 %v6865_v62, %v12948_v25 }
 0xb01   : > { %6908 = vst [vmem:[%s8934_s27 + $0x40] sm:$0xff] %v6876_v23  ;;  %v6898_v42 = vadd.f32 %v6866_v16, %v12953_v9  ;;  %v6899_v22 = vadd.f32 %v6867_v2, %v12955_v41 }
 0xb02   : > { %6909 = vst [vmem:[%s8934_s27 + $0x48] sm:$0xff] %v6877_v31 }
 0xb03   : > { %6910 = vst [vmem:[%s8934_s27 + $0x50] sm:$0xff] %v6878_v39 }
 0xb04   : > { %6911 = vst [vmem:[%s8934_s27 + $0x58] sm:$0xff] %v6879_v12 }
 0xb05   : > { %6912 = vst [vmem:[%s8934_s27 + $0x60] sm:$0xff] %v6880_v30 }
 0xb06   : > { %6913 = vst [vmem:[%s8934_s27 + $0x68] sm:$0xff] %v6881_v5 }
 0xb07   : > { %6914 = vst [vmem:[%s8934_s27 + $0x70] sm:$0xff] %v6882_v40 }
 0xb08   : > { %6915 = vst [vmem:[%s8934_s27 + $0x78] sm:$0xff] %v6883_v17 }
 0xb09   : > { %6916 = vst [vmem:[%s8934_s27 + $0x80] sm:$0xff] %v6884_v48 }
 0xb0a   : > { %6917 = vst [vmem:[%s8934_s27 + $0x88] sm:$0xff] %v6885_v50 }
 0xb0b   : > { %6918 = vst [vmem:[%s8934_s27 + $0x90] sm:$0xff] %v6886_v52 }
 0xb0c   : > { %6919 = vst [vmem:[%s8934_s27 + $0x98] sm:$0xff] %v6887_v56 }
 0xb0d   : > { %6920 = vst [vmem:[%s8934_s27 + $0xa0] sm:$0xff] %v6888_v45 }
 0xb0e   : > { %6921 = vst [vmem:[%s8934_s27 + $0xa8] sm:$0xff] %v6889_v51 }
 0xb0f   : > { %6922 = vst [vmem:[%s8934_s27 + $0xb0] sm:$0xff] %v6890_v13 }
 0xb10   : > { %6923 = vst [vmem:[%s8934_s27 + $0xb8] sm:$0xff] %v6891_v38 }
 0xb11   : > { %6924 = vst [vmem:[%s8934_s27 + $0xc0] sm:$0xff] %v6892_v35 }
 0xb12   : > { %6925 = vst [vmem:[%s8934_s27 + $0xc8] sm:$0xff] %v6893_v20 }
 0xb13   : > { %6926 = vst [vmem:[%s8934_s27 + $0xd0] sm:$0xff] %v6894_v49 }
 0xb14   : > { %6927 = vst [vmem:[%s8934_s27 + $0xd8] sm:$0xff] %v6895_v14 }
 0xb15   : > { %6928 = vst [vmem:[%s8934_s27 + $0xe0] sm:$0xff] %v6896_v33 }
 0xb16   : > { %6929 = vst [vmem:[%s8934_s27 + $0xe8] sm:$0xff] %v6897_v59 }
 0xb17   : > { %6930 = vst [vmem:[%s8934_s27 + $0xf0] sm:$0xff] %v6898_v42 }
 0xb18   : > { %6931 = vst [vmem:[%s8934_s27 + $0xf8] sm:$0xff] %v6899_v22 }
 0xb19 PF: > { %s8078_s10 = sshll.u32 %s8880_s1, 8  ;;  %s6945_s25 = sshll.u32 %s8934_s27, 4  ;;  %s6946_s25 = int_to_ptr.vmem [resolvable:$true] %s6945_s25 }
 0xb1a   : > { %s6944_s24 = scalar_lea.hbm %s13160_s8, %s8078_s10  ;;  %s6933_s29 = scalar_lea.sflag [#allocation7], %s291_s30 }
 0xb1b   : > { %s6947_s26 = sshll.u32 %s6944_s24, 4  ;;  %s8746_s1 = scalar_lea.hbm %s13160_s8, 1024  ;;  %s6948_s26 = int_to_ptr.hbm [resolvable:$true] %s6947_s26 }
 0xb1c   : > { %s8740_s9 = sshra.s32 %s6948_s26, 4  ;;  %s8741_s9 = int_to_ptr.hbm [resolvable:$true] %s8740_s9 }
 0xb1d   : > { %s8742_s11 = scalar_lea.hbm %s8741_s9, 256  ;;  %p8747_p4 = scmp.lt.s32.totalorder %s8741_s9, %s13160_s8 }
 0xb1e   : > { %p8743_p1 = scmp.ne.s32.totalorder %s8741_s9, %s8742_s11  ;;  %p8748_p7 = scmp.lt.s32.totalorder %s8746_s1, %s8742_s11 }
 0xb20   : > { %p8744_p2 = pnand %p8743_p1, %p8897_p5  ;;  %p8749_p8 = por %p8748_p7, %p8747_p4 }
 0xb22   : > { %p8745_p3 = pneg %p8744_p2 }
 0xb24   : > { %p8750_p9 = pnand %p8749_p8, %p8745_p3 }
 0xb26   : > { %8753 = shalt.err (!%p8750_p9)
}
 0xb27   : > { %s8806_s30 = smov 128   ;;  %s8807_s27 = smov 8  }
 0xb28   : > { %8083 = dma.vmem_to_hbm [thread:$0]  (%p8897_p5), %s6946_s25, 4096, %s6948_s26, %s6933_s29, %s8806_s30, %s8806_s30, %s8807_s27  }
 0xb29 PF: > { %p8095_p10 = scmp.ge.s32.totalorder %s8794_s15, 2  ;;  %s6962_s10 = sand.u32 1, %s8782_s13  }
 0xb2a   : > { %s6963_s19 = scalar_lea.sflag [#allocation7], %s6962_s10 }
 0xb2b   : > { %p8090_p11 = pnand %p8095_p10, %p8901_p6 }
 0xb2d   : > { %p8091_p12 = pneg %p8090_p11 }
 0xb2f   : > { %8777 = dma.done.wait (%p8091_p12), %s6963_s19, 4096  }
 0xb30   : > { %8779 = vsyncadd (%p8091_p12), %s6963_s19, 4294963200  ;;  %p32_p13 = scmp.ge.s32.totalorder %s8884_s17, 6   ;;  %s13434_s13 = smov %s8786_s14 }
 0xb31   : > { %s13435_s14 = smov %s8790_s0  ;;  %s13436_s0 = smov %s8895_s20 }
 0xb32   : > { %s13437_s15 = smov %s8884_s17  ;;  %34 = sbr.rel (!%p32_p13) target bundleno = 11 (0xb), region = 151 }
 0xb37   :  { %6969 = vsyncpa [#allocation6], 1 }
 0xb38   :  { %6971 = vsyncpa [#allocation6 + $0x1], 1 }
 0xb39   :  { %6972 = vsyncpa [#allocation7], 1 }
 0xb3a   :  { %6974 = vsyncpa [#allocation7 + $0x1], 1 }

</bundles_post_ra>
